<compile_context>
chip_gen: v5e
topology: v5e:2x2
jax: 0.10.0
libtpu: 0.0.40
codegen_flags: <defaults>
</compile_context>

<pallas_src>
import functools

import jax
import jax.numpy as jnp
from jax.experimental import pallas as pl
from jax.experimental.pallas import tpu as pltpu

IMAGENET_MEAN = jnp.array([0.485, 0.456, 0.406], jnp.float32)
IMAGENET_STD = jnp.array([0.229, 0.224, 0.225], jnp.float32)


def _round_up(x, m):
    return (x + m - 1) // m * m


# ----------------------------------------------------------------------------
# 3x3 conv (row-tiled, halo via second input view, flat-pixel MXU matmuls)
# ----------------------------------------------------------------------------
def _pick_row_tile(H, Wp, Cin, Cout, budget=24 << 20):
    """Largest multiple-of-8 row tile dividing H whose working set fits `budget`.
    Budget is kept ~24 MiB so double-buffered tiles fit v7x's 64 MiB VMEM."""
    if H % 8:
        return None
    cands = [t for t in range(8, min(H, 64) + 1, 8) if H % t == 0]
    if not cands:
        return None
    for th in reversed(cands):
        est = ((th + 8) * Wp * Cin * 2          # bf16 halo-window staging scratch
               + th * Wp * Cout * 4             # f32 accumulator scratch
               + 2 * (th + 8) * Wp * Cin * 2    # double-buffered input blocks
               + 2 * th * Wp * Cout * 2         # double-buffered output block(s)
               + 9 * Cin * Cout * 2)            # weights
        if est <= budget:
            return th
    return cands[0]


def _conv3x3_kernel(xa_ref, xb_ref, w_ref, b_ref, o_ref, *rest,
                    TH, W, Wp, Cin, Cout, relu, fuse_relu_pool):
    if fuse_relu_pool:
        p_ref, scr_ref, acc_ref = rest
    else:
        scr_ref, acc_ref = rest

    nwin = TH * Wp
    # Stage the (TH + 8)-row halo window contiguously (pixel-major, channels last).
    # Both reshapes merge leading dims onto an 8-aligned sublane axis -> no relayout.
    scr_ref[0:nwin, :] = xa_ref[0].reshape(nwin, Cin)
    scr_ref[nwin:nwin + 8 * Wp, :] = xb_ref[0].reshape(8 * Wp, Cin)

    # 9 shifted bf16 matmuls over the flat pixel axis, f32 accumulation on the MXU.
    for t in range(9):
        dy, dx = divmod(t, 3)
        off = dy * Wp + dx
        contrib = jnp.dot(scr_ref[off:off + nwin, :], w_ref[t],
                          preferred_element_type=jnp.float32)
        if t == 0:
            acc_ref[...] = contrib
        else:
            acc_ref[...] += contrib

    acc = acc_ref[...] + b_ref[...]                       # (TH*Wp, Cout) f32
    feat = jnp.maximum(acc, 0.0) if relu else acc
    feat = feat.reshape(TH, Wp, Cout)[:, :W, :]           # drop junk columns
    o_ref[...] = feat.astype(o_ref.dtype).reshape(1, TH, W, Cout)

    if fuse_relu_pool:
        # Fused relu + 2x2/stride-2 maxpool epilogue (relu commutes with max).
        # H-pairs via an aligned leading-dim split, W-pairs via stride-2 reads.
        acc4 = acc.reshape(TH // 2, 2, Wp, Cout)
        hmax = jnp.maximum(acc4[:, 0], acc4[:, 1])        # (TH//2, Wp, Cout)
        nh = (TH // 2) * Wp
        acc_ref[0:nh, :] = hmax.reshape(nh, Cout)         # reuse accumulator as staging
        npix = (TH // 2) * (Wp // 2)
        e0 = acc_ref[pl.ds(0, npix, stride=2), :]
        e1 = acc_ref[pl.ds(1, npix, stride=2), :]
        pooled = jnp.maximum(jnp.maximum(e0, e1), 0.0)
        pooled = pooled.reshape(TH // 2, Wp // 2, Cout)[:, :W // 2, :]
        p_ref[...] = pooled.astype(p_ref.dtype).reshape(1, TH // 2, W // 2, Cout)


def _conv3x3_xla(x, w, b, *, relu, fuse_relu_pool, out_dtype):
    """Plain-XLA fallback (used only when shapes violate the Pallas tiling rules)."""
    y = jax.lax.conv_general_dilated(
        x.astype(jnp.float32), w.astype(jnp.float32),
        window_strides=(1, 1), padding="SAME",
        dimension_numbers=("NHWC", "HWIO", "NHWC")) + b.astype(jnp.float32)
    feat = (jnp.maximum(y, 0.0) if relu else y).astype(out_dtype)
    if not fuse_relu_pool:
        return feat
    r = jnp.maximum(y, 0.0)
    N, H, W, C = r.shape
    pooled = r.reshape(N, H // 2, 2, W // 2, 2, C).max(axis=(2, 4)).astype(out_dtype)
    return feat, pooled


def conv3x3(x, w, b, *, relu=False, fuse_relu_pool=False, out_dtype=jnp.bfloat16):
    """x: (N,H,W,Cin), w: (3,3,Cin,Cout), b: (Cout,).
    Returns conv+bias (pre-ReLU unless relu=True); with fuse_relu_pool also returns
    maxpool2x2(relu(conv+bias)) as a second, fused output."""
    N, H, W, Cin = x.shape
    Cout = w.shape[-1]
    Wp = _round_up(W + 2, 16 if fuse_relu_pool else 8)
    ok = (not fuse_relu_pool) or (W % 2 == 0)
    TH = _pick_row_tile(H, Wp, Cin, Cout) if ok else None
    if TH is None:
        return _conv3x3_xla(x, w, b, relu=relu, fuse_relu_pool=fuse_relu_pool,
                            out_dtype=out_dtype)
    HT = H // TH

    # TODO(synk): the zero-pad below still makes one extra HBM copy of the activation;
    # an in-kernel halo zero-fill would remove it.
    xp = jnp.pad(x.astype(jnp.bfloat16),
                 ((0, 0), (1, 7), (1, Wp - W - 1), (0, 0)))  # (N, H+8, Wp, Cin)
    w9 = w.reshape(9, Cin, Cout).astype(jnp.bfloat16)
    b2 = b.reshape(1, Cout).astype(jnp.float32)

    kernel = functools.partial(_conv3x3_kernel, TH=TH, W=W, Wp=Wp, Cin=Cin,
                               Cout=Cout, relu=relu, fuse_relu_pool=fuse_relu_pool)

    feat_spec = pl.BlockSpec((1, TH, W, Cout), lambda n, i: (n, i, 0, 0))
    if fuse_relu_pool:
        out_shape = (jax.ShapeDtypeStruct((N, H, W, Cout), out_dtype),
                     jax.ShapeDtypeStruct((N, H // 2, W // 2, Cout), out_dtype))
        out_specs = (feat_spec,
                     pl.BlockSpec((1, TH // 2, W // 2, Cout),
                                  lambda n, i: (n, i, 0, 0)))
    else:
        out_shape = jax.ShapeDtypeStruct((N, H, W, Cout), out_dtype)
        out_specs = feat_spec

    res = pl.pallas_call(
        kernel,
        out_shape=out_shape,
        grid_spec=pltpu.PrefetchScalarGridSpec(
            num_scalar_prefetch=0,
            grid=(N, HT),
            in_specs=[
                # body rows [i*TH, (i+1)*TH)
                pl.BlockSpec((1, TH, Wp, Cin), lambda n, i: (n, i, 0, 0)),
                # 8-row halo block starting at row (i+1)*TH of the same padded array
                pl.BlockSpec((1, 8, Wp, Cin),
                             lambda n, i: (n, (i + 1) * (TH // 8), 0, 0)),
                pl.BlockSpec((9, Cin, Cout), lambda n, i: (0, 0, 0)),
                pl.BlockSpec((1, Cout), lambda n, i: (0, 0)),
            ],
            out_specs=out_specs,
            scratch_shapes=[
                pltpu.VMEM(((TH + 8) * Wp, Cin), jnp.bfloat16),  # halo staging
                pltpu.VMEM((TH * Wp, Cout), jnp.float32),        # f32 accumulator
            ],
        ),
        compiler_params=pltpu.CompilerParams(
            dimension_semantics=("parallel", "parallel")),
    )(xp, xp, w9, b2)
    return res


# ----------------------------------------------------------------------------
# Gram matrix: row-tiled accumulation of (C x C) on the MXU
# ----------------------------------------------------------------------------
def _pick_gram_rows(H, W, C, budget=4 << 20):
    if H * W * C * 2 <= budget:
        return H
    for t in (256, 128, 64, 32, 16, 8, 4, 2, 1):
        if H % t == 0 and t * W * C * 2 <= budget:
            return t
    return 1


def _gram_kernel(x_ref, o_ref, acc_ref, *, THg, W, C, denom):
    k = pl.program_id(1)

    @pl.when(k == 0)
    def _():
        acc_ref[...] = jnp.zeros_like(acc_ref)

    m = x_ref[0].reshape(THg * W, C)
    acc_ref[...] += jax.lax.dot_general(m, m, (((0,), (0,)), ((), ())),
                                        preferred_element_type=jnp.float32)

    @pl.when(k == pl.num_programs(1) - 1)
    def _():
        o_ref[...] = (acc_ref[...] * (1.0 / denom)).reshape(1, C, C)


def gram_mat(f):
    """gram[n,i,j] = sum_hw f[n,h,w,i]*f[n,h,w,j] / (C*H*W)  -> (N, C, C) f32."""
    N, H, W, C = f.shape
    THg = _pick_gram_rows(H, W, C)
    HT = H // THg
    kernel = functools.partial(_gram_kernel, THg=THg, W=W, C=C,
                               denom=float(C * H * W))
    return pl.pallas_call(
        kernel,
        out_shape=jax.ShapeDtypeStruct((N, C, C), jnp.float32),
        grid_spec=pltpu.PrefetchScalarGridSpec(
            num_scalar_prefetch=0,
            grid=(N, HT),
            in_specs=[pl.BlockSpec((1, THg, W, C), lambda n, k: (n, k, 0, 0))],
            out_specs=pl.BlockSpec((1, C, C), lambda n, k: (n, 0, 0)),
            scratch_shapes=[pltpu.VMEM((C, C), jnp.float32)],
        ),
        compiler_params=pltpu.CompilerParams(
            dimension_semantics=("parallel", "arbitrary")),
    )(f)


# ----------------------------------------------------------------------------
# L1 ("mean") loss: row-tiled abs-diff partial sums into an SMEM scalar
# ----------------------------------------------------------------------------
def _pick_rows(M, C, itemsize, budget=4 << 20):
    if M * C * itemsize <= budget:
        return M
    for t in (4096, 2048, 1024, 512, 256, 128, 64, 32, 16, 8):
        if M % t == 0 and t * C * itemsize <= budget:
            return t
    return M


def _l1_kernel(a_ref, b_ref, o_ref):
    @pl.when(pl.program_id(0) == 0)
    def _():
        o_ref[0, 0] = jnp.float32(0.0)

    d = a_ref[...].astype(jnp.float32) - b_ref[...].astype(jnp.float32)
    o_ref[0, 0] += jnp.sum(jnp.abs(d))


def l1_mean(a, b):
    """torch.nn.L1Loss() semantics: mean(|a-b|) over all elements (f32 reduction)."""
    a2 = a.reshape(-1, a.shape[-1])
    b2 = b.reshape(-1, b.shape[-1])
    M, C = a2.shape
    TB = _pick_rows(M, C, max(a2.dtype.itemsize, b2.dtype.itemsize))
    s = pl.pallas_call(
        _l1_kernel,
        out_shape=jax.ShapeDtypeStruct((1, 1), jnp.float32),
        grid_spec=pltpu.PrefetchScalarGridSpec(
            num_scalar_prefetch=0,
            grid=(M // TB,),
            in_specs=[pl.BlockSpec((TB, C), lambda i: (i, 0)),
                      pl.BlockSpec((TB, C), lambda i: (i, 0))],
            out_specs=pl.BlockSpec((1, 1), lambda i: (0, 0),
                                   memory_space=pltpu.MemorySpace.SMEM),
        ),
        compiler_params=pltpu.CompilerParams(dimension_semantics=("arbitrary",)),
    )(a2, b2)
    return s[0, 0] / (M * C)


# ----------------------------------------------------------------------------
# Synthetic VGG19 prefix (conv1_1 .. conv2_2) + PerceptualLoss
# ----------------------------------------------------------------------------
_VGG_DEFS = [("conv1_1", 3, 64), ("conv1_2", 64, 64),
             ("conv2_1", 64, 128), ("conv2_2", 128, 128)]


def init_vgg_params(key):
    params = {}
    for name, cin, cout in _VGG_DEFS:
        key, kw, kb = jax.random.split(key, 3)
        scale = (2.0 / (9 * cin)) ** 0.5
        params[name] = (
            jax.random.normal(kw, (3, 3, cin, cout), jnp.float32) * scale,
            jax.random.normal(kb, (cout,), jnp.float32) * 0.01,
        )
    return params


def vgg_features(x_nchw, params, use_input_norm=True, range_norm=False):
    """Extract 'conv1_2' and 'conv2_2' features (pre-ReLU, as VGGFeatureExtractor)."""
    x = jnp.transpose(x_nchw, (0, 2, 3, 1)).astype(jnp.float32)  # NCHW -> NHWC
    if range_norm:
        x = (x + 1.0) / 2.0
    if use_input_norm:
        x = (x - IMAGENET_MEAN) / IMAGENET_STD

    # conv1_1 (Cin=3) + relu1_1 stay in XLA: 3 channels would waste ~40x of the
    # channels-last Pallas path; XLA fuses the normalization into this conv.
    w, b = params["conv1_1"]
    h = jax.lax.conv_general_dilated(
        x, w, window_strides=(1, 1), padding="SAME",
        dimension_numbers=("NHWC", "HWIO", "NHWC"))
    h = jnp.maximum(h + b, 0.0).astype(jnp.bfloat16)

    feats = {}
    w, b = params["conv1_2"]
    f, h = conv3x3(h, w, b, relu=False, fuse_relu_pool=True)  # conv1_2 (+fused relu1_2+pool1)
    feats["conv1_2"] = f
    w, b = params["conv2_1"]
    h = conv3x3(h, w, b, relu=True)                           # conv2_1 + relu2_1
    w, b = params["conv2_2"]
    feats["conv2_2"] = conv3x3(h, w, b, relu=False)           # conv2_2 (pre-relu)
    return feats


def perceptual_loss(x, gt, params, layer_weights,
                    perceptual_weight=1.0, style_weight=0.0,
                    use_input_norm=True, range_norm=False):
    """Mirrors PerceptualLoss.forward with criterion='l1'. Returns (percep, style)."""
    x_feats = vgg_features(x, params, use_input_norm, range_norm)
    gt_feats = vgg_features(jax.lax.stop_gradient(gt), params,
                            use_input_norm, range_norm)

    percep = None
    if perceptual_weight > 0:
        percep = jnp.float32(0.0)
        for k, lw in layer_weights.items():
            percep = percep + l1_mean(x_feats[k], gt_feats[k]) * lw
        percep = percep * perceptual_weight

    style = None
    if style_weight > 0:
        style = jnp.float32(0.0)
        for k, lw in layer_weights.items():
            style = style + l1_mean(gram_mat(x_feats[k]),
                                    gram_mat(gt_feats[k])) * lw
        style = style * style_weight
    # TODO(synk): only the default 'l1' criterion is implemented ('fro'/'l2'/'mse' omitted).
    return percep, style


if __name__ == "__main__":
    key = jax.random.PRNGKey(0)
    kx, kg, kp = jax.random.split(key, 3)

    N, C, H, W = 2, 3, 16, 16                       # (n, c, h, w) per the module docstring
    x = jax.random.normal(kx, (N, C, H, W), jnp.float32)
    gt = jax.random.normal(kg, (N, C, H, W), jnp.float32)

    params = init_vgg_params(kp)
    layer_weights = {"conv1_2": 0.5, "conv2_2": 1.0}

    # --- spot-check the Pallas kernels against plain-XLA references --------------
    h0 = jax.random.normal(jax.random.PRNGKey(1), (N, H, W, 64),
                           jnp.float32).astype(jnp.bfloat16)
    w12, b12 = params["conv1_2"]
    feat, pooled = conv3x3(h0, w12, b12, relu=False, fuse_relu_pool=True)
    ref = jax.lax.conv_general_dilated(
        h0.astype(jnp.float32), w12, (1, 1), "SAME",
        dimension_numbers=("NHWC", "HWIO", "NHWC")) + b12
    rp = jnp.maximum(ref, 0.0)
    ref_pool = rp.reshape(N, H // 2, 2, W // 2, 2, 64).max(axis=(2, 4))
    scale = float(jnp.max(jnp.abs(ref))) + 1e-6
    assert float(jnp.max(jnp.abs(feat.astype(jnp.float32) - ref))) / scale < 5e-2
    assert float(jnp.max(jnp.abs(pooled.astype(jnp.float32) - ref_pool))) / scale < 5e-2

    g = gram_mat(feat)
    f32 = feat.astype(jnp.float32)
    g_ref = jnp.einsum("nhwc,nhwd->ncd", f32, f32) / (64 * H * W)
    assert float(jnp.max(jnp.abs(g - g_ref))) / (float(jnp.max(jnp.abs(g_ref))) + 1e-6) < 5e-2

    b0 = jnp.flip(feat, axis=1)
    l_ref = jnp.mean(jnp.abs(f32 - b0.astype(jnp.float32)))
    l_ker = l1_mean(feat, b0)
    assert abs(float(l_ker) - float(l_ref)) / (abs(float(l_ref)) + 1e-6) < 1e-3

    # --- full forward -------------------------------------------------------------
    percep, style = perceptual_loss(x, gt, params, layer_weights,
                                    perceptual_weight=1.0, style_weight=1.0)
    percep = jax.block_until_ready(percep)
    style = jax.block_until_ready(style)
    assert bool(jnp.isfinite(percep)) and bool(jnp.isfinite(style))
    print("KERNEL_OK")
</pallas_src>

<mosaic_0001>
module attributes {stable_mosaic.version = 11 : i64} {
  func.func @_conv3x3_kernel(%arg0: i32, %arg1: i32, %arg2: memref<1x16x32x64xbf16, #tpu.memory_space<vmem>>, %arg3: memref<1x8x32x64xbf16, #tpu.memory_space<vmem>>, %arg4: memref<9x64x64xbf16, #tpu.memory_space<vmem>>, %arg5: memref<1x64xf32, #tpu.memory_space<vmem>>, %arg6: memref<1x16x16x64xbf16, #tpu.memory_space<vmem>>, %arg7: memref<1x8x8x64xbf16, #tpu.memory_space<vmem>>, %arg8: memref<768x64xbf16, #tpu.memory_space<vmem>>, %arg9: memref<512x64xf32, #tpu.memory_space<vmem>>) attributes {dimension_semantics = [#tpu.dimension_semantics<parallel>, #tpu.dimension_semantics<parallel>], iteration_bounds = array<i64: 2, 1>, scalar_prefetch = 0 : i64, scratch_operands = 2 : i64, tpu.core_type = #tpu.core_type<tc>, window_params = [{transform_indices = @transform_0, window_bounds = array<i64: 1, 16, 32, 64>}, {transform_indices = @transform_1, window_bounds = array<i64: 1, 8, 32, 64>}, {pipeline_mode = #tpu.pipeline_mode<synchronous>, transform_indices = @transform_2, window_bounds = array<i64: 9, 64, 64>}, {pipeline_mode = #tpu.pipeline_mode<synchronous>, transform_indices = @transform_3, window_bounds = array<i64: 1, 64>}, {transform_indices = @transform_4, window_bounds = array<i64: 1, 16, 16, 64>}, {transform_indices = @transform_5, window_bounds = array<i64: 1, 8, 8, 64>}]} {
    %c0 = arith.constant 0 : index
    %c0_0 = arith.constant 0 : index
    %c0_1 = arith.constant 0 : index
    %c0_2 = arith.constant 0 : index
    %0 = vector.load %arg2[%c0, %c0_0, %c0_1, %c0_2] : memref<1x16x32x64xbf16, #tpu.memory_space<vmem>>, vector<1x16x32x64xbf16>
    %1 = vector.shape_cast %0 : vector<1x16x32x64xbf16> to vector<16x32x64xbf16>
    %2 = vector.shape_cast %1 : vector<16x32x64xbf16> to vector<512x64xbf16>
    %c0_3 = arith.constant 0 : index
    %c0_4 = arith.constant 0 : index
    %3 = vector.load %arg8[%c0_3, %c0_4] : memref<768x64xbf16, #tpu.memory_space<vmem>>, vector<512x64xbf16>
    tpu.vector_store %arg8[%c0_3, %c0_4], %2 {strides = array<i32>} : memref<768x64xbf16, #tpu.memory_space<vmem>>, vector<512x64xbf16>,
    %c0_5 = arith.constant 0 : index
    %c0_6 = arith.constant 0 : index
    %c0_7 = arith.constant 0 : index
    %c0_8 = arith.constant 0 : index
    %4 = vector.load %arg3[%c0_5, %c0_6, %c0_7, %c0_8] : memref<1x8x32x64xbf16, #tpu.memory_space<vmem>>, vector<1x8x32x64xbf16>
    %5 = vector.shape_cast %4 : vector<1x8x32x64xbf16> to vector<8x32x64xbf16>
    %6 = vector.shape_cast %5 : vector<8x32x64xbf16> to vector<256x64xbf16>
    %c512 = arith.constant 512 : index
    %c0_9 = arith.constant 0 : index
    %7 = vector.load %arg8[%c512, %c0_9] : memref<768x64xbf16, #tpu.memory_space<vmem>>, vector<256x64xbf16>
    tpu.vector_store %arg8[%c512, %c0_9], %6 {strides = array<i32>} : memref<768x64xbf16, #tpu.memory_space<vmem>>, vector<256x64xbf16>,
    %c0_10 = arith.constant 0 : index
    %c0_11 = arith.constant 0 : index
    %8 = vector.load %arg8[%c0_10, %c0_11] : memref<768x64xbf16, #tpu.memory_space<vmem>>, vector<512x64xbf16>
    %c0_12 = arith.constant 0 : index
    %c0_13 = arith.constant 0 : index
    %c0_14 = arith.constant 0 : index
    %9 = vector.load %arg4[%c0_12, %c0_13, %c0_14] : memref<9x64x64xbf16, #tpu.memory_space<vmem>>, vector<1x64x64xbf16>
    %10 = vector.shape_cast %9 : vector<1x64x64xbf16> to vector<64x64xbf16>
    %cst = arith.constant dense<0.000000e+00> : vector<512x64xf32>
    %11 = tpu.matmul %8, %10, %cst {dimension_numbers = #tpu.dot_dimension_numbers<[1], [0], [0], [1], [0, 0, 1, 1], [], []>} : vector<512x64xbf16>, vector<64x64xbf16>, vector<512x64xf32> -> vector<512x64xf32>
    %c0_15 = arith.constant 0 : index
    %c0_16 = arith.constant 0 : index
    %12 = vector.load %arg9[%c0_15, %c0_16] : memref<512x64xf32, #tpu.memory_space<vmem>>, vector<512x64xf32>
    tpu.vector_store %arg9[%c0_15, %c0_16], %11 {strides = array<i32>} : memref<512x64xf32, #tpu.memory_space<vmem>>, vector<512x64xf32>,
    %c1 = arith.constant 1 : index
    %c0_17 = arith.constant 0 : index
    %13 = vector.load %arg8[%c1, %c0_17] : memref<768x64xbf16, #tpu.memory_space<vmem>>, vector<512x64xbf16>
    %c1_18 = arith.constant 1 : index
    %c0_19 = arith.constant 0 : index
    %c0_20 = arith.constant 0 : index
    %14 = vector.load %arg4[%c1_18, %c0_19, %c0_20] : memref<9x64x64xbf16, #tpu.memory_space<vmem>>, vector<1x64x64xbf16>
    %15 = vector.shape_cast %14 : vector<1x64x64xbf16> to vector<64x64xbf16>
    %cst_21 = arith.constant dense<0.000000e+00> : vector<512x64xf32>
    %16 = tpu.matmul %13, %15, %cst_21 {dimension_numbers = #tpu.dot_dimension_numbers<[1], [0], [0], [1], [0, 0, 1, 1], [], []>} : vector<512x64xbf16>, vector<64x64xbf16>, vector<512x64xf32> -> vector<512x64xf32>
    %c0_22 = arith.constant 0 : index
    %c0_23 = arith.constant 0 : index
    %17 = vector.load %arg9[%c0_22, %c0_23] : memref<512x64xf32, #tpu.memory_space<vmem>>, vector<512x64xf32>
    %18 = arith.addf %17, %16 : vector<512x64xf32>
    %c0_24 = arith.constant 0 : index
    %c0_25 = arith.constant 0 : index
    %19 = vector.load %arg9[%c0_24, %c0_25] : memref<512x64xf32, #tpu.memory_space<vmem>>, vector<512x64xf32>
    tpu.vector_store %arg9[%c0_24, %c0_25], %18 {strides = array<i32>} : memref<512x64xf32, #tpu.memory_space<vmem>>, vector<512x64xf32>,
    %c2 = arith.constant 2 : index
    %c0_26 = arith.constant 0 : index
    %20 = vector.load %arg8[%c2, %c0_26] : memref<768x64xbf16, #tpu.memory_space<vmem>>, vector<512x64xbf16>
    %c2_27 = arith.constant 2 : index
    %c0_28 = arith.constant 0 : index
    %c0_29 = arith.constant 0 : index
    %21 = vector.load %arg4[%c2_27, %c0_28, %c0_29] : memref<9x64x64xbf16, #tpu.memory_space<vmem>>, vector<1x64x64xbf16>
    %22 = vector.shape_cast %21 : vector<1x64x64xbf16> to vector<64x64xbf16>
    %cst_30 = arith.constant dense<0.000000e+00> : vector<512x64xf32>
    %23 = tpu.matmul %20, %22, %cst_30 {dimension_numbers = #tpu.dot_dimension_numbers<[1], [0], [0], [1], [0, 0, 1, 1], [], []>} : vector<512x64xbf16>, vector<64x64xbf16>, vector<512x64xf32> -> vector<512x64xf32>
    %c0_31 = arith.constant 0 : index
    %c0_32 = arith.constant 0 : index
    %24 = vector.load %arg9[%c0_31, %c0_32] : memref<512x64xf32, #tpu.memory_space<vmem>>, vector<512x64xf32>
    %25 = arith.addf %24, %23 : vector<512x64xf32>
    %c0_33 = arith.constant 0 : index
    %c0_34 = arith.constant 0 : index
    %26 = vector.load %arg9[%c0_33, %c0_34] : memref<512x64xf32, #tpu.memory_space<vmem>>, vector<512x64xf32>
    tpu.vector_store %arg9[%c0_33, %c0_34], %25 {strides = array<i32>} : memref<512x64xf32, #tpu.memory_space<vmem>>, vector<512x64xf32>,
    %c32 = arith.constant 32 : index
    %c0_35 = arith.constant 0 : index
    %27 = vector.load %arg8[%c32, %c0_35] : memref<768x64xbf16, #tpu.memory_space<vmem>>, vector<512x64xbf16>
    %c3 = arith.constant 3 : index
    %c0_36 = arith.constant 0 : index
    %c0_37 = arith.constant 0 : index
    %28 = vector.load %arg4[%c3, %c0_36, %c0_37] : memref<9x64x64xbf16, #tpu.memory_space<vmem>>, vector<1x64x64xbf16>
    %29 = vector.shape_cast %28 : vector<1x64x64xbf16> to vector<64x64xbf16>
    %cst_38 = arith.constant dense<0.000000e+00> : vector<512x64xf32>
    %30 = tpu.matmul %27, %29, %cst_38 {dimension_numbers = #tpu.dot_dimension_numbers<[1], [0], [0], [1], [0, 0, 1, 1], [], []>} : vector<512x64xbf16>, vector<64x64xbf16>, vector<512x64xf32> -> vector<512x64xf32>
    %c0_39 = arith.constant 0 : index
    %c0_40 = arith.constant 0 : index
    %31 = vector.load %arg9[%c0_39, %c0_40] : memref<512x64xf32, #tpu.memory_space<vmem>>, vector<512x64xf32>
    %32 = arith.addf %31, %30 : vector<512x64xf32>
    %c0_41 = arith.constant 0 : index
    %c0_42 = arith.constant 0 : index
    %33 = vector.load %arg9[%c0_41, %c0_42] : memref<512x64xf32, #tpu.memory_space<vmem>>, vector<512x64xf32>
    tpu.vector_store %arg9[%c0_41, %c0_42], %32 {strides = array<i32>} : memref<512x64xf32, #tpu.memory_space<vmem>>, vector<512x64xf32>,
    %c33 = arith.constant 33 : index
    %c0_43 = arith.constant 0 : index
    %34 = vector.load %arg8[%c33, %c0_43] : memref<768x64xbf16, #tpu.memory_space<vmem>>, vector<512x64xbf16>
    %c4 = arith.constant 4 : index
    %c0_44 = arith.constant 0 : index
    %c0_45 = arith.constant 0 : index
    %35 = vector.load %arg4[%c4, %c0_44, %c0_45] : memref<9x64x64xbf16, #tpu.memory_space<vmem>>, vector<1x64x64xbf16>
    %36 = vector.shape_cast %35 : vector<1x64x64xbf16> to vector<64x64xbf16>
    %cst_46 = arith.constant dense<0.000000e+00> : vector<512x64xf32>
    %37 = tpu.matmul %34, %36, %cst_46 {dimension_numbers = #tpu.dot_dimension_numbers<[1], [0], [0], [1], [0, 0, 1, 1], [], []>} : vector<512x64xbf16>, vector<64x64xbf16>, vector<512x64xf32> -> vector<512x64xf32>
    %c0_47 = arith.constant 0 : index
    %c0_48 = arith.constant 0 : index
    %38 = vector.load %arg9[%c0_47, %c0_48] : memref<512x64xf32, #tpu.memory_space<vmem>>, vector<512x64xf32>
    %39 = arith.addf %38, %37 : vector<512x64xf32>
    %c0_49 = arith.constant 0 : index
    %c0_50 = arith.constant 0 : index
    %40 = vector.load %arg9[%c0_49, %c0_50] : memref<512x64xf32, #tpu.memory_space<vmem>>, vector<512x64xf32>
    tpu.vector_store %arg9[%c0_49, %c0_50], %39 {strides = array<i32>} : memref<512x64xf32, #tpu.memory_space<vmem>>, vector<512x64xf32>,
    %c34 = arith.constant 34 : index
    %c0_51 = arith.constant 0 : index
    %41 = vector.load %arg8[%c34, %c0_51] : memref<768x64xbf16, #tpu.memory_space<vmem>>, vector<512x64xbf16>
    %c5 = arith.constant 5 : index
    %c0_52 = arith.constant 0 : index
    %c0_53 = arith.constant 0 : index
    %42 = vector.load %arg4[%c5, %c0_52, %c0_53] : memref<9x64x64xbf16, #tpu.memory_space<vmem>>, vector<1x64x64xbf16>
    %43 = vector.shape_cast %42 : vector<1x64x64xbf16> to vector<64x64xbf16>
    %cst_54 = arith.constant dense<0.000000e+00> : vector<512x64xf32>
    %44 = tpu.matmul %41, %43, %cst_54 {dimension_numbers = #tpu.dot_dimension_numbers<[1], [0], [0], [1], [0, 0, 1, 1], [], []>} : vector<512x64xbf16>, vector<64x64xbf16>, vector<512x64xf32> -> vector<512x64xf32>
    %c0_55 = arith.constant 0 : index
    %c0_56 = arith.constant 0 : index
    %45 = vector.load %arg9[%c0_55, %c0_56] : memref<512x64xf32, #tpu.memory_space<vmem>>, vector<512x64xf32>
    %46 = arith.addf %45, %44 : vector<512x64xf32>
    %c0_57 = arith.constant 0 : index
    %c0_58 = arith.constant 0 : index
    %47 = vector.load %arg9[%c0_57, %c0_58] : memref<512x64xf32, #tpu.memory_space<vmem>>, vector<512x64xf32>
    tpu.vector_store %arg9[%c0_57, %c0_58], %46 {strides = array<i32>} : memref<512x64xf32, #tpu.memory_space<vmem>>, vector<512x64xf32>,
    %c64 = arith.constant 64 : index
    %c0_59 = arith.constant 0 : index
    %48 = vector.load %arg8[%c64, %c0_59] : memref<768x64xbf16, #tpu.memory_space<vmem>>, vector<512x64xbf16>
    %c6 = arith.constant 6 : index
    %c0_60 = arith.constant 0 : index
    %c0_61 = arith.constant 0 : index
    %49 = vector.load %arg4[%c6, %c0_60, %c0_61] : memref<9x64x64xbf16, #tpu.memory_space<vmem>>, vector<1x64x64xbf16>
    %50 = vector.shape_cast %49 : vector<1x64x64xbf16> to vector<64x64xbf16>
    %cst_62 = arith.constant dense<0.000000e+00> : vector<512x64xf32>
    %51 = tpu.matmul %48, %50, %cst_62 {dimension_numbers = #tpu.dot_dimension_numbers<[1], [0], [0], [1], [0, 0, 1, 1], [], []>} : vector<512x64xbf16>, vector<64x64xbf16>, vector<512x64xf32> -> vector<512x64xf32>
    %c0_63 = arith.constant 0 : index
    %c0_64 = arith.constant 0 : index
    %52 = vector.load %arg9[%c0_63, %c0_64] : memref<512x64xf32, #tpu.memory_space<vmem>>, vector<512x64xf32>
    %53 = arith.addf %52, %51 : vector<512x64xf32>
    %c0_65 = arith.constant 0 : index
    %c0_66 = arith.constant 0 : index
    %54 = vector.load %arg9[%c0_65, %c0_66] : memref<512x64xf32, #tpu.memory_space<vmem>>, vector<512x64xf32>
    tpu.vector_store %arg9[%c0_65, %c0_66], %53 {strides = array<i32>} : memref<512x64xf32, #tpu.memory_space<vmem>>, vector<512x64xf32>,
    %c65 = arith.constant 65 : index
    %c0_67 = arith.constant 0 : index
    %55 = vector.load %arg8[%c65, %c0_67] : memref<768x64xbf16, #tpu.memory_space<vmem>>, vector<512x64xbf16>
    %c7 = arith.constant 7 : index
    %c0_68 = arith.constant 0 : index
    %c0_69 = arith.constant 0 : index
    %56 = vector.load %arg4[%c7, %c0_68, %c0_69] : memref<9x64x64xbf16, #tpu.memory_space<vmem>>, vector<1x64x64xbf16>
    %57 = vector.shape_cast %56 : vector<1x64x64xbf16> to vector<64x64xbf16>
    %cst_70 = arith.constant dense<0.000000e+00> : vector<512x64xf32>
    %58 = tpu.matmul %55, %57, %cst_70 {dimension_numbers = #tpu.dot_dimension_numbers<[1], [0], [0], [1], [0, 0, 1, 1], [], []>} : vector<512x64xbf16>, vector<64x64xbf16>, vector<512x64xf32> -> vector<512x64xf32>
    %c0_71 = arith.constant 0 : index
    %c0_72 = arith.constant 0 : index
    %59 = vector.load %arg9[%c0_71, %c0_72] : memref<512x64xf32, #tpu.memory_space<vmem>>, vector<512x64xf32>
    %60 = arith.addf %59, %58 : vector<512x64xf32>
    %c0_73 = arith.constant 0 : index
    %c0_74 = arith.constant 0 : index
    %61 = vector.load %arg9[%c0_73, %c0_74] : memref<512x64xf32, #tpu.memory_space<vmem>>, vector<512x64xf32>
    tpu.vector_store %arg9[%c0_73, %c0_74], %60 {strides = array<i32>} : memref<512x64xf32, #tpu.memory_space<vmem>>, vector<512x64xf32>,
    %c66 = arith.constant 66 : index
    %c0_75 = arith.constant 0 : index
    %62 = vector.load %arg8[%c66, %c0_75] : memref<768x64xbf16, #tpu.memory_space<vmem>>, vector<512x64xbf16>
    %c8 = arith.constant 8 : index
    %c0_76 = arith.constant 0 : index
    %c0_77 = arith.constant 0 : index
    %63 = vector.load %arg4[%c8, %c0_76, %c0_77] : memref<9x64x64xbf16, #tpu.memory_space<vmem>>, vector<1x64x64xbf16>
    %64 = vector.shape_cast %63 : vector<1x64x64xbf16> to vector<64x64xbf16>
    %cst_78 = arith.constant dense<0.000000e+00> : vector<512x64xf32>
    %65 = tpu.matmul %62, %64, %cst_78 {dimension_numbers = #tpu.dot_dimension_numbers<[1], [0], [0], [1], [0, 0, 1, 1], [], []>} : vector<512x64xbf16>, vector<64x64xbf16>, vector<512x64xf32> -> vector<512x64xf32>
    %c0_79 = arith.constant 0 : index
    %c0_80 = arith.constant 0 : index
    %66 = vector.load %arg9[%c0_79, %c0_80] : memref<512x64xf32, #tpu.memory_space<vmem>>, vector<512x64xf32>
    %67 = arith.addf %66, %65 : vector<512x64xf32>
    %c0_81 = arith.constant 0 : index
    %c0_82 = arith.constant 0 : index
    %68 = vector.load %arg9[%c0_81, %c0_82] : memref<512x64xf32, #tpu.memory_space<vmem>>, vector<512x64xf32>
    tpu.vector_store %arg9[%c0_81, %c0_82], %67 {strides = array<i32>} : memref<512x64xf32, #tpu.memory_space<vmem>>, vector<512x64xf32>,
    %c0_83 = arith.constant 0 : index
    %c0_84 = arith.constant 0 : index
    %69 = vector.load %arg9[%c0_83, %c0_84] : memref<512x64xf32, #tpu.memory_space<vmem>>, vector<512x64xf32>
    %c0_85 = arith.constant 0 : index
    %c0_86 = arith.constant 0 : index
    %70 = vector.load %arg5[%c0_85, %c0_86] : memref<1x64xf32, #tpu.memory_space<vmem>>, vector<1x64xf32>
    %71 = vector.broadcast %70 : vector<1x64xf32> to vector<512x64xf32>
    %72 = arith.addf %69, %71 : vector<512x64xf32>
    %73 = vector.shape_cast %72 : vector<512x64xf32> to vector<16x32x64xf32>
    %74 = vector.extract_strided_slice %73 {offsets = [0, 0, 0], sizes = [16, 16, 64], strides = [1, 1, 1]} : vector<16x32x64xf32> to vector<16x16x64xf32>
    %75 = arith.truncf %74 : vector<16x16x64xf32> to vector<16x16x64xbf16>
    %76 = vector.shape_cast %75 : vector<16x16x64xbf16> to vector<1x16x16x64xbf16>
    %c0_87 = arith.constant 0 : index
    %c0_88 = arith.constant 0 : index
    %c0_89 = arith.constant 0 : index
    %c0_90 = arith.constant 0 : index
    %77 = vector.load %arg6[%c0_87, %c0_88, %c0_89, %c0_90] : memref<1x16x16x64xbf16, #tpu.memory_space<vmem>>, vector<1x16x16x64xbf16>
    tpu.vector_store %arg6[%c0_87, %c0_88, %c0_89, %c0_90], %76 {strides = array<i32>} : memref<1x16x16x64xbf16, #tpu.memory_space<vmem>>, vector<1x16x16x64xbf16>,
    %78 = vector.shape_cast %72 : vector<512x64xf32> to vector<8x2x32x64xf32>
    %79 = vector.extract_strided_slice %78 {offsets = [0, 0, 0, 0], sizes = [8, 1, 32, 64], strides = [1, 1, 1, 1]} : vector<8x2x32x64xf32> to vector<8x1x32x64xf32>
    %80 = vector.shape_cast %79 : vector<8x1x32x64xf32> to vector<8x32x64xf32>
    %81 = vector.extract_strided_slice %78 {offsets = [0, 1, 0, 0], sizes = [8, 1, 32, 64], strides = [1, 1, 1, 1]} : vector<8x2x32x64xf32> to vector<8x1x32x64xf32>
    %82 = vector.shape_cast %81 : vector<8x1x32x64xf32> to vector<8x32x64xf32>
    %83 = arith.maximumf %80, %82 : vector<8x32x64xf32>
    %84 = vector.shape_cast %83 : vector<8x32x64xf32> to vector<256x64xf32>
    %c0_91 = arith.constant 0 : index
    %c0_92 = arith.constant 0 : index
    %85 = vector.load %arg9[%c0_91, %c0_92] : memref<512x64xf32, #tpu.memory_space<vmem>>, vector<256x64xf32>
    tpu.vector_store %arg9[%c0_91, %c0_92], %84 {strides = array<i32>} : memref<512x64xf32, #tpu.memory_space<vmem>>, vector<256x64xf32>,
    %c0_93 = arith.constant 0 : index
    %c0_94 = arith.constant 0 : index
    %86 = tpu.strided_load %arg9[%c0_93, %c0_94] {strides = array<i32: 2, 1>} : memref<512x64xf32, #tpu.memory_space<vmem>>, vector<128x64xf32>
    %c1_95 = arith.constant 1 : index
    %c0_96 = arith.constant 0 : index
    %87 = tpu.strided_load %arg9[%c1_95, %c0_96] {strides = array<i32: 2, 1>} : memref<512x64xf32, #tpu.memory_space<vmem>>, vector<128x64xf32>
    %88 = arith.maximumf %86, %87 : vector<128x64xf32>
    %cst_97 = arith.constant 0.000000e+00 : f32
    %89 = vector.broadcast %cst_97 : f32 to vector<128x64xf32>
    %90 = arith.maximumf %88, %89 : vector<128x64xf32>
    %91 = vector.shape_cast %90 : vector<128x64xf32> to vector<8x16x64xf32>
    %92 = vector.extract_strided_slice %91 {offsets = [0, 0, 0], sizes = [8, 8, 64], strides = [1, 1, 1]} : vector<8x16x64xf32> to vector<8x8x64xf32>
    %93 = arith.truncf %92 : vector<8x8x64xf32> to vector<8x8x64xbf16>
    %94 = vector.shape_cast %93 : vector<8x8x64xbf16> to vector<1x8x8x64xbf16>
    %c0_98 = arith.constant 0 : index
    %c0_99 = arith.constant 0 : index
    %c0_100 = arith.constant 0 : index
    %c0_101 = arith.constant 0 : index
    %95 = vector.load %arg7[%c0_98, %c0_99, %c0_100, %c0_101] : memref<1x8x8x64xbf16, #tpu.memory_space<vmem>>, vector<1x8x8x64xbf16>
    tpu.vector_store %arg7[%c0_98, %c0_99, %c0_100, %c0_101], %94 {strides = array<i32>} : memref<1x8x8x64xbf16, #tpu.memory_space<vmem>>, vector<1x8x8x64xbf16>,
    return
  }
  func.func @transform_0(%arg0: i32, %arg1: i32) -> (i32, i32, i32, i32) {
    %c0_i32 = arith.constant 0 : i32
    %c0_i32_0 = arith.constant 0 : i32
    %c0_i32_1 = arith.constant 0 : i32
    return %arg0, %arg1, %c0_i32, %c0_i32_0 : i32, i32, i32, i32
  }
  func.func @transform_1(%arg0: i32, %arg1: i32) -> (i32, i32, i32, i32) {
    %c1_i32 = arith.constant 1 : i32
    %0 = arith.addi %arg1, %c1_i32 : i32
    %c2_i32 = arith.constant 2 : i32
    %1 = arith.muli %0, %c2_i32 : i32
    %c0_i32 = arith.constant 0 : i32
    %c0_i32_0 = arith.constant 0 : i32
    %c0_i32_1 = arith.constant 0 : i32
    return %arg0, %1, %c0_i32, %c0_i32_0 : i32, i32, i32, i32
  }
  func.func @transform_2(%arg0: i32, %arg1: i32) -> (i32, i32, i32) {
    %c0_i32 = arith.constant 0 : i32
    %c0_i32_0 = arith.constant 0 : i32
    %c0_i32_1 = arith.constant 0 : i32
    %c0_i32_2 = arith.constant 0 : i32
    return %c0_i32, %c0_i32_0, %c0_i32_1 : i32, i32, i32
  }
  func.func @transform_3(%arg0: i32, %arg1: i32) -> (i32, i32) {
    %c0_i32 = arith.constant 0 : i32
    %c0_i32_0 = arith.constant 0 : i32
    %c0_i32_1 = arith.constant 0 : i32
    return %c0_i32, %c0_i32_0 : i32, i32
  }
  func.func @transform_4(%arg0: i32, %arg1: i32) -> (i32, i32, i32, i32) {
    %c0_i32 = arith.constant 0 : i32
    %c0_i32_0 = arith.constant 0 : i32
    %c0_i32_1 = arith.constant 0 : i32
    return %arg0, %arg1, %c0_i32, %c0_i32_0 : i32, i32, i32, i32
  }
  func.func @transform_5(%arg0: i32, %arg1: i32) -> (i32, i32, i32, i32) {
    %c0_i32 = arith.constant 0 : i32
    %c0_i32_0 = arith.constant 0 : i32
    %c0_i32_1 = arith.constant 0 : i32
    return %arg0, %arg1, %c0_i32, %c0_i32_0 : i32, i32, i32, i32
  }
}

</mosaic_0001>

<bundles_post_ra>
// kernel: tpu_custom_call.1
= control target key start
LH: loop header
LB: loop body
LE: loop exit
PB: predicated region body
PF: predicated region fallthrough
CT: control target
= control target key end

     0   :  { %s13509_s0 = inlined_call_operand.hbm [shape: bf16[2,24,32,64], index: 0, kind: input, shape index: {}]   ;;  %s13510_s1 = inlined_call_operand.hbm [shape: bf16[2,24,32,64], index: 1, kind: input, shape index: {}]   ;;  %s13511_s2 = inlined_call_operand.hbm [shape: bf16[9,64,64], index: 2, kind: input, shape index: {}]   ;;  %s13512_s3 = inlined_call_operand.vmem [shape: f32[1,64], index: 3, kind: input, shape index: {}]   ;;  %s13513_s4 = inlined_call_operand.hbm [shape: bf16[2,16,16,64], index: 4, kind: output, shape index: {0}]   ;;  %s13514_s5 = inlined_call_operand.hbm [shape: bf16[2,8,8,64], index: 5, kind: output, shape index: {1}]  }
   0x1   :  { %13522 = sst [smem:[#allocation22_spill]] %s13509_s0 }
   0x2   :  { %13523 = sst [smem:[#allocation23_spill]] %s13511_s2 }
   0x3   :  { %11 = vsyncpa [#allocation5], 0 }
   0x4   :  { %13 = vsyncpa [#allocation5 + $0x1], 0 }
   0x5   :  { %14 = vsyncpa [#allocation8], 0 }
   0x6   :  { %16 = vsyncpa [#allocation8 + $0x1], 0 }
   0x7   :  { %17 = vsyncpa [#allocation6], 0 }
   0x8   :  { %19 = vsyncpa [#allocation6 + $0x1], 0 }
   0x9   :  { %20 = vsyncpa [#allocation12], 0 }
   0xa   :  { %22 = vsyncpa [#allocation12 + $0x1], 0  ;;  %s10670_s18 = smov 0   ;;  %s10672_s19 = smov 0  }
   0xb   :  { %s10674_s20 = smov 0   ;;  %s10676_s21 = smov 0  }
   0xc   :  { %s10678_s22 = smov 0   ;;  %s10680_s23 = smov 0  }
   0xd LB: > { %13524 = sst [smem:[#allocation18_spill]] %s10621_s20  ;;  %s10701_s24 = sadd.s32 4294967295, %s10633_s23   ;;  %s10633_s23 = sphi %s10680_s23, %s28_s23   ;;  %s10629_s22 = sphi %s10678_s22, %s13540_s22   ;;  %s10625_s21 = sphi %s10676_s21, %s13539_s21   ;;  %s10621_s20 = sphi %s10674_s20, %s13538_s20   ;;  %s10617_s19 = sphi %s10672_s19, %s13542_s19   ;;  %s10613_s18 = sphi %s10670_s18, %s13541_s18  }
   0xe   : > { %13525 = sst [smem:[#allocation19_spill]] %s10629_s22  ;;  %s8385_s25 = sadd.s32 4294967294, %s10633_s23  }
   0xf   : > { %p62_p0 = scmp.ne.s32.totalorder %s10617_s19, %s10613_s18  ;;  %p63_p1 = scmp.eq.s32.totalorder %s10701_s24, 0 }
  0x10   : > { %p162_p2 = scmp.eq.s32.totalorder %s10701_s24, 1  ;;  %p168_p3 = scmp.eq.s32.totalorder %s8385_s25, 1 }
  0x11   : > { %p10710_p4 = por %p63_p1, %p62_p0  ;;  %p8386_p5 = scmp.ge.s32.totalorder %s10633_s23, 1 }
  0x12   : > { %p10715_p6 = por %p168_p3, %p62_p0  ;;  %p203_p7 = scmp.lt.s32.totalorder %s10633_s23, 3 }
  0x13   : > { %s13528_s2 = sld [smem:[#allocation23_spill]]  ;;  %s10635_s7 = smov [#allocation9]  }
  0x14   : > { %p10723_p8 = pnand %p8386_p5, %p203_p7  ;;  %s216_s8 = sshll.u32 %s10635_s7, 4  ;;  %s217_s8 = int_to_ptr.vmem [resolvable:$true] %s216_s8 }
  0x15   : > { %p8388_p11 = scmp.ge.s32.totalorder %s10633_s23, 2  ;;  %s13515_s9 = smov 64  }
  0x16   : > { %p10342_p9 = pneg %p10723_p8  ;;  %s13517_s10 = smov 4  }
  0x17   : > { %s40_s11 = sadd.s32 1, %s10629_s22  ;;  %s49_s12 = sadd.s32 1, %s10621_s20 }
  0x18   : > { %p10343_p10 = pnand %p10342_p9, %p63_p1  ;;  %p42_p12 = scmp.ge.s32.totalorder %s40_s11, 2 }
  0x19   : > { %s214_s30 = sshll.u32 %s13528_s2, 4  ;;  %p56_p13 = scmp.ne.s32.totalorder %s10621_s20, %s10617_s19  ;;  %s215_s30 = int_to_ptr.hbm [resolvable:$true] %s214_s30 }
  0x1a   : > { %10345 = dma.hbm_to_vmem [thread:$0]  (!%p10343_p10), %s215_s30, 4608, %s217_s8, [#allocation8], %s13515_s9, %s13515_s9, %s13517_s10  }
  0x1b   : > { %p57_p0 = scmp.eq.s32.totalorder %s10633_s23, 0  ;;  %s13544_s11 = smov (%p42_p12, %s40_s11), 0 }
  0x1c   : > { %13530 = sst [smem:[#allocation20_spill]] %s13544_s11  ;;  %p10744_p5 = por %p162_p2, %p56_p13 }
  0x1d   : > { %p58_p3 = por %p57_p0, %p56_p13  ;;  %s44_s14 = ssub.s32 %s10629_s22, %s13544_s11 }
  0x1e   : > { %p10361_p7 = scmp.lt.s32.totalorder %s10633_s23, 2  ;;  %p47_p9 = scmp.eq.s32.totalorder %s44_s14, 0 }
  0x1f   : > { %s233_s15 = sand.u32 1, %s10621_s20   ;;  %s10329_s25 = smul.u32 384, %s10629_s22 }
  0x20   : > { %s8389_s16 = sshll.u32 %s233_s15, 8  ;;  %p10756_p10 = pnand %p10361_p7, %p58_p3 }
  0x21   : > { %s10753_s17 = scalar_select %p47_p9, %s10621_s20, %s49_s12  }
  0x22   : > { %s237_s28 = scalar_lea.vmem [#allocation4], %s8389_s16  ;;  %s13534_s0 = sld [smem:[#allocation22_spill]] }
  0x23   : > { %13532 = sst [smem:[#allocation21_spill]] %s10753_s17  ;;  %s257_s29 = sshll.u32 %s237_s28, 4  ;;  %s258_s29 = int_to_ptr.vmem [resolvable:$true] %s257_s29 }
  0x24   : > { %s267_s14 = sand.u32 1, %s10633_s23   ;;  %s234_s2 = scalar_lea.sflag [#allocation5], %s233_s15 }
  0x25   : > { %s13535_s12 = smov 4   ;;  %s13536_s11 = smov 64  }
  0x26   : > { %s8391_s16 = sshll.u32 %s233_s15, 7  ;;  %s8283_s17 = scalar_lea.hbm %s13510_s1, %s10329_s25 }
  0x27   : > { %s8284_s20 = scalar_lea.hbm %s8283_s17, 256  ;;  %s271_s7 = scalar_lea.vmem [#allocation7], %s8391_s16 }
  0x28   : > { %s252_s9 = scalar_lea.hbm %s13534_s0, %s10329_s25  ;;  %s284_s8 = sshll.u32 %s271_s7, 4  ;;  %s285_s8 = int_to_ptr.vmem [resolvable:$true] %s284_s8 }
  0x29   : > { %s255_s10 = sshll.u32 %s252_s9, 4  ;;  %s282_s0 = sshll.u32 %s8284_s20, 4  ;;  %s256_s10 = int_to_ptr.hbm [resolvable:$true] %s255_s10  ;;  %s283_s0 = int_to_ptr.hbm [resolvable:$true] %s282_s0 }
  0x2a   : > { %10349 = dma.hbm_to_vmem [thread:$0]  (!%p10756_p10), %s256_s10, 4096, %s258_s29, %s234_s2, %s13536_s11, %s13536_s11, %s13535_s12  }
  0x2b   : > { %s268_s9 = scalar_lea.sflag [#allocation8], %s267_s14  ;;  %296 = sbr.rel (%p10723_p8) target bundleno = 1389 (0x56d), region = 36 }
  0x2c   : > { %10352 = dma.hbm_to_vmem [thread:$0]  (!%p10756_p10), %s283_s0, 2048, %s285_s8, %s268_s9, %s13536_s11, %s13536_s11, %s13535_s12  }
  0x2d   : > { %s10780_s2 = sand.u32 (!%p10723_p8), 1, %s10617_s19  }
  0x2e   : > { %s8394_s22 = sshll.u32 (!%p10723_p8), %s10780_s2, 8  ;;  %s299_s10 = scalar_lea.sflag (!%p10723_p8), [#allocation5], %s10780_s2 }
  0x2f   : > { %s10784_s20 = scalar_lea.vmem (!%p10723_p8), [#allocation4], %s8394_s22 }
  0x30   : > { %10592 = dma.done.wait (%p10710_p4), %s299_s10, 4096  }
  0x31   : > { %10594 = vsyncadd (%p10710_p4), %s299_s10, 4294963200  ;;  %s308_s0 = sand.u32 1, %s10701_s24   ;;  %s8395_s6 = sshll.u32 %s10780_s2, 7 }
  0x32   : > { %s309_s11 = scalar_lea.sflag [#allocation8], %s308_s0  ;;  %s10794_s15 = scalar_lea.vmem [#allocation7], %s8395_s6 }
  0x33   : > { %10596 = dma.done.wait (%p10710_p4), %s309_s11, 2048  }
  0x34   : > { %10598 = vsyncadd (%p10710_p4), %s309_s11, 4294965248 }
  0x35   : > { %10600 = dma.done.wait (%p63_p1), [#allocation8], 4608  }
  0x36   : > { %10602 = vsyncadd (%p63_p1), [#allocation8], 4294962688  ;;  %vm431_vm0 = vcmask 519168   ;;  %v10026_v0 = vld [vmem:[#allocation9 + $0x18] sm:$0xff]  ;;  %v10025_v1 = vld [vmem:[#allocation9 + $0x10] sm:$0xff]  ;;  %vm816_vm1 = vcmask 523264  }
  0x37   : > { %10317 = vmatpush.bf16.msra.mxu1 %v10026_v0  ;;  %10318 = vmatpush.bf16.msra.mxu2 %v10026_v0  ;;  %v10024_v2 = vld [vmem:[#allocation9 + $0x8] sm:$0xff]  ;;  %v10023_v3 = vld [vmem:[#allocation9] sm:$0xff]  ;;  %v10062_v4 = vld [vmem:[#allocation9 + $0x38] sm:$0xff]  ;;  %vm1383_vm2 = vsmask.f32 7424  ;;  %vm2362_vm3 = vcmask 1046528  }
  0x38   : > { %10319 = vmatpush.bf16.msra.mxu3 %v10026_v0  ;;  %917 = vmatpush.bf16.msra.mxu0 %v10026_v0  ;;  %v10098_v5 = vld [vmem:[#allocation9 + $0x58] sm:$0xff]  ;;  %v383_v7 = vld [vmem:[%s10784_s20 + $0x40] sm:$0xf]  ;;  %v384_v8 = vld [vmem:[%s10784_s20 + $0x44] sm:$0xf]  ;;  %s12265_s17 = scalar_lea.vmem [#allocation10], %s8395_s6 }
  0x39   : > { %v10134_v6 = vld [vmem:[#allocation9 + $0x78] sm:$0xff]  ;;  %v399_v10 = vld [vmem:[%s10784_s20 + $0x80] sm:$0xf]  ;;  %448 = vst.msk [vmem:[#allocation2 + $0x40] sm:$0xf] %vm431_vm0, %v383_v7  ;;  %v10061_v27 = vld [vmem:[#allocation9 + $0x30] sm:$0xff] }
  0x3a   : > { %v10170_v9 = vld [vmem:[#allocation9 + $0x98] sm:$0xff]  ;;  %v400_v11 = vld [vmem:[%s10784_s20 + $0x84] sm:$0xf]  ;;  %449 = vst.msk [vmem:[#allocation2 + $0x44] sm:$0xf] %vm431_vm0, %v384_v8  ;;  %v10097_v28 = vld [vmem:[#allocation9 + $0x50] sm:$0xff] }
  0x3b   : > { %10320 = vmatpush.bf16.msra.mxu1 %v10025_v1  ;;  %10321 = vmatpush.bf16.msra.mxu2 %v10025_v1  ;;  %v415_v12 = vld [vmem:[%s10784_s20 + $0xc0] sm:$0xf]  ;;  %464 = vst.msk [vmem:[#allocation2 + $0x80] sm:$0xf] %vm431_vm0, %v399_v10  ;;  %v416_v13 = vld [vmem:[%s10784_s20 + $0xc4] sm:$0xf] }
  0x3c   : > { %10322 = vmatpush.bf16.msra.mxu3 %v10025_v1  ;;  %918 = vmatpush.bf16.msra.mxu0 %v10025_v1  ;;  %465 = vst.msk [vmem:[#allocation2 + $0x84] sm:$0xf] %vm431_vm0, %v400_v11  ;;  %v385_v14 = vld [vmem:[%s10784_s20 + $0x48] sm:$0xf]  ;;  %v386_v15 = vld [vmem:[%s10784_s20 + $0x4c] sm:$0xf] }
  0x3d   : > { %480 = vst.msk [vmem:[#allocation2 + $0xc0] sm:$0xf] %vm431_vm0, %v415_v12  ;;  %v401_v16 = vld [vmem:[%s10784_s20 + $0x88] sm:$0xf]  ;;  %v402_v17 = vld [vmem:[%s10784_s20 + $0x8c] sm:$0xf] }
  0x3e   : > { %481 = vst.msk [vmem:[#allocation2 + $0xc4] sm:$0xf] %vm431_vm0, %v416_v13  ;;  %v367_v18 = vld [vmem:[%s10784_s20] sm:$0xf]  ;;  %v368_v20 = vld [vmem:[%s10784_s20 + $0x4] sm:$0xf] }
  0x3f   : > { %10323 = vmatpush.bf16.msra.mxu1 %v10024_v2  ;;  %10324 = vmatpush.bf16.msra.mxu2 %v10024_v2  ;;  %450 = vst.msk [vmem:[#allocation2 + $0x48] sm:$0xf] %vm431_vm0, %v385_v14  ;;  %v417_v21 = vld [vmem:[%s10784_s20 + $0xc8] sm:$0xf]  ;;  %v418_v23 = vld [vmem:[%s10784_s20 + $0xcc] sm:$0xf] }
  0x40   : > { %10325 = vmatpush.bf16.msra.mxu3 %v10024_v2  ;;  %919 = vmatpush.bf16.msra.mxu0 %v10024_v2  ;;  %451 = vst.msk [vmem:[#allocation2 + $0x4c] sm:$0xf] %vm431_vm0, %v386_v15  ;;  %v387_v24 = vld [vmem:[%s10784_s20 + $0x50] sm:$0xf]  ;;  %v388_v25 = vld [vmem:[%s10784_s20 + $0x54] sm:$0xf] }
  0x41   : > { %v9999_v19 = vld [vmem:[#allocation2 + $0x40] sm:$0xff]  ;;  %466 = vst.msk [vmem:[#allocation2 + $0x88] sm:$0xf] %vm431_vm0, %v401_v16  ;;  %v403_v29 = vld [vmem:[%s10784_s20 + $0x90] sm:$0xf]  ;;  %v10060_v61 = vld [vmem:[#allocation9 + $0x28] sm:$0xff] }
  0x42   : > { %467 = vst.msk [vmem:[#allocation2 + $0x8c] sm:$0xf] %vm431_vm0, %v402_v17  ;;  %v404_v30 = vld [vmem:[%s10784_s20 + $0x94] sm:$0xf]  ;;  %v369_v32 = vld [vmem:[%s10784_s20 + $0x8] sm:$0xf] }
  0x43   : > { %10326 = vmatpush.bf16.msra.mxu1 %v10023_v3  ;;  %10327 = vmatpush.bf16.msra.mxu2 %v10023_v3  ;;  %v10007_v22 = vld [vmem:[#allocation2 + $0x80] sm:$0xff]  ;;  %432 = vst.msk [vmem:[#allocation2] sm:$0xf] %vm431_vm0, %v367_v18  ;;  %v10133_v31 = vld [vmem:[#allocation9 + $0x70] sm:$0xff]  ;;  %v370_v33 = vld [vmem:[%s10784_s20 + $0xc] sm:$0xf] }
  0x44   : > { %10328 = vmatpush.bf16.msra.mxu3 %v10023_v3  ;;  %920 = vmatpush.bf16.msra.mxu0 %v10023_v3  ;;  %433 = vst.msk [vmem:[#allocation2 + $0x4] sm:$0xf] %vm431_vm0, %v368_v20  ;;  %v419_v34 = vld [vmem:[%s10784_s20 + $0xd0] sm:$0xf]  ;;  %v420_v36 = vld [vmem:[%s10784_s20 + $0xd4] sm:$0xf] }
  0x45   : > { %v10015_v26 = vld [vmem:[#allocation2 + $0xc0] sm:$0xff]  ;;  %482 = vst.msk [vmem:[#allocation2 + $0xc8] sm:$0xf] %vm431_vm0, %v417_v21  ;;  %v389_v37 = vld [vmem:[%s10784_s20 + $0x58] sm:$0xf]  ;;  %v10169_v48 = vld [vmem:[#allocation9 + $0x90] sm:$0xff] }
  0x46   : > { %8551 = vmatmul.msk.bf16.vlgmr.msra.gmra.mxu1 %vm816_vm1, %v9999_v19  ;;  %8559 = vmatmul.msk.bf16.vlgmr.msra.gmra.mxu2 %vm816_vm1, %v10007_v22  ;;  %483 = vst.msk [vmem:[#allocation2 + $0xcc] sm:$0xf] %vm431_vm0, %v418_v23  ;;  %v390_v38 = vld [vmem:[%s10784_s20 + $0x5c] sm:$0xf]  ;;  %v405_v39 = vld [vmem:[%s10784_s20 + $0x98] sm:$0xf] }
  0x47   : > { %1768 = vmatpush.bf16.msrb.mxu1 %v10062_v4  ;;  %2552 = vmatpush.bf16.msrb.mxu2 %v10098_v5  ;;  %452 = vst.msk [vmem:[#allocation2 + $0x50] sm:$0xf] %vm431_vm0, %v387_v24  ;;  %v10000_v40 = vld [vmem:[#allocation2 + $0x48] sm:$0xff]  ;;  %v406_v41 = vld [vmem:[%s10784_s20 + $0x9c] sm:$0xf]  ;;  %s8398_s25 = sshll.u32 %s10780_s2, 5 }
  0x48   : > { %3266 = vmatpush.bf16.msrb.mxu3 %v10134_v6  ;;  %4244 = vmatpush.bf16.msrb.mxu0 %v10170_v9  ;;  %453 = vst.msk [vmem:[#allocation2 + $0x54] sm:$0xf] %vm431_vm0, %v388_v25  ;;  %v371_v43 = vld [vmem:[%s10784_s20 + $0x10] sm:$0xf]  ;;  %v372_v44 = vld [vmem:[%s10784_s20 + $0x14] sm:$0xf] }
  0x49   : > { %8567 = vmatmul.msk.bf16.vlgmr.msra.gmra.mxu3 %vm816_vm1, %v10015_v26  ;;  %468 = vst.msk [vmem:[#allocation2 + $0x90] sm:$0xf] %vm431_vm0, %v403_v29  ;;  %v10008_v42 = vld [vmem:[#allocation2 + $0x88] sm:$0xff]  ;;  %v421_v45 = vld [vmem:[%s10784_s20 + $0xd8] sm:$0xf]  ;;  %v10059_v25 = vld [vmem:[#allocation9 + $0x20] sm:$0xff] }
  0x4a   : > { %469 = vst.msk [vmem:[#allocation2 + $0x94] sm:$0xf] %vm431_vm0, %v404_v30  ;;  %v422_v47 = vld [vmem:[%s10784_s20 + $0xdc] sm:$0xf]  ;;  %v391_v49 = vld [vmem:[%s10784_s20 + $0x60] sm:$0xf] }
  0x4b   : > { %1769 = vmatpush.bf16.msrb.mxu1 %v10061_v27  ;;  %2553 = vmatpush.bf16.msrb.mxu2 %v10097_v28  ;;  %v9991_v35 = vld [vmem:[#allocation2] sm:$0xff]  ;;  %434 = vst.msk [vmem:[#allocation2 + $0x8] sm:$0xf] %vm431_vm0, %v369_v32  ;;  %v373_v56 = vld [vmem:[%s10784_s20 + $0x18] sm:$0xf]  ;;  %v10096_v62 = vld [vmem:[#allocation9 + $0x48] sm:$0xff] }
  0x4c   : > { %3267 = vmatpush.bf16.msrb.mxu3 %v10133_v31  ;;  %435 = vst.msk [vmem:[#allocation2 + $0xc] sm:$0xf] %vm431_vm0, %v370_v33  ;;  %8543 = vmatmul.msk.bf16.vlgmr.msra.gmra.mxu0 %vm816_vm1, %v9991_v35  ;;  %v392_v50 = vld [vmem:[%s10784_s20 + $0x64] sm:$0xf]  ;;  %v407_v52 = vld [vmem:[%s10784_s20 + $0xa0] sm:$0xf] }
  0x4d   : > { %484 = vst.msk [vmem:[#allocation2 + $0xd0] sm:$0xf] %vm431_vm0, %v419_v34  ;;  %v10016_v46 = vld [vmem:[#allocation2 + $0xc8] sm:$0xff]  ;;  %4245 = vmatpush.bf16.msrb.mxu0 %v10169_v48  ;;  %v408_v53 = vld [vmem:[%s10784_s20 + $0xa4] sm:$0xf]  ;;  %s12439_s29 = scalar_lea.vmem [#allocation11], %s8398_s25 }
  0x4e   : > { %485 = vst.msk [vmem:[#allocation2 + $0xd4] sm:$0xf] %vm431_vm0, %v420_v36  ;;  %v374_v57 = vld [vmem:[%s10784_s20 + $0x1c] sm:$0xf]  ;;  %v423_v58 = vld [vmem:[%s10784_s20 + $0xe0] sm:$0xf] }
  0x4f   : > { %454 = vst.msk [vmem:[#allocation2 + $0x58] sm:$0xf] %vm431_vm0, %v389_v37  ;;  %v10001_v54 = vld [vmem:[#allocation2 + $0x50] sm:$0xff]  ;;  %v424_v59 = vld [vmem:[%s10784_s20 + $0xe4] sm:$0xf]  ;;  %1770 = vmatpush.bf16.msrb.mxu1 %v10060_v61  ;;  %v10132_v63 = vld [vmem:[#allocation9 + $0x68] sm:$0xff]  ;;  %2554 = vmatpush.bf16.msrb.mxu2 %v10096_v62 }
  0x50   : > { %455 = vst.msk [vmem:[#allocation2 + $0x5c] sm:$0xf] %vm431_vm0, %v390_v38  ;;  %v393_v0 = vld [vmem:[%s10784_s20 + $0x68] sm:$0xf]  ;;  %v394_v1 = vld [vmem:[%s10784_s20 + $0x6c] sm:$0xf]  ;;  %3268 = vmatpush.bf16.msrb.mxu3 %v10132_v63 }
  0x51   : > { %470 = vst.msk [vmem:[#allocation2 + $0x98] sm:$0xf] %vm431_vm0, %v405_v39  ;;  %v10009_v55 = vld [vmem:[#allocation2 + $0x90] sm:$0xff]  ;;  %v409_v3 = vld [vmem:[%s10784_s20 + $0xa8] sm:$0xf]  ;;  %v10095_v26 = vld [vmem:[#allocation9 + $0x40] sm:$0xff] }
  0x52   : > { %471 = vst.msk [vmem:[#allocation2 + $0x9c] sm:$0xf] %vm431_vm0, %v406_v41  ;;  %v410_v4 = vld [vmem:[%s10784_s20 + $0xac] sm:$0xf]  ;;  %v375_v7 = vld [vmem:[%s10784_s20 + $0x20] sm:$0xf] }
  0x53   : > { %436 = vst.msk [vmem:[#allocation2 + $0x10] sm:$0xf] %vm431_vm0, %v371_v43  ;;  %v9992_v51 = vld [vmem:[#allocation2 + $0x8] sm:$0xff]  ;;  %v376_v8 = vld [vmem:[%s10784_s20 + $0x24] sm:$0xf]  ;;  %1771 = vmatpush.bf16.msrb.mxu1 %v10059_v25  ;;  %2555 = vmatpush.bf16.msrb.mxu2 %v10095_v26  ;;  %s10315_s8 = sshll.u32 %s10625_s21, 7 }
  0x54   : > { %437 = vst.msk [vmem:[#allocation2 + $0x14] sm:$0xf] %vm431_vm0, %v372_v44  ;;  %v425_v9 = vld [vmem:[%s10784_s20 + $0xe8] sm:$0xf]  ;;  %v426_v10 = vld [vmem:[%s10784_s20 + $0xec] sm:$0xf]  ;;  %s8202_s10 = scalar_lea.hbm %s13513_s4, %s10315_s8 }
  0x55   : > { %486 = vst.msk [vmem:[#allocation2 + $0xd8] sm:$0xf] %vm431_vm0, %v421_v45  ;;  %v10017_v60 = vld [vmem:[#allocation2 + $0xd0] sm:$0xff]  ;;  %v10168_v12 = vld [vmem:[#allocation9 + $0x88] sm:$0xff]  ;;  %v10131_v27 = vld [vmem:[#allocation9 + $0x60] sm:$0xff]  ;;  %s8205_s0 = sshll.u32 %s8202_s10, 4  ;;  %s8206_s0 = int_to_ptr.hbm [resolvable:$true] %s8205_s0 }
  0x56   : > { %8552 = vmatmul.msk.bf16.gmra.mxu1 %vm816_vm1, %v10000_v40  ;;  %8560 = vmatmul.msk.bf16.gmra.mxu2 %vm816_vm1, %v10008_v42  ;;  %487 = vst.msk [vmem:[#allocation2 + $0xdc] sm:$0xf] %vm431_vm0, %v422_v47  ;;  %v395_v13 = vld [vmem:[%s10784_s20 + $0x70] sm:$0xf]  ;;  %v396_v14 = vld [vmem:[%s10784_s20 + $0x74] sm:$0xf] }
  0x57   : > { %456 = vst.msk [vmem:[#allocation2 + $0x60] sm:$0xf] %vm431_vm0, %v391_v49  ;;  %v10002_v5 = vld [vmem:[#allocation2 + $0x58] sm:$0xff]  ;;  %4246 = vmatpush.bf16.msrb.mxu0 %v10168_v12  ;;  %v411_v16 = vld [vmem:[%s10784_s20 + $0xb0] sm:$0xf]  ;;  %3269 = vmatpush.bf16.msrb.mxu3 %v10131_v27  ;;  %v10167_v43 = vld [vmem:[#allocation9 + $0x80] sm:$0xff] }
  0x58   : > { %457 = vst.msk [vmem:[#allocation2 + $0x64] sm:$0xf] %vm431_vm0, %v392_v50  ;;  %v412_v17 = vld [vmem:[%s10784_s20 + $0xb4] sm:$0xf]  ;;  %v377_v20 = vld [vmem:[%s10784_s20 + $0x28] sm:$0xf] }
  0x59   : > { %8568 = vmatmul.msk.bf16.gmra.mxu3 %vm816_vm1, %v10016_v46  ;;  %472 = vst.msk [vmem:[#allocation2 + $0xa0] sm:$0xf] %vm431_vm0, %v407_v52  ;;  %v10010_v6 = vld [vmem:[#allocation2 + $0x98] sm:$0xff]  ;;  %v378_v21 = vld [vmem:[%s10784_s20 + $0x2c] sm:$0xf]  ;;  %s8183_s6 = scalar_lea.sflag [#allocation6], %s10780_s2 }
  0x5a   : > { %473 = vst.msk [vmem:[#allocation2 + $0xa4] sm:$0xf] %vm431_vm0, %v408_v53  ;;  %v427_v22 = vld [vmem:[%s10784_s20 + $0xf0] sm:$0xf]  ;;  %v428_v23 = vld [vmem:[%s10784_s20 + $0xf4] sm:$0xf] }
  0x5b   : > { %438 = vst.msk [vmem:[#allocation2 + $0x18] sm:$0xf] %vm431_vm0, %v373_v56  ;;  %v9993_v2 = vld [vmem:[#allocation2 + $0x10] sm:$0xff]  ;;  %v397_v28 = vld [vmem:[%s10784_s20 + $0x78] sm:$0xf]  ;;  %4247 = vmatpush.bf16.msrb.mxu0 %v10167_v43  ;;  %v10064_v63 = vld [vmem:[#allocation2 + $0x8] sm:$0xff] }
  0x5c   : > { %8544 = vmatmul.msk.bf16.gmra.mxu0 %vm816_vm1, %v9992_v51  ;;  %439 = vst.msk [vmem:[#allocation2 + $0x1c] sm:$0xf] %vm431_vm0, %v374_v57  ;;  %v398_v29 = vld [vmem:[%s10784_s20 + $0x7c] sm:$0xf]  ;;  %v413_v31 = vld [vmem:[%s10784_s20 + $0xb8] sm:$0xf] }
  0x5d   : > { %488 = vst.msk [vmem:[#allocation2 + $0xe0] sm:$0xf] %vm431_vm0, %v423_v58  ;;  %v10018_v11 = vld [vmem:[#allocation2 + $0xd8] sm:$0xff]  ;;  %v379_v35 = vld [vmem:[%s10784_s20 + $0x30] sm:$0xf]  ;;  %v10027_v51 = vld [vmem:[#allocation2] sm:$0xff] }
  0x5e   : > { %489 = vst.msk [vmem:[#allocation2 + $0xe4] sm:$0xf] %vm431_vm0, %v424_v59  ;;  %v414_v32 = vld [vmem:[%s10784_s20 + $0xbc] sm:$0xf]  ;;  %v380_v36 = vld [vmem:[%s10784_s20 + $0x34] sm:$0xf] }
  0x5f   : > { %458 = vst.msk [vmem:[#allocation2 + $0x68] sm:$0xf] %vm431_vm0, %v393_v0  ;;  %v10003_v18 = vld [vmem:[#allocation2 + $0x60] sm:$0xff]  ;;  %v429_v37 = vld [vmem:[%s10784_s20 + $0xf8] sm:$0xf]  ;;  %v1387_v56 = vshll.u32 %v10027_v51, 16 }
  0x60   : > { %459 = vst.msk [vmem:[#allocation2 + $0x6c] sm:$0xf] %vm431_vm0, %v394_v1  ;;  %v430_v38 = vld [vmem:[%s10784_s20 + $0xfc] sm:$0xf]  ;;  %v381_v44 = vld [vmem:[%s10784_s20 + $0x38] sm:$0xf] }
  0x61   : > { %474 = vst.msk [vmem:[#allocation2 + $0xa8] sm:$0xf] %vm431_vm0, %v409_v3  ;;  %v10011_v19 = vld [vmem:[#allocation2 + $0xa0] sm:$0xff]  ;;  %v382_v45 = vld [vmem:[%s10784_s20 + $0x3c] sm:$0xf]  ;;  %v1385_v59 = vshrl.u32 %v10027_v51, 16 }
  0x62   : > { %475 = vst.msk [vmem:[#allocation2 + $0xac] sm:$0xf] %vm431_vm0, %v410_v4  ;;  %v10206_v47 = vld [vmem:[#allocation9 + $0xb8] sm:$0xff]  ;;  %v8753_v57 = vld [vmem:[#allocation2] sm:$0xe]  ;;  %v10135_v1 = vld [vmem:[#allocation2 + $0x10] sm:$0xff] }
  0x63   : > { %440 = vst.msk [vmem:[#allocation2 + $0x20] sm:$0xf] %vm431_vm0, %v375_v7  ;;  %v9994_v15 = vld [vmem:[#allocation2 + $0x18] sm:$0xff]  ;;  %5027 = vmatpush.bf16.msra.mxu1 %v10206_v47  ;;  %v10063_v58 = vld [vmem:[#allocation2] sm:$0xf0]  ;;  %v3863_v7 = vshll.u32 %v10135_v1, 16 }
  0x64   : > { %441 = vst.msk [vmem:[#allocation2 + $0x24] sm:$0xf] %vm431_vm0, %v376_v8  ;;  %v10242_v49 = vld [vmem:[#allocation9 + $0xd8] sm:$0xff]  ;;  %v8754_v0 = vor.u32 %v10063_v58, %v8753_v57  ;;  %s8203_s20 = sshll.u32 %s12265_s17, 4  ;;  %s10525_s11 = sshra.s32 %s8206_s0, 4  ;;  %s13441_s20 = int_to_ptr.vmem [resolvable:$true] %s8203_s20  ;;  %s10526_s11 = int_to_ptr.hbm [resolvable:$true] %s10525_s11 }
  0x65   : > { %490 = vst.msk [vmem:[#allocation2 + $0xe8] sm:$0xf] %vm431_vm0, %v425_v9  ;;  %v10019_v24 = vld [vmem:[#allocation2 + $0xe0] sm:$0xff]  ;;  %5741 = vmatpush.bf16.msra.mxu2 %v10242_v49  ;;  %v10278_v53 = vld [vmem:[#allocation9 + $0xf8] sm:$0xff]  ;;  %v3865_v12 = vrot.slane %v3863_v7, 1  ;;  %s10531_s25 = scalar_lea.hbm %s13513_s4, 256  ;;  %p10532_p8 = scmp.lt.s32.totalorder %s10526_s11, %s13513_s4 }
  0x66   : > { %8553 = vmatmul.msk.bf16.gmra.mxu1 %vm816_vm1, %v10001_v54  ;;  %8561 = vmatmul.msk.bf16.gmra.mxu2 %vm816_vm1, %v10009_v55  ;;  %491 = vst.msk [vmem:[#allocation2 + $0xec] sm:$0xf] %vm431_vm0, %v426_v10  ;;  %v10028_v55 = vld [vmem:[#allocation2 + $0x8] sm:$0xff]  ;;  %v2363_v4 = vrot.slane %v8754_v0, 1 }
  0x67   : > { %460 = vst.msk [vmem:[#allocation2 + $0x70] sm:$0xf] %vm431_vm0, %v395_v13  ;;  %v10004_v33 = vld [vmem:[#allocation2 + $0x68] sm:$0xff]  ;;  %6719 = vmatpush.bf16.msra.mxu3 %v10278_v53  ;;  %v1392_v61 = vshll.u32 %v10028_v55, 16 }
  0x68   : > { %461 = vst.msk [vmem:[#allocation2 + $0x74] sm:$0xf] %vm431_vm0, %v396_v14  ;;  %v10314_v14 = vld [vmem:[#allocation9 + $0x118] sm:$0xff] }
  0x69   : > { %8569 = vmatmul.msk.bf16.gmra.mxu3 %vm816_vm1, %v10017_v60  ;;  %476 = vst.msk [vmem:[#allocation2 + $0xb0] sm:$0xf] %vm431_vm0, %v411_v16  ;;  %v10012_v34 = vld [vmem:[#allocation2 + $0xa8] sm:$0xff]  ;;  %v1389_v60 = vrot.slane %v1387_v56, 1  ;;  %v1394_v3 = vrot.slane %v1392_v61, 1  ;;  %v10029_v16 = vld [vmem:[#allocation2 + $0x10] sm:$0xff]  ;;  %7502 = vmatpush.bf16.msra.mxu0 %v10314_v14 }
  0x6a   : > { %477 = vst.msk [vmem:[#allocation2 + $0xb4] sm:$0xf] %vm431_vm0, %v412_v17 }
  0x6b   : > { %442 = vst.msk [vmem:[#allocation2 + $0x28] sm:$0xf] %vm431_vm0, %v377_v20  ;;  %v9995_v30 = vld [vmem:[#allocation2 + $0x20] sm:$0xff] }
  0x6c   : > { %8545 = vmatmul.msk.bf16.gmra.mxu0 %vm816_vm1, %v9993_v2  ;;  %443 = vst.msk [vmem:[#allocation2 + $0x2c] sm:$0xf] %vm431_vm0, %v378_v21  ;;  %v1390_v2 = vor.u32 %v1389_v60, %v1385_v59  ;;  %v1396_v21 = vshrl.u32 %v10028_v55, 16  ;;  %v10031_v0 = vld [vmem:[#allocation2 + $0x20] sm:$0xff] }
  0x6d   : > { %492 = vst.msk [vmem:[#allocation2 + $0xf0] sm:$0xf] %vm431_vm0, %v427_v22  ;;  %v10020_v39 = vld [vmem:[#allocation2 + $0xe8] sm:$0xff]  ;;  %v1400_v22 = vshll.u32 %v10029_v16, 16 }
  0x6e   : > { %493 = vst.msk [vmem:[#allocation2 + $0xf4] sm:$0xf] %vm431_vm0, %v428_v23  ;;  %v1395_v9 = vsel %vm1383_vm2, %v1390_v2, %v1394_v3  ;;  %v1398_v27 = vor.u32 %v1396_v21, %v1394_v3 }
  0x6f   : > { %462 = vst.msk [vmem:[#allocation2 + $0x78] sm:$0xf] %vm431_vm0, %v397_v28  ;;  %v10005_v41 = vld [vmem:[#allocation2 + $0x70] sm:$0xff]  ;;  %v1402_v28 = vrot.slane %v1400_v22, 1 }
  0x70   : > { %463 = vst.msk [vmem:[#allocation2 + $0x7c] sm:$0xf] %vm431_vm0, %v398_v29 }
  0x71   : > { %478 = vst.msk [vmem:[#allocation2 + $0xb8] sm:$0xf] %vm431_vm0, %v413_v31  ;;  %v10013_v42 = vld [vmem:[#allocation2 + $0xb0] sm:$0xff] }
  0x72   : > { %479 = vst.msk [vmem:[#allocation2 + $0xbc] sm:$0xf] %vm431_vm0, %v414_v32 }
  0x73   : > { %444 = vst.msk [vmem:[#allocation2 + $0x30] sm:$0xf] %vm431_vm0, %v379_v35  ;;  %v9996_v40 = vld [vmem:[#allocation2 + $0x28] sm:$0xff] }
  0x74   : > { %445 = vst.msk [vmem:[#allocation2 + $0x34] sm:$0xf] %vm431_vm0, %v380_v36 }
  0x75   : > { %494 = vst.msk [vmem:[#allocation2 + $0xf8] sm:$0xf] %vm431_vm0, %v429_v37  ;;  %v10021_v46 = vld [vmem:[#allocation2 + $0xf0] sm:$0xff] }
  0x76   : > { %8554 = vmatmul.msk.bf16.gmra.mxu1 %vm816_vm1, %v10002_v5  ;;  %8562 = vmatmul.msk.bf16.gmra.mxu2 %vm816_vm1, %v10010_v6  ;;  %495 = vst.msk [vmem:[#allocation2 + $0xfc] sm:$0xf] %vm431_vm0, %v430_v38  ;;  %v2364_v5 = vrot.slane %v10064_v63, 1  ;;  %v10136_v6 = vld [vmem:[#allocation2 + $0x18] sm:$0xff]  ;;  %v10101_v63 = vld [vmem:[#allocation2 + $0x20] sm:$0xff] }
  0x77   : > { %446 = vst.msk [vmem:[#allocation2 + $0x38] sm:$0xf] %vm431_vm0, %v381_v44  ;;  %v10006_v50 = vld [vmem:[#allocation2 + $0x78] sm:$0xff]  ;;  %v3868_v13 = vshll.u32 %v10136_v6, 16  ;;  %v3872_v37 = vshrl.u32 %v10136_v6, 16  ;;  %v1416_v6 = vshll.u32 %v10031_v0, 16 }
  0x78   : > { %447 = vst.msk [vmem:[#allocation2 + $0x3c] sm:$0xf] %vm431_vm0, %v382_v45  ;;  %v2365_v10 = vsel %vm2362_vm3, %v2363_v4, %v2364_v5  ;;  %v1404_v45 = vshrl.u32 %v10029_v16, 16 }
  0x79   : > { %8570 = vmatmul.msk.bf16.gmra.mxu3 %vm816_vm1, %v10018_v11  ;;  %v10014_v52 = vld [vmem:[#allocation2 + $0xb8] sm:$0xff]  ;;  %v3861_v11 = vshrl.u32 %v10135_v1, 16 }
  0x7a   : > { %v1406_v51 = vor.u32 %v1404_v45, %v1402_v28 }
  0x7b   : > { %v9997_v48 = vld [vmem:[#allocation2 + $0x30] sm:$0xff]  ;;  %v3866_v17 = vor.u32 %v3865_v12, %v3861_v11  ;;  %v1418_v12 = vrot.slane %v1416_v6, 1 }
  0x7c   : > { %8546 = vmatmul.msk.bf16.gmra.mxu0 %vm816_vm1, %v9994_v15  ;;  %v10099_v15 = vld [vmem:[#allocation2 + $0x10] sm:$0xff] }
  0x7d   : > { %v10022_v54 = vld [vmem:[#allocation2 + $0xf8] sm:$0xff]  ;;  %v10139_v14 = vld [vmem:[#allocation2 + $0x30] sm:$0xff] }
  0x7e   : > { %v3892_v22 = vshll.u32 %v10139_v14, 16  ;;  %v3896_v45 = vshrl.u32 %v10139_v14, 16 }
  0x7f   : > { %v9998_v62 = vld [vmem:[#allocation2 + $0x38] sm:$0xff] }
  0x86   : > { %8555 = vmatmul.msk.bf16.gmra.mxu1 %vm816_vm1, %v10003_v18  ;;  %8563 = vmatmul.msk.bf16.gmra.mxu2 %vm816_vm1, %v10011_v19  ;;  %v3870_v18 = vrot.slane %v3868_v13, 1 }
  0x88   : > { %v3871_v26 = vsel %vm1383_vm2, %v3866_v17, %v3870_v18 }
  0x89   : > { %8571 = vmatmul.msk.bf16.gmra.mxu3 %vm816_vm1, %v10019_v24  ;;  %v10065_v24 = vld [vmem:[#allocation2 + $0x10] sm:$0xff] }
  0x8a   : > { %v2366_v29 = vrot.slane %v10065_v24, 1  ;;  %v10032_v24 = vld [vmem:[#allocation2 + $0x28] sm:$0xff] }
  0x8c   : > { %8547 = vmatmul.msk.bf16.gmra.mxu0 %vm816_vm1, %v9995_v30  ;;  %v10137_v30 = vld [vmem:[#allocation2 + $0x20] sm:$0xff] }
  0x8d   : > { %v3876_v38 = vshll.u32 %v10137_v30, 16  ;;  %v3880_v61 = vshrl.u32 %v10137_v30, 16  ;;  %v1424_v30 = vshll.u32 %v10032_v24, 16 }
  0x96   : > { %8556 = vmatmul.msk.bf16.gmra.mxu1 %vm816_vm1, %v10004_v33  ;;  %8564 = vmatmul.msk.bf16.gmra.mxu2 %vm816_vm1, %v10012_v34  ;;  %v1403_v33 = vsel %vm1383_vm2, %v1398_v27, %v1402_v28  ;;  %v2367_v34 = vsel %vm2362_vm3, %v2364_v5, %v2366_v29 }
  0x99   : > { %8572 = vmatmul.msk.bf16.gmra.mxu3 %vm816_vm1, %v10020_v39  ;;  %v10100_v39 = vld [vmem:[#allocation2 + $0x18] sm:$0xff] }
  0x9c   : > { %8548 = vmatmul.msk.bf16.gmra.mxu0 %vm816_vm1, %v9996_v40  ;;  %v10030_v40 = vld [vmem:[#allocation2 + $0x18] sm:$0xff] }
  0x9d   : > { %v1412_v5 = vshrl.u32 %v10030_v40, 16 }
  0xa6   : > { %8557 = vmatmul.msk.bf16.gmra.mxu1 %vm816_vm1, %v10005_v41  ;;  %8565 = vmatmul.msk.bf16.gmra.mxu2 %vm816_vm1, %v10013_v42  ;;  %v3874_v41 = vor.u32 %v3872_v37, %v3870_v18  ;;  %v3878_v42 = vrot.slane %v3876_v38, 1  ;;  %v10140_v38 = vld [vmem:[#allocation2 + $0x38] sm:$0xff] }
  0xa8   : > { %v3882_v1 = vor.u32 %v3880_v61, %v3878_v42 }
  0xa9   : > { %8573 = vmatmul.msk.bf16.gmra.mxu3 %vm816_vm1, %v10021_v46  ;;  %v1408_v46 = vshll.u32 %v10030_v40, 16 }
  0xac   : > { %8549 = vmatmul.msk.bf16.gmra.mxu0 %vm816_vm1, %v9997_v48  ;;  %v10066_v48 = vld [vmem:[#allocation2 + $0x18] sm:$0xff] }
  0xad   : > { %v2368_v53 = vrot.slane %v10066_v48, 1  ;;  %v10033_v48 = vld [vmem:[#allocation2 + $0x30] sm:$0xff] }
  0xaf   : > { %v2369_v58 = vsel %vm2362_vm3, %v2366_v29, %v2368_v53  ;;  %v1420_v29 = vshrl.u32 %v10031_v0, 16 }
  0xb6   : > { %8558 = vmatmul.msk.bf16.gmra.mxu1 %vm816_vm1, %v10006_v50  ;;  %8566 = vmatmul.msk.bf16.gmra.mxu2 %vm816_vm1, %v10014_v52  ;;  %v3879_v50 = vsel %vm1383_vm2, %v3874_v41, %v3878_v42  ;;  %v1410_v52 = vrot.slane %v1408_v46, 1  ;;  %v3900_v46 = vshll.u32 %v10140_v38, 16 }
  0xb8   : > { %v1411_v57 = vsel %vm1383_vm2, %v1406_v51, %v1410_v52  ;;  %v1414_v11 = vor.u32 %v1412_v5, %v1410_v52  ;;  %v3904_v5 = vshrl.u32 %v10140_v38, 16 }
  0xb9   : > { %8574 = vmatmul.msk.bf16.gmra.mxu3 %vm816_vm1, %v10022_v54  ;;  %v10138_v54 = vld [vmem:[#allocation2 + $0x28] sm:$0xff] }
  0xba   : > { %v1419_v17 = vsel %vm1383_vm2, %v1414_v11, %v1418_v12  ;;  %v3888_v21 = vshrl.u32 %v10138_v54, 16 }
  0xbc   : > { %8550 = vmatmul.msk.bf16.gmra.mxu0 %vm816_vm1, %v9998_v62  ;;  %v3884_v62 = vshll.u32 %v10138_v54, 16  ;;  %v1432_v54 = vshll.u32 %v10033_v48, 16 }
  0xbe   : > { %v3886_v2 = vrot.slane %v3884_v62, 1  ;;  %v10141_v62 = vld [vmem:[#allocation2 + $0x40] sm:$0xff] }
  0xbf   : > { %v3908_v6 = vshll.u32 %v10141_v62, 16 }
  0xc3   : > { %v962_v8 = vpop.f32.mrf.mxu1 }
  0xc4   : > { %1098 = vst.msk [vmem:[#allocation3 + $0x80] sm:$0xff] %vm816_vm1, %v962_v8  ;;  %v10067_v8 = vld [vmem:[#allocation2 + $0x20] sm:$0xff] }
  0xc5   : > { %v2370_v13 = vrot.slane %v10067_v8, 1  ;;  %v10034_v8 = vld [vmem:[#allocation2 + $0x38] sm:$0xff] }
  0xc6   : > { %8719 = vmatmul.msk.bf16.vlgmr.msrb.gmra.mxu1 %vm816_vm1, %v1395_v9  ;;  %8895 = vmatmul.msk.bf16.vlgmr.msrb.gmra.mxu2 %vm816_vm1, %v2365_v10  ;;  %v3887_v10 = vsel %vm1383_vm2, %v3882_v1, %v3886_v2  ;;  %v1440_v14 = vshll.u32 %v10034_v8, 16  ;;  %v1444_v38 = vshrl.u32 %v10034_v8, 16 }
  0xc7   : > { %v2371_v18 = vsel %vm2362_vm3, %v2368_v53, %v2370_v13  ;;  %v1428_v53 = vshrl.u32 %v10032_v24, 16 }
  0xc9   : > { %9071 = vmatmul.msk.bf16.vlgmr.msrb.gmra.mxu3 %vm816_vm1, %v10099_v15  ;;  %v1002_v19 = vpop.f32.mrf.mxu2  ;;  %v922_v25 = vpop.f32.mrf.mxu0 }
  0xca   : > { %1114 = vst.msk [vmem:[#allocation3 + $0x100] sm:$0xff] %vm816_vm1, %v1002_v19 }
  0xcb   : > { %v964_v20 = vpop.f32.mrf.mxu1  ;;  %1082 = vst.msk [vmem:[#allocation3] sm:$0xff] %vm816_vm1, %v922_v25  ;;  %v3890_v25 = vor.u32 %v3888_v21, %v3886_v2 }
  0xcc   : > { %1099 = vst.msk [vmem:[#allocation3 + $0x88] sm:$0xff] %vm816_vm1, %v964_v20  ;;  %v1042_v23 = vpop.f32.mrf.mxu3  ;;  %9247 = vmatmul.msk.bf16.vlgmr.msrb.gmra.mxu0 %vm816_vm1, %v3871_v26  ;;  %v3894_v26 = vrot.slane %v3892_v22, 1  ;;  %v10142_v22 = vld [vmem:[#allocation2 + $0x48] sm:$0xff] }
  0xcd   : > { %1130 = vst.msk [vmem:[#allocation3 + $0x180] sm:$0xff] %vm816_vm1, %v1042_v23  ;;  %v10102_v23 = vld [vmem:[#allocation2 + $0x28] sm:$0xff] }
  0xd1   : > { %v1004_v31 = vpop.f32.mrf.mxu2  ;;  %v924_v36 = vpop.f32.mrf.mxu0 }
  0xd2   : > { %1115 = vst.msk [vmem:[#allocation3 + $0x108] sm:$0xff] %vm816_vm1, %v1004_v31 }
  0xd3   : > { %v967_v32 = vpop.f32.mrf.mxu1  ;;  %1083 = vst.msk [vmem:[#allocation3 + $0x8] sm:$0xff] %vm816_vm1, %v924_v36  ;;  %v1426_v36 = vrot.slane %v1424_v30, 1  ;;  %v3916_v30 = vshll.u32 %v10142_v22, 16 }
  0xd4   : > { %1100 = vst.msk [vmem:[#allocation3 + $0x90] sm:$0xff] %vm816_vm1, %v967_v32  ;;  %v1044_v35 = vpop.f32.mrf.mxu3  ;;  %v10068_v32 = vld [vmem:[#allocation2 + $0x28] sm:$0xff] }
  0xd5   : > { %1131 = vst.msk [vmem:[#allocation3 + $0x188] sm:$0xff] %vm816_vm1, %v1044_v35  ;;  %v1422_v35 = vor.u32 %v1420_v29, %v1418_v12  ;;  %v2372_v37 = vrot.slane %v10068_v32, 1  ;;  %v3912_v29 = vshrl.u32 %v10141_v62, 16  ;;  %v10035_v32 = vld [vmem:[#allocation2 + $0x40] sm:$0xff] }
  0xd6   : > { %8720 = vmatmul.msk.bf16.gmra.mxu1 %vm816_vm1, %v1403_v33  ;;  %8896 = vmatmul.msk.bf16.gmra.mxu2 %vm816_vm1, %v2367_v34  ;;  %v3895_v34 = vsel %vm1383_vm2, %v3890_v25, %v3894_v26 }
  0xd7   : > { %v1427_v41 = vsel %vm1383_vm2, %v1422_v35, %v1426_v36  ;;  %v2373_v42 = vsel %vm2362_vm3, %v2370_v13, %v2372_v37  ;;  %v1436_v13 = vshrl.u32 %v10033_v48, 16  ;;  %v3918_v35 = vrot.slane %v3916_v30, 1  ;;  %v10143_v48 = vld [vmem:[#allocation2 + $0x50] sm:$0xff] }
  0xd8   : > { %v10313_v30 = vld [vmem:[#allocation9 + $0x110] sm:$0xff] }
  0xd9   : > { %9072 = vmatmul.msk.bf16.gmra.mxu3 %vm816_vm1, %v10100_v39  ;;  %v1007_v43 = vpop.f32.mrf.mxu2  ;;  %v927_v49 = vpop.f32.mrf.mxu0  ;;  %7503 = vmatpush.bf16.msra.mxu0 %v10313_v30 }
  0xda   : > { %1116 = vst.msk [vmem:[#allocation3 + $0x110] sm:$0xff] %vm816_vm1, %v1007_v43 }
  0xdb   : > { %v969_v44 = vpop.f32.mrf.mxu1  ;;  %1084 = vst.msk [vmem:[#allocation3 + $0x10] sm:$0xff] %vm816_vm1, %v927_v49  ;;  %v3898_v49 = vor.u32 %v3896_v45, %v3894_v26 }
  0xdc   : > { %1101 = vst.msk [vmem:[#allocation3 + $0x98] sm:$0xff] %vm816_vm1, %v969_v44  ;;  %v1047_v47 = vpop.f32.mrf.mxu3  ;;  %9248 = vmatmul.msk.bf16.gmra.mxu0 %vm816_vm1, %v3879_v50  ;;  %v3902_v50 = vrot.slane %v3900_v46, 1  ;;  %v10241_v46 = vld [vmem:[#allocation9 + $0xd0] sm:$0xff] }
  0xdd   : > { %1132 = vst.msk [vmem:[#allocation3 + $0x190] sm:$0xff] %vm816_vm1, %v1047_v47  ;;  %v10103_v47 = vld [vmem:[#allocation2 + $0x30] sm:$0xff]  ;;  %5742 = vmatpush.bf16.msra.mxu2 %v10241_v46 }
  0xe1   : > { %v1009_v55 = vpop.f32.mrf.mxu2  ;;  %v929_v60 = vpop.f32.mrf.mxu0 }
  0xe2   : > { %1117 = vst.msk [vmem:[#allocation3 + $0x118] sm:$0xff] %vm816_vm1, %v1009_v55 }
  0xe3   : > { %v972_v56 = vpop.f32.mrf.mxu1  ;;  %1085 = vst.msk [vmem:[#allocation3 + $0x18] sm:$0xff] %vm816_vm1, %v929_v60  ;;  %v1434_v60 = vrot.slane %v1432_v54, 1 }
  0xe4   : > { %1102 = vst.msk [vmem:[#allocation3 + $0xa0] sm:$0xff] %vm816_vm1, %v972_v56  ;;  %v1049_v59 = vpop.f32.mrf.mxu3  ;;  %v10069_v56 = vld [vmem:[#allocation2 + $0x30] sm:$0xff] }
  0xe5   : > { %1133 = vst.msk [vmem:[#allocation3 + $0x198] sm:$0xff] %vm816_vm1, %v1049_v59  ;;  %v1430_v59 = vor.u32 %v1428_v53, %v1426_v36  ;;  %v2374_v61 = vrot.slane %v10069_v56, 1  ;;  %v3924_v56 = vshll.u32 %v10143_v48, 16 }
  0xe6   : > { %8721 = vmatmul.msk.bf16.gmra.mxu1 %vm816_vm1, %v1411_v57  ;;  %8897 = vmatmul.msk.bf16.gmra.mxu2 %vm816_vm1, %v2369_v58  ;;  %v3903_v58 = vsel %vm1383_vm2, %v3898_v49, %v3902_v50 }
  0xe7   : > { %v1435_v1 = vsel %vm1383_vm2, %v1430_v59, %v1434_v60  ;;  %v2375_v2 = vsel %vm2362_vm3, %v2372_v37, %v2374_v61 }
  0xe9   : > { %9073 = vmatmul.msk.bf16.gmra.mxu3 %vm816_vm1, %v10101_v63  ;;  %v1012_v3 = vpop.f32.mrf.mxu2  ;;  %v932_v9 = vpop.f32.mrf.mxu0 }
  0xea   : > { %1118 = vst.msk [vmem:[#allocation3 + $0x120] sm:$0xff] %vm816_vm1, %v1012_v3 }
  0xeb   : > { %v974_v4 = vpop.f32.mrf.mxu1  ;;  %1086 = vst.msk [vmem:[#allocation3 + $0x20] sm:$0xff] %vm816_vm1, %v932_v9  ;;  %v3906_v9 = vor.u32 %v3904_v5, %v3902_v50 }
  0xec   : > { %1103 = vst.msk [vmem:[#allocation3 + $0xa8] sm:$0xff] %vm816_vm1, %v974_v4  ;;  %v1052_v7 = vpop.f32.mrf.mxu3  ;;  %9249 = vmatmul.msk.bf16.gmra.mxu0 %vm816_vm1, %v3887_v10  ;;  %v3910_v10 = vrot.slane %v3908_v6, 1 }
  0xed   : > { %1134 = vst.msk [vmem:[#allocation3 + $0x1a0] sm:$0xff] %vm816_vm1, %v1052_v7  ;;  %v10104_v7 = vld [vmem:[#allocation2 + $0x38] sm:$0xff] }
  0xf1   : > { %v1014_v15 = vpop.f32.mrf.mxu2  ;;  %v934_v20 = vpop.f32.mrf.mxu0 }
  0xf2   : > { %1119 = vst.msk [vmem:[#allocation3 + $0x128] sm:$0xff] %vm816_vm1, %v1014_v15 }
  0xf3   : > { %v977_v16 = vpop.f32.mrf.mxu1  ;;  %1087 = vst.msk [vmem:[#allocation3 + $0x28] sm:$0xff] %vm816_vm1, %v934_v20  ;;  %v1442_v20 = vrot.slane %v1440_v14, 1 }
  0xf4   : > { %1104 = vst.msk [vmem:[#allocation3 + $0xb0] sm:$0xff] %vm816_vm1, %v977_v16  ;;  %v1054_v19 = vpop.f32.mrf.mxu3  ;;  %v10070_v16 = vld [vmem:[#allocation2 + $0x38] sm:$0xff] }
  0xf5   : > { %1135 = vst.msk [vmem:[#allocation3 + $0x1a8] sm:$0xff] %vm816_vm1, %v1054_v19  ;;  %v1438_v19 = vor.u32 %v1436_v13, %v1434_v60  ;;  %v2376_v21 = vrot.slane %v10070_v16, 1  ;;  %v3926_v60 = vrot.slane %v3924_v56, 1 }
  0xf6   : > { %8722 = vmatmul.msk.bf16.gmra.mxu1 %vm816_vm1, %v1419_v17  ;;  %8898 = vmatmul.msk.bf16.gmra.mxu2 %vm816_vm1, %v2371_v18  ;;  %v3911_v18 = vsel %vm1383_vm2, %v3906_v9, %v3910_v10  ;;  %v11081_v9 = vld [vmem:[#allocation2 + $0x58] sm:$0xff] }
  0xf7   : > { %v1443_v25 = vsel %vm1383_vm2, %v1438_v19, %v1442_v20  ;;  %v2377_v26 = vsel %vm2362_vm3, %v2374_v61, %v2376_v21  ;;  %v10277_v61 = vld [vmem:[#allocation9 + $0xf0] sm:$0xff]  ;;  %v3932_v19 = vshll.u32 %v11081_v9, 16 }
  0xf8   : > { %6720 = vmatpush.bf16.msra.mxu3 %v10277_v61  ;;  %v1936_v61 = vld [vmem:[#allocation3 + $0x18] sm:$0xff] }
  0xf9   : > { %9074 = vmatmul.msk.bf16.gmra.mxu3 %vm816_vm1, %v10102_v23  ;;  %v1017_v27 = vpop.f32.mrf.mxu2  ;;  %v937_v33 = vpop.f32.mrf.mxu0 }
  0xfa   : > { %1120 = vst.msk [vmem:[#allocation3 + $0x130] sm:$0xff] %vm816_vm1, %v1017_v27 }
  0xfb   : > { %v979_v28 = vpop.f32.mrf.mxu1  ;;  %1088 = vst.msk [vmem:[#allocation3 + $0x30] sm:$0xff] %vm816_vm1, %v937_v33  ;;  %v10205_v33 = vld [vmem:[#allocation9 + $0xb0] sm:$0xff] }
  0xfc   : > { %1105 = vst.msk [vmem:[#allocation3 + $0xb8] sm:$0xff] %vm816_vm1, %v979_v28  ;;  %v1057_v31 = vpop.f32.mrf.mxu3  ;;  %9250 = vmatmul.msk.bf16.gmra.mxu0 %vm816_vm1, %v3895_v34  ;;  %v3914_v34 = vor.u32 %v3912_v29, %v3910_v10  ;;  %5028 = vmatpush.bf16.msra.mxu1 %v10205_v33  ;;  %v11096_v33 = vld [vmem:[#allocation2 + $0x50] sm:$0xff] }
  0xfd   : > { %1136 = vst.msk [vmem:[#allocation3 + $0x1b0] sm:$0xff] %vm816_vm1, %v1057_v31  ;;  %v10105_v31 = vld [vmem:[#allocation2 + $0x40] sm:$0xff] }
 0x101   : > { %v1019_v39 = vpop.f32.mrf.mxu2  ;;  %v939_v44 = vpop.f32.mrf.mxu0 }
 0x102   : > { %1121 = vst.msk [vmem:[#allocation3 + $0x138] sm:$0xff] %vm816_vm1, %v1019_v39  ;;  %v1448_v39 = vshll.u32 %v10035_v32, 16 }
 0x103   : > { %v982_v40 = vpop.f32.mrf.mxu1  ;;  %1089 = vst.msk [vmem:[#allocation3 + $0x38] sm:$0xff] %vm816_vm1, %v939_v44  ;;  %v1446_v44 = vor.u32 %v1444_v38, %v1442_v20  ;;  %v10107_v20 = vld [vmem:[#allocation2 + $0x50] sm:$0xff] }
 0x104   : > { %1106 = vst.msk [vmem:[#allocation3 + $0xc0] sm:$0xff] %vm816_vm1, %v982_v40  ;;  %v1059_v43 = vpop.f32.mrf.mxu3  ;;  %v1450_v45 = vrot.slane %v1448_v39, 1  ;;  %v2382_v39 = vrot.slane %v11096_v33, 1 }
 0x105   : > { %1137 = vst.msk [vmem:[#allocation3 + $0x1b8] sm:$0xff] %vm816_vm1, %v1059_v43  ;;  %v3919_v43 = vsel %vm1383_vm2, %v3914_v34, %v3918_v35 }
 0x106   : > { %8723 = vmatmul.msk.bf16.gmra.mxu1 %vm816_vm1, %v1427_v41  ;;  %8899 = vmatmul.msk.bf16.gmra.mxu2 %vm816_vm1, %v2373_v42  ;;  %v10071_v41 = vld [vmem:[#allocation2 + $0x40] sm:$0xff] }
 0x109   : > { %9075 = vmatmul.msk.bf16.gmra.mxu3 %vm816_vm1, %v10103_v47  ;;  %v1022_v51 = vpop.f32.mrf.mxu2  ;;  %v942_v57 = vpop.f32.mrf.mxu0  ;;  %v2378_v47 = vrot.slane %v10071_v41, 1 }
 0x10a   : > { %1122 = vst.msk [vmem:[#allocation3 + $0x140] sm:$0xff] %vm816_vm1, %v1022_v51  ;;  %v1451_v51 = vsel %vm1383_vm2, %v1446_v44, %v1450_v45 }
 0x10b   : > { %v984_v52 = vpop.f32.mrf.mxu1  ;;  %1090 = vst.msk [vmem:[#allocation3 + $0x40] sm:$0xff] %vm816_vm1, %v942_v57  ;;  %v10106_v57 = vld [vmem:[#allocation2 + $0x48] sm:$0xff] }
 0x10c   : > { %1107 = vst.msk [vmem:[#allocation3 + $0xc8] sm:$0xff] %vm816_vm1, %v984_v52  ;;  %v1062_v55 = vpop.f32.mrf.mxu3  ;;  %9251 = vmatmul.msk.bf16.gmra.mxu0 %vm816_vm1, %v3903_v58  ;;  %v2379_v52 = vsel %vm2362_vm3, %v2376_v21, %v2378_v47  ;;  %v10036_v58 = vld [vmem:[#allocation2 + $0x48] sm:$0xff]  ;;  %v11090_v21 = vld [vmem:[#allocation2 + $0x50] sm:$0xff] }
 0x10d   : > { %1138 = vst.msk [vmem:[#allocation3 + $0x1c0] sm:$0xff] %vm816_vm1, %v1062_v55  ;;  %v3920_v55 = vshrl.u32 %v10142_v22, 16 }
 0x10f   : > { %v3922_v59 = vor.u32 %v3920_v55, %v3918_v35  ;;  %v11113_v55 = vld [vmem:[#allocation2 + $0x58] sm:$0xff] }
 0x111   : > { %v1024_v63 = vpop.f32.mrf.mxu2  ;;  %v944_v4 = vpop.f32.mrf.mxu0  ;;  %v3927_v5 = vsel %vm1383_vm2, %v3922_v59, %v3926_v60 }
 0x112   : > { %1123 = vst.msk [vmem:[#allocation3 + $0x148] sm:$0xff] %vm816_vm1, %v1024_v63 }
 0x113   : > { %v987_v0 = vpop.f32.mrf.mxu1  ;;  %1091 = vst.msk [vmem:[#allocation3 + $0x48] sm:$0xff] %vm816_vm1, %v944_v4 }
 0x114   : > { %1108 = vst.msk [vmem:[#allocation3 + $0xd0] sm:$0xff] %vm816_vm1, %v987_v0  ;;  %v1064_v3 = vpop.f32.mrf.mxu3  ;;  %v1452_v0 = vshrl.u32 %v10035_v32, 16 }
 0x115   : > { %1139 = vst.msk [vmem:[#allocation3 + $0x1c8] sm:$0xff] %vm816_vm1, %v1064_v3  ;;  %v10072_v3 = vld [vmem:[#allocation2 + $0x48] sm:$0xff] }
 0x116   : > { %8724 = vmatmul.msk.bf16.gmra.mxu1 %vm816_vm1, %v1435_v1  ;;  %8900 = vmatmul.msk.bf16.gmra.mxu2 %vm816_vm1, %v2375_v2  ;;  %v1456_v1 = vshll.u32 %v10036_v58, 16  ;;  %v1454_v6 = vor.u32 %v1452_v0, %v1450_v45  ;;  %v2380_v8 = vrot.slane %v10072_v3, 1  ;;  %v11121_v3 = vld [vmem:[#allocation2 + $0x58] sm:$0xff] }
 0x119   : > { %9076 = vmatmul.msk.bf16.gmra.mxu3 %vm816_vm1, %v10104_v7  ;;  %v1027_v11 = vpop.f32.mrf.mxu2  ;;  %v947_v17 = vpop.f32.mrf.mxu0  ;;  %v1458_v7 = vrot.slane %v1456_v1, 1 }
 0x11a   : > { %1124 = vst.msk [vmem:[#allocation3 + $0x150] sm:$0xff] %vm816_vm1, %v1027_v11 }
 0x11b   : > { %v989_v12 = vpop.f32.mrf.mxu1  ;;  %1092 = vst.msk [vmem:[#allocation3 + $0x50] sm:$0xff] %vm816_vm1, %v947_v17  ;;  %v1459_v13 = vsel %vm1383_vm2, %v1454_v6, %v1458_v7 }
 0x11c   : > { %1109 = vst.msk [vmem:[#allocation3 + $0xd8] sm:$0xff] %vm816_vm1, %v989_v12  ;;  %v1067_v15 = vpop.f32.mrf.mxu3  ;;  %9252 = vmatmul.msk.bf16.gmra.mxu0 %vm816_vm1, %v3911_v18  ;;  %v1933_v12 = vld [vmem:[#allocation3] sm:$0xff]  ;;  %v3928_v18 = vshrl.u32 %v10143_v48, 16 }
 0x11d   : > { %1140 = vst.msk [vmem:[#allocation3 + $0x1d0] sm:$0xff] %vm816_vm1, %v1067_v15  ;;  %v2381_v15 = vsel %vm2362_vm3, %v2378_v47, %v2380_v8  ;;  %v2383_v47 = vsel %vm2362_vm3, %v2380_v8, %v2382_v39 }
 0x11e   : > { %v3930_v22 = vor.u32 %v3928_v18, %v3926_v60 }
 0x121   : > { %v1029_v23 = vpop.f32.mrf.mxu2  ;;  %v949_v28 = vpop.f32.mrf.mxu0 }
 0x122   : > { %1125 = vst.msk [vmem:[#allocation3 + $0x158] sm:$0xff] %vm816_vm1, %v1029_v23  ;;  %v3934_v23 = vrot.slane %v3932_v19, 1 }
 0x123   : > { %v992_v24 = vpop.f32.mrf.mxu1  ;;  %1093 = vst.msk [vmem:[#allocation3 + $0x58] sm:$0xff] %vm816_vm1, %v949_v28  ;;  %v1464_v28 = vshll.u32 %v11090_v21, 16 }
 0x124   : > { %1110 = vst.msk [vmem:[#allocation3 + $0xe0] sm:$0xff] %vm816_vm1, %v992_v24  ;;  %v1069_v27 = vpop.f32.mrf.mxu3  ;;  %v3935_v35 = vsel %vm1383_vm2, %v3930_v22, %v3934_v23 }
 0x125   : > { %1141 = vst.msk [vmem:[#allocation3 + $0x1d8] sm:$0xff] %vm816_vm1, %v1069_v27  ;;  %v1460_v27 = vshrl.u32 %v10036_v58, 16  ;;  %v1466_v38 = vrot.slane %v1464_v28, 1 }
 0x126   : > { %8725 = vmatmul.msk.bf16.gmra.mxu1 %vm816_vm1, %v1443_v25  ;;  %8901 = vmatmul.msk.bf16.gmra.mxu2 %vm816_vm1, %v2377_v26  ;;  %v1934_v26 = vld [vmem:[#allocation3 + $0x8] sm:$0xff] }
 0x129   : > { %9077 = vmatmul.msk.bf16.gmra.mxu3 %vm816_vm1, %v10105_v31  ;;  %v1032_v36 = vpop.f32.mrf.mxu2  ;;  %v952_v42 = vpop.f32.mrf.mxu0 }
 0x12a   : > { %1126 = vst.msk [vmem:[#allocation3 + $0x160] sm:$0xff] %vm816_vm1, %v1032_v36 }
 0x12b   : > { %v994_v37 = vpop.f32.mrf.mxu1  ;;  %1094 = vst.msk [vmem:[#allocation3 + $0x60] sm:$0xff] %vm816_vm1, %v952_v42 }
 0x12c   : > { %1111 = vst.msk [vmem:[#allocation3 + $0xe8] sm:$0xff] %vm816_vm1, %v994_v37  ;;  %v1072_v40 = vpop.f32.mrf.mxu3  ;;  %9253 = vmatmul.msk.bf16.gmra.mxu0 %vm816_vm1, %v3919_v43  ;;  %v1462_v37 = vor.u32 %v1460_v27, %v1458_v7  ;;  %v1935_v43 = vld [vmem:[#allocation3 + $0x10] sm:$0xff]  ;;  %v10109_v27 = vld [vmem:[#allocation2 + $0x60] sm:$0xff] }
 0x12d   : > { %1142 = vst.msk [vmem:[#allocation3 + $0x1e0] sm:$0xff] %vm816_vm1, %v1072_v40  ;;  %v11103_v40 = vld [vmem:[#allocation2 + $0x60] sm:$0xff] }
 0x12e   : > { %v1467_v44 = vsel %vm1383_vm2, %v1462_v37, %v1466_v38  ;;  %v1938_v37 = vld [vmem:[#allocation3 + $0x28] sm:$0xff] }
 0x131   : > { %v1034_v49 = vpop.f32.mrf.mxu2  ;;  %v954_v54 = vpop.f32.mrf.mxu0 }
 0x132   : > { %1127 = vst.msk [vmem:[#allocation3 + $0x168] sm:$0xff] %vm816_vm1, %v1034_v49 }
 0x133   : > { %v997_v50 = vpop.f32.mrf.mxu1  ;;  %1095 = vst.msk [vmem:[#allocation3 + $0x68] sm:$0xff] %vm816_vm1, %v954_v54 }
 0x134   : > { %1112 = vst.msk [vmem:[#allocation3 + $0xf0] sm:$0xff] %vm816_vm1, %v997_v50  ;;  %v1074_v53 = vpop.f32.mrf.mxu3  ;;  %v3936_v50 = vshrl.u32 %v11081_v9, 16 }
 0x135   : > { %1143 = vst.msk [vmem:[#allocation3 + $0x1e8] sm:$0xff] %vm816_vm1, %v1074_v53  ;;  %v10108_v53 = vld [vmem:[#allocation2 + $0x58] sm:$0xff] }
 0x136   : > { %8726 = vmatmul.msk.bf16.gmra.mxu1 %vm816_vm1, %v1451_v51  ;;  %8902 = vmatmul.msk.bf16.gmra.mxu2 %vm816_vm1, %v2379_v52  ;;  %v3940_v51 = vshll.u32 %v11103_v40, 16 }
 0x138   : > { %v3942_v58 = vrot.slane %v3940_v51, 1 }
 0x139   : > { %9078 = vmatmul.msk.bf16.gmra.mxu3 %vm816_vm1, %v10106_v57  ;;  %v1037_v62 = vpop.f32.mrf.mxu2  ;;  %v957_v4 = vpop.f32.mrf.mxu0  ;;  %v3938_v57 = vor.u32 %v3936_v50, %v3934_v23 }
 0x13a   : > { %1128 = vst.msk [vmem:[#allocation3 + $0x170] sm:$0xff] %vm816_vm1, %v1037_v62  ;;  %v1468_v62 = vshrl.u32 %v11090_v21, 16 }
 0x13b   : > { %v999_v63 = vpop.f32.mrf.mxu1  ;;  %1096 = vst.msk [vmem:[#allocation3 + $0x70] sm:$0xff] %vm816_vm1, %v957_v4 }
 0x13c   : > { %1113 = vst.msk [vmem:[#allocation3 + $0xf8] sm:$0xff] %vm816_vm1, %v999_v63  ;;  %v1077_v2 = vpop.f32.mrf.mxu3  ;;  %9254 = vmatmul.msk.bf16.gmra.mxu0 %vm816_vm1, %v3927_v5  ;;  %v1472_v63 = vshll.u32 %v11113_v55, 16  ;;  %v3943_v5 = vsel %vm1383_vm2, %v3938_v57, %v3942_v58  ;;  %v1470_v8 = vor.u32 %v1468_v62, %v1466_v38  ;;  %v1476_v38 = vshrl.u32 %v11113_v55, 16  ;;  %v1939_v57 = vld [vmem:[#allocation3 + $0x30] sm:$0xff] }
 0x13d   : > { %1144 = vst.msk [vmem:[#allocation3 + $0x1f0] sm:$0xff] %vm816_vm1, %v1077_v2 }
 0x13e   : > { %v1474_v9 = vrot.slane %v1472_v63, 1 }
 0x140   : > { %v1475_v18 = vsel %vm1383_vm2, %v1470_v8, %v1474_v9 }
 0x141   : > { %v1039_v10 = vpop.f32.mrf.mxu2  ;;  %v959_v17 = vpop.f32.mrf.mxu0 }
 0x142   : > { %1129 = vst.msk [vmem:[#allocation3 + $0x178] sm:$0xff] %vm816_vm1, %v1039_v10 }
 0x143   : > { %v1773_v11 = vpop.f32.mrf.mxu1  ;;  %1097 = vst.msk [vmem:[#allocation3 + $0x78] sm:$0xff] %vm816_vm1, %v959_v17  ;;  %v1937_v17 = vld [vmem:[#allocation3 + $0x20] sm:$0xff] }
 0x144   : > { %v1997_v14 = vadd.f32 %v1933_v12, %v1773_v11  ;;  %v1079_v16 = vpop.f32.mrf.mxu3  ;;  %v2384_v12 = vrot.slane %v11121_v3, 1 }
 0x145   : > { %1145 = vst.msk [vmem:[#allocation3 + $0x1f8] sm:$0xff] %vm816_vm1, %v1079_v16 }
 0x146   : > { %2061 = vst.msk [vmem:[#allocation3] sm:$0xff] %vm816_vm1, %v1997_v14  ;;  %8727 = vmatmul.msk.bf16.gmra.mxu1 %vm816_vm1, %v1459_v13  ;;  %8903 = vmatmul.msk.bf16.gmra.mxu2 %vm816_vm1, %v2381_v15  ;;  %v11130_v13 = vld [vmem:[#allocation2 + $0x68] sm:$0xff]  ;;  %v2385_v21 = vsel %vm2362_vm3, %v2382_v39, %v2384_v12 }
 0x149   : > { %9079 = vmatmul.msk.bf16.gmra.mxu3 %vm816_vm1, %v10107_v20  ;;  %v2557_v24 = vpop.f32.mrf.mxu2  ;;  %v4249_v34 = vpop.f32.mrf.mxu0 }
 0x14b   : > { %v1775_v25 = vpop.f32.mrf.mxu1 }
 0x14c   : > { %v1998_v29 = vadd.f32 %v1934_v26, %v1775_v25  ;;  %v3271_v32 = vpop.f32.mrf.mxu3  ;;  %9255 = vmatmul.msk.bf16.gmra.mxu0 %vm816_vm1, %v3935_v35  ;;  %v3948_v25 = vshll.u32 %v11130_v13, 16 }
 0x14d   : > { %v2717_v31 = vld [vmem:[#allocation3] sm:$0xff] }
 0x14e   : > { %v2781_v36 = vadd.f32 %v2717_v31, %v2557_v24  ;;  %2062 = vst.msk [vmem:[#allocation3 + $0x8] sm:$0xff] %vm816_vm1, %v1998_v29  ;;  %v3944_v24 = vshrl.u32 %v11103_v40, 16  ;;  %v11144_v29 = vld [vmem:[#allocation2 + $0x60] sm:$0xff]  ;;  %v3950_v33 = vrot.slane %v3948_v25, 1 }
 0x14f   : > { %v1480_v39 = vshll.u32 %v11144_v29, 16 }
 0x150   : > { %2845 = vst.msk [vmem:[#allocation3] sm:$0xff] %vm816_vm1, %v2781_v36 }
 0x151   : > { %v2559_v41 = vpop.f32.mrf.mxu2  ;;  %v11107_v49 = vpop.f32.mrf.mxu0 }
 0x153   : > { %v1778_v42 = vpop.f32.mrf.mxu1 }
 0x154   : > { %v1999_v45 = vadd.f32 %v1935_v43, %v1778_v42  ;;  %v3273_v48 = vpop.f32.mrf.mxu3  ;;  %v11154_v43 = vld [vmem:[#allocation2 + $0x60] sm:$0xff] }
 0x155   : > { %v2718_v46 = vld [vmem:[#allocation3 + $0x8] sm:$0xff] }
 0x156   : > { %v2782_v52 = vadd.f32 %v2718_v46, %v2559_v41  ;;  %2063 = vst.msk [vmem:[#allocation3 + $0x10] sm:$0xff] %vm816_vm1, %v1999_v45  ;;  %8728 = vmatmul.msk.bf16.gmra.mxu1 %vm816_vm1, %v1467_v44  ;;  %8904 = vmatmul.msk.bf16.gmra.mxu2 %vm816_vm1, %v2383_v47 }
 0x157   : > { %v3431_v54 = vld [vmem:[#allocation3] sm:$0xff] }
 0x158   : > { %v3495_v56 = vadd.f32 %v3431_v54, %v3271_v32  ;;  %2846 = vst.msk [vmem:[#allocation3 + $0x8] sm:$0xff] %vm816_vm1, %v2782_v52  ;;  %v3946_v32 = vor.u32 %v3944_v24, %v3942_v58  ;;  %v2386_v52 = vrot.slane %v11154_v43, 1 }
 0x159   : > { %9080 = vmatmul.msk.bf16.gmra.mxu3 %vm816_vm1, %v10108_v53  ;;  %v2562_v59 = vpop.f32.mrf.mxu2  ;;  %v11123_v4 = vpop.f32.mrf.mxu0  ;;  %v11163_v53 = vld [vmem:[#allocation2 + $0x70] sm:$0xff] }
 0x15a   : > { %3559 = vst.msk [vmem:[#allocation3] sm:$0xff] %vm816_vm1, %v3495_v56  ;;  %v3951_v45 = vsel %vm1383_vm2, %v3946_v32, %v3950_v33 }
 0x15b   : > { %v1780_v60 = vpop.f32.mrf.mxu1 }
 0x15c   : > { %v2000_v0 = vadd.f32 %v1936_v61, %v1780_v60  ;;  %v3276_v2 = vpop.f32.mrf.mxu3  ;;  %9256 = vmatmul.msk.bf16.gmra.mxu0 %vm816_vm1, %v3943_v5  ;;  %v2387_v61 = vsel %vm2362_vm3, %v2384_v12, %v2386_v52 }
 0x15d   : > { %v2719_v1 = vld [vmem:[#allocation3 + $0x10] sm:$0xff] }
 0x15e   : > { %v2783_v6 = vadd.f32 %v2719_v1, %v2562_v59  ;;  %2064 = vst.msk [vmem:[#allocation3 + $0x18] sm:$0xff] %vm816_vm1, %v2000_v0  ;;  %v3952_v0 = vshrl.u32 %v11130_v13, 16  ;;  %v3956_v1 = vshll.u32 %v11163_v53, 16  ;;  %v1940_v13 = vld [vmem:[#allocation3 + $0x38] sm:$0xff] }
 0x15f   : > { %v3432_v7 = vld [vmem:[#allocation3 + $0x8] sm:$0xff] }
 0x160   : > { %v3496_v10 = vadd.f32 %v3432_v7, %v3273_v48  ;;  %2847 = vst.msk [vmem:[#allocation3 + $0x10] sm:$0xff] %vm816_vm1, %v2783_v6  ;;  %v1478_v48 = vor.u32 %v1476_v38, %v1474_v9  ;;  %v11180_v6 = vld [vmem:[#allocation2 + $0x68] sm:$0xff]  ;;  %v3954_v8 = vor.u32 %v3952_v0, %v3950_v33  ;;  %v3958_v9 = vrot.slane %v3956_v1, 1  ;;  %v1941_v33 = vld [vmem:[#allocation3 + $0x40] sm:$0xff] }
 0x161   : > { %v4409_v11 = vld [vmem:[#allocation3] sm:$0xff]  ;;  %v2564_v15 = vpop.f32.mrf.mxu2  ;;  %v11138_v23 = vpop.f32.mrf.mxu0 }
 0x162   : > { %3560 = vst.msk [vmem:[#allocation3 + $0x8] sm:$0xff] %vm816_vm1, %v3496_v10  ;;  %v4473_v14 = vadd.f32 %v4409_v11, %v4249_v34 }
 0x163   : > { %v1783_v16 = vpop.f32.mrf.mxu1 }
 0x164   : > { %4537 = vst.msk [vmem:[#allocation3] sm:$0xff] %vm816_vm1, %v4473_v14  ;;  %v2001_v19 = vadd.f32 %v1937_v17, %v1783_v16  ;;  %v3278_v22 = vpop.f32.mrf.mxu3  ;;  %v1484_v14 = vshrl.u32 %v11144_v29, 16  ;;  %v11199_v29 = vld [vmem:[#allocation2 + $0x78] sm:$0xff] }
 0x165   : > { %v2720_v20 = vld [vmem:[#allocation3 + $0x18] sm:$0xff] }
 0x166   : > { %v2784_v26 = vadd.f32 %v2720_v20, %v2564_v15  ;;  %2065 = vst.msk [vmem:[#allocation3 + $0x20] sm:$0xff] %vm816_vm1, %v2001_v19  ;;  %8729 = vmatmul.msk.bf16.gmra.mxu1 %vm816_vm1, %v1475_v18  ;;  %8905 = vmatmul.msk.bf16.gmra.mxu2 %vm816_vm1, %v2385_v21  ;;  %v1488_v15 = vshll.u32 %v11180_v6, 16  ;;  %v11190_v19 = vld [vmem:[#allocation2 + $0x68] sm:$0xff]  ;;  %v3959_v21 = vsel %vm1383_vm2, %v3954_v8, %v3958_v9 }
 0x167   : > { %v3433_v28 = vld [vmem:[#allocation3 + $0x10] sm:$0xff] }
 0x168   : > { %v3497_v30 = vadd.f32 %v3433_v28, %v3276_v2  ;;  %2848 = vst.msk [vmem:[#allocation3 + $0x18] sm:$0xff] %vm816_vm1, %v2784_v26  ;;  %v1490_v25 = vrot.slane %v1488_v15, 1  ;;  %v2388_v28 = vrot.slane %v11190_v19, 1 }
 0x169   : > { %v4410_v31 = vld [vmem:[#allocation3 + $0x8] sm:$0xff]  ;;  %9081 = vmatmul.msk.bf16.gmra.mxu3 %vm816_vm1, %v10109_v27  ;;  %v2567_v35 = vpop.f32.mrf.mxu2  ;;  %v11156_v44 = vpop.f32.mrf.mxu0 }
 0x16a   : > { %3561 = vst.msk [vmem:[#allocation3 + $0x10] sm:$0xff] %vm816_vm1, %v3497_v30  ;;  %v4474_v34 = vadd.f32 %v4410_v31, %v11107_v49  ;;  %v1482_v49 = vrot.slane %v1480_v39, 1 }
 0x16b   : > { %v1785_v36 = vpop.f32.mrf.mxu1 }
 0x16c   : > { %4538 = vst.msk [vmem:[#allocation3 + $0x8] sm:$0xff] %vm816_vm1, %v4474_v34  ;;  %v2002_v40 = vadd.f32 %v1938_v37, %v1785_v36  ;;  %v3281_v42 = vpop.f32.mrf.mxu3  ;;  %9257 = vmatmul.msk.bf16.gmra.mxu0 %vm816_vm1, %v3951_v45  ;;  %v1483_v58 = vsel %vm1383_vm2, %v1478_v48, %v1482_v49  ;;  %v1486_v24 = vor.u32 %v1484_v14, %v1482_v49 }
 0x16d   : > { %v2721_v41 = vld [vmem:[#allocation3 + $0x20] sm:$0xff]  ;;  %v2389_v37 = vsel %vm2362_vm3, %v2386_v52, %v2388_v28 }
 0x16e   : > { %v2785_v46 = vadd.f32 %v2721_v41, %v2567_v35  ;;  %2066 = vst.msk [vmem:[#allocation3 + $0x28] sm:$0xff] %vm816_vm1, %v2002_v40  ;;  %v1491_v34 = vsel %vm1383_vm2, %v1486_v24, %v1490_v25  ;;  %v3960_v40 = vshrl.u32 %v11163_v53, 16  ;;  %v3964_v41 = vshll.u32 %v11199_v29, 16  ;;  %v1942_v53 = vld [vmem:[#allocation3 + $0x48] sm:$0xff] }
 0x16f   : > { %v3434_v47 = vld [vmem:[#allocation3 + $0x18] sm:$0xff] }
 0x170   : > { %v3498_v50 = vadd.f32 %v3434_v47, %v3278_v22  ;;  %2849 = vst.msk [vmem:[#allocation3 + $0x20] sm:$0xff] %vm816_vm1, %v2785_v46  ;;  %v11216_v46 = vld [vmem:[#allocation2 + $0x70] sm:$0xff]  ;;  %v3962_v48 = vor.u32 %v3960_v40, %v3958_v9  ;;  %v3966_v49 = vrot.slane %v3964_v41, 1 }
 0x171   : > { %v4411_v51 = vld [vmem:[#allocation3 + $0x10] sm:$0xff]  ;;  %v2569_v55 = vpop.f32.mrf.mxu2  ;;  %v11174_v63 = vpop.f32.mrf.mxu0 }
 0x172   : > { %3562 = vst.msk [vmem:[#allocation3 + $0x18] sm:$0xff] %vm816_vm1, %v3498_v50  ;;  %v4475_v54 = vadd.f32 %v4411_v51, %v11123_v4  ;;  %v10110_v4 = vld [vmem:[#allocation2 + $0x68] sm:$0xff]  ;;  %v1943_v9 = vld [vmem:[#allocation3 + $0x50] sm:$0xff] }
 0x173   : > { %v1788_v56 = vpop.f32.mrf.mxu1 }
 0x174   : > { %4539 = vst.msk [vmem:[#allocation3 + $0x10] sm:$0xff] %vm816_vm1, %v4475_v54  ;;  %v2003_v59 = vadd.f32 %v1939_v57, %v1788_v56  ;;  %v3283_v62 = vpop.f32.mrf.mxu3  ;;  %v1492_v54 = vshrl.u32 %v11180_v6, 16  ;;  %v11235_v6 = vld [vmem:[#allocation2 + $0x80] sm:$0xff] }
 0x175   : > { %v2722_v60 = vld [vmem:[#allocation3 + $0x28] sm:$0xff] }
 0x176   : > { %v2786_v2 = vadd.f32 %v2722_v60, %v2569_v55  ;;  %2067 = vst.msk [vmem:[#allocation3 + $0x30] sm:$0xff] %vm816_vm1, %v2003_v59  ;;  %8730 = vmatmul.msk.bf16.gmra.mxu1 %vm816_vm1, %v1483_v58  ;;  %8906 = vmatmul.msk.bf16.gmra.mxu2 %vm816_vm1, %v2387_v61  ;;  %v1496_v55 = vshll.u32 %v11216_v46, 16  ;;  %v11226_v59 = vld [vmem:[#allocation2 + $0x70] sm:$0xff]  ;;  %v3967_v61 = vsel %vm1383_vm2, %v3962_v48, %v3966_v49 }
 0x177   : > { %v3435_v5 = vld [vmem:[#allocation3 + $0x20] sm:$0xff]  ;;  %v1494_v0 = vor.u32 %v1492_v54, %v1490_v25 }
 0x178   : > { %v3499_v7 = vadd.f32 %v3435_v5, %v3281_v42  ;;  %2850 = vst.msk [vmem:[#allocation3 + $0x28] sm:$0xff] %vm816_vm1, %v2786_v2  ;;  %v1498_v1 = vrot.slane %v1496_v55, 1  ;;  %v2390_v5 = vrot.slane %v11226_v59, 1 }
 0x179   : > { %v4412_v3 = vld [vmem:[#allocation3 + $0x18] sm:$0xff]  ;;  %9082 = vmatmul.msk.bf16.gmra.mxu3 %vm816_vm1, %v10110_v4  ;;  %v2572_v11 = vpop.f32.mrf.mxu2  ;;  %v11192_v20 = vpop.f32.mrf.mxu0 }
 0x17a   : > { %3563 = vst.msk [vmem:[#allocation3 + $0x20] sm:$0xff] %vm816_vm1, %v3499_v7  ;;  %v4476_v10 = vadd.f32 %v4412_v3, %v11138_v23 }
 0x17b   : > { %v1790_v12 = vpop.f32.mrf.mxu1 }
 0x17c   : > { %4540 = vst.msk [vmem:[#allocation3 + $0x18] sm:$0xff] %vm816_vm1, %v4476_v10  ;;  %v2004_v16 = vadd.f32 %v1940_v13, %v1790_v12  ;;  %v3286_v18 = vpop.f32.mrf.mxu3  ;;  %9258 = vmatmul.msk.bf16.gmra.mxu0 %vm816_vm1, %v3959_v21  ;;  %v1499_v10 = vsel %vm1383_vm2, %v1494_v0, %v1498_v1  ;;  %v2391_v13 = vsel %vm2362_vm3, %v2388_v28, %v2390_v5 }
 0x17d   : > { %v2723_v17 = vld [vmem:[#allocation3 + $0x30] sm:$0xff] }
 0x17e   : > { %v2787_v22 = vadd.f32 %v2723_v17, %v2572_v11  ;;  %2068 = vst.msk [vmem:[#allocation3 + $0x38] sm:$0xff] %vm816_vm1, %v2004_v16  ;;  %v3968_v16 = vshrl.u32 %v11199_v29, 16  ;;  %v3972_v17 = vshll.u32 %v11235_v6, 16  ;;  %v1944_v29 = vld [vmem:[#allocation3 + $0x58] sm:$0xff] }
 0x17f   : > { %v3436_v23 = vld [vmem:[#allocation3 + $0x28] sm:$0xff] }
 0x180   : > { %v3500_v26 = vadd.f32 %v3436_v23, %v3283_v62  ;;  %2851 = vst.msk [vmem:[#allocation3 + $0x30] sm:$0xff] %vm816_vm1, %v2787_v22  ;;  %v11252_v22 = vld [vmem:[#allocation2 + $0x78] sm:$0xff]  ;;  %v3970_v24 = vor.u32 %v3968_v16, %v3966_v49  ;;  %v3974_v25 = vrot.slane %v3972_v17, 1  ;;  %v1945_v49 = vld [vmem:[#allocation3 + $0x60] sm:$0xff] }
 0x181   : > { %v4413_v27 = vld [vmem:[#allocation3 + $0x20] sm:$0xff]  ;;  %v2574_v31 = vpop.f32.mrf.mxu2  ;;  %v11210_v39 = vpop.f32.mrf.mxu0 }
 0x182   : > { %3564 = vst.msk [vmem:[#allocation3 + $0x28] sm:$0xff] %vm816_vm1, %v3500_v26  ;;  %v4477_v30 = vadd.f32 %v4413_v27, %v11156_v44  ;;  %v10111_v44 = vld [vmem:[#allocation2 + $0x70] sm:$0xff] }
 0x183   : > { %v1793_v32 = vpop.f32.mrf.mxu1 }
 0x184   : > { %4541 = vst.msk [vmem:[#allocation3 + $0x20] sm:$0xff] %vm816_vm1, %v4477_v30  ;;  %v2005_v35 = vadd.f32 %v1941_v33, %v1793_v32  ;;  %v3288_v38 = vpop.f32.mrf.mxu3  ;;  %v1500_v30 = vshrl.u32 %v11216_v46, 16  ;;  %v11271_v46 = vld [vmem:[#allocation2 + $0x88] sm:$0xff] }
 0x185   : > { %v2724_v36 = vld [vmem:[#allocation3 + $0x38] sm:$0xff] }
 0x186   : > { %v2788_v42 = vadd.f32 %v2724_v36, %v2574_v31  ;;  %2069 = vst.msk [vmem:[#allocation3 + $0x40] sm:$0xff] %vm816_vm1, %v2005_v35  ;;  %8731 = vmatmul.msk.bf16.gmra.mxu1 %vm816_vm1, %v1491_v34  ;;  %8907 = vmatmul.msk.bf16.gmra.mxu2 %vm816_vm1, %v2389_v37  ;;  %v1504_v31 = vshll.u32 %v11252_v22, 16  ;;  %v11262_v35 = vld [vmem:[#allocation2 + $0x78] sm:$0xff]  ;;  %v3975_v37 = vsel %vm1383_vm2, %v3970_v24, %v3974_v25 }
 0x187   : > { %v3437_v45 = vld [vmem:[#allocation3 + $0x30] sm:$0xff]  ;;  %v1502_v40 = vor.u32 %v1500_v30, %v1498_v1 }
 0x188   : > { %v3501_v47 = vadd.f32 %v3437_v45, %v3286_v18  ;;  %2852 = vst.msk [vmem:[#allocation3 + $0x38] sm:$0xff] %vm816_vm1, %v2788_v42  ;;  %v1506_v41 = vrot.slane %v1504_v31, 1  ;;  %v2392_v45 = vrot.slane %v11262_v35, 1 }
 0x189   : > { %v4414_v43 = vld [vmem:[#allocation3 + $0x28] sm:$0xff]  ;;  %9083 = vmatmul.msk.bf16.gmra.mxu3 %vm816_vm1, %v10111_v44  ;;  %v2577_v51 = vpop.f32.mrf.mxu2  ;;  %v11228_v60 = vpop.f32.mrf.mxu0 }
 0x18a   : > { %3565 = vst.msk [vmem:[#allocation3 + $0x30] sm:$0xff] %vm816_vm1, %v3501_v47  ;;  %v4478_v50 = vadd.f32 %v4414_v43, %v11174_v63 }
 0x18b   : > { %v1795_v52 = vpop.f32.mrf.mxu1 }
 0x18c   : > { %4542 = vst.msk [vmem:[#allocation3 + $0x28] sm:$0xff] %vm816_vm1, %v4478_v50  ;;  %v2006_v56 = vadd.f32 %v1942_v53, %v1795_v52  ;;  %v3291_v58 = vpop.f32.mrf.mxu3  ;;  %9259 = vmatmul.msk.bf16.gmra.mxu0 %vm816_vm1, %v3967_v61  ;;  %v1507_v50 = vsel %vm1383_vm2, %v1502_v40, %v1506_v41  ;;  %v2393_v53 = vsel %vm2362_vm3, %v2390_v5, %v2392_v45  ;;  %v11324_v40 = vld [vmem:[#allocation2 + $0x88] sm:$0xff] }
 0x18d   : > { %v2725_v57 = vld [vmem:[#allocation3 + $0x40] sm:$0xff] }
 0x18e   : > { %v2789_v62 = vadd.f32 %v2725_v57, %v2577_v51  ;;  %2070 = vst.msk [vmem:[#allocation3 + $0x48] sm:$0xff] %vm816_vm1, %v2006_v56  ;;  %v3976_v56 = vshrl.u32 %v11235_v6, 16  ;;  %v3980_v57 = vshll.u32 %v11271_v46, 16  ;;  %v1946_v6 = vld [vmem:[#allocation3 + $0x68] sm:$0xff] }
 0x18f   : > { %v3438_v63 = vld [vmem:[#allocation3 + $0x38] sm:$0xff] }
 0x190   : > { %v3502_v2 = vadd.f32 %v3438_v63, %v3288_v38  ;;  %2853 = vst.msk [vmem:[#allocation3 + $0x40] sm:$0xff] %vm816_vm1, %v2789_v62  ;;  %v11288_v62 = vld [vmem:[#allocation2 + $0x80] sm:$0xff]  ;;  %v3978_v0 = vor.u32 %v3976_v56, %v3974_v25  ;;  %v3982_v1 = vrot.slane %v3980_v57, 1 }
 0x191   : > { %v4415_v4 = vld [vmem:[#allocation3 + $0x30] sm:$0xff]  ;;  %v2579_v3 = vpop.f32.mrf.mxu2  ;;  %v11246_v15 = vpop.f32.mrf.mxu0 }
 0x192   : > { %3566 = vst.msk [vmem:[#allocation3 + $0x38] sm:$0xff] %vm816_vm1, %v3502_v2  ;;  %v4479_v7 = vadd.f32 %v4415_v4, %v11192_v20  ;;  %v10112_v20 = vld [vmem:[#allocation2 + $0x78] sm:$0xff] }
 0x193   : > { %v1798_v8 = vpop.f32.mrf.mxu1 }
 0x194   : > { %4543 = vst.msk [vmem:[#allocation3 + $0x30] sm:$0xff] %vm816_vm1, %v4479_v7  ;;  %v2007_v11 = vadd.f32 %v1943_v9, %v1798_v8  ;;  %v3293_v14 = vpop.f32.mrf.mxu3  ;;  %v1508_v7 = vshrl.u32 %v11252_v22, 16  ;;  %v10204_v9 = vld [vmem:[#allocation9 + $0xa8] sm:$0xff] }
 0x195   : > { %v2726_v12 = vld [vmem:[#allocation3 + $0x48] sm:$0xff]  ;;  %5029 = vmatpush.bf16.msra.mxu1 %v10204_v9 }
 0x196   : > { %v2790_v18 = vadd.f32 %v2726_v12, %v2579_v3  ;;  %2071 = vst.msk [vmem:[#allocation3 + $0x50] sm:$0xff] %vm816_vm1, %v2007_v11  ;;  %8732 = vmatmul.msk.bf16.gmra.mxu1 %vm816_vm1, %v1499_v10  ;;  %8908 = vmatmul.msk.bf16.gmra.mxu2 %vm816_vm1, %v2391_v13  ;;  %v1512_v3 = vshll.u32 %v11288_v62, 16  ;;  %v11298_v12 = vld [vmem:[#allocation2 + $0x80] sm:$0xff]  ;;  %v1510_v17 = vor.u32 %v1508_v7, %v1506_v41 }
 0x197   : > { %v3439_v21 = vld [vmem:[#allocation3 + $0x40] sm:$0xff]  ;;  %v2394_v22 = vrot.slane %v11298_v12, 1 }
 0x198   : > { %v3503_v23 = vadd.f32 %v3439_v21, %v3291_v58  ;;  %2854 = vst.msk [vmem:[#allocation3 + $0x48] sm:$0xff] %vm816_vm1, %v2790_v18  ;;  %v1514_v18 = vrot.slane %v1512_v3, 1 }
 0x199   : > { %v4416_v19 = vld [vmem:[#allocation3 + $0x38] sm:$0xff]  ;;  %9084 = vmatmul.msk.bf16.gmra.mxu3 %vm816_vm1, %v10112_v20  ;;  %v2582_v27 = vpop.f32.mrf.mxu2  ;;  %v11264_v36 = vpop.f32.mrf.mxu0  ;;  %v2395_v31 = vsel %vm2362_vm3, %v2392_v45, %v2394_v22 }
 0x19a   : > { %3567 = vst.msk [vmem:[#allocation3 + $0x40] sm:$0xff] %vm816_vm1, %v3503_v23  ;;  %v4480_v26 = vadd.f32 %v4416_v19, %v11210_v39  ;;  %v11307_v23 = vld [vmem:[#allocation2 + $0x90] sm:$0xff] }
 0x19b   : > { %v1800_v28 = vpop.f32.mrf.mxu1 }
 0x19c   : > { %4544 = vst.msk [vmem:[#allocation3 + $0x38] sm:$0xff] %vm816_vm1, %v4480_v26  ;;  %v2008_v32 = vadd.f32 %v1944_v29, %v1800_v28  ;;  %v3296_v34 = vpop.f32.mrf.mxu3  ;;  %9260 = vmatmul.msk.bf16.gmra.mxu0 %vm816_vm1, %v3975_v37  ;;  %v1947_v26 = vld [vmem:[#allocation3 + $0x70] sm:$0xff]  ;;  %v10240_v29 = vld [vmem:[#allocation9 + $0xc8] sm:$0xff] }
 0x19d   : > { %v2727_v33 = vld [vmem:[#allocation3 + $0x50] sm:$0xff]  ;;  %5743 = vmatpush.bf16.msra.mxu2 %v10240_v29 }
 0x19e   : > { %v2791_v38 = vadd.f32 %v2727_v33, %v2582_v27  ;;  %2072 = vst.msk [vmem:[#allocation3 + $0x58] sm:$0xff] %vm816_vm1, %v2008_v32  ;;  %v1515_v27 = vsel %vm1383_vm2, %v1510_v17, %v1514_v18  ;;  %v11360_v17 = vld [vmem:[#allocation2 + $0x90] sm:$0xff] }
 0x19f   : > { %v3440_v39 = vld [vmem:[#allocation3 + $0x48] sm:$0xff] }
 0x1a0   : > { %v3504_v42 = vadd.f32 %v3440_v39, %v3293_v14  ;;  %2855 = vst.msk [vmem:[#allocation3 + $0x50] sm:$0xff] %vm816_vm1, %v2791_v38  ;;  %v3983_v14 = vsel %vm1383_vm2, %v3978_v0, %v3982_v1  ;;  %v10114_v38 = vld [vmem:[#allocation2 + $0x88] sm:$0xff]  ;;  %v11343_v0 = vld [vmem:[#allocation2 + $0x98] sm:$0xff] }
 0x1a1   : > { %v4417_v44 = vld [vmem:[#allocation3 + $0x40] sm:$0xff]  ;;  %v2584_v43 = vpop.f32.mrf.mxu2  ;;  %v11282_v55 = vpop.f32.mrf.mxu0 }
 0x1a2   : > { %3568 = vst.msk [vmem:[#allocation3 + $0x48] sm:$0xff] %vm816_vm1, %v3504_v42  ;;  %v4481_v47 = vadd.f32 %v4417_v44, %v11228_v60  ;;  %v10113_v60 = vld [vmem:[#allocation2 + $0x80] sm:$0xff] }
 0x1a3   : > { %v1803_v48 = vpop.f32.mrf.mxu1 }
 0x1a4   : > { %4545 = vst.msk [vmem:[#allocation3 + $0x40] sm:$0xff] %vm816_vm1, %v4481_v47  ;;  %v2009_v51 = vadd.f32 %v1945_v49, %v1803_v48  ;;  %v3298_v54 = vpop.f32.mrf.mxu3  ;;  %v1516_v48 = vshrl.u32 %v11288_v62, 16  ;;  %v1520_v49 = vshll.u32 %v11324_v40, 16 }
 0x1a5   : > { %v2728_v52 = vld [vmem:[#allocation3 + $0x58] sm:$0xff] }
 0x1a6   : > { %v2792_v58 = vadd.f32 %v2728_v52, %v2584_v43  ;;  %2073 = vst.msk [vmem:[#allocation3 + $0x60] sm:$0xff] %vm816_vm1, %v2009_v51  ;;  %8733 = vmatmul.msk.bf16.gmra.mxu1 %vm816_vm1, %v1507_v50  ;;  %8909 = vmatmul.msk.bf16.gmra.mxu2 %vm816_vm1, %v2393_v53  ;;  %v1948_v43 = vld [vmem:[#allocation3 + $0x78] sm:$0xff]  ;;  %v10276_v51 = vld [vmem:[#allocation9 + $0xe8] sm:$0xff] }
 0x1a7   : > { %v3441_v61 = vld [vmem:[#allocation3 + $0x50] sm:$0xff]  ;;  %6721 = vmatpush.bf16.msra.mxu3 %v10276_v51 }
 0x1a8   : > { %v3505_v63 = vadd.f32 %v3441_v61, %v3296_v34  ;;  %2856 = vst.msk [vmem:[#allocation3 + $0x58] sm:$0xff] %vm816_vm1, %v2792_v58  ;;  %v3984_v34 = vshrl.u32 %v11271_v46, 16  ;;  %v1522_v61 = vrot.slane %v1520_v49, 1 }
 0x1a9   : > { %v4418_v59 = vld [vmem:[#allocation3 + $0x48] sm:$0xff]  ;;  %9085 = vmatmul.msk.bf16.gmra.mxu3 %vm816_vm1, %v10113_v60  ;;  %v2587_v4 = vpop.f32.mrf.mxu2  ;;  %v11300_v13 = vpop.f32.mrf.mxu0  ;;  %v1518_v60 = vor.u32 %v1516_v48, %v1514_v18 }
 0x1aa   : > { %3569 = vst.msk [vmem:[#allocation3 + $0x50] sm:$0xff] %vm816_vm1, %v3505_v63  ;;  %v4482_v2 = vadd.f32 %v4418_v59, %v11246_v15  ;;  %v3986_v42 = vor.u32 %v3984_v34, %v3982_v1 }
 0x1ab   : > { %v1805_v5 = vpop.f32.mrf.mxu1 }
 0x1ac   : > { %4546 = vst.msk [vmem:[#allocation3 + $0x48] sm:$0xff] %vm816_vm1, %v4482_v2  ;;  %v2010_v8 = vadd.f32 %v1946_v6, %v1805_v5  ;;  %v3301_v11 = vpop.f32.mrf.mxu3  ;;  %9261 = vmatmul.msk.bf16.gmra.mxu0 %vm816_vm1, %v3983_v14  ;;  %v1949_v5 = vld [vmem:[#allocation3 + $0x80] sm:$0xff]  ;;  %v1523_v6 = vsel %vm1383_vm2, %v1518_v60, %v1522_v61 }
 0x1ad   : > { %v2729_v10 = vld [vmem:[#allocation3 + $0x60] sm:$0xff] }
 0x1ae   : > { %v2793_v15 = vadd.f32 %v2729_v10, %v2587_v4  ;;  %2074 = vst.msk [vmem:[#allocation3 + $0x68] sm:$0xff] %vm816_vm1, %v2010_v8 }
 0x1af   : > { %v3442_v16 = vld [vmem:[#allocation3 + $0x58] sm:$0xff] }
 0x1b0   : > { %v3506_v20 = vadd.f32 %v3442_v16, %v3298_v54  ;;  %2857 = vst.msk [vmem:[#allocation3 + $0x60] sm:$0xff] %vm816_vm1, %v2793_v15  ;;  %v11334_v54 = vld [vmem:[#allocation2 + $0x88] sm:$0xff]  ;;  %v10115_v15 = vld [vmem:[#allocation2 + $0x90] sm:$0xff] }
 0x1b1   : > { %v4419_v21 = vld [vmem:[#allocation3 + $0x50] sm:$0xff]  ;;  %v2589_v24 = vpop.f32.mrf.mxu2  ;;  %v11318_v33 = vpop.f32.mrf.mxu0  ;;  %v2396_v59 = vrot.slane %v11334_v54, 1 }
 0x1b2   : > { %3570 = vst.msk [vmem:[#allocation3 + $0x58] sm:$0xff] %vm816_vm1, %v3506_v20  ;;  %v4483_v19 = vadd.f32 %v4419_v21, %v11264_v36  ;;  %v3988_v36 = vshll.u32 %v11307_v23, 16 }
 0x1b3   : > { %v1808_v25 = vpop.f32.mrf.mxu1  ;;  %v2397_v8 = vsel %vm2362_vm3, %v2394_v22, %v2396_v59 }
 0x1b4   : > { %4547 = vst.msk [vmem:[#allocation3 + $0x50] sm:$0xff] %vm816_vm1, %v4483_v19  ;;  %v2011_v28 = vadd.f32 %v1947_v26, %v1808_v25  ;;  %v3303_v32 = vpop.f32.mrf.mxu3  ;;  %v3990_v44 = vrot.slane %v3988_v36, 1  ;;  %v1524_v25 = vshrl.u32 %v11324_v40, 16  ;;  %v1528_v26 = vshll.u32 %v11360_v17, 16 }
 0x1b5   : > { %v2730_v30 = vld [vmem:[#allocation3 + $0x68] sm:$0xff] }
 0x1b6   : > { %v2794_v37 = vadd.f32 %v2730_v30, %v2589_v24  ;;  %2075 = vst.msk [vmem:[#allocation3 + $0x70] sm:$0xff] %vm816_vm1, %v2011_v28  ;;  %8734 = vmatmul.msk.bf16.gmra.mxu1 %vm816_vm1, %v1515_v27  ;;  %8910 = vmatmul.msk.bf16.gmra.mxu2 %vm816_vm1, %v2395_v31  ;;  %v1950_v24 = vld [vmem:[#allocation3 + $0x88] sm:$0xff]  ;;  %v11370_v31 = vld [vmem:[#allocation2 + $0x90] sm:$0xff] }
 0x1b7   : > { %v3443_v39 = vld [vmem:[#allocation3 + $0x60] sm:$0xff]  ;;  %v10312_v28 = vld [vmem:[#allocation9 + $0x108] sm:$0xff] }
 0x1b8   : > { %v3507_v35 = vadd.f32 %v3443_v39, %v3301_v11  ;;  %2858 = vst.msk [vmem:[#allocation3 + $0x68] sm:$0xff] %vm816_vm1, %v2794_v37  ;;  %v3992_v11 = vshrl.u32 %v11307_v23, 16  ;;  %7504 = vmatpush.bf16.msra.mxu0 %v10312_v28  ;;  %v1526_v37 = vor.u32 %v1524_v25, %v1522_v61 }
 0x1b9   : > { %v4420_v41 = vld [vmem:[#allocation3 + $0x58] sm:$0xff]  ;;  %9086 = vmatmul.msk.bf16.gmra.mxu3 %vm816_vm1, %v10114_v38  ;;  %v2592_v46 = vpop.f32.mrf.mxu2  ;;  %v11336_v56 = vpop.f32.mrf.mxu0  ;;  %v1530_v38 = vrot.slane %v1528_v26, 1 }
 0x1ba   : > { %3571 = vst.msk [vmem:[#allocation3 + $0x60] sm:$0xff] %vm816_vm1, %v3507_v35  ;;  %v4484_v45 = vadd.f32 %v4420_v41, %v11282_v55  ;;  %v3991_v55 = vsel %vm1383_vm2, %v3986_v42, %v3990_v44  ;;  %v3994_v20 = vor.u32 %v3992_v11, %v3990_v44  ;;  %v2398_v35 = vrot.slane %v11370_v31, 1  ;;  %v11379_v41 = vld [vmem:[#allocation2 + $0xa0] sm:$0xff] }
 0x1bb   : > { %v1810_v47 = vpop.f32.mrf.mxu1  ;;  %v4008_v28 = vshrl.u32 %v11379_v41, 16 }
 0x1bc   : > { %4548 = vst.msk [vmem:[#allocation3 + $0x58] sm:$0xff] %vm816_vm1, %v4484_v45  ;;  %v2012_v50 = vadd.f32 %v1948_v43, %v1810_v47  ;;  %v3306_v53 = vpop.f32.mrf.mxu3  ;;  %9262 = vmatmul.msk.bf16.gmra.mxu0 %vm816_vm1, %v3991_v55  ;;  %v1531_v47 = vsel %vm1383_vm2, %v1526_v37, %v1530_v38  ;;  %v2399_v49 = vsel %vm2362_vm3, %v2396_v59, %v2398_v35  ;;  %v10116_v55 = vld [vmem:[#allocation2 + $0x98] sm:$0xff] }
 0x1bd   : > { %v2731_v52 = vld [vmem:[#allocation3 + $0x70] sm:$0xff] }
 0x1be   : > { %v2795_v57 = vadd.f32 %v2731_v52, %v2592_v46  ;;  %2076 = vst.msk [vmem:[#allocation3 + $0x78] sm:$0xff] %vm816_vm1, %v2012_v50  ;;  %v1951_v46 = vld [vmem:[#allocation3 + $0x90] sm:$0xff]  ;;  %v4000_v52 = vshrl.u32 %v11343_v0, 16 }
 0x1bf   : > { %v3444_v58 = vld [vmem:[#allocation3 + $0x68] sm:$0xff] }
 0x1c0   : > { %v3508_v62 = vadd.f32 %v3444_v58, %v3303_v32  ;;  %2859 = vst.msk [vmem:[#allocation3 + $0x70] sm:$0xff] %vm816_vm1, %v2795_v57  ;;  %v11396_v58 = vld [vmem:[#allocation2 + $0x98] sm:$0xff] }
 0x1c1   : > { %v4421_v63 = vld [vmem:[#allocation3 + $0x60] sm:$0xff]  ;;  %v2594_v2 = vpop.f32.mrf.mxu2  ;;  %v11354_v10 = vpop.f32.mrf.mxu0 }
 0x1c2   : > { %3572 = vst.msk [vmem:[#allocation3 + $0x68] sm:$0xff] %vm816_vm1, %v3508_v62  ;;  %v4485_v1 = vadd.f32 %v4421_v63, %v11300_v13  ;;  %v3996_v13 = vshll.u32 %v11343_v0, 16 }
 0x1c3   : > { %v1813_v4 = vpop.f32.mrf.mxu1 }
 0x1c4   : > { %4549 = vst.msk [vmem:[#allocation3 + $0x60] sm:$0xff] %vm816_vm1, %v4485_v1  ;;  %v2013_v7 = vadd.f32 %v1949_v5, %v1813_v4  ;;  %v3308_v9 = vpop.f32.mrf.mxu3  ;;  %v3998_v21 = vrot.slane %v3996_v13, 1  ;;  %v1952_v1 = vld [vmem:[#allocation3 + $0x98] sm:$0xff]  ;;  %v1536_v4 = vshll.u32 %v11396_v58, 16 }
 0x1c5   : > { %v2732_v3 = vld [vmem:[#allocation3 + $0x78] sm:$0xff] }
 0x1c6   : > { %v2796_v14 = vadd.f32 %v2732_v3, %v2594_v2  ;;  %2077 = vst.msk [vmem:[#allocation3 + $0x80] sm:$0xff] %vm816_vm1, %v2013_v7  ;;  %8735 = vmatmul.msk.bf16.gmra.mxu1 %vm816_vm1, %v1523_v6  ;;  %8911 = vmatmul.msk.bf16.gmra.mxu2 %vm816_vm1, %v2397_v8  ;;  %v4002_v61 = vor.u32 %v4000_v52, %v3998_v21  ;;  %v1532_v2 = vshrl.u32 %v11360_v17, 16  ;;  %v11406_v3 = vld [vmem:[#allocation2 + $0x98] sm:$0xff] }
 0x1c7   : > { %v3445_v16 = vld [vmem:[#allocation3 + $0x70] sm:$0xff]  ;;  %v2400_v17 = vrot.slane %v11406_v3, 1 }
 0x1c8   : > { %v3509_v18 = vadd.f32 %v3445_v16, %v3306_v53  ;;  %2860 = vst.msk [vmem:[#allocation3 + $0x78] sm:$0xff] %vm816_vm1, %v2796_v14  ;;  %v4004_v53 = vshll.u32 %v11379_v41, 16  ;;  %v1534_v13 = vor.u32 %v1532_v2, %v1530_v38  ;;  %v1538_v14 = vrot.slane %v1536_v4, 1  ;;  %v1954_v41 = vld [vmem:[#allocation3 + $0xa8] sm:$0xff] }
 0x1c9   : > { %v4422_v12 = vld [vmem:[#allocation3 + $0x68] sm:$0xff]  ;;  %9087 = vmatmul.msk.bf16.gmra.mxu3 %vm816_vm1, %v10115_v15  ;;  %v2597_v23 = vpop.f32.mrf.mxu2  ;;  %v11372_v32 = vpop.f32.mrf.mxu0  ;;  %v2401_v25 = vsel %vm2362_vm3, %v2398_v35, %v2400_v17 }
 0x1ca   : > { %3573 = vst.msk [vmem:[#allocation3 + $0x70] sm:$0xff] %vm816_vm1, %v3509_v18  ;;  %v4486_v22 = vadd.f32 %v4422_v12, %v11318_v33  ;;  %v3999_v33 = vsel %vm1383_vm2, %v3994_v20, %v3998_v21  ;;  %v4006_v62 = vrot.slane %v4004_v53, 1  ;;  %v11415_v18 = vld [vmem:[#allocation2 + $0xa8] sm:$0xff] }
 0x1cb   : > { %v1815_v19 = vpop.f32.mrf.mxu1 }
 0x1cc   : > { %4550 = vst.msk [vmem:[#allocation3 + $0x68] sm:$0xff] %vm816_vm1, %v4486_v22  ;;  %v2014_v27 = vadd.f32 %v1950_v24, %v1815_v19  ;;  %v3311_v30 = vpop.f32.mrf.mxu3  ;;  %9263 = vmatmul.msk.bf16.gmra.mxu0 %vm816_vm1, %v3999_v33  ;;  %v1953_v22 = vld [vmem:[#allocation3 + $0xa0] sm:$0xff]  ;;  %v4010_v37 = vor.u32 %v4008_v28, %v4006_v62 }
 0x1cd   : > { %v2733_v29 = vld [vmem:[#allocation3 + $0x80] sm:$0xff] }
 0x1ce   : > { %v2797_v34 = vadd.f32 %v2733_v29, %v2597_v23  ;;  %2078 = vst.msk [vmem:[#allocation3 + $0x88] sm:$0xff] %vm816_vm1, %v2014_v27  ;;  %v1539_v23 = vsel %vm1383_vm2, %v1534_v13, %v1538_v14  ;;  %v4012_v29 = vshll.u32 %v11415_v18, 16 }
 0x1cf   : > { %v3446_v36 = vld [vmem:[#allocation3 + $0x78] sm:$0xff] }
 0x1d0   : > { %v3510_v39 = vadd.f32 %v3446_v36, %v3308_v9  ;;  %2861 = vst.msk [vmem:[#allocation3 + $0x80] sm:$0xff] %vm816_vm1, %v2797_v34  ;;  %v4007_v9 = vsel %vm1383_vm2, %v4002_v61, %v4006_v62  ;;  %v11432_v34 = vld [vmem:[#allocation2 + $0xa0] sm:$0xff]  ;;  %v4014_v38 = vrot.slane %v4012_v29, 1  ;;  %v1955_v62 = vld [vmem:[#allocation3 + $0xb0] sm:$0xff] }
 0x1d1   : > { %v4423_v40 = vld [vmem:[#allocation3 + $0x70] sm:$0xff]  ;;  %v2599_v44 = vpop.f32.mrf.mxu2  ;;  %v11390_v51 = vpop.f32.mrf.mxu0 }
 0x1d2   : > { %3574 = vst.msk [vmem:[#allocation3 + $0x78] sm:$0xff] %vm816_vm1, %v3510_v39  ;;  %v4487_v42 = vadd.f32 %v4423_v40, %v11336_v56 }
 0x1d3   : > { %v1818_v45 = vpop.f32.mrf.mxu1 }
 0x1d4   : > { %4551 = vst.msk [vmem:[#allocation3 + $0x70] sm:$0xff] %vm816_vm1, %v4487_v42  ;;  %v2015_v43 = vadd.f32 %v1951_v46, %v1818_v45  ;;  %v3313_v50 = vpop.f32.mrf.mxu3  ;;  %v1540_v42 = vshrl.u32 %v11396_v58, 16  ;;  %v11451_v58 = vld [vmem:[#allocation2 + $0xb0] sm:$0xff] }
 0x1d5   : > { %v2734_v48 = vld [vmem:[#allocation3 + $0x88] sm:$0xff] }
 0x1d6   : > { %v2798_v56 = vadd.f32 %v2734_v48, %v2599_v44  ;;  %2079 = vst.msk [vmem:[#allocation3 + $0x90] sm:$0xff] %vm816_vm1, %v2015_v43  ;;  %8736 = vmatmul.msk.bf16.gmra.mxu1 %vm816_vm1, %v1531_v47  ;;  %8912 = vmatmul.msk.bf16.gmra.mxu2 %vm816_vm1, %v2399_v49  ;;  %v1544_v44 = vshll.u32 %v11432_v34, 16  ;;  %v11442_v43 = vld [vmem:[#allocation2 + $0xa0] sm:$0xff]  ;;  %v4015_v49 = vsel %vm1383_vm2, %v4010_v37, %v4014_v38 }
 0x1d7   : > { %v3447_v57 = vld [vmem:[#allocation3 + $0x80] sm:$0xff]  ;;  %v1542_v52 = vor.u32 %v1540_v42, %v1538_v14 }
 0x1d8   : > { %v3511_v60 = vadd.f32 %v3447_v57, %v3311_v30  ;;  %2862 = vst.msk [vmem:[#allocation3 + $0x88] sm:$0xff] %vm816_vm1, %v2798_v56  ;;  %v1546_v53 = vrot.slane %v1544_v44, 1  ;;  %v2402_v57 = vrot.slane %v11442_v43, 1 }
 0x1d9   : > { %v4424_v54 = vld [vmem:[#allocation3 + $0x78] sm:$0xff]  ;;  %9088 = vmatmul.msk.bf16.gmra.mxu3 %vm816_vm1, %v10116_v55  ;;  %v2602_v59 = vpop.f32.mrf.mxu2  ;;  %v11408_v8 = vpop.f32.mrf.mxu0 }
 0x1da   : > { %3575 = vst.msk [vmem:[#allocation3 + $0x80] sm:$0xff] %vm816_vm1, %v3511_v60  ;;  %v4488_v63 = vadd.f32 %v4424_v54, %v11354_v10 }
 0x1db   : > { %v1820_v0 = vpop.f32.mrf.mxu1 }
 0x1dc   : > { %4552 = vst.msk [vmem:[#allocation3 + $0x78] sm:$0xff] %vm816_vm1, %v4488_v63  ;;  %v2016_v5 = vadd.f32 %v1952_v1, %v1820_v0  ;;  %v3316_v7 = vpop.f32.mrf.mxu3  ;;  %9264 = vmatmul.msk.bf16.gmra.mxu0 %vm816_vm1, %v4007_v9  ;;  %v1547_v63 = vsel %vm1383_vm2, %v1542_v52, %v1546_v53  ;;  %v2403_v1 = vsel %vm2362_vm3, %v2400_v17, %v2402_v57 }
 0x1dd   : > { %v2735_v6 = vld [vmem:[#allocation3 + $0x90] sm:$0xff] }
 0x1de   : > { %v2799_v10 = vadd.f32 %v2735_v6, %v2602_v59  ;;  %2080 = vst.msk [vmem:[#allocation3 + $0x98] sm:$0xff] %vm816_vm1, %v2016_v5  ;;  %v4016_v5 = vshrl.u32 %v11415_v18, 16  ;;  %v4020_v6 = vshll.u32 %v11451_v58, 16  ;;  %v1956_v18 = vld [vmem:[#allocation3 + $0xb8] sm:$0xff] }
 0x1df   : > { %v3448_v11 = vld [vmem:[#allocation3 + $0x88] sm:$0xff] }
 0x1e0   : > { %v3512_v15 = vadd.f32 %v3448_v11, %v3313_v50  ;;  %2863 = vst.msk [vmem:[#allocation3 + $0x90] sm:$0xff] %vm816_vm1, %v2799_v10  ;;  %v11468_v10 = vld [vmem:[#allocation2 + $0xa8] sm:$0xff]  ;;  %v4018_v13 = vor.u32 %v4016_v5, %v4014_v38  ;;  %v4022_v14 = vrot.slane %v4020_v6, 1  ;;  %v1957_v38 = vld [vmem:[#allocation3 + $0xc0] sm:$0xff] }
 0x1e1   : > { %v4425_v16 = vld [vmem:[#allocation3 + $0x80] sm:$0xff]  ;;  %v2604_v20 = vpop.f32.mrf.mxu2  ;;  %v11426_v27 = vpop.f32.mrf.mxu0 }
 0x1e2   : > { %3576 = vst.msk [vmem:[#allocation3 + $0x88] sm:$0xff] %vm816_vm1, %v3512_v15  ;;  %v4489_v12 = vadd.f32 %v4425_v16, %v11372_v32  ;;  %v10117_v32 = vld [vmem:[#allocation2 + $0xa0] sm:$0xff] }
 0x1e3   : > { %v1823_v21 = vpop.f32.mrf.mxu1 }
 0x1e4   : > { %4553 = vst.msk [vmem:[#allocation3 + $0x80] sm:$0xff] %vm816_vm1, %v4489_v12  ;;  %v2017_v19 = vadd.f32 %v1953_v22, %v1823_v21  ;;  %v3318_v26 = vpop.f32.mrf.mxu3  ;;  %v1548_v12 = vshrl.u32 %v11432_v34, 16  ;;  %v11487_v34 = vld [vmem:[#allocation2 + $0xb8] sm:$0xff] }
 0x1e5   : > { %v2736_v24 = vld [vmem:[#allocation3 + $0x98] sm:$0xff] }
 0x1e6   : > { %v2800_v30 = vadd.f32 %v2736_v24, %v2604_v20  ;;  %2081 = vst.msk [vmem:[#allocation3 + $0xa0] sm:$0xff] %vm816_vm1, %v2017_v19  ;;  %8737 = vmatmul.msk.bf16.gmra.mxu1 %vm816_vm1, %v1539_v23  ;;  %8913 = vmatmul.msk.bf16.gmra.mxu2 %vm816_vm1, %v2401_v25  ;;  %v1552_v20 = vshll.u32 %v11468_v10, 16  ;;  %v11478_v19 = vld [vmem:[#allocation2 + $0xa8] sm:$0xff]  ;;  %v4023_v25 = vsel %vm1383_vm2, %v4018_v13, %v4022_v14 }
 0x1e7   : > { %v3449_v33 = vld [vmem:[#allocation3 + $0x90] sm:$0xff]  ;;  %v1550_v28 = vor.u32 %v1548_v12, %v1546_v53 }
 0x1e8   : > { %v3513_v36 = vadd.f32 %v3449_v33, %v3316_v7  ;;  %2864 = vst.msk [vmem:[#allocation3 + $0x98] sm:$0xff] %vm816_vm1, %v2800_v30  ;;  %v1554_v29 = vrot.slane %v1552_v20, 1  ;;  %v2404_v33 = vrot.slane %v11478_v19, 1 }
 0x1e9   : > { %v4426_v31 = vld [vmem:[#allocation3 + $0x88] sm:$0xff]  ;;  %9089 = vmatmul.msk.bf16.gmra.mxu3 %vm816_vm1, %v10117_v32  ;;  %v2607_v40 = vpop.f32.mrf.mxu2  ;;  %v11444_v48 = vpop.f32.mrf.mxu0 }
 0x1ea   : > { %3577 = vst.msk [vmem:[#allocation3 + $0x90] sm:$0xff] %vm816_vm1, %v3513_v36  ;;  %v4490_v39 = vadd.f32 %v4426_v31, %v11390_v51 }
 0x1eb   : > { %v1825_v35 = vpop.f32.mrf.mxu1 }
 0x1ec   : > { %4554 = vst.msk [vmem:[#allocation3 + $0x88] sm:$0xff] %vm816_vm1, %v4490_v39  ;;  %v2018_v45 = vadd.f32 %v1954_v41, %v1825_v35  ;;  %v3321_v47 = vpop.f32.mrf.mxu3  ;;  %9265 = vmatmul.msk.bf16.gmra.mxu0 %vm816_vm1, %v4015_v49  ;;  %v1555_v39 = vsel %vm1383_vm2, %v1550_v28, %v1554_v29  ;;  %v2405_v41 = vsel %vm2362_vm3, %v2402_v57, %v2404_v33 }
 0x1ed   : > { %v2737_v46 = vld [vmem:[#allocation3 + $0xa0] sm:$0xff] }
 0x1ee   : > { %v2801_v50 = vadd.f32 %v2737_v46, %v2607_v40  ;;  %2082 = vst.msk [vmem:[#allocation3 + $0xa8] sm:$0xff] %vm816_vm1, %v2018_v45  ;;  %v4024_v45 = vshrl.u32 %v11451_v58, 16  ;;  %v4028_v46 = vshll.u32 %v11487_v34, 16  ;;  %v1958_v58 = vld [vmem:[#allocation3 + $0xc8] sm:$0xff] }
 0x1ef   : > { %v3450_v51 = vld [vmem:[#allocation3 + $0x98] sm:$0xff] }
 0x1f0   : > { %v3514_v56 = vadd.f32 %v3450_v51, %v3318_v26  ;;  %2865 = vst.msk [vmem:[#allocation3 + $0xa0] sm:$0xff] %vm816_vm1, %v2801_v50  ;;  %v11504_v50 = vld [vmem:[#allocation2 + $0xb0] sm:$0xff]  ;;  %v4026_v52 = vor.u32 %v4024_v45, %v4022_v14  ;;  %v4030_v53 = vrot.slane %v4028_v46, 1 }
 0x1f1   : > { %v4427_v55 = vld [vmem:[#allocation3 + $0x90] sm:$0xff]  ;;  %v2609_v54 = vpop.f32.mrf.mxu2  ;;  %v11462_v4 = vpop.f32.mrf.mxu0 }
 0x1f2   : > { %3578 = vst.msk [vmem:[#allocation3 + $0x98] sm:$0xff] %vm816_vm1, %v3514_v56  ;;  %v4491_v60 = vadd.f32 %v4427_v55, %v11408_v8  ;;  %v10118_v8 = vld [vmem:[#allocation2 + $0xa8] sm:$0xff]  ;;  %v1959_v14 = vld [vmem:[#allocation3 + $0xd0] sm:$0xff] }
 0x1f3   : > { %v1828_v61 = vpop.f32.mrf.mxu1 }
 0x1f4   : > { %4555 = vst.msk [vmem:[#allocation3 + $0x90] sm:$0xff] %vm816_vm1, %v4491_v60  ;;  %v2019_v59 = vadd.f32 %v1955_v62, %v1828_v61  ;;  %v3323_v2 = vpop.f32.mrf.mxu3  ;;  %v1556_v60 = vshrl.u32 %v11468_v10, 16  ;;  %v11523_v10 = vld [vmem:[#allocation2 + $0xc0] sm:$0xff] }
 0x1f5   : > { %v2738_v0 = vld [vmem:[#allocation3 + $0xa8] sm:$0xff] }
 0x1f6   : > { %v2802_v7 = vadd.f32 %v2738_v0, %v2609_v54  ;;  %2083 = vst.msk [vmem:[#allocation3 + $0xb0] sm:$0xff] %vm816_vm1, %v2019_v59  ;;  %8738 = vmatmul.msk.bf16.gmra.mxu1 %vm816_vm1, %v1547_v63  ;;  %8914 = vmatmul.msk.bf16.gmra.mxu2 %vm816_vm1, %v2403_v1  ;;  %v1560_v54 = vshll.u32 %v11504_v50, 16  ;;  %v11514_v59 = vld [vmem:[#allocation2 + $0xb0] sm:$0xff]  ;;  %v4031_v1 = vsel %vm1383_vm2, %v4026_v52, %v4030_v53 }
 0x1f7   : > { %v3451_v9 = vld [vmem:[#allocation3 + $0xa0] sm:$0xff]  ;;  %v1558_v5 = vor.u32 %v1556_v60, %v1554_v29 }
 0x1f8   : > { %v3515_v11 = vadd.f32 %v3451_v9, %v3321_v47  ;;  %2866 = vst.msk [vmem:[#allocation3 + $0xa8] sm:$0xff] %vm816_vm1, %v2802_v7  ;;  %v1562_v6 = vrot.slane %v1560_v54, 1  ;;  %v2406_v9 = vrot.slane %v11514_v59, 1 }
 0x1f9   : > { %v4428_v3 = vld [vmem:[#allocation3 + $0x98] sm:$0xff]  ;;  %9090 = vmatmul.msk.bf16.gmra.mxu3 %vm816_vm1, %v10118_v8  ;;  %v2612_v16 = vpop.f32.mrf.mxu2  ;;  %v11480_v24 = vpop.f32.mrf.mxu0 }
 0x1fa   : > { %3579 = vst.msk [vmem:[#allocation3 + $0xa0] sm:$0xff] %vm816_vm1, %v3515_v11  ;;  %v4492_v15 = vadd.f32 %v4428_v3, %v11426_v27 }
 0x1fb   : > { %v1830_v17 = vpop.f32.mrf.mxu1 }
 0x1fc   : > { %4556 = vst.msk [vmem:[#allocation3 + $0x98] sm:$0xff] %vm816_vm1, %v4492_v15  ;;  %v2020_v21 = vadd.f32 %v1956_v18, %v1830_v17  ;;  %v3326_v23 = vpop.f32.mrf.mxu3  ;;  %9266 = vmatmul.msk.bf16.gmra.mxu0 %vm816_vm1, %v4023_v25  ;;  %v1563_v15 = vsel %vm1383_vm2, %v1558_v5, %v1562_v6  ;;  %v2407_v18 = vsel %vm2362_vm3, %v2404_v33, %v2406_v9 }
 0x1fd   : > { %v2739_v22 = vld [vmem:[#allocation3 + $0xb0] sm:$0xff] }
 0x1fe   : > { %v2803_v26 = vadd.f32 %v2739_v22, %v2612_v16  ;;  %2084 = vst.msk [vmem:[#allocation3 + $0xb8] sm:$0xff] %vm816_vm1, %v2020_v21  ;;  %v4032_v21 = vshrl.u32 %v11487_v34, 16  ;;  %v4036_v22 = vshll.u32 %v11523_v10, 16  ;;  %v1960_v34 = vld [vmem:[#allocation3 + $0xd8] sm:$0xff] }
 0x1ff   : > { %v3452_v27 = vld [vmem:[#allocation3 + $0xa8] sm:$0xff] }
 0x200   : > { %v3516_v30 = vadd.f32 %v3452_v27, %v3323_v2  ;;  %2867 = vst.msk [vmem:[#allocation3 + $0xb0] sm:$0xff] %vm816_vm1, %v2803_v26  ;;  %v11540_v26 = vld [vmem:[#allocation2 + $0xb8] sm:$0xff]  ;;  %v4034_v28 = vor.u32 %v4032_v21, %v4030_v53  ;;  %v4038_v29 = vrot.slane %v4036_v22, 1  ;;  %v1961_v53 = vld [vmem:[#allocation3 + $0xe0] sm:$0xff] }
 0x201   : > { %v4429_v32 = vld [vmem:[#allocation3 + $0xa0] sm:$0xff]  ;;  %v2614_v31 = vpop.f32.mrf.mxu2  ;;  %v11498_v44 = vpop.f32.mrf.mxu0 }
 0x202   : > { %3580 = vst.msk [vmem:[#allocation3 + $0xa8] sm:$0xff] %vm816_vm1, %v3516_v30  ;;  %v4493_v36 = vadd.f32 %v4429_v32, %v11444_v48  ;;  %v10119_v48 = vld [vmem:[#allocation2 + $0xb0] sm:$0xff] }
 0x203   : > { %v1833_v37 = vpop.f32.mrf.mxu1 }
 0x204   : > { %4557 = vst.msk [vmem:[#allocation3 + $0xa0] sm:$0xff] %vm816_vm1, %v4493_v36  ;;  %v2021_v40 = vadd.f32 %v1957_v38, %v1833_v37  ;;  %v3328_v42 = vpop.f32.mrf.mxu3  ;;  %v1564_v36 = vshrl.u32 %v11504_v50, 16  ;;  %v11559_v50 = vld [vmem:[#allocation2 + $0xc8] sm:$0xff] }
 0x205   : > { %v2740_v35 = vld [vmem:[#allocation3 + $0xb8] sm:$0xff] }
 0x206   : > { %v2804_v47 = vadd.f32 %v2740_v35, %v2614_v31  ;;  %2085 = vst.msk [vmem:[#allocation3 + $0xc0] sm:$0xff] %vm816_vm1, %v2021_v40  ;;  %8739 = vmatmul.msk.bf16.gmra.mxu1 %vm816_vm1, %v1555_v39  ;;  %8915 = vmatmul.msk.bf16.gmra.mxu2 %vm816_vm1, %v2405_v41  ;;  %v1568_v31 = vshll.u32 %v11540_v26, 16  ;;  %v11550_v40 = vld [vmem:[#allocation2 + $0xb8] sm:$0xff]  ;;  %v4039_v41 = vsel %vm1383_vm2, %v4034_v28, %v4038_v29 }
 0x207   : > { %v3453_v49 = vld [vmem:[#allocation3 + $0xb0] sm:$0xff]  ;;  %v1566_v45 = vor.u32 %v1564_v36, %v1562_v6 }
 0x208   : > { %v3517_v51 = vadd.f32 %v3453_v49, %v3326_v23  ;;  %2868 = vst.msk [vmem:[#allocation3 + $0xb8] sm:$0xff] %vm816_vm1, %v2804_v47  ;;  %v1570_v46 = vrot.slane %v1568_v31, 1  ;;  %v2408_v49 = vrot.slane %v11550_v40, 1 }
 0x209   : > { %v4430_v43 = vld [vmem:[#allocation3 + $0xa8] sm:$0xff]  ;;  %9091 = vmatmul.msk.bf16.gmra.mxu3 %vm816_vm1, %v10119_v48  ;;  %v2617_v55 = vpop.f32.mrf.mxu2  ;;  %v11516_v0 = vpop.f32.mrf.mxu0 }
 0x20a   : > { %3581 = vst.msk [vmem:[#allocation3 + $0xb0] sm:$0xff] %vm816_vm1, %v3517_v51  ;;  %v4494_v56 = vadd.f32 %v4430_v43, %v11462_v4 }
 0x20b   : > { %v1835_v57 = vpop.f32.mrf.mxu1 }
 0x20c   : > { %4558 = vst.msk [vmem:[#allocation3 + $0xa8] sm:$0xff] %vm816_vm1, %v4494_v56  ;;  %v2022_v61 = vadd.f32 %v1958_v58, %v1835_v57  ;;  %v3331_v63 = vpop.f32.mrf.mxu3  ;;  %9267 = vmatmul.msk.bf16.gmra.mxu0 %vm816_vm1, %v4031_v1  ;;  %v1571_v56 = vsel %vm1383_vm2, %v1566_v45, %v1570_v46  ;;  %v2409_v58 = vsel %vm2362_vm3, %v2406_v9, %v2408_v49  ;;  %v11612_v45 = vld [vmem:[#allocation2 + $0xc8] sm:$0xff] }
 0x20d   : > { %v2741_v62 = vld [vmem:[#allocation3 + $0xc0] sm:$0xff] }
 0x20e   : > { %v2805_v2 = vadd.f32 %v2741_v62, %v2617_v55  ;;  %2086 = vst.msk [vmem:[#allocation3 + $0xc8] sm:$0xff] %vm816_vm1, %v2022_v61  ;;  %v4040_v61 = vshrl.u32 %v11523_v10, 16  ;;  %v4044_v62 = vshll.u32 %v11559_v50, 16  ;;  %v1962_v10 = vld [vmem:[#allocation3 + $0xe8] sm:$0xff] }
 0x20f   : > { %v3454_v4 = vld [vmem:[#allocation3 + $0xb8] sm:$0xff] }
 0x210   : > { %v3518_v7 = vadd.f32 %v3454_v4, %v3328_v42  ;;  %2869 = vst.msk [vmem:[#allocation3 + $0xc0] sm:$0xff] %vm816_vm1, %v2805_v2  ;;  %v11576_v2 = vld [vmem:[#allocation2 + $0xc0] sm:$0xff]  ;;  %v4042_v5 = vor.u32 %v4040_v61, %v4038_v29  ;;  %v4046_v6 = vrot.slane %v4044_v62, 1 }
 0x211   : > { %v4431_v8 = vld [vmem:[#allocation3 + $0xb0] sm:$0xff]  ;;  %v2619_v3 = vpop.f32.mrf.mxu2  ;;  %v11534_v20 = vpop.f32.mrf.mxu0 }
 0x212   : > { %3582 = vst.msk [vmem:[#allocation3 + $0xb8] sm:$0xff] %vm816_vm1, %v3518_v7  ;;  %v4495_v11 = vadd.f32 %v4431_v8, %v11480_v24  ;;  %v10120_v24 = vld [vmem:[#allocation2 + $0xb8] sm:$0xff] }
 0x213   : > { %v1838_v13 = vpop.f32.mrf.mxu1 }
 0x214   : > { %4559 = vst.msk [vmem:[#allocation3 + $0xb0] sm:$0xff] %vm816_vm1, %v4495_v11  ;;  %v2023_v16 = vadd.f32 %v1959_v14, %v1838_v13  ;;  %v3333_v12 = vpop.f32.mrf.mxu3  ;;  %v1572_v11 = vshrl.u32 %v11540_v26, 16  ;;  %v10203_v14 = vld [vmem:[#allocation9 + $0xa0] sm:$0xff] }
 0x215   : > { %v2742_v17 = vld [vmem:[#allocation3 + $0xc8] sm:$0xff]  ;;  %5030 = vmatpush.bf16.msra.mxu1 %v10203_v14 }
 0x216   : > { %v2806_v23 = vadd.f32 %v2742_v17, %v2619_v3  ;;  %2087 = vst.msk [vmem:[#allocation3 + $0xd0] sm:$0xff] %vm816_vm1, %v2023_v16  ;;  %8740 = vmatmul.msk.bf16.gmra.mxu1 %vm816_vm1, %v1563_v15  ;;  %8916 = vmatmul.msk.bf16.gmra.mxu2 %vm816_vm1, %v2407_v18  ;;  %v1576_v3 = vshll.u32 %v11576_v2, 16  ;;  %v11586_v17 = vld [vmem:[#allocation2 + $0xc0] sm:$0xff]  ;;  %v1574_v22 = vor.u32 %v1572_v11, %v1570_v46 }
 0x217   : > { %v3455_v25 = vld [vmem:[#allocation3 + $0xc0] sm:$0xff]  ;;  %v2410_v26 = vrot.slane %v11586_v17, 1 }
 0x218   : > { %v3519_v27 = vadd.f32 %v3455_v25, %v3331_v63  ;;  %2870 = vst.msk [vmem:[#allocation3 + $0xc8] sm:$0xff] %vm816_vm1, %v2806_v23  ;;  %v1578_v23 = vrot.slane %v1576_v3, 1 }
 0x219   : > { %v4432_v19 = vld [vmem:[#allocation3 + $0xb8] sm:$0xff]  ;;  %9092 = vmatmul.msk.bf16.gmra.mxu3 %vm816_vm1, %v10120_v24  ;;  %v2622_v32 = vpop.f32.mrf.mxu2  ;;  %v11552_v35 = vpop.f32.mrf.mxu0  ;;  %v2411_v31 = vsel %vm2362_vm3, %v2408_v49, %v2410_v26 }
 0x21a   : > { %3583 = vst.msk [vmem:[#allocation3 + $0xc0] sm:$0xff] %vm816_vm1, %v3519_v27  ;;  %v4496_v30 = vadd.f32 %v4432_v19, %v11498_v44  ;;  %v11595_v27 = vld [vmem:[#allocation2 + $0xd0] sm:$0xff] }
 0x21b   : > { %v1840_v33 = vpop.f32.mrf.mxu1 }
 0x21c   : > { %4560 = vst.msk [vmem:[#allocation3 + $0xb8] sm:$0xff] %vm816_vm1, %v4496_v30  ;;  %v2024_v37 = vadd.f32 %v1960_v34, %v1840_v33  ;;  %v3336_v39 = vpop.f32.mrf.mxu3  ;;  %9268 = vmatmul.msk.bf16.gmra.mxu0 %vm816_vm1, %v4039_v41  ;;  %v1963_v30 = vld [vmem:[#allocation3 + $0xf0] sm:$0xff]  ;;  %v10239_v34 = vld [vmem:[#allocation9 + $0xc0] sm:$0xff] }
 0x21d   : > { %v2743_v38 = vld [vmem:[#allocation3 + $0xd0] sm:$0xff]  ;;  %5744 = vmatpush.bf16.msra.mxu2 %v10239_v34 }
 0x21e   : > { %v2807_v42 = vadd.f32 %v2743_v38, %v2622_v32  ;;  %2088 = vst.msk [vmem:[#allocation3 + $0xd8] sm:$0xff] %vm816_vm1, %v2024_v37  ;;  %v1579_v32 = vsel %vm1383_vm2, %v1574_v22, %v1578_v23  ;;  %v11648_v22 = vld [vmem:[#allocation2 + $0xd0] sm:$0xff] }
 0x21f   : > { %v3456_v44 = vld [vmem:[#allocation3 + $0xc8] sm:$0xff] }
 0x220   : > { %v3520_v47 = vadd.f32 %v3456_v44, %v3333_v12  ;;  %2871 = vst.msk [vmem:[#allocation3 + $0xd0] sm:$0xff] %vm816_vm1, %v2807_v42  ;;  %v4047_v12 = vsel %vm1383_vm2, %v4042_v5, %v4046_v6  ;;  %v10122_v42 = vld [vmem:[#allocation2 + $0xc8] sm:$0xff]  ;;  %v11631_v5 = vld [vmem:[#allocation2 + $0xd8] sm:$0xff] }
 0x221   : > { %v4433_v48 = vld [vmem:[#allocation3 + $0xc0] sm:$0xff]  ;;  %v2624_v43 = vpop.f32.mrf.mxu2  ;;  %v11570_v54 = vpop.f32.mrf.mxu0 }
 0x222   : > { %3584 = vst.msk [vmem:[#allocation3 + $0xc8] sm:$0xff] %vm816_vm1, %v3520_v47  ;;  %v4497_v51 = vadd.f32 %v4433_v48, %v11516_v0  ;;  %v10121_v0 = vld [vmem:[#allocation2 + $0xc0] sm:$0xff] }
 0x223   : > { %v1843_v52 = vpop.f32.mrf.mxu1 }
 0x224   : > { %4561 = vst.msk [vmem:[#allocation3 + $0xc0] sm:$0xff] %vm816_vm1, %v4497_v51  ;;  %v2025_v55 = vadd.f32 %v1961_v53, %v1843_v52  ;;  %v3338_v60 = vpop.f32.mrf.mxu3  ;;  %v1580_v52 = vshrl.u32 %v11576_v2, 16  ;;  %v1584_v53 = vshll.u32 %v11612_v45, 16 }
 0x225   : > { %v2744_v57 = vld [vmem:[#allocation3 + $0xd8] sm:$0xff] }
 0x226   : > { %v2808_v63 = vadd.f32 %v2744_v57, %v2624_v43  ;;  %2089 = vst.msk [vmem:[#allocation3 + $0xe0] sm:$0xff] %vm816_vm1, %v2025_v55  ;;  %8741 = vmatmul.msk.bf16.gmra.mxu1 %vm816_vm1, %v1571_v56  ;;  %8917 = vmatmul.msk.bf16.gmra.mxu2 %vm816_vm1, %v2409_v58  ;;  %v1964_v43 = vld [vmem:[#allocation3 + $0xf8] sm:$0xff]  ;;  %v10275_v55 = vld [vmem:[#allocation9 + $0xe0] sm:$0xff] }
 0x227   : > { %v3457_v1 = vld [vmem:[#allocation3 + $0xd0] sm:$0xff]  ;;  %6722 = vmatpush.bf16.msra.mxu3 %v10275_v55 }
 0x228   : > { %v3521_v4 = vadd.f32 %v3457_v1, %v3336_v39  ;;  %2872 = vst.msk [vmem:[#allocation3 + $0xd8] sm:$0xff] %vm816_vm1, %v2808_v63  ;;  %v4048_v39 = vshrl.u32 %v11559_v50, 16  ;;  %v1586_v1 = vrot.slane %v1584_v53, 1 }
 0x229   : > { %v4434_v59 = vld [vmem:[#allocation3 + $0xc8] sm:$0xff]  ;;  %9093 = vmatmul.msk.bf16.gmra.mxu3 %vm816_vm1, %v10121_v0  ;;  %v2627_v8 = vpop.f32.mrf.mxu2  ;;  %v11588_v18 = vpop.f32.mrf.mxu0  ;;  %v1582_v0 = vor.u32 %v1580_v52, %v1578_v23 }
 0x22a   : > { %3585 = vst.msk [vmem:[#allocation3 + $0xd0] sm:$0xff] %vm816_vm1, %v3521_v4  ;;  %v4498_v7 = vadd.f32 %v4434_v59, %v11534_v20  ;;  %v4050_v47 = vor.u32 %v4048_v39, %v4046_v6 }
 0x22b   : > { %v1845_v9 = vpop.f32.mrf.mxu1 }
 0x22c   : > { %4562 = vst.msk [vmem:[#allocation3 + $0xc8] sm:$0xff] %vm816_vm1, %v4498_v7  ;;  %v2026_v13 = vadd.f32 %v1962_v10, %v1845_v9  ;;  %v3341_v16 = vpop.f32.mrf.mxu3  ;;  %9269 = vmatmul.msk.bf16.gmra.mxu0 %vm816_vm1, %v4047_v12  ;;  %v1965_v9 = vld [vmem:[#allocation3 + $0x100] sm:$0xff]  ;;  %v1587_v10 = vsel %vm1383_vm2, %v1582_v0, %v1586_v1 }
 0x22d   : > { %v2745_v15 = vld [vmem:[#allocation3 + $0xe0] sm:$0xff] }
 0x22e   : > { %v2809_v20 = vadd.f32 %v2745_v15, %v2627_v8  ;;  %2090 = vst.msk [vmem:[#allocation3 + $0xe8] sm:$0xff] %vm816_vm1, %v2026_v13 }
 0x22f   : > { %v3458_v21 = vld [vmem:[#allocation3 + $0xd8] sm:$0xff] }
 0x230   : > { %v3522_v24 = vadd.f32 %v3458_v21, %v3338_v60  ;;  %2873 = vst.msk [vmem:[#allocation3 + $0xe0] sm:$0xff] %vm816_vm1, %v2809_v20  ;;  %v11622_v60 = vld [vmem:[#allocation2 + $0xc8] sm:$0xff]  ;;  %v10123_v20 = vld [vmem:[#allocation2 + $0xd0] sm:$0xff] }
 0x231   : > { %v4435_v25 = vld [vmem:[#allocation3 + $0xd0] sm:$0xff]  ;;  %v2629_v28 = vpop.f32.mrf.mxu2  ;;  %v11606_v38 = vpop.f32.mrf.mxu0  ;;  %v2412_v59 = vrot.slane %v11622_v60, 1 }
 0x232   : > { %3586 = vst.msk [vmem:[#allocation3 + $0xd8] sm:$0xff] %vm816_vm1, %v3522_v24  ;;  %v4499_v19 = vadd.f32 %v4435_v25, %v11552_v35  ;;  %v4052_v35 = vshll.u32 %v11595_v27, 16 }
 0x233   : > { %v1848_v29 = vpop.f32.mrf.mxu1  ;;  %v2413_v13 = vsel %vm2362_vm3, %v2410_v26, %v2412_v59 }
 0x234   : > { %4563 = vst.msk [vmem:[#allocation3 + $0xd0] sm:$0xff] %vm816_vm1, %v4499_v19  ;;  %v2027_v33 = vadd.f32 %v1963_v30, %v1848_v29  ;;  %v3343_v37 = vpop.f32.mrf.mxu3  ;;  %v4054_v48 = vrot.slane %v4052_v35, 1  ;;  %v1588_v29 = vshrl.u32 %v11612_v45, 16  ;;  %v1592_v30 = vshll.u32 %v11648_v22, 16 }
 0x235   : > { %v2746_v36 = vld [vmem:[#allocation3 + $0xe8] sm:$0xff] }
 0x236   : > { %v2810_v41 = vadd.f32 %v2746_v36, %v2629_v28  ;;  %2091 = vst.msk [vmem:[#allocation3 + $0xf0] sm:$0xff] %vm816_vm1, %v2027_v33  ;;  %8742 = vmatmul.msk.bf16.gmra.mxu1 %vm816_vm1, %v1579_v32  ;;  %8918 = vmatmul.msk.bf16.gmra.mxu2 %vm816_vm1, %v2411_v31  ;;  %v1966_v28 = vld [vmem:[#allocation3 + $0x108] sm:$0xff]  ;;  %v10311_v33 = vld [vmem:[#allocation9 + $0x100] sm:$0xff]  ;;  %v11658_v31 = vld [vmem:[#allocation2 + $0xd0] sm:$0xff] }
 0x237   : > { %v3459_v44 = vld [vmem:[#allocation3 + $0xe0] sm:$0xff]  ;;  %7505 = vmatpush.bf16.msra.mxu0 %v10311_v33 }
 0x238   : > { %v3523_v40 = vadd.f32 %v3459_v44, %v3341_v16  ;;  %2874 = vst.msk [vmem:[#allocation3 + $0xe8] sm:$0xff] %vm816_vm1, %v2810_v41  ;;  %v4056_v16 = vshrl.u32 %v11595_v27, 16  ;;  %v1590_v41 = vor.u32 %v1588_v29, %v1586_v1 }
 0x239   : > { %v4436_v46 = vld [vmem:[#allocation3 + $0xd8] sm:$0xff]  ;;  %9094 = vmatmul.msk.bf16.gmra.mxu3 %vm816_vm1, %v10122_v42  ;;  %v2632_v50 = vpop.f32.mrf.mxu2  ;;  %v11624_v61 = vpop.f32.mrf.mxu0  ;;  %v1594_v42 = vrot.slane %v1592_v30, 1 }
 0x23a   : > { %3587 = vst.msk [vmem:[#allocation3 + $0xe0] sm:$0xff] %vm816_vm1, %v3523_v40  ;;  %v4500_v49 = vadd.f32 %v4436_v46, %v11570_v54  ;;  %v4055_v54 = vsel %vm1383_vm2, %v4050_v47, %v4054_v48  ;;  %v4058_v24 = vor.u32 %v4056_v16, %v4054_v48  ;;  %v2414_v40 = vrot.slane %v11658_v31, 1  ;;  %v11667_v46 = vld [vmem:[#allocation2 + $0xe0] sm:$0xff] }
 0x23b   : > { %v1850_v51 = vpop.f32.mrf.mxu1  ;;  %v4072_v33 = vshrl.u32 %v11667_v46, 16 }
 0x23c   : > { %4564 = vst.msk [vmem:[#allocation3 + $0xd8] sm:$0xff] %vm816_vm1, %v4500_v49  ;;  %v2028_v56 = vadd.f32 %v1964_v43, %v1850_v51  ;;  %v3346_v58 = vpop.f32.mrf.mxu3  ;;  %9270 = vmatmul.msk.bf16.gmra.mxu0 %vm816_vm1, %v4055_v54  ;;  %v1595_v51 = vsel %vm1383_vm2, %v1590_v41, %v1594_v42  ;;  %v2415_v53 = vsel %vm2362_vm3, %v2412_v59, %v2414_v40  ;;  %v10124_v54 = vld [vmem:[#allocation2 + $0xd8] sm:$0xff] }
 0x23d   : > { %v2747_v57 = vld [vmem:[#allocation3 + $0xf0] sm:$0xff] }
 0x23e   : > { %v2811_v62 = vadd.f32 %v2747_v57, %v2632_v50  ;;  %2092 = vst.msk [vmem:[#allocation3 + $0xf8] sm:$0xff] %vm816_vm1, %v2028_v56  ;;  %v1967_v50 = vld [vmem:[#allocation3 + $0x110] sm:$0xff]  ;;  %v4064_v57 = vshrl.u32 %v11631_v5, 16 }
 0x23f   : > { %v3460_v63 = vld [vmem:[#allocation3 + $0xe8] sm:$0xff] }
 0x240   : > { %v3524_v2 = vadd.f32 %v3460_v63, %v3343_v37  ;;  %2875 = vst.msk [vmem:[#allocation3 + $0xf0] sm:$0xff] %vm816_vm1, %v2811_v62  ;;  %v11684_v63 = vld [vmem:[#allocation2 + $0xd8] sm:$0xff] }
 0x241   : > { %v4437_v4 = vld [vmem:[#allocation3 + $0xe0] sm:$0xff]  ;;  %v2634_v7 = vpop.f32.mrf.mxu2  ;;  %v11642_v15 = vpop.f32.mrf.mxu0 }
 0x242   : > { %3588 = vst.msk [vmem:[#allocation3 + $0xe8] sm:$0xff] %vm816_vm1, %v3524_v2  ;;  %v4501_v6 = vadd.f32 %v4437_v4, %v11588_v18  ;;  %v4060_v18 = vshll.u32 %v11631_v5, 16 }
 0x243   : > { %v1853_v8 = vpop.f32.mrf.mxu1 }
 0x244   : > { %4565 = vst.msk [vmem:[#allocation3 + $0xe0] sm:$0xff] %vm816_vm1, %v4501_v6  ;;  %v2029_v11 = vadd.f32 %v1965_v9, %v1853_v8  ;;  %v3348_v14 = vpop.f32.mrf.mxu3  ;;  %v4062_v25 = vrot.slane %v4060_v18, 1  ;;  %v1968_v6 = vld [vmem:[#allocation3 + $0x118] sm:$0xff]  ;;  %v1600_v8 = vshll.u32 %v11684_v63, 16 }
 0x245   : > { %v2748_v3 = vld [vmem:[#allocation3 + $0xf8] sm:$0xff] }
 0x246   : > { %v2812_v12 = vadd.f32 %v2748_v3, %v2634_v7  ;;  %2093 = vst.msk [vmem:[#allocation3 + $0x100] sm:$0xff] %vm816_vm1, %v2029_v11  ;;  %8743 = vmatmul.msk.bf16.gmra.mxu1 %vm816_vm1, %v1587_v10  ;;  %8919 = vmatmul.msk.bf16.gmra.mxu2 %vm816_vm1, %v2413_v13  ;;  %v4066_v1 = vor.u32 %v4064_v57, %v4062_v25  ;;  %v1596_v7 = vshrl.u32 %v11648_v22, 16  ;;  %v11694_v3 = vld [vmem:[#allocation2 + $0xd8] sm:$0xff] }
 0x247   : > { %v3461_v21 = vld [vmem:[#allocation3 + $0xf0] sm:$0xff]  ;;  %v2416_v22 = vrot.slane %v11694_v3, 1 }
 0x248   : > { %v3525_v23 = vadd.f32 %v3461_v21, %v3346_v58  ;;  %2876 = vst.msk [vmem:[#allocation3 + $0xf8] sm:$0xff] %vm816_vm1, %v2812_v12  ;;  %v4068_v58 = vshll.u32 %v11667_v46, 16  ;;  %v1598_v18 = vor.u32 %v1596_v7, %v1594_v42  ;;  %v1602_v12 = vrot.slane %v1600_v8, 1  ;;  %v1970_v46 = vld [vmem:[#allocation3 + $0x128] sm:$0xff] }
 0x249   : > { %v4438_v17 = vld [vmem:[#allocation3 + $0xe8] sm:$0xff]  ;;  %9095 = vmatmul.msk.bf16.gmra.mxu3 %vm816_vm1, %v10123_v20  ;;  %v2637_v27 = vpop.f32.mrf.mxu2  ;;  %v11660_v37 = vpop.f32.mrf.mxu0  ;;  %v2417_v29 = vsel %vm2362_vm3, %v2414_v40, %v2416_v22 }
 0x24a   : > { %3589 = vst.msk [vmem:[#allocation3 + $0xf0] sm:$0xff] %vm816_vm1, %v3525_v23  ;;  %v4502_v26 = vadd.f32 %v4438_v17, %v11606_v38  ;;  %v4063_v38 = vsel %vm1383_vm2, %v4058_v24, %v4062_v25  ;;  %v4070_v2 = vrot.slane %v4068_v58, 1  ;;  %v11703_v23 = vld [vmem:[#allocation2 + $0xe8] sm:$0xff] }
 0x24b   : > { %v1855_v19 = vpop.f32.mrf.mxu1 }
 0x24c   : > { %4566 = vst.msk [vmem:[#allocation3 + $0xe8] sm:$0xff] %vm816_vm1, %v4502_v26  ;;  %v2030_v32 = vadd.f32 %v1966_v28, %v1855_v19  ;;  %v3351_v36 = vpop.f32.mrf.mxu3  ;;  %9271 = vmatmul.msk.bf16.gmra.mxu0 %vm816_vm1, %v4063_v38  ;;  %v1969_v26 = vld [vmem:[#allocation3 + $0x120] sm:$0xff]  ;;  %v4074_v41 = vor.u32 %v4072_v33, %v4070_v2 }
 0x24d   : > { %v2749_v34 = vld [vmem:[#allocation3 + $0x100] sm:$0xff] }
 0x24e   : > { %v2813_v39 = vadd.f32 %v2749_v34, %v2637_v27  ;;  %2094 = vst.msk [vmem:[#allocation3 + $0x108] sm:$0xff] %vm816_vm1, %v2030_v32  ;;  %v1603_v27 = vsel %vm1383_vm2, %v1598_v18, %v1602_v12  ;;  %v4076_v34 = vshll.u32 %v11703_v23, 16 }
 0x24f   : > { %v3462_v35 = vld [vmem:[#allocation3 + $0xf8] sm:$0xff] }
 0x250   : > { %v3526_v44 = vadd.f32 %v3462_v35, %v3348_v14  ;;  %2877 = vst.msk [vmem:[#allocation3 + $0x100] sm:$0xff] %vm816_vm1, %v2813_v39  ;;  %v4071_v14 = vsel %vm1383_vm2, %v4066_v1, %v4070_v2  ;;  %v11720_v39 = vld [vmem:[#allocation2 + $0xe0] sm:$0xff]  ;;  %v4078_v42 = vrot.slane %v4076_v34, 1  ;;  %v1971_v2 = vld [vmem:[#allocation3 + $0x130] sm:$0xff] }
 0x251   : > { %v4439_v45 = vld [vmem:[#allocation3 + $0xf0] sm:$0xff]  ;;  %v2639_v48 = vpop.f32.mrf.mxu2  ;;  %v11678_v55 = vpop.f32.mrf.mxu0 }
 0x252   : > { %3590 = vst.msk [vmem:[#allocation3 + $0xf8] sm:$0xff] %vm816_vm1, %v3526_v44  ;;  %v4503_v47 = vadd.f32 %v4439_v45, %v11624_v61 }
 0x253   : > { %v1858_v49 = vpop.f32.mrf.mxu1 }
 0x254   : > { %4567 = vst.msk [vmem:[#allocation3 + $0xf0] sm:$0xff] %vm816_vm1, %v4503_v47  ;;  %v2031_v43 = vadd.f32 %v1967_v50, %v1858_v49  ;;  %v3353_v56 = vpop.f32.mrf.mxu3  ;;  %v1604_v47 = vshrl.u32 %v11684_v63, 16  ;;  %v11739_v63 = vld [vmem:[#allocation2 + $0xf0] sm:$0xff] }
 0x255   : > { %v2750_v52 = vld [vmem:[#allocation3 + $0x108] sm:$0xff] }
 0x256   : > { %v2814_v61 = vadd.f32 %v2750_v52, %v2639_v48  ;;  %2095 = vst.msk [vmem:[#allocation3 + $0x110] sm:$0xff] %vm816_vm1, %v2031_v43  ;;  %8744 = vmatmul.msk.bf16.gmra.mxu1 %vm816_vm1, %v1595_v51  ;;  %8920 = vmatmul.msk.bf16.gmra.mxu2 %vm816_vm1, %v2415_v53  ;;  %v1608_v48 = vshll.u32 %v11720_v39, 16  ;;  %v11730_v43 = vld [vmem:[#allocation2 + $0xe0] sm:$0xff]  ;;  %v4079_v53 = vsel %vm1383_vm2, %v4074_v41, %v4078_v42 }
 0x257   : > { %v3463_v62 = vld [vmem:[#allocation3 + $0x100] sm:$0xff]  ;;  %v1606_v57 = vor.u32 %v1604_v47, %v1602_v12 }
 0x258   : > { %v3527_v0 = vadd.f32 %v3463_v62, %v3351_v36  ;;  %2878 = vst.msk [vmem:[#allocation3 + $0x108] sm:$0xff] %vm816_vm1, %v2814_v61  ;;  %v1610_v58 = vrot.slane %v1608_v48, 1  ;;  %v2418_v62 = vrot.slane %v11730_v43, 1 }
 0x259   : > { %v4440_v60 = vld [vmem:[#allocation3 + $0xf8] sm:$0xff]  ;;  %9096 = vmatmul.msk.bf16.gmra.mxu3 %vm816_vm1, %v10124_v54  ;;  %v2642_v59 = vpop.f32.mrf.mxu2  ;;  %v11696_v13 = vpop.f32.mrf.mxu0 }
 0x25a   : > { %3591 = vst.msk [vmem:[#allocation3 + $0x100] sm:$0xff] %vm816_vm1, %v3527_v0  ;;  %v4504_v4 = vadd.f32 %v4440_v60, %v11642_v15 }
 0x25b   : > { %v1860_v5 = vpop.f32.mrf.mxu1 }
 0x25c   : > { %4568 = vst.msk [vmem:[#allocation3 + $0xf8] sm:$0xff] %vm816_vm1, %v4504_v4  ;;  %v2032_v9 = vadd.f32 %v1968_v6, %v1860_v5  ;;  %v3356_v11 = vpop.f32.mrf.mxu3  ;;  %9272 = vmatmul.msk.bf16.gmra.mxu0 %vm816_vm1, %v4071_v14  ;;  %v1611_v4 = vsel %vm1383_vm2, %v1606_v57, %v1610_v58  ;;  %v2419_v6 = vsel %vm2362_vm3, %v2416_v22, %v2418_v62  ;;  %v11796_v57 = vld [vmem:[#allocation2 + $0xf0] sm:$0xff] }
 0x25d   : > { %v2751_v10 = vld [vmem:[#allocation3 + $0x110] sm:$0xff] }
 0x25e   : > { %v2815_v15 = vadd.f32 %v2751_v10, %v2642_v59  ;;  %2096 = vst.msk [vmem:[#allocation3 + $0x118] sm:$0xff] %vm816_vm1, %v2032_v9  ;;  %v4080_v9 = vshrl.u32 %v11703_v23, 16  ;;  %v4084_v10 = vshll.u32 %v11739_v63, 16  ;;  %v1972_v23 = vld [vmem:[#allocation3 + $0x138] sm:$0xff] }
 0x25f   : > { %v3464_v16 = vld [vmem:[#allocation3 + $0x108] sm:$0xff] }
 0x260   : > { %v3528_v20 = vadd.f32 %v3464_v16, %v3353_v56  ;;  %2879 = vst.msk [vmem:[#allocation3 + $0x110] sm:$0xff] %vm816_vm1, %v2815_v15  ;;  %v11756_v15 = vld [vmem:[#allocation2 + $0xe8] sm:$0xff]  ;;  %v4082_v18 = vor.u32 %v4080_v9, %v4078_v42  ;;  %v4086_v12 = vrot.slane %v4084_v10, 1 }
 0x261   : > { %v4441_v21 = vld [vmem:[#allocation3 + $0x100] sm:$0xff]  ;;  %v2644_v24 = vpop.f32.mrf.mxu2  ;;  %v11714_v32 = vpop.f32.mrf.mxu0 }
 0x262   : > { %3592 = vst.msk [vmem:[#allocation3 + $0x108] sm:$0xff] %vm816_vm1, %v3528_v20  ;;  %v4505_v17 = vadd.f32 %v4441_v21, %v11660_v37  ;;  %v10125_v37 = vld [vmem:[#allocation2 + $0xe0] sm:$0xff] }
 0x263   : > { %v1863_v25 = vpop.f32.mrf.mxu1 }
 0x264   : > { %4569 = vst.msk [vmem:[#allocation3 + $0x100] sm:$0xff] %vm816_vm1, %v4505_v17  ;;  %v2033_v19 = vadd.f32 %v1969_v26, %v1863_v25  ;;  %v3358_v30 = vpop.f32.mrf.mxu3  ;;  %v1612_v17 = vshrl.u32 %v11720_v39, 16 }
 0x265   : > { %v2752_v28 = vld [vmem:[#allocation3 + $0x118] sm:$0xff] }
 0x266   : > { %v2816_v36 = vadd.f32 %v2752_v28, %v2644_v24  ;;  %2097 = vst.msk [vmem:[#allocation3 + $0x120] sm:$0xff] %vm816_vm1, %v2033_v19  ;;  %8745 = vmatmul.msk.bf16.gmra.mxu1 %vm816_vm1, %v1603_v27  ;;  %8921 = vmatmul.msk.bf16.gmra.mxu2 %vm816_vm1, %v2417_v29  ;;  %v1616_v24 = vshll.u32 %v11756_v15, 16  ;;  %v11766_v19 = vld [vmem:[#allocation2 + $0xe8] sm:$0xff]  ;;  %v4087_v29 = vsel %vm1383_vm2, %v4082_v18, %v4086_v12 }
 0x267   : > { %v3465_v38 = vld [vmem:[#allocation3 + $0x110] sm:$0xff]  ;;  %v1614_v33 = vor.u32 %v1612_v17, %v1610_v58 }
 0x268   : > { %v3529_v35 = vadd.f32 %v3465_v38, %v3356_v11  ;;  %2880 = vst.msk [vmem:[#allocation3 + $0x118] sm:$0xff] %vm816_vm1, %v2816_v36  ;;  %v1618_v34 = vrot.slane %v1616_v24, 1  ;;  %v496_v36 = vld [vmem:[%s10794_s15] sm:$0xf]  ;;  %v497_v38 = vld [vmem:[%s10794_s15 + $0x4] sm:$0xf] }
 0x269   : > { %v4442_v31 = vld [vmem:[#allocation3 + $0x108] sm:$0xff]  ;;  %9097 = vmatmul.msk.bf16.gmra.mxu3 %vm816_vm1, %v10125_v37  ;;  %v2647_v45 = vpop.f32.mrf.mxu2  ;;  %v11732_v52 = vpop.f32.mrf.mxu0  ;;  %528 = vst.msk [vmem:[#allocation2 + $0x100] sm:$0xf] %vm431_vm0, %v496_v36  ;;  %v11836_v36 = vld [vmem:[#allocation2 + $0xf8] sm:$0xff] }
 0x26a   : > { %3593 = vst.msk [vmem:[#allocation3 + $0x110] sm:$0xff] %vm816_vm1, %v3529_v35  ;;  %v4506_v44 = vadd.f32 %v4442_v31, %v11678_v55  ;;  %v2420_v35 = vrot.slane %v11766_v19, 1  ;;  %v11777_v31 = vld [vmem:[#allocation2 + $0xf8] sm:$0xff] }
 0x26b   : > { %v1865_v40 = vpop.f32.mrf.mxu1  ;;  %529 = vst.msk [vmem:[#allocation2 + $0x104] sm:$0xf] %vm431_vm0, %v497_v38 }
 0x26c   : > { %4570 = vst.msk [vmem:[#allocation3 + $0x108] sm:$0xff] %vm816_vm1, %v4506_v44  ;;  %v2034_v49 = vadd.f32 %v1970_v46, %v1865_v40  ;;  %v3361_v51 = vpop.f32.mrf.mxu3  ;;  %9273 = vmatmul.msk.bf16.gmra.mxu0 %vm816_vm1, %v4079_v53  ;;  %v1619_v40 = vsel %vm1383_vm2, %v1614_v33, %v1618_v34  ;;  %v2421_v48 = vsel %vm2362_vm3, %v2418_v62, %v2420_v35  ;;  %v10128_v33 = vld [vmem:[#allocation2 + $0xf8] sm:$0xff] }
 0x26d   : > { %v2753_v50 = vld [vmem:[#allocation3 + $0x120] sm:$0xff] }
 0x26e   : > { %v2817_v56 = vadd.f32 %v2753_v50, %v2647_v45  ;;  %2098 = vst.msk [vmem:[#allocation3 + $0x128] sm:$0xff] %vm816_vm1, %v2034_v49  ;;  %v1973_v45 = vld [vmem:[#allocation3 + $0x140] sm:$0xff] }
 0x26f   : > { %v3466_v55 = vld [vmem:[#allocation3 + $0x118] sm:$0xff] }
 0x270   : > { %v3530_v61 = vadd.f32 %v3466_v55, %v3358_v30  ;;  %2881 = vst.msk [vmem:[#allocation3 + $0x120] sm:$0xff] %vm816_vm1, %v2817_v56  ;;  %v10127_v56 = vld [vmem:[#allocation2 + $0xf0] sm:$0xff] }
 0x271   : > { %v4443_v54 = vld [vmem:[#allocation3 + $0x110] sm:$0xff]  ;;  %v2649_v60 = vpop.f32.mrf.mxu2  ;;  %v11750_v8 = vpop.f32.mrf.mxu0 }
 0x272   : > { %3594 = vst.msk [vmem:[#allocation3 + $0x118] sm:$0xff] %vm816_vm1, %v3530_v61  ;;  %v4507_v0 = vadd.f32 %v4443_v54, %v11696_v13  ;;  %v10126_v13 = vld [vmem:[#allocation2 + $0xe8] sm:$0xff] }
 0x273   : > { %v1868_v1 = vpop.f32.mrf.mxu1 }
 0x274   : > { %4571 = vst.msk [vmem:[#allocation3 + $0x110] sm:$0xff] %vm816_vm1, %v4507_v0  ;;  %v2035_v59 = vadd.f32 %v1971_v2, %v1868_v1  ;;  %v3363_v7 = vpop.f32.mrf.mxu3  ;;  %v1620_v1 = vshrl.u32 %v11756_v15, 16  ;;  %v1624_v2 = vshll.u32 %v11796_v57, 16 }
 0x275   : > { %v2754_v5 = vld [vmem:[#allocation3 + $0x128] sm:$0xff] }
 0x276   : > { %v2818_v11 = vadd.f32 %v2754_v5, %v2649_v60  ;;  %2099 = vst.msk [vmem:[#allocation3 + $0x130] sm:$0xff] %vm816_vm1, %v2035_v59  ;;  %8746 = vmatmul.msk.bf16.gmra.mxu1 %vm816_vm1, %v1611_v4  ;;  %8922 = vmatmul.msk.bf16.gmra.mxu2 %vm816_vm1, %v2419_v6  ;;  %v1974_v60 = vld [vmem:[#allocation3 + $0x148] sm:$0xff]  ;;  %v11806_v6 = vld [vmem:[#allocation2 + $0xf0] sm:$0xff] }
 0x277   : > { %v3467_v14 = vld [vmem:[#allocation3 + $0x120] sm:$0xff]  ;;  %v2422_v18 = vrot.slane %v11806_v6, 1 }
 0x278   : > { %v3531_v16 = vadd.f32 %v3467_v14, %v3361_v51  ;;  %2882 = vst.msk [vmem:[#allocation3 + $0x128] sm:$0xff] %vm816_vm1, %v2818_v11  ;;  %v4088_v51 = vshrl.u32 %v11739_v63, 16  ;;  %v1622_v11 = vor.u32 %v1620_v1, %v1618_v34  ;;  %v498_v14 = vld [vmem:[%s10794_s15 + $0x8] sm:$0xf] }
 0x279   : > { %v4444_v3 = vld [vmem:[#allocation3 + $0x118] sm:$0xff]  ;;  %9098 = vmatmul.msk.bf16.gmra.mxu3 %vm816_vm1, %v10126_v13  ;;  %v2652_v21 = vpop.f32.mrf.mxu2  ;;  %v11768_v28 = vpop.f32.mrf.mxu0  ;;  %v1626_v13 = vrot.slane %v1624_v2, 1  ;;  %530 = vst.msk [vmem:[#allocation2 + $0x108] sm:$0xf] %vm431_vm0, %v498_v14  ;;  %v2189_v14 = vld [vmem:[#allocation2 + $0x100] sm:$0x1] }
 0x27a   : > { %3595 = vst.msk [vmem:[#allocation3 + $0x120] sm:$0xff] %vm816_vm1, %v3531_v16  ;;  %v4508_v20 = vadd.f32 %v4444_v3, %v11714_v32  ;;  %v4090_v61 = vor.u32 %v4088_v51, %v4086_v12  ;;  %v499_v16 = vld [vmem:[%s10794_s15 + $0xc] sm:$0xf]  ;;  %v11817_v12 = vld [vmem:[#allocation2 + $0x100] sm:$0xff] }
 0x27b   : > { %v1870_v22 = vpop.f32.mrf.mxu1  ;;  %v1627_v17 = vsel %vm1383_vm2, %v1622_v11, %v1626_v13  ;;  %531 = vst.msk [vmem:[#allocation2 + $0x10c] sm:$0xf] %vm431_vm0, %v499_v16 }
 0x27c   : > { %4572 = vst.msk [vmem:[#allocation3 + $0x118] sm:$0xff] %vm816_vm1, %v4508_v20  ;;  %v2036_v25 = vadd.f32 %v1972_v23, %v1870_v22  ;;  %v3366_v27 = vpop.f32.mrf.mxu3  ;;  %9274 = vmatmul.msk.bf16.gmra.mxu0 %vm816_vm1, %v4087_v29  ;;  %v1975_v23 = vld [vmem:[#allocation3 + $0x150] sm:$0xff] }
 0x27d   : > { %v2755_v26 = vld [vmem:[#allocation3 + $0x130] sm:$0xff] }
 0x27e   : > { %v2819_v30 = vadd.f32 %v2755_v26, %v2652_v21  ;;  %2100 = vst.msk [vmem:[#allocation3 + $0x138] sm:$0xff] %vm816_vm1, %v2036_v25  ;;  %v2423_v26 = vsel %vm2362_vm3, %v2420_v35, %v2422_v18 }
 0x27f   : > { %v3468_v32 = vld [vmem:[#allocation3 + $0x128] sm:$0xff] }
 0x280   : > { %v3532_v37 = vadd.f32 %v3468_v32, %v3363_v7  ;;  %2883 = vst.msk [vmem:[#allocation3 + $0x130] sm:$0xff] %vm816_vm1, %v2819_v30  ;;  %v4100_v30 = vshll.u32 %v11817_v12, 16 }
 0x281   : > { %v4445_v39 = vld [vmem:[#allocation3 + $0x120] sm:$0xff]  ;;  %v2654_v42 = vpop.f32.mrf.mxu2  ;;  %v11790_v50 = vpop.f32.mrf.mxu0 }
 0x282   : > { %3596 = vst.msk [vmem:[#allocation3 + $0x128] sm:$0xff] %vm816_vm1, %v3532_v37  ;;  %v4509_v41 = vadd.f32 %v4445_v39, %v11732_v52  ;;  %v4092_v52 = vshll.u32 %v11777_v31, 16  ;;  %v4102_v39 = vrot.slane %v4100_v30, 1 }
 0x283   : > { %v1873_v44 = vpop.f32.mrf.mxu1 }
 0x284   : > { %4573 = vst.msk [vmem:[#allocation3 + $0x120] sm:$0xff] %vm816_vm1, %v4509_v41  ;;  %v2037_v46 = vadd.f32 %v1973_v45, %v1873_v44  ;;  %v3368_v49 = vpop.f32.mrf.mxu3  ;;  %v4094_v54 = vrot.slane %v4092_v52, 1  ;;  %v1628_v44 = vshrl.u32 %v11796_v57, 16  ;;  %v1632_v45 = vshll.u32 %v11836_v36, 16 }
 0x285   : > { %v2756_v47 = vld [vmem:[#allocation3 + $0x138] sm:$0xff] }
 0x286   : > { %v2820_v53 = vadd.f32 %v2756_v47, %v2654_v42  ;;  %2101 = vst.msk [vmem:[#allocation3 + $0x140] sm:$0xff] %vm816_vm1, %v2037_v46  ;;  %8747 = vmatmul.msk.bf16.gmra.mxu1 %vm816_vm1, %v1619_v40  ;;  %8923 = vmatmul.msk.bf16.gmra.mxu2 %vm816_vm1, %v2421_v48  ;;  %v1976_v42 = vld [vmem:[#allocation3 + $0x158] sm:$0xff]  ;;  %v500_v46 = vld [vmem:[%s10794_s15 + $0x10] sm:$0xf] }
 0x287   : > { %v3469_v55 = vld [vmem:[#allocation3 + $0x130] sm:$0xff]  ;;  %532 = vst.msk [vmem:[#allocation2 + $0x110] sm:$0xf] %vm431_vm0, %v500_v46 }
 0x288   : > { %v3533_v58 = vadd.f32 %v3469_v55, %v3366_v27  ;;  %2884 = vst.msk [vmem:[#allocation3 + $0x138] sm:$0xff] %vm816_vm1, %v2820_v53  ;;  %v1634_v55 = vrot.slane %v1632_v45, 1 }
 0x289   : > { %v4446_v43 = vld [vmem:[#allocation3 + $0x128] sm:$0xff]  ;;  %9099 = vmatmul.msk.bf16.gmra.mxu3 %vm816_vm1, %v10127_v56  ;;  %v2657_v63 = vpop.f32.mrf.mxu2  ;;  %v11808_v7 = vpop.f32.mrf.mxu0  ;;  %v1630_v56 = vor.u32 %v1628_v44, %v1626_v13  ;;  %v10129_v13 = vld [vmem:[#allocation2 + $0x100] sm:$0xff] }
 0x28a   : > { %3597 = vst.msk [vmem:[#allocation3 + $0x130] sm:$0xff] %vm816_vm1, %v3533_v58  ;;  %v4510_v62 = vadd.f32 %v4446_v43, %v11750_v8  ;;  %v4095_v8 = vsel %vm1383_vm2, %v4090_v61, %v4094_v54  ;;  %v1210_v58 = vld [vmem:[#allocation2 + $0x100] sm:$0x1] }
 0x28b   : > { %v1875_v0 = vpop.f32.mrf.mxu1  ;;  %v1635_v1 = vsel %vm1383_vm2, %v1630_v56, %v1634_v55  ;;  %v1349_v2 = vunpack.c.l.b16 %v1210_v58  ;;  %v9281_v58 = vld [vmem:[#allocation2 + $0x10] sm:$0xe] }
 0x28c   : > { %4574 = vst.msk [vmem:[#allocation3 + $0x128] sm:$0xff] %vm816_vm1, %v4510_v62  ;;  %v2038_v4 = vadd.f32 %v1974_v60, %v1875_v0  ;;  %v3371_v5 = vpop.f32.mrf.mxu3  ;;  %9275 = vmatmul.msk.bf16.gmra.mxu0 %vm816_vm1, %v4095_v8  ;;  %v1977_v60 = vld [vmem:[#allocation3 + $0x160] sm:$0xff] }
 0x28d   : > { %v2757_v59 = vld [vmem:[#allocation3 + $0x140] sm:$0xff]  ;;  %v1382_v16 = vpack.c.b16 %v1349_v2, %v1349_v2 }
 0x28e   : > { %v2821_v9 = vadd.f32 %v2757_v59, %v2657_v63  ;;  %2102 = vst.msk [vmem:[#allocation3 + $0x148] sm:$0xff] %vm816_vm1, %v2038_v4 }
 0x28f   : > { %v3470_v10 = vld [vmem:[#allocation3 + $0x138] sm:$0xff] }
 0x290   : > { %v3534_v15 = vadd.f32 %v3470_v10, %v3368_v49  ;;  %2885 = vst.msk [vmem:[#allocation3 + $0x140] sm:$0xff] %vm816_vm1, %v2821_v9  ;;  %v11847_v49 = vld [vmem:[#allocation2 + $0xf8] sm:$0xff] }
 0x291   : > { %v4447_v3 = vld [vmem:[#allocation3 + $0x130] sm:$0xff]  ;;  %v2659_v21 = vpop.f32.mrf.mxu2  ;;  %v11830_v29 = vpop.f32.mrf.mxu0  ;;  %v2424_v61 = vrot.slane %v11847_v49, 1 }
 0x292   : > { %3598 = vst.msk [vmem:[#allocation3 + $0x138] sm:$0xff] %vm816_vm1, %v3534_v15  ;;  %v4511_v20 = vadd.f32 %v4447_v3, %v11768_v28  ;;  %v4096_v28 = vshrl.u32 %v11777_v31, 16 }
 0x293   : > { %v1878_v22 = vpop.f32.mrf.mxu1 }
 0x294   : > { %4575 = vst.msk [vmem:[#allocation3 + $0x130] sm:$0xff] %vm816_vm1, %v4511_v20  ;;  %v2039_v24 = vadd.f32 %v1975_v23, %v1878_v22  ;;  %v3373_v27 = vpop.f32.mrf.mxu3  ;;  %v4098_v38 = vor.u32 %v4096_v28, %v4094_v54  ;;  %v11857_v54 = vld [vmem:[#allocation2 + $0x108] sm:$0xff]  ;;  %v3687_v22 = vld [vmem:[#allocation2 + $0x110] sm:$0x1] }
 0x295   : > { %v2758_v25 = vld [vmem:[#allocation3 + $0x148] sm:$0xff]  ;;  %v4108_v10 = vshll.u32 %v11857_v54, 16  ;;  %v4112_v56 = vshrl.u32 %v11857_v54, 16 }
 0x296   : > { %v2822_v32 = vadd.f32 %v2758_v25, %v2659_v21  ;;  %2103 = vst.msk [vmem:[#allocation3 + $0x150] sm:$0xff] %vm816_vm1, %v2039_v24  ;;  %8748 = vmatmul.msk.bf16.gmra.mxu1 %vm816_vm1, %v1627_v17  ;;  %8924 = vmatmul.msk.bf16.gmra.mxu2 %vm816_vm1, %v2423_v26  ;;  %v1978_v24 = vld [vmem:[#allocation3 + $0x168] sm:$0xff]  ;;  %v1636_v25 = vshrl.u32 %v11836_v36, 16  ;;  %v1640_v26 = vshll.u32 %v1382_v16, 16 }
 0x297   : > { %v3471_v34 = vld [vmem:[#allocation3 + $0x140] sm:$0xff] }
 0x298   : > { %v3535_v37 = vadd.f32 %v3471_v34, %v3371_v5  ;;  %2886 = vst.msk [vmem:[#allocation3 + $0x148] sm:$0xff] %vm816_vm1, %v2822_v32  ;;  %v2425_v5 = vsel %vm2362_vm3, %v2422_v18, %v2424_v61  ;;  %v2328_v18 = vunpack.c.l.b16 %v2189_v14 }
 0x299   : > { %v4448_v19 = vld [vmem:[#allocation3 + $0x138] sm:$0xff]  ;;  %9100 = vmatmul.msk.bf16.gmra.mxu3 %vm816_vm1, %v10128_v33  ;;  %v2662_v31 = vpop.f32.mrf.mxu2  ;;  %v11849_v51 = vpop.f32.mrf.mxu0 }
 0x29a   : > { %3599 = vst.msk [vmem:[#allocation3 + $0x140] sm:$0xff] %vm816_vm1, %v3535_v37  ;;  %v4512_v35 = vadd.f32 %v4448_v19, %v11790_v50  ;;  %v4103_v50 = vsel %vm1383_vm2, %v4098_v38, %v4102_v39  ;;  %v2361_v32 = vpack.c.b16 %v2328_v18, %v2328_v18  ;;  %v1638_v38 = vor.u32 %v1636_v25, %v1634_v55 }
 0x29b   : > { %v1880_v41 = vpop.f32.mrf.mxu1 }
 0x29c   : > { %4576 = vst.msk [vmem:[#allocation3 + $0x138] sm:$0xff] %vm816_vm1, %v4512_v35  ;;  %v2040_v40 = vadd.f32 %v1976_v42, %v1880_v41  ;;  %v3376_v48 = vpop.f32.mrf.mxu3  ;;  %9276 = vmatmul.msk.bf16.gmra.mxu0 %vm816_vm1, %v4103_v50 }
 0x29d   : > { %v2759_v47 = vld [vmem:[#allocation3 + $0x150] sm:$0xff] }
 0x29e   : > { %v2823_v52 = vadd.f32 %v2759_v47, %v2662_v31  ;;  %2104 = vst.msk [vmem:[#allocation3 + $0x158] sm:$0xff] %vm816_vm1, %v2040_v40  ;;  %v2426_v31 = vrot.slane %v2361_v32, 1  ;;  %v1979_v40 = vld [vmem:[#allocation3 + $0x170] sm:$0xff] }
 0x29f   : > { %v3472_v53 = vld [vmem:[#allocation3 + $0x148] sm:$0xff] }
 0x2a0   : > { %v3536_v57 = vadd.f32 %v3472_v53, %v3373_v27  ;;  %2887 = vst.msk [vmem:[#allocation3 + $0x150] sm:$0xff] %vm816_vm1, %v2823_v52  ;;  %v2427_v50 = vsel %vm2362_vm3, %v2424_v61, %v2426_v31 }
 0x2a1   : > { %v4449_v43 = vld [vmem:[#allocation3 + $0x140] sm:$0xff]  ;;  %v2664_v63 = vpop.f32.mrf.mxu2  ;;  %v11868_v9 = vpop.f32.mrf.mxu0 }
 0x2a2   : > { %3600 = vst.msk [vmem:[#allocation3 + $0x148] sm:$0xff] %vm816_vm1, %v3536_v57  ;;  %v4513_v62 = vadd.f32 %v4449_v43, %v11808_v7  ;;  %v4104_v7 = vshrl.u32 %v11817_v12, 16  ;;  %v4110_v12 = vrot.slane %v4108_v10, 1  ;;  %v10130_v57 = vld [vmem:[#allocation2 + $0x108] sm:$0xff] }
 0x2a3   : > { %v1883_v0 = vpop.f32.mrf.mxu1 }
 0x2a4   : > { %4577 = vst.msk [vmem:[#allocation3 + $0x140] sm:$0xff] %vm816_vm1, %v4513_v62  ;;  %v2041_v4 = vadd.f32 %v1977_v60, %v1883_v0  ;;  %v3378_v8 = vpop.f32.mrf.mxu3  ;;  %v4106_v20 = vor.u32 %v4104_v7, %v4102_v39  ;;  %v1642_v39 = vrot.slane %v1640_v26, 1  ;;  %v10171_v62 = vld [vmem:[#allocation2 + $0x10] sm:$0xf0]  ;;  %v4114_v61 = vor.u32 %v4112_v56, %v4110_v12 }
 0x2a5   : > { %v2760_v59 = vld [vmem:[#allocation3 + $0x158] sm:$0xff] }
 0x2a6   : > { %v2824_v11 = vadd.f32 %v2760_v59, %v2664_v63  ;;  %2105 = vst.msk [vmem:[#allocation3 + $0x160] sm:$0xff] %vm816_vm1, %v2041_v4  ;;  %8749 = vmatmul.msk.bf16.gmra.mxu1 %vm816_vm1, %v1635_v1  ;;  %8925 = vmatmul.msk.bf16.gmra.mxu2 %vm816_vm1, %v2425_v5  ;;  %v4111_v34 = vsel %vm1383_vm2, %v4106_v20, %v4110_v12  ;;  %v10243_v63 = vld [vmem:[#allocation2 + $0x20] sm:$0xff]  ;;  %v1980_v59 = vld [vmem:[#allocation3 + $0x178] sm:$0xff] }
 0x2a7   : > { %v3473_v15 = vld [vmem:[#allocation3 + $0x150] sm:$0xff]  ;;  %v1643_v46 = vsel %vm1383_vm2, %v1638_v38, %v1642_v39  ;;  %v9282_v1 = vor.u32 %v10171_v62, %v9281_v58  ;;  %v11904_v5 = vld [vmem:[#allocation2 + $0x18] sm:$0xff]  ;;  %v6338_v7 = vshll.u32 %v10243_v63, 16  ;;  %v6336_v18 = vshrl.u32 %v10243_v63, 16 }
 0x2a8   : > { %v3537_v3 = vadd.f32 %v3473_v15, %v3376_v48  ;;  %2888 = vst.msk [vmem:[#allocation3 + $0x158] sm:$0xff] %vm816_vm1, %v2824_v11 }
 0x2a9   : > { %v4450_v6 = vld [vmem:[#allocation3 + $0x148] sm:$0xff]  ;;  %9101 = vmatmul.msk.bf16.gmra.mxu3 %vm816_vm1, %v10129_v13  ;;  %v2667_v23 = vpop.f32.mrf.mxu2  ;;  %v11881_v33 = vpop.f32.mrf.mxu0  ;;  %v4838_v16 = vrot.slane %v9282_v1, 1  ;;  %v6340_v20 = vrot.slane %v6338_v7, 1 }
 0x2aa   : > { %3601 = vst.msk [vmem:[#allocation3 + $0x150] sm:$0xff] %vm816_vm1, %v3537_v3  ;;  %v4514_v21 = vadd.f32 %v4450_v6, %v11830_v29  ;;  %v3826_v29 = vunpack.c.l.b16 %v3687_v22  ;;  %v4839_v6 = vrot.slane %v11904_v5, 1 }
 0x2ab   : > { %v1885_v17 = vpop.f32.mrf.mxu1 }
 0x2ac   : > { %4578 = vst.msk [vmem:[#allocation3 + $0x148] sm:$0xff] %vm816_vm1, %v4514_v21  ;;  %v2042_v27 = vadd.f32 %v1978_v24, %v1885_v17  ;;  %v3381_v30 = vpop.f32.mrf.mxu3  ;;  %9277 = vmatmul.msk.bf16.gmra.mxu0 %vm816_vm1, %v4111_v34  ;;  %v3859_v41 = vpack.c.b16 %v3826_v29, %v3826_v29  ;;  %v9809_v17 = vld [vmem:[#allocation2 + $0x20] sm:$0xe]  ;;  %v10279_v24 = vld [vmem:[#allocation2 + $0x20] sm:$0xf0] }
 0x2ad   : > { %v2761_v28 = vld [vmem:[#allocation3 + $0x160] sm:$0xff]  ;;  %v9810_v39 = vor.u32 %v10279_v24, %v9809_v17  ;;  %v11969_v17 = vld [vmem:[#allocation2 + $0x38] sm:$0xff] }
 0x2ae   : > { %v2825_v37 = vadd.f32 %v2761_v28, %v2667_v23  ;;  %2106 = vst.msk [vmem:[#allocation3 + $0x168] sm:$0xff] %vm816_vm1, %v2042_v27  ;;  %v4116_v55 = vshll.u32 %v3859_v41, 16  ;;  %v1981_v27 = vld [vmem:[#allocation3 + $0x180] sm:$0xff]  ;;  %v4840_v28 = vsel %vm2362_vm3, %v4838_v16, %v4839_v6 }
 0x2af   : > { %v3474_v19 = vld [vmem:[#allocation3 + $0x158] sm:$0xff]  ;;  %v10207_v29 = vld [vmem:[#allocation2 + $0x20] sm:$0xff] }
 0x2b0   : > { %v3538_v35 = vadd.f32 %v3474_v19, %v3378_v8  ;;  %2889 = vst.msk [vmem:[#allocation3 + $0x160] sm:$0xff] %vm816_vm1, %v2825_v37  ;;  %v4118_v60 = vrot.slane %v4116_v55, 1  ;;  %v11906_v8 = vld [vmem:[#allocation2 + $0x28] sm:$0xff] }
 0x2b1   : > { %v4451_v36 = vld [vmem:[#allocation3 + $0x150] sm:$0xff]  ;;  %v2669_v44 = vpop.f32.mrf.mxu2  ;;  %v11894_v53 = vpop.f32.mrf.mxu0  ;;  %v6343_v12 = vshll.u32 %v11906_v8, 16  ;;  %v6347_v63 = vshrl.u32 %v11906_v8, 16 }
 0x2b2   : > { %3602 = vst.msk [vmem:[#allocation3 + $0x158] sm:$0xff] %vm816_vm1, %v3538_v35  ;;  %v4515_v42 = vadd.f32 %v4451_v36, %v11849_v51 }
 0x2b3   : > { %v1888_v45 = vpop.f32.mrf.mxu1  ;;  %v6345_v32 = vrot.slane %v6343_v12, 1 }
 0x2b4   : > { %4579 = vst.msk [vmem:[#allocation3 + $0x150] sm:$0xff] %vm816_vm1, %v4515_v42  ;;  %v2043_v47 = vadd.f32 %v1979_v40, %v1888_v45  ;;  %v3383_v52 = vpop.f32.mrf.mxu3 }
 0x2b5   : > { %v2762_v48 = vld [vmem:[#allocation3 + $0x168] sm:$0xff] }
 0x2b6   : > { %v2826_v51 = vadd.f32 %v2762_v48, %v2669_v44  ;;  %2107 = vst.msk [vmem:[#allocation3 + $0x170] sm:$0xff] %vm816_vm1, %v2043_v47  ;;  %8750 = vmatmul.msk.bf16.gmra.mxu1 %vm816_vm1, %v1643_v46  ;;  %8926 = vmatmul.msk.bf16.gmra.mxu2 %vm816_vm1, %v2427_v50  ;;  %v7313_v44 = vrot.slane %v9810_v39, 1  ;;  %v1982_v48 = vld [vmem:[#allocation3 + $0x188] sm:$0xff]  ;;  %v11936_v50 = vld [vmem:[#allocation2 + $0x20] sm:$0xff] }
 0x2b7   : > { %v3475_v43 = vld [vmem:[#allocation3 + $0x160] sm:$0xff]  ;;  %v4841_v62 = vrot.slane %v11936_v50, 1 }
 0x2b8   : > { %v3539_v0 = vadd.f32 %v3475_v43, %v3381_v30  ;;  %2890 = vst.msk [vmem:[#allocation3 + $0x168] sm:$0xff] %vm816_vm1, %v2826_v51  ;;  %v6341_v30 = vor.u32 %v6340_v20, %v6336_v18 }
 0x2b9   : > { %v4452_v49 = vld [vmem:[#allocation3 + $0x158] sm:$0xff]  ;;  %9102 = vmatmul.msk.bf16.gmra.mxu3 %vm816_vm1, %v10130_v57  ;;  %v2672_v2 = vpop.f32.mrf.mxu2  ;;  %v11909_v14 = vpop.f32.mrf.mxu0 }
 0x2ba   : > { %3603 = vst.msk [vmem:[#allocation3 + $0x160] sm:$0xff] %vm816_vm1, %v3539_v0  ;;  %v4516_v54 = vadd.f32 %v4452_v49, %v11868_v9  ;;  %v4119_v9 = vsel %vm1383_vm2, %v4114_v61, %v4118_v60  ;;  %v6346_v31 = vsel %vm1383_vm2, %v6341_v30, %v6345_v32 }
 0x2bb   : > { %v1890_v4 = vpop.f32.mrf.mxu1 }
 0x2bc   : > { %4580 = vst.msk [vmem:[#allocation3 + $0x158] sm:$0xff] %vm816_vm1, %v4516_v54  ;;  %v2044_v10 = vadd.f32 %v1980_v59, %v1890_v4  ;;  %v3386_v13 = vpop.f32.mrf.mxu3  ;;  %9278 = vmatmul.msk.bf16.gmra.mxu0 %vm816_vm1, %v4119_v9  ;;  %v4842_v4 = vsel %vm2362_vm3, %v4839_v6, %v4841_v62  ;;  %v6349_v59 = vor.u32 %v6347_v63, %v6345_v32  ;;  %v11996_v63 = vld [vmem:[#allocation2 + $0x30] sm:$0xff] }
 0x2bd   : > { %v2763_v11 = vld [vmem:[#allocation3 + $0x170] sm:$0xff] }
 0x2be   : > { %v2827_v15 = vadd.f32 %v2763_v11, %v2672_v2  ;;  %2108 = vst.msk [vmem:[#allocation3 + $0x178] sm:$0xff] %vm816_vm1, %v2044_v10  ;;  %v1983_v2 = vld [vmem:[#allocation3 + $0x190] sm:$0xff]  ;;  %v10208_v10 = vld [vmem:[#allocation2 + $0x28] sm:$0xff] }
 0x2bf   : > { %v3476_v3 = vld [vmem:[#allocation3 + $0x168] sm:$0xff] }
 0x2c0   : > { %v3540_v21 = vadd.f32 %v3476_v3, %v3383_v52  ;;  %2891 = vst.msk [vmem:[#allocation3 + $0x170] sm:$0xff] %vm816_vm1, %v2827_v15  ;;  %v11938_v52 = vld [vmem:[#allocation2 + $0x30] sm:$0xff] }
 0x2c1   : > { %v4453_v22 = vld [vmem:[#allocation3 + $0x160] sm:$0xff]  ;;  %v2674_v25 = vpop.f32.mrf.mxu2  ;;  %v11923_v38 = vpop.f32.mrf.mxu0  ;;  %v6351_v0 = vshll.u32 %v11938_v52, 16  ;;  %v11956_v15 = vld [vmem:[#allocation2 + $0x30] sm:$0xff] }
 0x2c2   : > { %3604 = vst.msk [vmem:[#allocation3 + $0x168] sm:$0xff] %vm816_vm1, %v3540_v21  ;;  %v4517_v23 = vadd.f32 %v4453_v22, %v11881_v33  ;;  %v11925_v33 = vld [vmem:[#allocation2 + $0x28] sm:$0xff]  ;;  %v7316_v18 = vrot.slane %v11956_v15, 1  ;;  %v1984_v22 = vld [vmem:[#allocation3 + $0x198] sm:$0xff] }
 0x2c3   : > { %v1893_v26 = vpop.f32.mrf.mxu1  ;;  %v7314_v45 = vrot.slane %v11925_v33, 1  ;;  %v6353_v8 = vrot.slane %v6351_v0, 1  ;;  %v11998_v0 = vld [vmem:[#allocation2 + $0x40] sm:$0xff] }
 0x2c4   : > { %4581 = vst.msk [vmem:[#allocation3 + $0x160] sm:$0xff] %vm816_vm1, %v4517_v23  ;;  %v2045_v34 = vadd.f32 %v1981_v27, %v1893_v26  ;;  %v3388_v19 = vpop.f32.mrf.mxu3  ;;  %v11967_v23 = vld [vmem:[#allocation2 + $0x28] sm:$0xff] }
 0x2c5   : > { %v2764_v37 = vld [vmem:[#allocation3 + $0x178] sm:$0xff]  ;;  %v7315_v58 = vsel %vm2362_vm3, %v7313_v44, %v7314_v45  ;;  %v6354_v5 = vsel %vm1383_vm2, %v6349_v59, %v6353_v8  ;;  %v4845_v59 = vrot.slane %v11996_v63, 1 }
 0x2c6   : > { %v2828_v35 = vadd.f32 %v2764_v37, %v2674_v25  ;;  %2109 = vst.msk [vmem:[#allocation3 + $0x180] sm:$0xff] %vm816_vm1, %v2045_v34  ;;  %9423 = vmatmul.msk.bf16.vlgmr.msra.gmra.mxu1 %vm816_vm1, %v4840_v28  ;;  %9599 = vmatmul.msk.bf16.vlgmr.msra.gmra.mxu2 %vm816_vm1, %v10207_v29  ;;  %v7317_v28 = vsel %vm2362_vm3, %v7314_v45, %v7316_v18  ;;  %v4843_v34 = vrot.slane %v11967_v23, 1  ;;  %v6355_v29 = vshrl.u32 %v11938_v52, 16  ;;  %v10209_v45 = vld [vmem:[#allocation2 + $0x30] sm:$0xff] }
 0x2c7   : > { %v3477_v36 = vld [vmem:[#allocation3 + $0x170] sm:$0xff]  ;;  %v6359_v37 = vshll.u32 %v11969_v17, 16 }
 0x2c8   : > { %v3541_v41 = vadd.f32 %v3477_v36, %v3386_v13  ;;  %2892 = vst.msk [vmem:[#allocation3 + $0x178] sm:$0xff] %vm816_vm1, %v2828_v35  ;;  %v1985_v36 = vld [vmem:[#allocation3 + $0x1a0] sm:$0xff] }
 0x2c9   : > { %v4454_v42 = vld [vmem:[#allocation3 + $0x168] sm:$0xff]  ;;  %9775 = vmatmul.msk.bf16.vlgmr.msra.gmra.mxu3 %vm816_vm1, %v6346_v31  ;;  %v2677_v46 = vpop.f32.mrf.mxu2  ;;  %v4369_v57 = vpop.f32.mrf.mxu0  ;;  %v4844_v31 = vsel %vm2362_vm3, %v4841_v62, %v4843_v34 }
 0x2ca   : > { %3605 = vst.msk [vmem:[#allocation3 + $0x170] sm:$0xff] %vm816_vm1, %v3541_v41  ;;  %v4518_v40 = vadd.f32 %v4454_v42, %v11894_v53  ;;  %v6357_v41 = vor.u32 %v6355_v29, %v6353_v8  ;;  %v6361_v42 = vrot.slane %v6359_v37, 1  ;;  %v1986_v62 = vld [vmem:[#allocation3 + $0x1a8] sm:$0xff]  ;;  %v6363_v8 = vshrl.u32 %v11969_v17, 16  ;;  %v12025_v29 = vld [vmem:[#allocation2 + $0x38] sm:$0xff] }
 0x2cb   : > { %v1895_v47 = vpop.f32.mrf.mxu1  ;;  %v12027_v37 = vld [vmem:[#allocation2 + $0x48] sm:$0xff] }
 0x2cc   : > { %4582 = vst.msk [vmem:[#allocation3 + $0x168] sm:$0xff] %vm816_vm1, %v4518_v40  ;;  %v2046_v56 = vadd.f32 %v1982_v48, %v1895_v47  ;;  %v3391_v51 = vpop.f32.mrf.mxu3  ;;  %9951 = vmatmul.msk.bf16.vlgmr.msra.gmra.mxu0 %vm816_vm1, %v7315_v58  ;;  %v11986_v48 = vld [vmem:[#allocation2 + $0x38] sm:$0xff] }
 0x2cd   : > { %v2765_v55 = vld [vmem:[#allocation3 + $0x180] sm:$0xff] }
 0x2ce   : > { %v2829_v53 = vadd.f32 %v2765_v55, %v2677_v46  ;;  %2110 = vst.msk [vmem:[#allocation3 + $0x188] sm:$0xff] %vm816_vm1, %v2046_v56  ;;  %v6362_v56 = vsel %vm1383_vm2, %v6357_v41, %v6361_v42  ;;  %v4847_v41 = vrot.slane %v12025_v29, 1 }
 0x2cf   : > { %v3478_v43 = vld [vmem:[#allocation3 + $0x178] sm:$0xff] }
 0x2d0   : > { %v3542_v49 = vadd.f32 %v3478_v43, %v3388_v19  ;;  %2893 = vst.msk [vmem:[#allocation3 + $0x180] sm:$0xff] %vm816_vm1, %v2829_v53 }
 0x2d1   : > { %v4455_v61 = vld [vmem:[#allocation3 + $0x170] sm:$0xff]  ;;  %v2679_v54 = vpop.f32.mrf.mxu2  ;;  %v4371_v9 = vpop.f32.mrf.mxu0 }
 0x2d2   : > { %3606 = vst.msk [vmem:[#allocation3 + $0x178] sm:$0xff] %vm816_vm1, %v3542_v49  ;;  %v4519_v60 = vadd.f32 %v4455_v61, %v11909_v14 }
 0x2d3   : > { %v1898_v1 = vpop.f32.mrf.mxu1 }
 0x2d4   : > { %4583 = vst.msk [vmem:[#allocation3 + $0x170] sm:$0xff] %vm816_vm1, %v4519_v60  ;;  %v2047_v7 = vadd.f32 %v1983_v2, %v1898_v1  ;;  %v3393_v13 = vpop.f32.mrf.mxu3 }
 0x2d5   : > { %v2766_v11 = vld [vmem:[#allocation3 + $0x188] sm:$0xff] }
 0x2d6   : > { %v2830_v16 = vadd.f32 %v2766_v11, %v2679_v54  ;;  %2111 = vst.msk [vmem:[#allocation3 + $0x190] sm:$0xff] %vm816_vm1, %v2047_v7  ;;  %9424 = vmatmul.msk.bf16.gmra.mxu1 %vm816_vm1, %v4842_v4  ;;  %9600 = vmatmul.msk.bf16.gmra.mxu2 %vm816_vm1, %v10208_v10  ;;  %v6367_v7 = vshll.u32 %v11998_v0, 16 }
 0x2d7   : > { %v3479_v14 = vld [vmem:[#allocation3 + $0x180] sm:$0xff] }
 0x2d8   : > { %v3543_v3 = vadd.f32 %v3479_v14, %v3391_v51  ;;  %2894 = vst.msk [vmem:[#allocation3 + $0x188] sm:$0xff] %vm816_vm1, %v2830_v16  ;;  %v1987_v16 = vld [vmem:[#allocation3 + $0x1b0] sm:$0xff]  ;;  %v4846_v14 = vsel %vm2362_vm3, %v4843_v34, %v4845_v59  ;;  %v1988_v34 = vld [vmem:[#allocation3 + $0x1b8] sm:$0xff] }
 0x2d9   : > { %v4456_v6 = vld [vmem:[#allocation3 + $0x178] sm:$0xff]  ;;  %9776 = vmatmul.msk.bf16.gmra.mxu3 %vm816_vm1, %v6354_v5  ;;  %v2682_v12 = vpop.f32.mrf.mxu2  ;;  %v4374_v27 = vpop.f32.mrf.mxu0  ;;  %v6365_v5 = vor.u32 %v6363_v8, %v6361_v42  ;;  %v6371_v42 = vshrl.u32 %v11998_v0, 16  ;;  %v12054_v8 = vld [vmem:[#allocation2 + $0x40] sm:$0xff] }
 0x2da   : > { %3607 = vst.msk [vmem:[#allocation3 + $0x180] sm:$0xff] %vm816_vm1, %v3543_v3  ;;  %v4520_v20 = vadd.f32 %v4456_v6, %v11923_v38  ;;  %v6369_v3 = vrot.slane %v6367_v7, 1  ;;  %v12056_v7 = vld [vmem:[#allocation2 + $0x50] sm:$0xff] }
 0x2db   : > { %v1900_v21 = vpop.f32.mrf.mxu1 }
 0x2dc   : > { %4584 = vst.msk [vmem:[#allocation3 + $0x178] sm:$0xff] %vm816_vm1, %v4520_v20  ;;  %v2048_v24 = vadd.f32 %v1984_v22, %v1900_v21  ;;  %v3396_v26 = vpop.f32.mrf.mxu3  ;;  %9952 = vmatmul.msk.bf16.gmra.mxu0 %vm816_vm1, %v7317_v28  ;;  %v12015_v22 = vld [vmem:[#allocation2 + $0x40] sm:$0xff] }
 0x2dd   : > { %v2767_v25 = vld [vmem:[#allocation3 + $0x190] sm:$0xff] }
 0x2de   : > { %v2831_v30 = vadd.f32 %v2767_v25, %v2682_v12  ;;  %2112 = vst.msk [vmem:[#allocation3 + $0x198] sm:$0xff] %vm816_vm1, %v2048_v24  ;;  %v6370_v24 = vsel %vm1383_vm2, %v6365_v5, %v6369_v3  ;;  %v4849_v5 = vrot.slane %v12054_v8, 1 }
 0x2df   : > { %v3480_v32 = vld [vmem:[#allocation3 + $0x188] sm:$0xff] }
 0x2e0   : > { %v3544_v19 = vadd.f32 %v3480_v32, %v3393_v13  ;;  %2895 = vst.msk [vmem:[#allocation3 + $0x190] sm:$0xff] %vm816_vm1, %v2831_v30 }
 0x2e1   : > { %v4457_v38 = vld [vmem:[#allocation3 + $0x180] sm:$0xff]  ;;  %v2684_v39 = vpop.f32.mrf.mxu2  ;;  %v4376_v47 = vpop.f32.mrf.mxu0 }
 0x2e2   : > { %3608 = vst.msk [vmem:[#allocation3 + $0x188] sm:$0xff] %vm816_vm1, %v3544_v19  ;;  %v4521_v33 = vadd.f32 %v4457_v38, %v4369_v57  ;;  %v7318_v57 = vrot.slane %v11986_v48, 1 }
 0x2e3   : > { %v1903_v35 = vpop.f32.mrf.mxu1 }
 0x2e4   : > { %4585 = vst.msk [vmem:[#allocation3 + $0x180] sm:$0xff] %vm816_vm1, %v4521_v33  ;;  %v2049_v44 = vadd.f32 %v1985_v36, %v1903_v35  ;;  %v3398_v46 = vpop.f32.mrf.mxu3  ;;  %v7319_v1 = vsel %vm2362_vm3, %v7316_v18, %v7318_v57  ;;  %v10210_v18 = vld [vmem:[#allocation2 + $0x38] sm:$0xff] }
 0x2e5   : > { %v2768_v40 = vld [vmem:[#allocation3 + $0x198] sm:$0xff] }
 0x2e6   : > { %v2832_v50 = vadd.f32 %v2768_v40, %v2684_v39  ;;  %2113 = vst.msk [vmem:[#allocation3 + $0x1a0] sm:$0xff] %vm816_vm1, %v2049_v44  ;;  %9425 = vmatmul.msk.bf16.gmra.mxu1 %vm816_vm1, %v4844_v31  ;;  %9601 = vmatmul.msk.bf16.gmra.mxu2 %vm816_vm1, %v10209_v45  ;;  %v6375_v44 = vshll.u32 %v12027_v37, 16 }
 0x2e7   : > { %v3481_v52 = vld [vmem:[#allocation3 + $0x190] sm:$0xff] }
 0x2e8   : > { %v3545_v55 = vadd.f32 %v3481_v52, %v3396_v26  ;;  %2896 = vst.msk [vmem:[#allocation3 + $0x198] sm:$0xff] %vm816_vm1, %v2832_v50  ;;  %v1989_v50 = vld [vmem:[#allocation3 + $0x1c0] sm:$0xff]  ;;  %v4848_v52 = vsel %vm2362_vm3, %v4845_v59, %v4847_v41  ;;  %v1990_v59 = vld [vmem:[#allocation3 + $0x1c8] sm:$0xff] }
 0x2e9   : > { %v4458_v51 = vld [vmem:[#allocation3 + $0x188] sm:$0xff]  ;;  %9777 = vmatmul.msk.bf16.gmra.mxu3 %vm816_vm1, %v6362_v56  ;;  %v2687_v53 = vpop.f32.mrf.mxu2  ;;  %v4379_v54 = vpop.f32.mrf.mxu0  ;;  %v6373_v56 = vor.u32 %v6371_v42, %v6369_v3  ;;  %v6379_v3 = vshrl.u32 %v12027_v37, 16 }
 0x2ea   : > { %3609 = vst.msk [vmem:[#allocation3 + $0x190] sm:$0xff] %vm816_vm1, %v3545_v55  ;;  %v4522_v58 = vadd.f32 %v4458_v51, %v4371_v9  ;;  %v6377_v55 = vrot.slane %v6375_v44, 1  ;;  %v12083_v42 = vld [vmem:[#allocation2 + $0x48] sm:$0xff]  ;;  %v12085_v44 = vld [vmem:[#allocation2 + $0x58] sm:$0xff] }
 0x2eb   : > { %v1905_v43 = vpop.f32.mrf.mxu1 }
 0x2ec   : > { %4586 = vst.msk [vmem:[#allocation3 + $0x188] sm:$0xff] %vm816_vm1, %v4522_v58  ;;  %v2050_v49 = vadd.f32 %v1986_v62, %v1905_v43  ;;  %v3401_v60 = vpop.f32.mrf.mxu3  ;;  %9953 = vmatmul.msk.bf16.gmra.mxu0 %vm816_vm1, %v7319_v1  ;;  %v12044_v62 = vld [vmem:[#allocation2 + $0x48] sm:$0xff] }
 0x2ed   : > { %v2769_v61 = vld [vmem:[#allocation3 + $0x1a0] sm:$0xff] }
 0x2ee   : > { %v2833_v2 = vadd.f32 %v2769_v61, %v2687_v53  ;;  %2114 = vst.msk [vmem:[#allocation3 + $0x1a8] sm:$0xff] %vm816_vm1, %v2050_v49  ;;  %v6378_v49 = vsel %vm1383_vm2, %v6373_v56, %v6377_v55  ;;  %v4851_v56 = vrot.slane %v12083_v42, 1 }
 0x2ef   : > { %v3482_v4 = vld [vmem:[#allocation3 + $0x198] sm:$0xff] }
 0x2f0   : > { %v3546_v10 = vadd.f32 %v3482_v4, %v3398_v46  ;;  %2897 = vst.msk [vmem:[#allocation3 + $0x1a0] sm:$0xff] %vm816_vm1, %v2833_v2 }
 0x2f1   : > { %v4459_v11 = vld [vmem:[#allocation3 + $0x190] sm:$0xff]  ;;  %v2689_v9 = vpop.f32.mrf.mxu2  ;;  %v4381_v21 = vpop.f32.mrf.mxu0 }
 0x2f2   : > { %3610 = vst.msk [vmem:[#allocation3 + $0x198] sm:$0xff] %vm816_vm1, %v3546_v10  ;;  %v4523_v13 = vadd.f32 %v4459_v11, %v4374_v27  ;;  %v7320_v27 = vrot.slane %v12015_v22, 1 }
 0x2f3   : > { %v1908_v15 = vpop.f32.mrf.mxu1 }
 0x2f4   : > { %4587 = vst.msk [vmem:[#allocation3 + $0x190] sm:$0xff] %vm816_vm1, %v4523_v13  ;;  %v2051_v6 = vadd.f32 %v1987_v16, %v1908_v15  ;;  %v3403_v12 = vpop.f32.mrf.mxu3  ;;  %v7321_v35 = vsel %vm2362_vm3, %v7318_v57, %v7320_v27  ;;  %v10211_v57 = vld [vmem:[#allocation2 + $0x40] sm:$0xff] }
 0x2f5   : > { %v2770_v20 = vld [vmem:[#allocation3 + $0x1a8] sm:$0xff] }
 0x2f6   : > { %v2834_v23 = vadd.f32 %v2770_v20, %v2689_v9  ;;  %2115 = vst.msk [vmem:[#allocation3 + $0x1b0] sm:$0xff] %vm816_vm1, %v2051_v6  ;;  %9426 = vmatmul.msk.bf16.gmra.mxu1 %vm816_vm1, %v4846_v14  ;;  %9602 = vmatmul.msk.bf16.gmra.mxu2 %vm816_vm1, %v10210_v18  ;;  %v6383_v6 = vshll.u32 %v12056_v7, 16 }
 0x2f7   : > { %v3483_v17 = vld [vmem:[#allocation3 + $0x1a0] sm:$0xff] }
 0x2f8   : > { %v3547_v25 = vadd.f32 %v3483_v17, %v3401_v60  ;;  %2898 = vst.msk [vmem:[#allocation3 + $0x1a8] sm:$0xff] %vm816_vm1, %v2834_v23  ;;  %v1991_v23 = vld [vmem:[#allocation3 + $0x1d0] sm:$0xff]  ;;  %v4850_v17 = vsel %vm2362_vm3, %v4847_v41, %v4849_v5  ;;  %v1992_v41 = vld [vmem:[#allocation3 + $0x1d8] sm:$0xff] }
 0x2f9   : > { %v4460_v26 = vld [vmem:[#allocation3 + $0x198] sm:$0xff]  ;;  %9778 = vmatmul.msk.bf16.gmra.mxu3 %vm816_vm1, %v6370_v24  ;;  %v2692_v30 = vpop.f32.mrf.mxu2  ;;  %v4384_v39 = vpop.f32.mrf.mxu0  ;;  %v6381_v24 = vor.u32 %v6379_v3, %v6377_v55  ;;  %v6387_v55 = vshrl.u32 %v12056_v7, 16  ;;  %v12112_v3 = vld [vmem:[#allocation2 + $0x50] sm:$0xff] }
 0x2fa   : > { %3611 = vst.msk [vmem:[#allocation3 + $0x1a0] sm:$0xff] %vm816_vm1, %v3547_v25  ;;  %v4524_v28 = vadd.f32 %v4460_v26, %v4376_v47  ;;  %v6385_v25 = vrot.slane %v6383_v6, 1  ;;  %v12114_v6 = vld [vmem:[#allocation2 + $0x60] sm:$0xff] }
 0x2fb   : > { %v1910_v32 = vpop.f32.mrf.mxu1 }
 0x2fc   : > { %4588 = vst.msk [vmem:[#allocation3 + $0x198] sm:$0xff] %vm816_vm1, %v4524_v28  ;;  %v2052_v19 = vadd.f32 %v1988_v34, %v1910_v32  ;;  %v3406_v33 = vpop.f32.mrf.mxu3  ;;  %9954 = vmatmul.msk.bf16.gmra.mxu0 %vm816_vm1, %v7321_v35  ;;  %v12073_v34 = vld [vmem:[#allocation2 + $0x50] sm:$0xff] }
 0x2fd   : > { %v2771_v38 = vld [vmem:[#allocation3 + $0x1b0] sm:$0xff] }
 0x2fe   : > { %v2835_v36 = vadd.f32 %v2771_v38, %v2692_v30  ;;  %2116 = vst.msk [vmem:[#allocation3 + $0x1b8] sm:$0xff] %vm816_vm1, %v2052_v19  ;;  %v6386_v19 = vsel %vm1383_vm2, %v6381_v24, %v6385_v25  ;;  %v4853_v24 = vrot.slane %v12112_v3, 1 }
 0x2ff   : > { %v3484_v31 = vld [vmem:[#allocation3 + $0x1a8] sm:$0xff] }
 0x300   : > { %v3548_v45 = vadd.f32 %v3484_v31, %v3403_v12  ;;  %2899 = vst.msk [vmem:[#allocation3 + $0x1b0] sm:$0xff] %vm816_vm1, %v2835_v36 }
 0x301   : > { %v4461_v40 = vld [vmem:[#allocation3 + $0x1a0] sm:$0xff]  ;;  %v2694_v47 = vpop.f32.mrf.mxu2  ;;  %v4386_v43 = vpop.f32.mrf.mxu0 }
 0x302   : > { %3612 = vst.msk [vmem:[#allocation3 + $0x1a8] sm:$0xff] %vm816_vm1, %v3548_v45  ;;  %v4525_v46 = vadd.f32 %v4461_v40, %v4379_v54  ;;  %v7322_v54 = vrot.slane %v12044_v62, 1 }
 0x303   : > { %v1913_v48 = vpop.f32.mrf.mxu1 }
 0x304   : > { %4589 = vst.msk [vmem:[#allocation3 + $0x1a0] sm:$0xff] %vm816_vm1, %v4525_v46  ;;  %v2053_v51 = vadd.f32 %v1989_v50, %v1913_v48  ;;  %v3408_v53 = vpop.f32.mrf.mxu3  ;;  %v7323_v15 = vsel %vm2362_vm3, %v7320_v27, %v7322_v54  ;;  %v10212_v27 = vld [vmem:[#allocation2 + $0x48] sm:$0xff] }
 0x305   : > { %v2772_v58 = vld [vmem:[#allocation3 + $0x1b8] sm:$0xff] }
 0x306   : > { %v2836_v63 = vadd.f32 %v2772_v58, %v2694_v47  ;;  %2117 = vst.msk [vmem:[#allocation3 + $0x1c0] sm:$0xff] %vm816_vm1, %v2053_v51  ;;  %9427 = vmatmul.msk.bf16.gmra.mxu1 %vm816_vm1, %v4848_v52  ;;  %9603 = vmatmul.msk.bf16.gmra.mxu2 %vm816_vm1, %v10211_v57  ;;  %v6391_v51 = vshll.u32 %v12085_v44, 16 }
 0x307   : > { %v3485_v0 = vld [vmem:[#allocation3 + $0x1b0] sm:$0xff] }
 0x308   : > { %v3549_v61 = vadd.f32 %v3485_v0, %v3406_v33  ;;  %2900 = vst.msk [vmem:[#allocation3 + $0x1b8] sm:$0xff] %vm816_vm1, %v2836_v63  ;;  %v1993_v63 = vld [vmem:[#allocation3 + $0x1e0] sm:$0xff]  ;;  %v4852_v0 = vsel %vm2362_vm3, %v4849_v5, %v4851_v56  ;;  %v1994_v5 = vld [vmem:[#allocation3 + $0x1e8] sm:$0xff] }
 0x309   : > { %v4462_v60 = vld [vmem:[#allocation3 + $0x1a8] sm:$0xff]  ;;  %9779 = vmatmul.msk.bf16.gmra.mxu3 %vm816_vm1, %v6378_v49  ;;  %v2697_v2 = vpop.f32.mrf.mxu2  ;;  %v4389_v9 = vpop.f32.mrf.mxu0  ;;  %v6389_v49 = vor.u32 %v6387_v55, %v6385_v25  ;;  %v6395_v25 = vshrl.u32 %v12085_v44, 16  ;;  %v12141_v55 = vld [vmem:[#allocation2 + $0x58] sm:$0xff] }
 0x30a   : > { %3613 = vst.msk [vmem:[#allocation3 + $0x1b0] sm:$0xff] %vm816_vm1, %v3549_v61  ;;  %v4526_v1 = vadd.f32 %v4462_v60, %v4381_v21  ;;  %v6393_v61 = vrot.slane %v6391_v51, 1  ;;  %v12143_v51 = vld [vmem:[#allocation2 + $0x68] sm:$0xff] }
 0x30b   : > { %v1915_v4 = vpop.f32.mrf.mxu1 }
 0x30c   : > { %4590 = vst.msk [vmem:[#allocation3 + $0x1a8] sm:$0xff] %vm816_vm1, %v4526_v1  ;;  %v2054_v10 = vadd.f32 %v1990_v59, %v1915_v4  ;;  %v3411_v13 = vpop.f32.mrf.mxu3  ;;  %9955 = vmatmul.msk.bf16.gmra.mxu0 %vm816_vm1, %v7323_v15  ;;  %v12102_v59 = vld [vmem:[#allocation2 + $0x58] sm:$0xff] }
 0x30d   : > { %v2773_v11 = vld [vmem:[#allocation3 + $0x1c0] sm:$0xff] }
 0x30e   : > { %v2837_v16 = vadd.f32 %v2773_v11, %v2697_v2  ;;  %2118 = vst.msk [vmem:[#allocation3 + $0x1c8] sm:$0xff] %vm816_vm1, %v2054_v10  ;;  %v6394_v10 = vsel %vm1383_vm2, %v6389_v49, %v6393_v61  ;;  %v4855_v49 = vrot.slane %v12141_v55, 1 }
 0x30f   : > { %v3486_v14 = vld [vmem:[#allocation3 + $0x1b8] sm:$0xff] }
 0x310   : > { %v3550_v18 = vadd.f32 %v3486_v14, %v3408_v53  ;;  %2901 = vst.msk [vmem:[#allocation3 + $0x1c0] sm:$0xff] %vm816_vm1, %v2837_v16 }
 0x311   : > { %v4463_v20 = vld [vmem:[#allocation3 + $0x1b0] sm:$0xff]  ;;  %v2699_v21 = vpop.f32.mrf.mxu2  ;;  %v4391_v32 = vpop.f32.mrf.mxu0 }
 0x312   : > { %3614 = vst.msk [vmem:[#allocation3 + $0x1b8] sm:$0xff] %vm816_vm1, %v3550_v18  ;;  %v4527_v12 = vadd.f32 %v4463_v20, %v4384_v39  ;;  %v7324_v39 = vrot.slane %v12073_v34, 1 }
 0x313   : > { %v1918_v22 = vpop.f32.mrf.mxu1 }
 0x314   : > { %4591 = vst.msk [vmem:[#allocation3 + $0x1b0] sm:$0xff] %vm816_vm1, %v4527_v12  ;;  %v2055_v26 = vadd.f32 %v1991_v23, %v1918_v22  ;;  %v3413_v30 = vpop.f32.mrf.mxu3  ;;  %v7325_v48 = vsel %vm2362_vm3, %v7322_v54, %v7324_v39  ;;  %v10213_v54 = vld [vmem:[#allocation2 + $0x50] sm:$0xff] }
 0x315   : > { %v2774_v28 = vld [vmem:[#allocation3 + $0x1c8] sm:$0xff] }
 0x316   : > { %v2838_v29 = vadd.f32 %v2774_v28, %v2699_v21  ;;  %2119 = vst.msk [vmem:[#allocation3 + $0x1d0] sm:$0xff] %vm816_vm1, %v2055_v26  ;;  %9428 = vmatmul.msk.bf16.gmra.mxu1 %vm816_vm1, %v4850_v17  ;;  %9604 = vmatmul.msk.bf16.gmra.mxu2 %vm816_vm1, %v10212_v27  ;;  %v6399_v26 = vshll.u32 %v12114_v6, 16 }
 0x317   : > { %v3487_v37 = vld [vmem:[#allocation3 + $0x1c0] sm:$0xff] }
 0x318   : > { %v3551_v38 = vadd.f32 %v3487_v37, %v3411_v13  ;;  %2902 = vst.msk [vmem:[#allocation3 + $0x1c8] sm:$0xff] %vm816_vm1, %v2838_v29  ;;  %v1995_v29 = vld [vmem:[#allocation3 + $0x1f0] sm:$0xff]  ;;  %v4854_v37 = vsel %vm2362_vm3, %v4851_v56, %v4853_v24  ;;  %v1996_v56 = vld [vmem:[#allocation3 + $0x1f8] sm:$0xff] }
 0x319   : > { %v4464_v33 = vld [vmem:[#allocation3 + $0x1b8] sm:$0xff]  ;;  %9780 = vmatmul.msk.bf16.gmra.mxu3 %vm816_vm1, %v6386_v19  ;;  %v2702_v36 = vpop.f32.mrf.mxu2  ;;  %v4394_v47 = vpop.f32.mrf.mxu0  ;;  %v6397_v19 = vor.u32 %v6395_v25, %v6393_v61  ;;  %v6403_v61 = vshrl.u32 %v12114_v6, 16  ;;  %v12170_v25 = vld [vmem:[#allocation2 + $0x60] sm:$0xff] }
 0x31a   : > { %3615 = vst.msk [vmem:[#allocation3 + $0x1c0] sm:$0xff] %vm816_vm1, %v3551_v38  ;;  %v4528_v35 = vadd.f32 %v4464_v33, %v4386_v43  ;;  %v6401_v38 = vrot.slane %v6399_v26, 1  ;;  %v12172_v26 = vld [vmem:[#allocation2 + $0x70] sm:$0xff] }
 0x31b   : > { %v1920_v31 = vpop.f32.mrf.mxu1 }
 0x31c   : > { %4592 = vst.msk [vmem:[#allocation3 + $0x1b8] sm:$0xff] %vm816_vm1, %v4528_v35  ;;  %v2056_v45 = vadd.f32 %v1992_v41, %v1920_v31  ;;  %v3416_v46 = vpop.f32.mrf.mxu3  ;;  %9956 = vmatmul.msk.bf16.gmra.mxu0 %vm816_vm1, %v7325_v48  ;;  %v12131_v41 = vld [vmem:[#allocation2 + $0x60] sm:$0xff] }
 0x31d   : > { %v2775_v40 = vld [vmem:[#allocation3 + $0x1d0] sm:$0xff] }
 0x31e   : > { %v2839_v50 = vadd.f32 %v2775_v40, %v2702_v36  ;;  %2120 = vst.msk [vmem:[#allocation3 + $0x1d8] sm:$0xff] %vm816_vm1, %v2056_v45  ;;  %v6402_v45 = vsel %vm1383_vm2, %v6397_v19, %v6401_v38  ;;  %v4857_v19 = vrot.slane %v12170_v25, 1 }
 0x31f   : > { %v3488_v52 = vld [vmem:[#allocation3 + $0x1c8] sm:$0xff] }
 0x320   : > { %v3552_v57 = vadd.f32 %v3488_v52, %v3413_v30  ;;  %2903 = vst.msk [vmem:[#allocation3 + $0x1d0] sm:$0xff] %vm816_vm1, %v2839_v50 }
 0x321   : > { %v4465_v58 = vld [vmem:[#allocation3 + $0x1c0] sm:$0xff]  ;;  %v2704_v43 = vpop.f32.mrf.mxu2  ;;  %v4396_v4 = vpop.f32.mrf.mxu0 }
 0x322   : > { %3616 = vst.msk [vmem:[#allocation3 + $0x1c8] sm:$0xff] %vm816_vm1, %v3552_v57  ;;  %v4529_v53 = vadd.f32 %v4465_v58, %v4389_v9  ;;  %v7326_v9 = vrot.slane %v12102_v59, 1 }
 0x323   : > { %v1923_v62 = vpop.f32.mrf.mxu1 }
 0x324   : > { %4593 = vst.msk [vmem:[#allocation3 + $0x1c0] sm:$0xff] %vm816_vm1, %v4529_v53  ;;  %v2057_v60 = vadd.f32 %v1993_v63, %v1923_v62  ;;  %v3418_v2 = vpop.f32.mrf.mxu3  ;;  %v7327_v22 = vsel %vm2362_vm3, %v7324_v39, %v7326_v9  ;;  %v10214_v39 = vld [vmem:[#allocation2 + $0x58] sm:$0xff] }
 0x325   : > { %v2776_v1 = vld [vmem:[#allocation3 + $0x1d8] sm:$0xff] }
 0x326   : > { %v2840_v8 = vadd.f32 %v2776_v1, %v2704_v43  ;;  %2121 = vst.msk [vmem:[#allocation3 + $0x1e0] sm:$0xff] %vm816_vm1, %v2057_v60  ;;  %9429 = vmatmul.msk.bf16.gmra.mxu1 %vm816_vm1, %v4852_v0  ;;  %9605 = vmatmul.msk.bf16.gmra.mxu2 %vm816_vm1, %v10213_v54  ;;  %v6407_v60 = vshll.u32 %v12143_v51, 16 }
 0x327   : > { %v3489_v7 = vld [vmem:[#allocation3 + $0x1d0] sm:$0xff] }
 0x328   : > { %v3553_v11 = vadd.f32 %v3489_v7, %v3416_v46  ;;  %2904 = vst.msk [vmem:[#allocation3 + $0x1d8] sm:$0xff] %vm816_vm1, %v2840_v8  ;;  %v5192_v8 = vld [vmem:[#allocation3] sm:$0xff]  ;;  %v4856_v7 = vsel %vm2362_vm3, %v4853_v24, %v4855_v49  ;;  %v5193_v24 = vld [vmem:[#allocation3 + $0x8] sm:$0xff] }
 0x329   : > { %v4466_v13 = vld [vmem:[#allocation3 + $0x1c8] sm:$0xff]  ;;  %9781 = vmatmul.msk.bf16.gmra.mxu3 %vm816_vm1, %v6394_v10  ;;  %v2707_v16 = vpop.f32.mrf.mxu2  ;;  %v4399_v21 = vpop.f32.mrf.mxu0  ;;  %v6405_v10 = vor.u32 %v6403_v61, %v6401_v38  ;;  %v6411_v38 = vshrl.u32 %v12143_v51, 16 }
 0x32a   : > { %3617 = vst.msk [vmem:[#allocation3 + $0x1d0] sm:$0xff] %vm816_vm1, %v3553_v11  ;;  %v4530_v15 = vadd.f32 %v4466_v13, %v4391_v32  ;;  %v6409_v11 = vrot.slane %v6407_v60, 1  ;;  %v12201_v61 = vld [vmem:[#allocation2 + $0x68] sm:$0xff]  ;;  %v12203_v60 = vld [vmem:[#allocation2 + $0x78] sm:$0xff] }
 0x32b   : > { %v1925_v14 = vpop.f32.mrf.mxu1 }
 0x32c   : > { %4594 = vst.msk [vmem:[#allocation3 + $0x1c8] sm:$0xff] %vm816_vm1, %v4530_v15  ;;  %v2058_v18 = vadd.f32 %v1994_v5, %v1925_v14  ;;  %v3421_v12 = vpop.f32.mrf.mxu3  ;;  %9957 = vmatmul.msk.bf16.gmra.mxu0 %vm816_vm1, %v7327_v22  ;;  %v12160_v5 = vld [vmem:[#allocation2 + $0x68] sm:$0xff] }
 0x32d   : > { %v2777_v20 = vld [vmem:[#allocation3 + $0x1e0] sm:$0xff] }
 0x32e   : > { %v2841_v23 = vadd.f32 %v2777_v20, %v2707_v16  ;;  %2122 = vst.msk [vmem:[#allocation3 + $0x1e8] sm:$0xff] %vm816_vm1, %v2058_v18  ;;  %v6410_v18 = vsel %vm1383_vm2, %v6405_v10, %v6409_v11  ;;  %v4859_v10 = vrot.slane %v12201_v61, 1 }
 0x32f   : > { %v3490_v17 = vld [vmem:[#allocation3 + $0x1d8] sm:$0xff] }
 0x330   : > { %v3554_v27 = vadd.f32 %v3490_v17, %v3418_v2  ;;  %2905 = vst.msk [vmem:[#allocation3 + $0x1e0] sm:$0xff] %vm816_vm1, %v2841_v23 }
 0x331   : > { %v4467_v28 = vld [vmem:[#allocation3 + $0x1d0] sm:$0xff]  ;;  %v2709_v32 = vpop.f32.mrf.mxu2  ;;  %v4401_v31 = vpop.f32.mrf.mxu0 }
 0x332   : > { %3618 = vst.msk [vmem:[#allocation3 + $0x1d8] sm:$0xff] %vm816_vm1, %v3554_v27  ;;  %v4531_v30 = vadd.f32 %v4467_v28, %v4394_v47  ;;  %v7328_v47 = vrot.slane %v12131_v41, 1 }
 0x333   : > { %v1928_v34 = vpop.f32.mrf.mxu1 }
 0x334   : > { %4595 = vst.msk [vmem:[#allocation3 + $0x1d0] sm:$0xff] %vm816_vm1, %v4531_v30  ;;  %v2059_v33 = vadd.f32 %v1995_v29, %v1928_v34  ;;  %v3423_v36 = vpop.f32.mrf.mxu3  ;;  %v7329_v62 = vsel %vm2362_vm3, %v7326_v9, %v7328_v47  ;;  %v10215_v9 = vld [vmem:[#allocation2 + $0x60] sm:$0xff] }
 0x335   : > { %v2778_v35 = vld [vmem:[#allocation3 + $0x1e8] sm:$0xff] }
 0x336   : > { %v2842_v42 = vadd.f32 %v2778_v35, %v2709_v32  ;;  %2123 = vst.msk [vmem:[#allocation3 + $0x1f0] sm:$0xff] %vm816_vm1, %v2059_v33  ;;  %9430 = vmatmul.msk.bf16.gmra.mxu1 %vm816_vm1, %v4854_v37  ;;  %9606 = vmatmul.msk.bf16.gmra.mxu2 %vm816_vm1, %v10214_v39  ;;  %v6415_v33 = vshll.u32 %v12172_v26, 16 }
 0x337   : > { %v3491_v44 = vld [vmem:[#allocation3 + $0x1e0] sm:$0xff] }
 0x338   : > { %v3555_v40 = vadd.f32 %v3491_v44, %v3421_v12  ;;  %2906 = vst.msk [vmem:[#allocation3 + $0x1e8] sm:$0xff] %vm816_vm1, %v2842_v42  ;;  %v5194_v42 = vld [vmem:[#allocation3 + $0x10] sm:$0xff]  ;;  %v4858_v44 = vsel %vm2362_vm3, %v4855_v49, %v4857_v19  ;;  %v5195_v49 = vld [vmem:[#allocation3 + $0x18] sm:$0xff] }
 0x339   : > { %v4468_v46 = vld [vmem:[#allocation3 + $0x1d8] sm:$0xff]  ;;  %9782 = vmatmul.msk.bf16.gmra.mxu3 %vm816_vm1, %v6402_v45  ;;  %v2712_v50 = vpop.f32.mrf.mxu2  ;;  %v4404_v43 = vpop.f32.mrf.mxu0  ;;  %v6413_v45 = vor.u32 %v6411_v38, %v6409_v11  ;;  %v6419_v11 = vshrl.u32 %v12172_v26, 16 }
 0x33a   : > { %3619 = vst.msk [vmem:[#allocation3 + $0x1e0] sm:$0xff] %vm816_vm1, %v3555_v40  ;;  %v4532_v48 = vadd.f32 %v4468_v46, %v4396_v4  ;;  %v6417_v40 = vrot.slane %v6415_v33, 1 }
 0x33b   : > { %v1930_v52 = vpop.f32.mrf.mxu1 }
 0x33c   : > { %4596 = vst.msk [vmem:[#allocation3 + $0x1d8] sm:$0xff] %vm816_vm1, %v4532_v48  ;;  %v2060_v57 = vadd.f32 %v1996_v56, %v1930_v52  ;;  %v3426_v53 = vpop.f32.mrf.mxu3  ;;  %9958 = vmatmul.msk.bf16.gmra.mxu0 %vm816_vm1, %v7329_v62  ;;  %v12191_v56 = vld [vmem:[#allocation2 + $0x70] sm:$0xff] }
 0x33d   : > { %v2779_v58 = vld [vmem:[#allocation3 + $0x1f0] sm:$0xff] }
 0x33e   : > { %v2843_v63 = vadd.f32 %v2779_v58, %v2712_v50  ;;  %2124 = vst.msk [vmem:[#allocation3 + $0x1f8] sm:$0xff] %vm816_vm1, %v2060_v57  ;;  %v6418_v57 = vsel %vm1383_vm2, %v6413_v45, %v6417_v40 }
 0x33f   : > { %v3492_v0 = vld [vmem:[#allocation3 + $0x1e8] sm:$0xff] }
 0x340   : > { %v3556_v54 = vadd.f32 %v3492_v0, %v3423_v36  ;;  %2907 = vst.msk [vmem:[#allocation3 + $0x1f0] sm:$0xff] %vm816_vm1, %v2843_v63 }
 0x341   : > { %v4469_v1 = vld [vmem:[#allocation3 + $0x1e0] sm:$0xff]  ;;  %v2714_v4 = vpop.f32.mrf.mxu2  ;;  %v4406_v14 = vpop.f32.mrf.mxu0 }
 0x342   : > { %3620 = vst.msk [vmem:[#allocation3 + $0x1e8] sm:$0xff] %vm816_vm1, %v3556_v54  ;;  %v4533_v2 = vadd.f32 %v4469_v1, %v4399_v21  ;;  %v7330_v21 = vrot.slane %v12160_v5, 1 }
 0x343   : > { %v5032_v59 = vpop.f32.mrf.mxu1 }
 0x344   : > { %4597 = vst.msk [vmem:[#allocation3 + $0x1e0] sm:$0xff] %vm816_vm1, %v4533_v2  ;;  %v5256_v13 = vadd.f32 %v5192_v8, %v5032_v59  ;;  %v3428_v16 = vpop.f32.mrf.mxu3  ;;  %v7331_v34 = vsel %vm2362_vm3, %v7328_v47, %v7330_v21  ;;  %v10216_v47 = vld [vmem:[#allocation2 + $0x68] sm:$0xff] }
 0x345   : > { %v2780_v15 = vld [vmem:[#allocation3 + $0x1f8] sm:$0xff] }
 0x346   : > { %v2844_v3 = vadd.f32 %v2780_v15, %v2714_v4  ;;  %5320 = vst.msk [vmem:[#allocation3] sm:$0xff] %vm816_vm1, %v5256_v13  ;;  %9431 = vmatmul.msk.bf16.gmra.mxu1 %vm816_vm1, %v4856_v7  ;;  %9607 = vmatmul.msk.bf16.gmra.mxu2 %vm816_vm1, %v10215_v9  ;;  %v6423_v13 = vshll.u32 %v12203_v60, 16 }
 0x347   : > { %v3493_v6 = vld [vmem:[#allocation3 + $0x1f0] sm:$0xff] }
 0x348   : > { %v3557_v20 = vadd.f32 %v3493_v6, %v3426_v53  ;;  %2908 = vst.msk [vmem:[#allocation3 + $0x1f8] sm:$0xff] %vm816_vm1, %v2844_v3  ;;  %v5196_v3 = vld [vmem:[#allocation3 + $0x20] sm:$0xff]  ;;  %v4860_v6 = vsel %vm2362_vm3, %v4857_v19, %v4859_v10 }
 0x349   : > { %v4470_v12 = vld [vmem:[#allocation3 + $0x1e8] sm:$0xff]  ;;  %9783 = vmatmul.msk.bf16.gmra.mxu3 %vm816_vm1, %v6410_v18  ;;  %v5746_v23 = vpop.f32.mrf.mxu2  ;;  %v7507_v32 = vpop.f32.mrf.mxu0  ;;  %v6421_v18 = vor.u32 %v6419_v11, %v6417_v40 }
 0x34a   : > { %3621 = vst.msk [vmem:[#allocation3 + $0x1f0] sm:$0xff] %vm816_vm1, %v3557_v20  ;;  %v4534_v22 = vadd.f32 %v4470_v12, %v4401_v31  ;;  %v6425_v20 = vrot.slane %v6423_v13, 1 }
 0x34b   : > { %v5034_v17 = vpop.f32.mrf.mxu1 }
 0x34c   : > { %4598 = vst.msk [vmem:[#allocation3 + $0x1e8] sm:$0xff] %vm816_vm1, %v4534_v22  ;;  %v5257_v27 = vadd.f32 %v5193_v24, %v5034_v17  ;;  %v6724_v30 = vpop.f32.mrf.mxu3  ;;  %9959 = vmatmul.msk.bf16.gmra.mxu0 %vm816_vm1, %v7331_v34  ;;  %v12226_v24 = vld [vmem:[#allocation2 + $0x78] sm:$0xff] }
 0x34d   : > { %v5906_v28 = vld [vmem:[#allocation3] sm:$0xff]  ;;  %v7334_v34 = vrot.slane %v12226_v24, 1 }
 0x34e   : > { %v5970_v29 = vadd.f32 %v5906_v28, %v5746_v23  ;;  %5321 = vst.msk [vmem:[#allocation3 + $0x8] sm:$0xff] %vm816_vm1, %v5257_v27  ;;  %v6426_v27 = vsel %vm1383_vm2, %v6421_v18, %v6425_v20  ;;  %v12234_v28 = vld [vmem:[%s13512_s3] ss:$0 sm:$0xff] }
 0x34f   : > { %v3494_v37 = vld [vmem:[#allocation3 + $0x1f8] sm:$0xff] }
 0x350   : > { %v3558_v39 = vadd.f32 %v3494_v37, %v3428_v16  ;;  %6034 = vst.msk [vmem:[#allocation3] sm:$0xff] %vm816_vm1, %v5970_v29  ;;  %v5197_v37 = vld [vmem:[#allocation3 + $0x28] sm:$0xff] }
 0x351   : > { %v4471_v35 = vld [vmem:[#allocation3 + $0x1f0] sm:$0xff]  ;;  %v5748_v31 = vpop.f32.mrf.mxu2  ;;  %v12189_v52 = vpop.f32.mrf.mxu0 }
 0x352   : > { %3622 = vst.msk [vmem:[#allocation3 + $0x1f8] sm:$0xff] %vm816_vm1, %v3558_v39  ;;  %v4535_v36 = vadd.f32 %v4471_v35, %v4404_v43  ;;  %v7332_v43 = vrot.slane %v12191_v56, 1  ;;  %v12242_v39 = vld [vmem:[#allocation2 + $0x70] sm:$0xff]  ;;  %v12244_v35 = vld [vmem:[#allocation2 + $0x80] sm:$0xff] }
 0x353   : > { %v5037_v41 = vpop.f32.mrf.mxu1 }
 0x354   : > { %4599 = vst.msk [vmem:[#allocation3 + $0x1f0] sm:$0xff] %vm816_vm1, %v4535_v36  ;;  %v5258_v46 = vadd.f32 %v5194_v42, %v5037_v41  ;;  %v6726_v50 = vpop.f32.mrf.mxu3  ;;  %v7333_v59 = vsel %vm2362_vm3, %v7330_v21, %v7332_v43  ;;  %v10217_v21 = vld [vmem:[#allocation2 + $0x70] sm:$0xff]  ;;  %v7335_v45 = vsel %vm2362_vm3, %v7332_v43, %v7334_v34 }
 0x355   : > { %v5907_v48 = vld [vmem:[#allocation3 + $0x8] sm:$0xff]  ;;  %v5198_v43 = vld [vmem:[#allocation3 + $0x30] sm:$0xff] }
 0x356   : > { %v5971_v55 = vadd.f32 %v5907_v48, %v5748_v31  ;;  %5322 = vst.msk [vmem:[#allocation3 + $0x10] sm:$0xff] %vm816_vm1, %v5258_v46  ;;  %9432 = vmatmul.msk.bf16.gmra.mxu1 %vm816_vm1, %v4858_v44  ;;  %9608 = vmatmul.msk.bf16.gmra.mxu2 %vm816_vm1, %v10216_v47  ;;  %v4861_v48 = vrot.slane %v12242_v39, 1 }
 0x357   : > { %v6884_v51 = vld [vmem:[#allocation3] sm:$0xff] }
 0x358   : > { %v6948_v58 = vadd.f32 %v6884_v51, %v6724_v30  ;;  %6035 = vst.msk [vmem:[#allocation3 + $0x8] sm:$0xff] %vm816_vm1, %v5971_v55 }
 0x359   : > { %v4472_v53 = vld [vmem:[#allocation3 + $0x1f8] sm:$0xff]  ;;  %9784 = vmatmul.msk.bf16.gmra.mxu3 %vm816_vm1, %v6418_v57  ;;  %v5751_v63 = vpop.f32.mrf.mxu2  ;;  %v12206_v4 = vpop.f32.mrf.mxu0 }
 0x35a   : > { %7012 = vst.msk [vmem:[#allocation3] sm:$0xff] %vm816_vm1, %v6948_v58  ;;  %v4536_v62 = vadd.f32 %v4472_v53, %v4406_v14 }
 0x35b   : > { %v5039_v0 = vpop.f32.mrf.mxu1 }
 0x35c   : > { %4600 = vst.msk [vmem:[#allocation3 + $0x1f8] sm:$0xff] %vm816_vm1, %v4536_v62  ;;  %v5259_v54 = vadd.f32 %v5195_v49, %v5039_v0  ;;  %v6729_v2 = vpop.f32.mrf.mxu3  ;;  %9960 = vmatmul.msk.bf16.gmra.mxu0 %vm816_vm1, %v7333_v59  ;;  %v4862_v62 = vsel %vm2362_vm3, %v4859_v10, %v4861_v48  ;;  %v12284_v59 = vld [vmem:[#allocation2 + $0x80] sm:$0xff] }
 0x35d   : > { %v5908_v1 = vld [vmem:[#allocation3 + $0x10] sm:$0xff] }
 0x35e   : > { %v5972_v8 = vadd.f32 %v5908_v1, %v5751_v63  ;;  %5323 = vst.msk [vmem:[#allocation3 + $0x18] sm:$0xff] %vm816_vm1, %v5259_v54  ;;  %v10218_v54 = vld [vmem:[#allocation2 + $0x78] sm:$0xff] }
 0x35f   : > { %v6885_v7 = vld [vmem:[#allocation3 + $0x8] sm:$0xff] }
 0x360   : > { %v6949_v9 = vadd.f32 %v6885_v7, %v6726_v50  ;;  %6036 = vst.msk [vmem:[#allocation3 + $0x10] sm:$0xff] %vm816_vm1, %v5972_v8  ;;  %v6427_v50 = vshrl.u32 %v12203_v60, 16 }
 0x361   : > { %v7667_v15 = vld [vmem:[#allocation3] sm:$0xff]  ;;  %v5753_v14 = vpop.f32.mrf.mxu2  ;;  %v12224_v17 = vpop.f32.mrf.mxu0 }
 0x362   : > { %7013 = vst.msk [vmem:[#allocation3 + $0x8] sm:$0xff] %vm816_vm1, %v6949_v9  ;;  %v7731_v16 = vadd.f32 %v7667_v15, %v7507_v32  ;;  %v6429_v63 = vor.u32 %v6427_v50, %v6425_v20  ;;  %v7336_v9 = vrot.slane %v12284_v59, 1 }
 0x363   : > { %v5042_v5 = vpop.f32.mrf.mxu1 }
 0x364   : > { %7795 = vst.msk [vmem:[#allocation3] sm:$0xff] %vm816_vm1, %v7731_v16  ;;  %v5260_v12 = vadd.f32 %v5196_v3, %v5042_v5  ;;  %v6731_v23 = vpop.f32.mrf.mxu3  ;;  %v5199_v5 = vld [vmem:[#allocation3 + $0x38] sm:$0xff] }
 0x365   : > { %v5909_v22 = vld [vmem:[#allocation3 + $0x18] sm:$0xff] }
 0x366   : > { %v5973_v25 = vadd.f32 %v5909_v22, %v5753_v14  ;;  %5324 = vst.msk [vmem:[#allocation3 + $0x20] sm:$0xff] %vm816_vm1, %v5260_v12  ;;  %9433 = vmatmul.msk.bf16.gmra.mxu1 %vm816_vm1, %v4860_v6  ;;  %9609 = vmatmul.msk.bf16.gmra.mxu2 %vm816_vm1, %v10217_v21  ;;  %v12299_v3 = vld [vmem:[#allocation2 + $0x78] sm:$0xff]  ;;  %v12301_v6 = vld [vmem:[#allocation2 + $0x88] sm:$0xff]  ;;  %v7337_v22 = vsel %vm2362_vm3, %v7334_v34, %v7336_v9 }
 0x367   : > { %v6886_v26 = vld [vmem:[#allocation3 + $0x10] sm:$0xff] }
 0x368   : > { %v6950_v30 = vadd.f32 %v6886_v26, %v6729_v2  ;;  %6037 = vst.msk [vmem:[#allocation3 + $0x18] sm:$0xff] %vm816_vm1, %v5973_v25  ;;  %v6435_v25 = vshrl.u32 %v12244_v35, 16  ;;  %v6439_v26 = vshll.u32 %v12301_v6, 16 }
 0x369   : > { %v7668_v32 = vld [vmem:[#allocation3 + $0x8] sm:$0xff]  ;;  %9785 = vmatmul.msk.bf16.gmra.mxu3 %vm816_vm1, %v6426_v27  ;;  %v5756_v38 = vpop.f32.mrf.mxu2  ;;  %v12250_v44 = vpop.f32.mrf.mxu0 }
 0x36a   : > { %7014 = vst.msk [vmem:[#allocation3 + $0x10] sm:$0xff] %vm816_vm1, %v6950_v30  ;;  %v7732_v29 = vadd.f32 %v7668_v32, %v12189_v52  ;;  %v6431_v52 = vshll.u32 %v12244_v35, 16 }
 0x36b   : > { %v7859_v19 = vld [vmem:[#allocation3] sm:$0xff]  ;;  %v5044_v33 = vpop.f32.mrf.mxu1 }
 0x36c   : > { %v12247_v36 = vadd.f32 %v12234_v28, %v7859_v19  ;;  %7796 = vst.msk [vmem:[#allocation3 + $0x8] sm:$0xff] %vm816_vm1, %v7732_v29  ;;  %v5261_v31 = vadd.f32 %v5197_v37, %v5044_v33  ;;  %v6734_v42 = vpop.f32.mrf.mxu3  ;;  %9961 = vmatmul.msk.bf16.gmra.mxu0 %vm816_vm1, %v7335_v45  ;;  %v6433_v0 = vrot.slane %v6431_v52, 1  ;;  %v5200_v37 = vld [vmem:[#allocation3 + $0x40] sm:$0xff]  ;;  %v6441_v33 = vrot.slane %v6439_v26, 1 }
 0x36d   : > { %v5910_v41 = vld [vmem:[#allocation3 + $0x20] sm:$0xff] }
 0x36e   : > { %v7991_v40 = vpack.c.bf16 %v12247_v36, %v12247_v36  ;;  %v5974_v46 = vadd.f32 %v5910_v41, %v5756_v38  ;;  %5325 = vst.msk [vmem:[#allocation3 + $0x28] sm:$0xff] %vm816_vm1, %v5261_v31  ;;  %v6434_v7 = vsel %vm1383_vm2, %v6429_v63, %v6433_v0  ;;  %v6437_v38 = vor.u32 %v6435_v25, %v6433_v0  ;;  %v10219_v31 = vld [vmem:[#allocation2 + $0x80] sm:$0xff]  ;;  %v12374_v25 = vld [vmem:[#allocation2 + $0x90] sm:$0xff] }
 0x36f   : > { %v6887_v47 = vld [vmem:[#allocation3 + $0x18] sm:$0xff]  ;;  %v12337_v52 = vld [vmem:[#allocation2 + $0x80] sm:$0xff] }
 0x370   : > { %8023 = vst.msk [vmem:[%s12265_s17] sm:$0xf] %vm431_vm0, %v7991_v40  ;;  %v6951_v56 = vadd.f32 %v6887_v47, %v6731_v23 }
 0x371   : > { %6038 = vst.msk [vmem:[#allocation3 + $0x20] sm:$0xff] %vm816_vm1, %v5974_v46  ;;  %v7669_v55 = vld [vmem:[#allocation3 + $0x10] sm:$0xff]  ;;  %v5758_v58 = vpop.f32.mrf.mxu2  ;;  %v6442_v46 = vsel %vm1383_vm2, %v6437_v38, %v6441_v33 }
 0x372   : > { %7015 = vst.msk [vmem:[#allocation3 + $0x18] sm:$0xff] %vm816_vm1, %v6951_v56  ;;  %v7733_v51 = vadd.f32 %v7669_v55, %v12206_v4  ;;  %v12282_v4 = vpop.f32.mrf.mxu0 }
 0x373   : > { %v7860_v57 = vld [vmem:[#allocation3 + $0x8] sm:$0xff]  ;;  %v5047_v53 = vpop.f32.mrf.mxu1 }
 0x374   : > { %v12279_v49 = vadd.f32 %v12234_v28, %v7860_v57  ;;  %7797 = vst.msk [vmem:[#allocation3 + $0x10] sm:$0xff] %vm816_vm1, %v7733_v51  ;;  %v5262_v60 = vadd.f32 %v5198_v43, %v5047_v53  ;;  %v6736_v2 = vpop.f32.mrf.mxu3  ;;  %v5201_v57 = vld [vmem:[#allocation3 + $0x48] sm:$0xff] }
 0x375   : > { %v5911_v1 = vld [vmem:[#allocation3 + $0x28] sm:$0xff] }
 0x376   : > { %v7992_v61 = vpack.c.bf16 %v12279_v49, %v12279_v49  ;;  %v5975_v8 = vadd.f32 %v5911_v1, %v5758_v58  ;;  %5326 = vst.msk [vmem:[#allocation3 + $0x30] sm:$0xff] %vm816_vm1, %v5262_v60  ;;  %9434 = vmatmul.msk.bf16.gmra.mxu1 %vm816_vm1, %v4862_v62  ;;  %9610 = vmatmul.msk.bf16.gmra.mxu2 %vm816_vm1, %v10218_v54  ;;  %v12340_v58 = vld [vmem:[#allocation2 + $0x90] sm:$0xff] }
 0x378   : > { %8024 = vst.msk [vmem:[%s12265_s17 + $0x4] sm:$0xf] %vm431_vm0, %v7992_v61  ;;  %v6888_v10 = vld [vmem:[#allocation3 + $0x20] sm:$0xff] }
 0x379   : > { %v6952_v11 = vadd.f32 %v6888_v10, %v6734_v42  ;;  %6039 = vst.msk [vmem:[#allocation3 + $0x28] sm:$0xff] %vm816_vm1, %v5975_v8  ;;  %v7670_v13 = vld [vmem:[#allocation3 + $0x18] sm:$0xff]  ;;  %9786 = vmatmul.msk.bf16.gmra.mxu3 %vm816_vm1, %v6434_v7  ;;  %v5761_v16 = vpop.f32.mrf.mxu2  ;;  %v6443_v7 = vshrl.u32 %v12301_v6, 16  ;;  %v6447_v10 = vshll.u32 %v12340_v58, 16 }
 0x37a   : > { %v7734_v15 = vadd.f32 %v7670_v13, %v12224_v17  ;;  %v12304_v21 = vpop.f32.mrf.mxu0  ;;  %v4863_v17 = vrot.slane %v12299_v3, 1 }
 0x37b   : > { %7016 = vst.msk [vmem:[#allocation3 + $0x20] sm:$0xff] %vm816_vm1, %v6952_v11  ;;  %v5049_v14 = vpop.f32.mrf.mxu1 }
 0x37c   : > { %7798 = vst.msk [vmem:[#allocation3 + $0x18] sm:$0xff] %vm816_vm1, %v7734_v15  ;;  %v5263_v18 = vadd.f32 %v5199_v5, %v5049_v14  ;;  %v6739_v12 = vpop.f32.mrf.mxu3  ;;  %9962 = vmatmul.msk.bf16.gmra.mxu0 %vm816_vm1, %v7337_v22  ;;  %v4864_v19 = vsel %vm2362_vm3, %v4861_v48, %v4863_v17  ;;  %v5202_v15 = vld [vmem:[#allocation3 + $0x50] sm:$0xff]  ;;  %v6445_v14 = vor.u32 %v6443_v7, %v6441_v33  ;;  %v12368_v5 = vrot.slane %v6447_v10, 1 }
 0x37d   : > { %v5912_v20 = vld [vmem:[#allocation3 + $0x30] sm:$0xff] }
 0x37e   : > { %v5976_v23 = vadd.f32 %v5912_v20, %v5761_v16  ;;  %5327 = vst.msk [vmem:[#allocation3 + $0x38] sm:$0xff] %vm816_vm1, %v5263_v18  ;;  %v10220_v20 = vld [vmem:[#allocation2 + $0x88] sm:$0xff] }
 0x380   : > { %v6889_v27 = vld [vmem:[#allocation3 + $0x28] sm:$0xff]  ;;  %6040 = vst.msk [vmem:[#allocation3 + $0x30] sm:$0xff] %vm816_vm1, %v5976_v23 }
 0x381   : > { %v6953_v30 = vadd.f32 %v6889_v27, %v6736_v2  ;;  %v5763_v34 = vpop.f32.mrf.mxu2  ;;  %v4865_v2 = vrot.slane %v12337_v52, 1 }
 0x382   : > { %v7671_v32 = vld [vmem:[#allocation3 + $0x20] sm:$0xff]  ;;  %v12325_v45 = vpop.f32.mrf.mxu0 }
 0x383   : > { %7017 = vst.msk [vmem:[#allocation3 + $0x28] sm:$0xff] %vm816_vm1, %v6953_v30  ;;  %v7735_v24 = vadd.f32 %v7671_v32, %v12250_v44  ;;  %v5052_v29 = vpop.f32.mrf.mxu1  ;;  %v12327_v44 = vld [vmem:[#allocation2 + $0x88] sm:$0xff]  ;;  %v4866_v16 = vsel %vm2362_vm3, %v4863_v17, %v4865_v2  ;;  %v6450_v30 = vsel %vm1383_vm2, %v6445_v14, %v12368_v5 }
 0x384   : > { %v5264_v35 = vadd.f32 %v5200_v37, %v5052_v29  ;;  %v6741_v42 = vpop.f32.mrf.mxu3  ;;  %v7338_v48 = vrot.slane %v12327_v44, 1  ;;  %v5203_v37 = vld [vmem:[#allocation3 + $0x58] sm:$0xff] }
 0x385   : > { %7799 = vst.msk [vmem:[#allocation3 + $0x20] sm:$0xff] %vm816_vm1, %v7735_v24  ;;  %v5913_v41 = vld [vmem:[#allocation3 + $0x38] sm:$0xff]  ;;  %v7861_v24 = vld [vmem:[#allocation3 + $0x10] sm:$0xff] }
 0x386   : > { %v5977_v40 = vadd.f32 %v5913_v41, %v5763_v34  ;;  %5328 = vst.msk [vmem:[#allocation3 + $0x40] sm:$0xff] %vm816_vm1, %v5264_v35  ;;  %9435 = vmatmul.msk.bf16.gmra.mxu1 %vm816_vm1, %v4864_v19  ;;  %9611 = vmatmul.msk.bf16.gmra.mxu2 %vm816_vm1, %v10219_v31  ;;  %v7339_v54 = vsel %vm2362_vm3, %v7336_v9, %v7338_v48  ;;  %v7340_v34 = vrot.slane %v12374_v25, 1  ;;  %v12390_v35 = vld [vmem:[#allocation2 + $0x88] sm:$0xff]  ;;  %v12392_v31 = vld [vmem:[#allocation2 + $0x98] sm:$0xff] }
 0x387   : > { %v6890_v39 = vld [vmem:[#allocation3 + $0x30] sm:$0xff]  ;;  %v7929_v41 = vadd.f32 %v12234_v28, %v7861_v24 }
 0x388   : > { %v6954_v47 = vadd.f32 %v6890_v39, %v6739_v12  ;;  %6041 = vst.msk [vmem:[#allocation3 + $0x38] sm:$0xff] %vm816_vm1, %v5977_v40 }
 0x389   : > { %9787 = vmatmul.msk.bf16.gmra.mxu3 %vm816_vm1, %v6442_v46  ;;  %v5766_v55 = vpop.f32.mrf.mxu2 }
 0x38a   : > { %7018 = vst.msk [vmem:[#allocation3 + $0x30] sm:$0xff] %vm816_vm1, %v6954_v47  ;;  %v7672_v50 = vld [vmem:[#allocation3 + $0x28] sm:$0xff]  ;;  %v12344_v60 = vpop.f32.mrf.mxu0 }
 0x38b   : > { %v7736_v56 = vadd.f32 %v7672_v50, %v12282_v4  ;;  %v5054_v51 = vpop.f32.mrf.mxu1 }
 0x38c   : > { %v7863_v53 = vld [vmem:[#allocation3 + $0x20] sm:$0xff]  ;;  %v5265_v43 = vadd.f32 %v5201_v57, %v5054_v51  ;;  %v6744_v0 = vpop.f32.mrf.mxu3  ;;  %9963 = vmatmul.msk.bf16.gmra.mxu0 %vm816_vm1, %v7339_v54  ;;  %v4867_v51 = vrot.slane %v12390_v35, 1  ;;  %v6451_v57 = vshrl.u32 %v12340_v58, 16 }
 0x38d   : > { %v7931_v62 = vadd.f32 %v12234_v28, %v7863_v53  ;;  %7800 = vst.msk [vmem:[#allocation3 + $0x28] sm:$0xff] %vm816_vm1, %v7736_v56  ;;  %v5914_v63 = vld [vmem:[#allocation3 + $0x40] sm:$0xff]  ;;  %v6455_v53 = vshll.u32 %v12392_v31, 16 }
 0x38e   : > { %v5978_v1 = vadd.f32 %v5914_v63, %v5766_v55  ;;  %5329 = vst.msk [vmem:[#allocation3 + $0x48] sm:$0xff] %vm816_vm1, %v5265_v43 }
 0x38f   : > { %v7993_v4 = vpack.c.bf16 %v7931_v62, %v7931_v62  ;;  %v8055_v61 = vmax.f32 %v12247_v36, %v7931_v62  ;;  %v6891_v8 = vld [vmem:[#allocation3 + $0x38] sm:$0xff]  ;;  %v12419_v7 = vrot.slane %v6455_v53, 1 }
 0x390   : > { %v6955_v11 = vadd.f32 %v6891_v8, %v6741_v42  ;;  %6042 = vst.msk [vmem:[#allocation3 + $0x40] sm:$0xff] %vm816_vm1, %v5978_v1  ;;  %v7862_v62 = vld [vmem:[#allocation3 + $0x18] sm:$0xff]  ;;  %v6453_v8 = vor.u32 %v6451_v57, %v12368_v5 }
 0x391   : > { %8025 = vst.msk [vmem:[%s12265_s17 + $0x8] sm:$0xf] %vm431_vm0, %v7993_v4  ;;  %v7673_v59 = vld [vmem:[#allocation3 + $0x30] sm:$0xff]  ;;  %v5768_v36 = vpop.f32.mrf.mxu2  ;;  %v5204_v4 = vld [vmem:[#allocation3 + $0x60] sm:$0xff] }
 0x392   : > { %8087 = vst.msk [vmem:[#allocation3] sm:$0xff] %vm816_vm1, %v8055_v61  ;;  %v7737_v13 = vadd.f32 %v7673_v59, %v12304_v21  ;;  %v12372_v23 = vpop.f32.mrf.mxu0  ;;  %v4868_v61 = vsel %vm2362_vm3, %v4865_v2, %v4867_v51  ;;  %v10221_v59 = vld [vmem:[#allocation2 + $0x90] sm:$0xff]  ;;  %v12427_v2 = vld [vmem:[#allocation2 + $0x98] sm:$0xff] }
 0x393   : > { %7019 = vst.msk [vmem:[#allocation3 + $0x38] sm:$0xff] %vm816_vm1, %v6955_v11  ;;  %v5057_v9 = vpop.f32.mrf.mxu1 }
 0x394   : > { %v7864_v6 = vld [vmem:[#allocation3 + $0x28] sm:$0xff]  ;;  %7801 = vst.msk [vmem:[#allocation3 + $0x30] sm:$0xff] %vm816_vm1, %v7737_v13  ;;  %v5266_v18 = vadd.f32 %v5202_v15, %v5057_v9  ;;  %v6746_v22 = vpop.f32.mrf.mxu3 }
 0x395   : > { %v7932_v12 = vadd.f32 %v12234_v28, %v7864_v6  ;;  %v5915_v21 = vld [vmem:[#allocation3 + $0x48] sm:$0xff]  ;;  %v6458_v6 = vsel %vm1383_vm2, %v6453_v8, %v12419_v7 }
 0x396   : > { %v5979_v3 = vadd.f32 %v5915_v21, %v5768_v36  ;;  %5330 = vst.msk [vmem:[#allocation3 + $0x50] sm:$0xff] %vm816_vm1, %v5266_v18  ;;  %9436 = vmatmul.msk.bf16.gmra.mxu1 %vm816_vm1, %v4866_v16  ;;  %9612 = vmatmul.msk.bf16.gmra.mxu2 %vm816_vm1, %v10220_v20  ;;  %v7342_v21 = vrot.slane %v12427_v2, 1 }
 0x397   : > { %v7994_v17 = vpack.c.bf16 %v7932_v12, %v7932_v12  ;;  %v8056_v26 = vmax.f32 %v12279_v49, %v7932_v12  ;;  %v6892_v27 = vld [vmem:[#allocation3 + $0x40] sm:$0xff] }
 0x398   : > { %v6956_v32 = vadd.f32 %v6892_v27, %v6744_v0  ;;  %6043 = vst.msk [vmem:[#allocation3 + $0x48] sm:$0xff] %vm816_vm1, %v5979_v3  ;;  %v12444_v27 = vld [vmem:[#allocation2 + $0x90] sm:$0xff] }
 0x399   : > { %8026 = vst.msk [vmem:[%s12265_s17 + $0xc] sm:$0xf] %vm431_vm0, %v7994_v17  ;;  %9788 = vmatmul.msk.bf16.gmra.mxu3 %vm816_vm1, %v6450_v30  ;;  %v5771_v38 = vpop.f32.mrf.mxu2  ;;  %v12446_v30 = vld [vmem:[#allocation2 + $0xa0] sm:$0xff] }
 0x39a   : > { %8088 = vst.msk [vmem:[#allocation3 + $0x8] sm:$0xff] %vm816_vm1, %v8056_v26  ;;  %v7674_v29 = vld [vmem:[#allocation3 + $0x38] sm:$0xff]  ;;  %v12397_v47 = vpop.f32.mrf.mxu0  ;;  %v5205_v26 = vld [vmem:[#allocation3 + $0x68] sm:$0xff] }
 0x39b   : > { %v7865_v49 = vld [vmem:[#allocation3 + $0x30] sm:$0xff]  ;;  %7020 = vst.msk [vmem:[#allocation3 + $0x40] sm:$0xff] %vm816_vm1, %v6956_v32  ;;  %v7738_v19 = vadd.f32 %v7674_v29, %v12325_v45  ;;  %v5059_v33 = vpop.f32.mrf.mxu1  ;;  %v7341_v45 = vsel %vm2362_vm3, %v7338_v48, %v7340_v34 }
 0x39c   : > { %v7933_v42 = vadd.f32 %v12234_v28, %v7865_v49  ;;  %v5267_v40 = vadd.f32 %v5203_v37, %v5059_v33  ;;  %v6749_v46 = vpop.f32.mrf.mxu3  ;;  %9964 = vmatmul.msk.bf16.gmra.mxu0 %vm816_vm1, %v7341_v45 }
 0x39d   : > { %7802 = vst.msk [vmem:[#allocation3 + $0x38] sm:$0xff] %vm816_vm1, %v7738_v19  ;;  %v5916_v39 = vld [vmem:[#allocation3 + $0x50] sm:$0xff]  ;;  %v7343_v19 = vsel %vm2362_vm3, %v7340_v34, %v7342_v21 }
 0x39e   : > { %v8057_v50 = vmax.f32 %v7929_v41, %v7933_v42  ;;  %v5980_v56 = vadd.f32 %v5916_v39, %v5771_v38  ;;  %5331 = vst.msk [vmem:[#allocation3 + $0x58] sm:$0xff] %vm816_vm1, %v5267_v40  ;;  %v4869_v42 = vrot.slane %v12444_v27, 1  ;;  %v6459_v40 = vshrl.u32 %v12392_v31, 16 }
 0x39f   : > { %v6893_v55 = vld [vmem:[#allocation3 + $0x48] sm:$0xff]  ;;  %v6463_v39 = vshll.u32 %v12446_v30, 16 }
 0x3a0   : > { %8089 = vst.msk [vmem:[#allocation3 + $0x10] sm:$0xff] %vm816_vm1, %v8057_v50  ;;  %v6957_v43 = vadd.f32 %v6893_v55, %v6746_v22  ;;  %v5206_v55 = vld [vmem:[#allocation3 + $0x70] sm:$0xff]  ;;  %v4870_v31 = vsel %vm2362_vm3, %v4867_v51, %v4869_v42  ;;  %v6461_v57 = vor.u32 %v6459_v40, %v12419_v7 }
 0x3a1   : > { %6044 = vst.msk [vmem:[#allocation3 + $0x50] sm:$0xff] %vm816_vm1, %v5980_v56  ;;  %v8119_v44 = vld [vmem:[#allocation3] ss:$2 sm:$0xff]  ;;  %v8135_v48 = vld [vmem:[#allocation3 + $0x1] ss:$2 sm:$0xff]  ;;  %v5773_v58 = vpop.f32.mrf.mxu2  ;;  %v6465_v53 = vrot.slane %v6463_v39, 1 }
 0x3a2   : > { %7021 = vst.msk [vmem:[#allocation3 + $0x48] sm:$0xff] %vm816_vm1, %v6957_v43  ;;  %v7675_v63 = vld [vmem:[#allocation3 + $0x40] sm:$0xff]  ;;  %v8150_v0 = vmax.f32 %v8119_v44, %v8135_v48  ;;  %v12425_v52 = vpop.f32.mrf.mxu0  ;;  %v10222_v48 = vld [vmem:[#allocation2 + $0x98] sm:$0xff]  ;;  %v5209_v39 = vld [vmem:[#allocation3 + $0x88] sm:$0xff] }
 0x3a3   : > { %v7739_v54 = vadd.f32 %v7675_v63, %v12344_v60  ;;  %v5062_v1 = vpop.f32.mrf.mxu1  ;;  %v7930_v60 = vadd.f32 %v12234_v28, %v7862_v62 }
 0x3a4   : > { %v7866_v10 = vld [vmem:[#allocation3 + $0x38] sm:$0xff]  ;;  %v5268_v11 = vadd.f32 %v5204_v4, %v5062_v1  ;;  %v8158_v13 = vmax.f32 %v8150_v0, 0.0  ;;  %v6751_v15 = vpop.f32.mrf.mxu3  ;;  %v12483_v0 = vld [vmem:[#allocation2 + $0xa0] sm:$0xff] }
 0x3a5   : > { %v7934_v36 = vadd.f32 %v12234_v28, %v7866_v10  ;;  %7803 = vst.msk [vmem:[#allocation3 + $0x40] sm:$0xff] %vm816_vm1, %v7739_v54  ;;  %v5917_v9 = vld [vmem:[#allocation3 + $0x58] sm:$0xff] }
 0x3a6   : > { %v5981_v16 = vadd.f32 %v5917_v9, %v5773_v58  ;;  %5332 = vst.msk [vmem:[#allocation3 + $0x60] sm:$0xff] %vm816_vm1, %v5268_v11  ;;  %9437 = vmatmul.msk.bf16.gmra.mxu1 %vm816_vm1, %v4868_v61  ;;  %v8166_v14 = vpack.c.bf16 %v8158_v13, %v8158_v13  ;;  %9613 = vmatmul.msk.bf16.gmra.mxu2 %vm816_vm1, %v10221_v59  ;;  %v7344_v61 = vrot.slane %v12483_v0, 1  ;;  %v5207_v11 = vld [vmem:[#allocation3 + $0x78] sm:$0xff]  ;;  %v12500_v13 = vld [vmem:[#allocation2 + $0xa8] sm:$0xff] }
 0x3a7   : > { %v8058_v5 = vmax.f32 %v7930_v60, %v7934_v36  ;;  %v6466_v58 = vsel %vm1383_vm2, %v6461_v57, %v6465_v53  ;;  %v12498_v59 = vld [vmem:[#allocation2 + $0x98] sm:$0xff] }
 0x3a8   : > { %v6894_v18 = vld [vmem:[#allocation3 + $0x50] sm:$0xff]  ;;  %6045 = vst.msk [vmem:[#allocation3 + $0x58] sm:$0xff] %vm816_vm1, %v5981_v16 }
 0x3a9   : > { %8090 = vst.msk [vmem:[#allocation3 + $0x18] sm:$0xff] %vm816_vm1, %v8058_v5  ;;  %v6958_v20 = vadd.f32 %v6894_v18, %v6749_v46  ;;  %v7676_v12 = vld [vmem:[#allocation3 + $0x48] sm:$0xff]  ;;  %9789 = vmatmul.msk.bf16.gmra.mxu3 %vm816_vm1, %v6458_v6  ;;  %v5776_v3 = vpop.f32.mrf.mxu2  ;;  %v6467_v5 = vshrl.u32 %v12446_v30, 16  ;;  %v6471_v6 = vshll.u32 %v12500_v13, 16 }
 0x3aa   : > { %v7740_v22 = vadd.f32 %v7676_v12, %v12372_v23  ;;  %8174 = vst.msk [vmem:[%s12439_s29] sm:$0xf] %vm431_vm0, %v8166_v14  ;;  %v12452_v49 = vpop.f32.mrf.mxu0  ;;  %v4871_v14 = vrot.slane %v12498_v59, 1 }
 0x3ab   : > { %7022 = vst.msk [vmem:[#allocation3 + $0x50] sm:$0xff] %vm816_vm1, %v6958_v20  ;;  %v5064_v17 = vpop.f32.mrf.mxu1  ;;  %v6473_v30 = vrot.slane %v6471_v6, 1 }
 0x3ac   : > { %v7867_v32 = vld [vmem:[#allocation3 + $0x40] sm:$0xff]  ;;  %7804 = vst.msk [vmem:[#allocation3 + $0x48] sm:$0xff] %vm816_vm1, %v7740_v22  ;;  %v5269_v23 = vadd.f32 %v5205_v26, %v5064_v17  ;;  %v6754_v37 = vpop.f32.mrf.mxu3  ;;  %9965 = vmatmul.msk.bf16.gmra.mxu0 %vm816_vm1, %v7343_v19  ;;  %v4872_v17 = vsel %vm2362_vm3, %v4869_v42, %v4871_v14  ;;  %v6469_v26 = vor.u32 %v6467_v5, %v6465_v53  ;;  %v12526_v19 = vld [vmem:[#allocation2 + $0xa8] sm:$0xff]  ;;  %v12573_v5 = vld [vmem:[#allocation2 + $0xb0] sm:$0xff] }
 0x3ad   : > { %v12450_v24 = vadd.f32 %v12234_v28, %v7867_v32  ;;  %v5918_v29 = vld [vmem:[#allocation3 + $0x60] sm:$0xff]  ;;  %v7346_v42 = vrot.slane %v12526_v19, 1 }
 0x3ae   : > { %v5982_v38 = vadd.f32 %v5918_v29, %v5776_v3  ;;  %5333 = vst.msk [vmem:[#allocation3 + $0x68] sm:$0xff] %vm816_vm1, %v5269_v23  ;;  %v5208_v3 = vld [vmem:[#allocation3 + $0x80] sm:$0xff] }
 0x3af   : > { %v7995_v33 = vpack.c.bf16 %v12450_v24, %v12450_v24  ;;  %v6895_v41 = vld [vmem:[#allocation3 + $0x58] sm:$0xff]  ;;  %v10223_v23 = vld [vmem:[#allocation2 + $0xa0] sm:$0xff] }
 0x3b0   : > { %v6959_v46 = vadd.f32 %v6895_v41, %v6751_v15  ;;  %6046 = vst.msk [vmem:[#allocation3 + $0x60] sm:$0xff] %vm816_vm1, %v5982_v38 }
 0x3b1   : > { %8027 = vst.msk [vmem:[%s12265_s17 + $0x10] sm:$0xf] %vm431_vm0, %v7995_v33  ;;  %v5778_v50 = vpop.f32.mrf.mxu2  ;;  %v6474_v33 = vsel %vm1383_vm2, %v6469_v26, %v6473_v30 }
 0x3b2   : > { %7023 = vst.msk [vmem:[#allocation3 + $0x58] sm:$0xff] %vm816_vm1, %v6959_v46  ;;  %v7677_v25 = vld [vmem:[#allocation3 + $0x50] sm:$0xff]  ;;  %v12481_v63 = vpop.f32.mrf.mxu0 }
 0x3b3   : > { %v7868_v34 = vld [vmem:[#allocation3 + $0x48] sm:$0xff]  ;;  %v7741_v45 = vadd.f32 %v7677_v25, %v12397_v47  ;;  %v5067_v56 = vpop.f32.mrf.mxu1 }
 0x3b4   : > { %v12478_v43 = vadd.f32 %v12234_v28, %v7868_v34  ;;  %v5270_v44 = vadd.f32 %v5206_v55, %v5067_v56  ;;  %v6756_v62 = vpop.f32.mrf.mxu3  ;;  %v12539_v56 = vld [vmem:[#allocation2 + $0xb0] sm:$0xff] }
 0x3b5   : > { %7805 = vst.msk [vmem:[#allocation3 + $0x50] sm:$0xff] %vm816_vm1, %v7741_v45  ;;  %v5919_v47 = vld [vmem:[#allocation3 + $0x68] sm:$0xff] }
 0x3b6   : > { %v7996_v35 = vpack.c.bf16 %v12478_v43, %v12478_v43  ;;  %v5983_v51 = vadd.f32 %v5919_v47, %v5778_v50  ;;  %5334 = vst.msk [vmem:[#allocation3 + $0x70] sm:$0xff] %vm816_vm1, %v5270_v44  ;;  %9438 = vmatmul.msk.bf16.gmra.mxu1 %vm816_vm1, %v4870_v31  ;;  %9614 = vmatmul.msk.bf16.gmra.mxu2 %vm816_vm1, %v10222_v48  ;;  %v12537_v50 = vld [vmem:[#allocation2 + $0xa0] sm:$0xff] }
 0x3b7   : > { %v6896_v54 = vld [vmem:[#allocation3 + $0x60] sm:$0xff]  ;;  %v7347_v48 = vsel %vm2362_vm3, %v7344_v61, %v7346_v42 }
 0x3b8   : > { %8028 = vst.msk [vmem:[%s12265_s17 + $0x14] sm:$0xf] %vm431_vm0, %v7996_v35  ;;  %v6960_v1 = vadd.f32 %v6896_v54, %v6754_v37  ;;  %v6475_v54 = vshrl.u32 %v12500_v13, 16 }
 0x3b9   : > { %6047 = vst.msk [vmem:[#allocation3 + $0x68] sm:$0xff] %vm816_vm1, %v5983_v51  ;;  %v7678_v4 = vld [vmem:[#allocation3 + $0x58] sm:$0xff]  ;;  %9790 = vmatmul.msk.bf16.gmra.mxu3 %vm816_vm1, %v6466_v58  ;;  %v5781_v7 = vpop.f32.mrf.mxu2  ;;  %v4873_v51 = vrot.slane %v12537_v50, 1  ;;  %v6479_v58 = vshll.u32 %v12539_v56, 16 }
 0x3ba   : > { %7024 = vst.msk [vmem:[#allocation3 + $0x60] sm:$0xff] %vm816_vm1, %v6960_v1  ;;  %v7742_v8 = vadd.f32 %v7678_v4, %v12425_v52  ;;  %v12503_v15 = vpop.f32.mrf.mxu0  ;;  %v7345_v52 = vsel %vm2362_vm3, %v7342_v21, %v7344_v61  ;;  %v12622_v50 = vld [vmem:[#allocation2 + $0xb8] sm:$0xff] }
 0x3bb   : > { %v5069_v10 = vpop.f32.mrf.mxu1 }
 0x3bc   : > { %7806 = vst.msk [vmem:[#allocation3 + $0x58] sm:$0xff] %vm816_vm1, %v7742_v8  ;;  %v5271_v60 = vadd.f32 %v5207_v11, %v5069_v10  ;;  %v6759_v9 = vpop.f32.mrf.mxu3  ;;  %9966 = vmatmul.msk.bf16.gmra.mxu0 %vm816_vm1, %v7345_v52  ;;  %v5210_v8 = vld [vmem:[#allocation3 + $0x90] sm:$0xff]  ;;  %v6477_v10 = vor.u32 %v6475_v54, %v6473_v30  ;;  %v12567_v11 = vrot.slane %v6479_v58, 1 }
 0x3bd   : > { %v5920_v36 = vld [vmem:[#allocation3 + $0x70] sm:$0xff] }
 0x3be   : > { %v5984_v16 = vadd.f32 %v5920_v36, %v5781_v7  ;;  %5335 = vst.msk [vmem:[#allocation3 + $0x78] sm:$0xff] %vm816_vm1, %v5271_v60  ;;  %v4874_v7 = vsel %vm2362_vm3, %v4871_v14, %v4873_v51  ;;  %v10224_v36 = vld [vmem:[#allocation2 + $0xa8] sm:$0xff] }
 0x3c0   : > { %v6897_v18 = vld [vmem:[#allocation3 + $0x68] sm:$0xff]  ;;  %6048 = vst.msk [vmem:[#allocation3 + $0x70] sm:$0xff] %vm816_vm1, %v5984_v16 }
 0x3c1   : > { %v6961_v20 = vadd.f32 %v6897_v18, %v6756_v62  ;;  %v7679_v12 = vld [vmem:[#allocation3 + $0x60] sm:$0xff]  ;;  %v5783_v21 = vpop.f32.mrf.mxu2  ;;  %v6482_v18 = vsel %vm1383_vm2, %v6477_v10, %v12567_v11 }
 0x3c2   : > { %v7743_v2 = vadd.f32 %v7679_v12, %v12452_v49  ;;  %v12524_v49 = vpop.f32.mrf.mxu0 }
 0x3c3   : > { %7025 = vst.msk [vmem:[#allocation3 + $0x68] sm:$0xff] %vm816_vm1, %v6961_v20  ;;  %v5072_v22 = vpop.f32.mrf.mxu1  ;;  %v7869_v20 = vld [vmem:[#allocation3 + $0x50] sm:$0xff] }
 0x3c4   : > { %7807 = vst.msk [vmem:[#allocation3 + $0x60] sm:$0xff] %vm816_vm1, %v7743_v2  ;;  %v5272_v32 = vadd.f32 %v5208_v3, %v5072_v22  ;;  %v6761_v37 = vpop.f32.mrf.mxu3  ;;  %v7348_v2 = vrot.slane %v12573_v5, 1  ;;  %v5211_v3 = vld [vmem:[#allocation3 + $0x98] sm:$0xff] }
 0x3c5   : > { %v5921_v29 = vld [vmem:[#allocation3 + $0x78] sm:$0xff] }
 0x3c6   : > { %v5985_v38 = vadd.f32 %v5921_v29, %v5783_v21  ;;  %5336 = vst.msk [vmem:[#allocation3 + $0x80] sm:$0xff] %vm816_vm1, %v5272_v32  ;;  %9439 = vmatmul.msk.bf16.gmra.mxu1 %vm816_vm1, %v4872_v17  ;;  %9615 = vmatmul.msk.bf16.gmra.mxu2 %vm816_vm1, %v10223_v23  ;;  %v12588_v32 = vld [vmem:[#allocation2 + $0xa8] sm:$0xff]  ;;  %v12590_v23 = vld [vmem:[#allocation2 + $0xb8] sm:$0xff]  ;;  %v7937_v29 = vadd.f32 %v12234_v28, %v7869_v20  ;;  %v12639_v20 = vld [vmem:[#allocation2 + $0xc0] sm:$0xff] }
 0x3c7   : > { %v6898_v27 = vld [vmem:[#allocation3 + $0x70] sm:$0xff] }
 0x3c8   : > { %v6962_v41 = vadd.f32 %v6898_v27, %v6759_v9  ;;  %6049 = vst.msk [vmem:[#allocation3 + $0x78] sm:$0xff] %vm816_vm1, %v5985_v38 }
 0x3c9   : > { %9791 = vmatmul.msk.bf16.gmra.mxu3 %vm816_vm1, %v6474_v33  ;;  %v5786_v34 = vpop.f32.mrf.mxu2 }
 0x3ca   : > { %7026 = vst.msk [vmem:[#allocation3 + $0x70] sm:$0xff] %vm816_vm1, %v6962_v41  ;;  %v7680_v40 = vld [vmem:[#allocation3 + $0x68] sm:$0xff]  ;;  %v12543_v44 = vpop.f32.mrf.mxu0  ;;  %v7349_v41 = vsel %vm2362_vm3, %v7346_v42, %v7348_v2 }
 0x3cb   : > { %v7871_v46 = vld [vmem:[#allocation3 + $0x60] sm:$0xff]  ;;  %v7744_v25 = vadd.f32 %v7680_v40, %v12481_v63  ;;  %v5074_v45 = vpop.f32.mrf.mxu1 }
 0x3cc   : > { %v7939_v55 = vadd.f32 %v12234_v28, %v7871_v46  ;;  %v5273_v31 = vadd.f32 %v5209_v39, %v5074_v45  ;;  %v6764_v53 = vpop.f32.mrf.mxu3  ;;  %9967 = vmatmul.msk.bf16.gmra.mxu0 %vm816_vm1, %v7347_v48  ;;  %v6487_v45 = vshll.u32 %v12590_v23, 16 }
 0x3cd   : > { %7808 = vst.msk [vmem:[#allocation3 + $0x68] sm:$0xff] %vm816_vm1, %v7744_v25  ;;  %v5922_v57 = vld [vmem:[#allocation3 + $0x80] sm:$0xff]  ;;  %v4875_v25 = vrot.slane %v12588_v32, 1 }
 0x3ce   : > { %v7997_v47 = vpack.c.bf16 %v7939_v55, %v7939_v55  ;;  %v8059_v62 = vmax.f32 %v12450_v24, %v7939_v55  ;;  %5337 = vst.msk [vmem:[#allocation3 + $0x88] sm:$0xff] %vm816_vm1, %v5273_v31  ;;  %v5986_v35 = vadd.f32 %v5922_v57, %v5786_v34  ;;  %v6483_v34 = vshrl.u32 %v12539_v56, 16  ;;  %v7870_v31 = vld [vmem:[#allocation3 + $0x58] sm:$0xff] }
 0x3cf   : > { %v6899_v63 = vld [vmem:[#allocation3 + $0x78] sm:$0xff]  ;;  %v4876_v56 = vsel %vm2362_vm3, %v4873_v51, %v4875_v25  ;;  %v7938_v54 = vadd.f32 %v12234_v28, %v7870_v31 }
 0x3d0   : > { %8029 = vst.msk [vmem:[%s12265_s17 + $0x18] sm:$0xf] %vm431_vm0, %v7997_v47  ;;  %v6963_v1 = vadd.f32 %v6899_v63, %v6761_v37  ;;  %v6485_v63 = vor.u32 %v6483_v34, %v12567_v11  ;;  %v10226_v31 = vld [vmem:[#allocation2 + $0xb8] sm:$0xff] }
 0x3d1   : > { %8091 = vst.msk [vmem:[#allocation3 + $0x20] sm:$0xff] %vm816_vm1, %v8059_v62  ;;  %v7681_v0 = vld [vmem:[#allocation3 + $0x70] sm:$0xff]  ;;  %v5788_v4 = vpop.f32.mrf.mxu2  ;;  %v5212_v62 = vld [vmem:[#allocation3 + $0xa0] sm:$0xff] }
 0x3d2   : > { %7027 = vst.msk [vmem:[#allocation3 + $0x78] sm:$0xff] %vm816_vm1, %v6963_v1  ;;  %v7745_v24 = vadd.f32 %v7681_v0, %v12503_v15  ;;  %v12571_v16 = vpop.f32.mrf.mxu0 }
 0x3d3   : > { %6050 = vst.msk [vmem:[#allocation3 + $0x80] sm:$0xff] %vm816_vm1, %v5986_v35  ;;  %v5077_v61 = vpop.f32.mrf.mxu1  ;;  %v6489_v35 = vrot.slane %v6487_v45, 1  ;;  %v12671_v45 = vld [vmem:[%s13512_s3] ss:$0 sm:$0xff] }
 0x3d4   : > { %v7872_v13 = vld [vmem:[#allocation3 + $0x68] sm:$0xff]  ;;  %7809 = vst.msk [vmem:[#allocation3 + $0x70] sm:$0xff] %vm816_vm1, %v7745_v24  ;;  %v5274_v60 = vadd.f32 %v5210_v8, %v5077_v61  ;;  %v6766_v52 = vpop.f32.mrf.mxu3  ;;  %v10225_v24 = vld [vmem:[#allocation2 + $0xb0] sm:$0xff] }
 0x3d5   : > { %v7940_v9 = vadd.f32 %v12234_v28, %v7872_v13  ;;  %v5923_v15 = vld [vmem:[#allocation3 + $0x88] sm:$0xff] }
 0x3d6   : > { %v5987_v59 = vadd.f32 %v5923_v15, %v5788_v4  ;;  %5338 = vst.msk [vmem:[#allocation3 + $0x90] sm:$0xff] %vm816_vm1, %v5274_v60  ;;  %9440 = vmatmul.msk.bf16.gmra.mxu1 %vm816_vm1, %v4874_v7  ;;  %9616 = vmatmul.msk.bf16.gmra.mxu2 %vm816_vm1, %v10224_v36  ;;  %v6490_v60 = vsel %vm1383_vm2, %v6485_v63, %v6489_v35  ;;  %v7350_v15 = vrot.slane %v12622_v50, 1  ;;  %v5215_v63 = vld [vmem:[#allocation3 + $0xb8] sm:$0xff] }
 0x3d7   : > { %v7998_v14 = vpack.c.bf16 %v7940_v9, %v7940_v9  ;;  %v8060_v6 = vmax.f32 %v12478_v43, %v7940_v9 }
 0x3d8   : > { %6051 = vst.msk [vmem:[#allocation3 + $0x88] sm:$0xff] %vm816_vm1, %v5987_v59 }
 0x3d9   : > { %8030 = vst.msk [vmem:[%s12265_s17 + $0x1c] sm:$0xf] %vm431_vm0, %v7998_v14  ;;  %v7682_v12 = vld [vmem:[#allocation3 + $0x78] sm:$0xff]  ;;  %9792 = vmatmul.msk.bf16.gmra.mxu3 %vm816_vm1, %v6482_v18  ;;  %v5791_v26 = vpop.f32.mrf.mxu2  ;;  %v12637_v18 = vld [vmem:[#allocation2 + $0xb0] sm:$0xff] }
 0x3da   : > { %8092 = vst.msk [vmem:[#allocation3 + $0x28] sm:$0xff] %vm816_vm1, %v8060_v6  ;;  %v6900_v21 = vld [vmem:[#allocation3 + $0x80] sm:$0xff]  ;;  %v7746_v22 = vadd.f32 %v7682_v12, %v12524_v49  ;;  %v12596_v33 = vpop.f32.mrf.mxu0  ;;  %v5213_v6 = vld [vmem:[#allocation3 + $0xa8] sm:$0xff] }
 0x3db   : > { %v7873_v43 = vld [vmem:[#allocation3 + $0x70] sm:$0xff]  ;;  %v6964_v17 = vadd.f32 %v6900_v21, %v6764_v53  ;;  %v5079_v30 = vpop.f32.mrf.mxu1 }
 0x3dc   : > { %v7941_v37 = vadd.f32 %v12234_v28, %v7873_v43  ;;  %7810 = vst.msk [vmem:[#allocation3 + $0x78] sm:$0xff] %vm816_vm1, %v7746_v22  ;;  %v5275_v38 = vadd.f32 %v5211_v3, %v5079_v30  ;;  %v6769_v27 = vpop.f32.mrf.mxu3  ;;  %9968 = vmatmul.msk.bf16.gmra.mxu0 %vm816_vm1, %v7349_v41  ;;  %v7351_v3 = vsel %vm2362_vm3, %v7348_v2, %v7350_v15  ;;  %v4877_v30 = vrot.slane %v12637_v18, 1 }
 0x3dd   : > { %7028 = vst.msk [vmem:[#allocation3 + $0x80] sm:$0xff] %vm816_vm1, %v6964_v17  ;;  %v5924_v49 = vld [vmem:[#allocation3 + $0x90] sm:$0xff] }
 0x3de   : > { %v8061_v40 = vmax.f32 %v7937_v29, %v7941_v37  ;;  %v5988_v39 = vadd.f32 %v5924_v49, %v5791_v26  ;;  %5339 = vst.msk [vmem:[#allocation3 + $0x98] sm:$0xff] %vm816_vm1, %v5275_v38  ;;  %v6491_v29 = vshrl.u32 %v12590_v23, 16  ;;  %v6495_v37 = vshll.u32 %v12639_v20, 16  ;;  %v5214_v23 = vld [vmem:[#allocation3 + $0xb0] sm:$0xff] }
 0x3df   : > { %v6901_v46 = vld [vmem:[#allocation3 + $0x88] sm:$0xff] }
 0x3e0   : > { %8093 = vst.msk [vmem:[#allocation3 + $0x30] sm:$0xff] %vm816_vm1, %v8061_v40  ;;  %v6965_v55 = vadd.f32 %v6901_v46, %v6766_v52  ;;  %v6493_v46 = vor.u32 %v6491_v29, %v6489_v35  ;;  %v6497_v34 = vrot.slane %v6495_v37, 1 }
 0x3e1   : > { %6052 = vst.msk [vmem:[#allocation3 + $0x90] sm:$0xff] %vm816_vm1, %v5988_v39  ;;  %v8121_v19 = vld [vmem:[#allocation3 + $0x20] ss:$2 sm:$0xff]  ;;  %v8137_v42 = vld [vmem:[#allocation3 + $0x21] ss:$2 sm:$0xff]  ;;  %v5793_v48 = vpop.f32.mrf.mxu2  ;;  %v4878_v39 = vsel %vm2362_vm3, %v4875_v25, %v4877_v30 }
 0x3e2   : > { %7029 = vst.msk [vmem:[#allocation3 + $0x88] sm:$0xff] %vm816_vm1, %v6965_v55  ;;  %v8151_v57 = vmax.f32 %v8121_v19, %v8137_v42  ;;  %v12620_v10 = vpop.f32.mrf.mxu0  ;;  %v12680_v42 = vld [vmem:[#allocation2 + $0xc0] sm:$0xff] }
 0x3e3   : > { %v7874_v53 = vld [vmem:[#allocation3 + $0x78] sm:$0xff]  ;;  %v5082_v47 = vpop.f32.mrf.mxu1 }
 0x3e4   : > { %v7942_v58 = vadd.f32 %v12234_v28, %v7874_v53  ;;  %v7683_v1 = vld [vmem:[#allocation3 + $0x80] sm:$0xff]  ;;  %v5276_v0 = vadd.f32 %v5212_v62, %v5082_v47  ;;  %v8159_v4 = vmax.f32 %v8151_v57, 0.0  ;;  %v6771_v7 = vpop.f32.mrf.mxu3  ;;  %v6498_v47 = vsel %vm1383_vm2, %v6493_v46, %v6497_v34 }
 0x3e5   : > { %v7747_v61 = vadd.f32 %v7683_v1, %v12543_v44  ;;  %v5925_v8 = vld [vmem:[#allocation3 + $0x98] sm:$0xff] }
 0x3e6   : > { %v8062_v51 = vmax.f32 %v7938_v54, %v7942_v58  ;;  %v5989_v11 = vadd.f32 %v5925_v8, %v5793_v48  ;;  %5340 = vst.msk [vmem:[#allocation3 + $0xa0] sm:$0xff] %vm816_vm1, %v5276_v0  ;;  %9441 = vmatmul.msk.bf16.gmra.mxu1 %vm816_vm1, %v4876_v56  ;;  %v8167_v13 = vpack.c.bf16 %v8159_v4, %v8159_v4  ;;  %v7352_v56 = vrot.slane %v12680_v42, 1  ;;  %v12694_v1 = vld [vmem:[#allocation2 + $0xb8] sm:$0xff]  ;;  %v12696_v0 = vld [vmem:[#allocation2 + $0xc8] sm:$0xff] }
 0x3e7   : > { %7811 = vst.msk [vmem:[#allocation3 + $0x80] sm:$0xff] %vm816_vm1, %v7747_v61  ;;  %9617 = vmatmul.msk.bf16.gmra.mxu2 %vm816_vm1, %v10225_v24 }
 0x3e8   : > { %8094 = vst.msk [vmem:[#allocation3 + $0x38] sm:$0xff] %vm816_vm1, %v8062_v51  ;;  %v6902_v44 = vld [vmem:[#allocation3 + $0x90] sm:$0xff]  ;;  %v7353_v51 = vsel %vm2362_vm3, %v7350_v15, %v7352_v56 }
 0x3e9   : > { %v6966_v36 = vadd.f32 %v6902_v44, %v6769_v27  ;;  %6053 = vst.msk [vmem:[#allocation3 + $0x98] sm:$0xff] %vm816_vm1, %v5989_v11  ;;  %v7684_v9 = vld [vmem:[#allocation3 + $0x88] sm:$0xff]  ;;  %9793 = vmatmul.msk.bf16.gmra.mxu3 %vm816_vm1, %v6490_v60  ;;  %v5796_v59 = vpop.f32.mrf.mxu2  ;;  %v6503_v60 = vshll.u32 %v12696_v0, 16 }
 0x3ea   : > { %v7748_v52 = vadd.f32 %v7684_v9, %v12571_v16  ;;  %8175 = vst.msk [vmem:[%s12439_s29 + $0x4] sm:$0xf] %vm431_vm0, %v8167_v13  ;;  %v12642_v16 = vpop.f32.mrf.mxu0  ;;  %v4879_v13 = vrot.slane %v12694_v1, 1 }
 0x3eb   : > { %7030 = vst.msk [vmem:[#allocation3 + $0x90] sm:$0xff] %vm816_vm1, %v6966_v36  ;;  %v5084_v14 = vpop.f32.mrf.mxu1 }
 0x3ec   : > { %7812 = vst.msk [vmem:[#allocation3 + $0x88] sm:$0xff] %vm816_vm1, %v7748_v52  ;;  %v5277_v12 = vadd.f32 %v5213_v6, %v5084_v14  ;;  %v6774_v22 = vpop.f32.mrf.mxu3  ;;  %9969 = vmatmul.msk.bf16.gmra.mxu0 %vm816_vm1, %v7351_v3  ;;  %v4880_v14 = vsel %vm2362_vm3, %v4877_v30, %v4879_v13 }
 0x3ed   : > { %v5926_v21 = vld [vmem:[#allocation3 + $0xa0] sm:$0xff] }
 0x3ee   : > { %v7875_v43 = vld [vmem:[#allocation3 + $0x80] sm:$0xff]  ;;  %v5990_v17 = vadd.f32 %v5926_v21, %v5796_v59  ;;  %5341 = vst.msk [vmem:[#allocation3 + $0xa8] sm:$0xff] %vm816_vm1, %v5277_v12 }
 0x3ef   : > { %v12651_v26 = vadd.f32 %v12234_v28, %v7875_v43  ;;  %v5216_v59 = vld [vmem:[#allocation3 + $0xc0] sm:$0xff] }
 0x3f0   : > { %v6903_v38 = vld [vmem:[#allocation3 + $0x98] sm:$0xff]  ;;  %6054 = vst.msk [vmem:[#allocation3 + $0xa0] sm:$0xff] %vm816_vm1, %v5990_v17  ;;  %v10227_v21 = vld [vmem:[#allocation2 + $0xc0] sm:$0xff] }
 0x3f1   : > { %v7999_v5 = vpack.c.bf16 %v12651_v26, %v12651_v26  ;;  %v6967_v2 = vadd.f32 %v6903_v38, %v6771_v7  ;;  %v5798_v41 = vpop.f32.mrf.mxu2 }
 0x3f2   : > { %v7685_v49 = vld [vmem:[#allocation3 + $0x90] sm:$0xff]  ;;  %v12678_v25 = vpop.f32.mrf.mxu0 }
 0x3f3   : > { %8031 = vst.msk [vmem:[%s12265_s17 + $0x20] sm:$0xf] %vm431_vm0, %v7999_v5  ;;  %v7876_v28 = vld [vmem:[#allocation3 + $0x88] sm:$0xff]  ;;  %v7749_v27 = vadd.f32 %v7685_v49, %v12596_v33  ;;  %v5087_v40 = vpop.f32.mrf.mxu1 }
 0x3f4   : > { %v12674_v55 = vadd.f32 %v12671_v45, %v7876_v28  ;;  %7031 = vst.msk [vmem:[#allocation3 + $0x98] sm:$0xff] %vm816_vm1, %v6967_v2  ;;  %v5278_v33 = vadd.f32 %v5214_v23, %v5087_v40  ;;  %v6776_v19 = vpop.f32.mrf.mxu3  ;;  %v5217_v5 = vld [vmem:[#allocation3 + $0xc8] sm:$0xff]  ;;  %v12736_v40 = vld [vmem:[#allocation2 + $0xd0] sm:$0xff] }
 0x3f5   : > { %7813 = vst.msk [vmem:[#allocation3 + $0x90] sm:$0xff] %vm816_vm1, %v7749_v27  ;;  %v5927_v32 = vld [vmem:[#allocation3 + $0xa8] sm:$0xff] }
 0x3f6   : > { %v8000_v57 = vpack.c.bf16 %v12674_v55, %v12674_v55  ;;  %v5991_v53 = vadd.f32 %v5927_v32, %v5798_v41  ;;  %5342 = vst.msk [vmem:[#allocation3 + $0xb0] sm:$0xff] %vm816_vm1, %v5278_v33  ;;  %9442 = vmatmul.msk.bf16.gmra.mxu1 %vm816_vm1, %v4878_v39  ;;  %v12734_v41 = vld [vmem:[#allocation2 + $0xc0] sm:$0xff] }
 0x3f7   : > { %v6904_v48 = vld [vmem:[#allocation3 + $0xa0] sm:$0xff]  ;;  %9618 = vmatmul.msk.bf16.gmra.mxu2 %vm816_vm1, %v10226_v31 }
 0x3f8   : > { %8032 = vst.msk [vmem:[%s12265_s17 + $0x24] sm:$0xf] %vm431_vm0, %v8000_v57  ;;  %v6968_v62 = vadd.f32 %v6904_v48, %v6774_v22  ;;  %v4881_v57 = vrot.slane %v12734_v41, 1  ;;  %v6511_v48 = vshll.u32 %v12736_v40, 16  ;;  %v12821_v41 = vld [vmem:[#allocation2 + $0xd8] sm:$0xff] }
 0x3f9   : > { %6055 = vst.msk [vmem:[#allocation3 + $0xa8] sm:$0xff] %vm816_vm1, %v5991_v53  ;;  %9794 = vmatmul.msk.bf16.gmra.mxu3 %vm816_vm1, %v6498_v47  ;;  %v5801_v54 = vpop.f32.mrf.mxu2  ;;  %v6507_v53 = vshrl.u32 %v12696_v0, 16 }
 0x3fa   : > { %7032 = vst.msk [vmem:[#allocation3 + $0xa0] sm:$0xff] %vm816_vm1, %v6968_v62  ;;  %v12699_v7 = vpop.f32.mrf.mxu0  ;;  %v12764_v0 = vrot.slane %v6511_v48, 1 }
 0x3fb   : > { %v7686_v35 = vld [vmem:[#allocation3 + $0x98] sm:$0xff]  ;;  %v5089_v58 = vpop.f32.mrf.mxu1 }
 0x3fc   : > { %v7750_v24 = vadd.f32 %v7686_v35, %v12620_v10  ;;  %v5279_v4 = vadd.f32 %v5215_v63, %v5089_v58  ;;  %v6779_v8 = vpop.f32.mrf.mxu3  ;;  %v6499_v10 = vshrl.u32 %v12639_v20, 16  ;;  %9970 = vmatmul.msk.bf16.gmra.mxu0 %vm816_vm1, %v7353_v51  ;;  %v6505_v20 = vrot.slane %v6503_v60, 1  ;;  %v5218_v35 = vld [vmem:[#allocation3 + $0xd0] sm:$0xff] }
 0x3fd   : > { %v5928_v61 = vld [vmem:[#allocation3 + $0xb0] sm:$0xff] }
 0x3fe   : > { %7814 = vst.msk [vmem:[#allocation3 + $0x98] sm:$0xff] %vm816_vm1, %v7750_v24  ;;  %v5992_v11 = vadd.f32 %v5928_v61, %v5801_v54  ;;  %v6501_v6 = vor.u32 %v6499_v10, %v6497_v34  ;;  %v4882_v54 = vsel %vm2362_vm3, %v4879_v13, %v4881_v57  ;;  %v6509_v58 = vor.u32 %v6507_v53, %v6505_v20  ;;  %v10228_v61 = vld [vmem:[#allocation2 + $0xc8] sm:$0xff]  ;;  %v12770_v10 = vld [vmem:[#allocation2 + $0xd0] sm:$0xff] }
 0x3ff   : > { %5343 = vst.msk [vmem:[#allocation3 + $0xb8] sm:$0xff] %vm816_vm1, %v5279_v4 }
 0x400   : > { %v6905_v44 = vld [vmem:[#allocation3 + $0xa8] sm:$0xff]  ;;  %6056 = vst.msk [vmem:[#allocation3 + $0xb0] sm:$0xff] %vm816_vm1, %v5992_v11  ;;  %v6506_v30 = vsel %vm1383_vm2, %v6501_v6, %v6505_v20 }
 0x401   : > { %v6969_v36 = vadd.f32 %v6905_v44, %v6776_v19  ;;  %v7687_v50 = vld [vmem:[#allocation3 + $0xa0] sm:$0xff]  ;;  %v5803_v15 = vpop.f32.mrf.mxu2  ;;  %v6514_v44 = vsel %vm1383_vm2, %v6509_v58, %v12764_v0 }
 0x402   : > { %v7751_v9 = vadd.f32 %v7687_v50, %v12642_v16  ;;  %v12721_v3 = vpop.f32.mrf.mxu0  ;;  %v12723_v16 = vld [vmem:[#allocation2 + $0xc8] sm:$0xff] }
 0x403   : > { %7033 = vst.msk [vmem:[#allocation3 + $0xa8] sm:$0xff] %vm816_vm1, %v6969_v36  ;;  %v5092_v52 = vpop.f32.mrf.mxu1  ;;  %v7354_v37 = vrot.slane %v12723_v16, 1  ;;  %v7877_v36 = vld [vmem:[#allocation3 + $0x90] sm:$0xff] }
 0x404   : > { %7815 = vst.msk [vmem:[#allocation3 + $0xa0] sm:$0xff] %vm816_vm1, %v7751_v9  ;;  %v5280_v12 = vadd.f32 %v5216_v59, %v5092_v52  ;;  %v6781_v22 = vpop.f32.mrf.mxu3  ;;  %v7356_v9 = vrot.slane %v12770_v10, 1  ;;  %v5219_v59 = vld [vmem:[#allocation3 + $0xd8] sm:$0xff] }
 0x405   : > { %v7355_v31 = vsel %vm2362_vm3, %v7352_v56, %v7354_v37 }
 0x406   : > { %v5929_v43 = vld [vmem:[#allocation3 + $0xb8] sm:$0xff]  ;;  %5344 = vst.msk [vmem:[#allocation3 + $0xc0] sm:$0xff] %vm816_vm1, %v5280_v12  ;;  %9443 = vmatmul.msk.bf16.gmra.mxu1 %vm816_vm1, %v4880_v14  ;;  %v12785_v12 = vld [vmem:[#allocation2 + $0xc8] sm:$0xff] }
 0x407   : > { %v6906_v17 = vld [vmem:[#allocation3 + $0xb0] sm:$0xff]  ;;  %v5993_v18 = vadd.f32 %v5929_v43, %v5803_v15  ;;  %9619 = vmatmul.msk.bf16.gmra.mxu2 %vm816_vm1, %v10227_v21  ;;  %v12787_v21 = vld [vmem:[#allocation2 + $0xd8] sm:$0xff] }
 0x408   : > { %v6970_v29 = vadd.f32 %v6906_v17, %v6779_v8 }
 0x409   : > { %6057 = vst.msk [vmem:[#allocation3 + $0xb8] sm:$0xff] %vm816_vm1, %v5993_v18  ;;  %9795 = vmatmul.msk.bf16.gmra.mxu3 %vm816_vm1, %v6506_v30  ;;  %v5806_v28 = vpop.f32.mrf.mxu2 }
 0x40a   : > { %7034 = vst.msk [vmem:[#allocation3 + $0xb0] sm:$0xff] %vm816_vm1, %v6970_v29  ;;  %v7688_v38 = vld [vmem:[#allocation3 + $0xa8] sm:$0xff]  ;;  %v12740_v33 = vpop.f32.mrf.mxu0 }
 0x40b   : > { %v7879_v2 = vld [vmem:[#allocation3 + $0xa0] sm:$0xff]  ;;  %v7752_v49 = vadd.f32 %v7688_v38, %v12678_v25  ;;  %v5094_v27 = vpop.f32.mrf.mxu1 }
 0x40c   : > { %v7947_v23 = vadd.f32 %v12671_v45, %v7879_v2  ;;  %v5281_v39 = vadd.f32 %v5217_v5, %v5094_v27  ;;  %v6784_v34 = vpop.f32.mrf.mxu3  ;;  %9971 = vmatmul.msk.bf16.gmra.mxu0 %vm816_vm1, %v7355_v31  ;;  %v6519_v27 = vshll.u32 %v12787_v21, 16 }
 0x40d   : > { %7816 = vst.msk [vmem:[#allocation3 + $0xa8] sm:$0xff] %vm816_vm1, %v7752_v49  ;;  %v5930_v46 = vld [vmem:[#allocation3 + $0xc0] sm:$0xff]  ;;  %v4883_v49 = vrot.slane %v12785_v12, 1 }
 0x40e   : > { %v8001_v32 = vpack.c.bf16 %v7947_v23, %v7947_v23  ;;  %v8063_v19 = vmax.f32 %v12651_v26, %v7947_v23  ;;  %v5994_v25 = vadd.f32 %v5930_v46, %v5806_v28  ;;  %5345 = vst.msk [vmem:[#allocation3 + $0xc8] sm:$0xff] %vm816_vm1, %v5281_v39  ;;  %v6515_v28 = vshrl.u32 %v12736_v40, 16  ;;  %v7878_v39 = vld [vmem:[#allocation3 + $0x98] sm:$0xff] }
 0x40f   : > { %v4884_v40 = vsel %vm2362_vm3, %v4881_v57, %v4883_v49  ;;  %v12814_v53 = vrot.slane %v6519_v27, 1 }
 0x410   : > { %8033 = vst.msk [vmem:[%s12265_s17 + $0x28] sm:$0xf] %vm431_vm0, %v8001_v32  ;;  %v6907_v47 = vld [vmem:[#allocation3 + $0xb8] sm:$0xff] }
 0x411   : > { %8095 = vst.msk [vmem:[#allocation3 + $0x40] sm:$0xff] %vm816_vm1, %v8063_v19  ;;  %v6971_v42 = vadd.f32 %v6907_v47, %v6781_v22  ;;  %v7689_v62 = vld [vmem:[#allocation3 + $0xb0] sm:$0xff]  ;;  %v5808_v56 = vpop.f32.mrf.mxu2  ;;  %v7945_v22 = vadd.f32 %v12671_v45, %v7877_v36  ;;  %v5220_v19 = vld [vmem:[#allocation3 + $0xe0] sm:$0xff] }
 0x412   : > { %6058 = vst.msk [vmem:[#allocation3 + $0xc0] sm:$0xff] %vm816_vm1, %v5994_v25  ;;  %v7753_v26 = vadd.f32 %v7689_v62, %v12699_v7  ;;  %v12768_v11 = vpop.f32.mrf.mxu0  ;;  %v6517_v25 = vor.u32 %v6515_v28, %v12764_v0  ;;  %v10229_v62 = vld [vmem:[#allocation2 + $0xd0] sm:$0xff]  ;;  %v12839_v36 = vld [vmem:[#allocation2 + $0xe0] sm:$0xff] }
 0x413   : > { %7035 = vst.msk [vmem:[#allocation3 + $0xb8] sm:$0xff] %vm816_vm1, %v6971_v42  ;;  %v5097_v63 = vpop.f32.mrf.mxu1 }
 0x414   : > { %v7880_v24 = vld [vmem:[#allocation3 + $0xa8] sm:$0xff]  ;;  %7817 = vst.msk [vmem:[#allocation3 + $0xb0] sm:$0xff] %vm816_vm1, %v7753_v26  ;;  %v5282_v4 = vadd.f32 %v5218_v35, %v5097_v63  ;;  %v6786_v51 = vpop.f32.mrf.mxu3 }
 0x415   : > { %v7948_v8 = vadd.f32 %v12671_v45, %v7880_v24  ;;  %v5931_v7 = vld [vmem:[#allocation3 + $0xc8] sm:$0xff]  ;;  %v6522_v24 = vsel %vm1383_vm2, %v6517_v25, %v12814_v53 }
 0x416   : > { %v5995_v1 = vadd.f32 %v5931_v7, %v5808_v56  ;;  %5346 = vst.msk [vmem:[#allocation3 + $0xd0] sm:$0xff] %vm816_vm1, %v5282_v4  ;;  %9444 = vmatmul.msk.bf16.gmra.mxu1 %vm816_vm1, %v4882_v54  ;;  %v7946_v56 = vadd.f32 %v12671_v45, %v7878_v39  ;;  %v7358_v7 = vrot.slane %v12821_v41, 1 }
 0x417   : > { %v8002_v13 = vpack.c.bf16 %v7948_v8, %v7948_v8  ;;  %v8064_v60 = vmax.f32 %v12674_v55, %v7948_v8  ;;  %9620 = vmatmul.msk.bf16.gmra.mxu2 %vm816_vm1, %v10228_v61 }
 0x418   : > { %6059 = vst.msk [vmem:[#allocation3 + $0xc8] sm:$0xff] %vm816_vm1, %v5995_v1 }
 0x419   : > { %8034 = vst.msk [vmem:[%s12265_s17 + $0x2c] sm:$0xf] %vm431_vm0, %v8002_v13  ;;  %v6908_v50 = vld [vmem:[#allocation3 + $0xc0] sm:$0xff]  ;;  %9796 = vmatmul.msk.bf16.gmra.mxu3 %vm816_vm1, %v6514_v44  ;;  %v5811_v6 = vpop.f32.mrf.mxu2  ;;  %v12837_v44 = vld [vmem:[#allocation2 + $0xd0] sm:$0xff] }
 0x41a   : > { %8096 = vst.msk [vmem:[#allocation3 + $0x48] sm:$0xff] %vm816_vm1, %v8064_v60  ;;  %v6972_v15 = vadd.f32 %v6908_v50, %v6784_v34  ;;  %v7690_v52 = vld [vmem:[#allocation3 + $0xb8] sm:$0xff]  ;;  %v12793_v29 = vpop.f32.mrf.mxu0  ;;  %v5221_v60 = vld [vmem:[#allocation3 + $0xe8] sm:$0xff] }
 0x41b   : > { %v7881_v55 = vld [vmem:[#allocation3 + $0xb0] sm:$0xff]  ;;  %v7754_v14 = vadd.f32 %v7690_v52, %v12721_v3  ;;  %v5099_v20 = vpop.f32.mrf.mxu1  ;;  %v7357_v3 = vsel %vm2362_vm3, %v7354_v37, %v7356_v9 }
 0x41c   : > { %v7949_v43 = vadd.f32 %v12671_v45, %v7881_v55  ;;  %7036 = vst.msk [vmem:[#allocation3 + $0xc0] sm:$0xff] %vm816_vm1, %v6972_v15  ;;  %v5283_v17 = vadd.f32 %v5219_v59, %v5099_v20  ;;  %v6789_v30 = vpop.f32.mrf.mxu3  ;;  %9972 = vmatmul.msk.bf16.gmra.mxu0 %vm816_vm1, %v7357_v3  ;;  %v7359_v59 = vsel %vm2362_vm3, %v7356_v9, %v7358_v7 }
 0x41d   : > { %7818 = vst.msk [vmem:[#allocation3 + $0xb8] sm:$0xff] %vm816_vm1, %v7754_v14  ;;  %v5932_v18 = vld [vmem:[#allocation3 + $0xd0] sm:$0xff] }
 0x41e   : > { %v8065_v38 = vmax.f32 %v7945_v22, %v7949_v43  ;;  %v5996_v5 = vadd.f32 %v5932_v18, %v5811_v6  ;;  %5347 = vst.msk [vmem:[#allocation3 + $0xd8] sm:$0xff] %vm816_vm1, %v5283_v17  ;;  %v4885_v22 = vrot.slane %v12837_v44, 1  ;;  %v6523_v43 = vshrl.u32 %v12787_v21, 16 }
 0x41f   : > { %v6909_v2 = vld [vmem:[#allocation3 + $0xc8] sm:$0xff]  ;;  %v6527_v17 = vshll.u32 %v12839_v36, 16 }
 0x420   : > { %8097 = vst.msk [vmem:[#allocation3 + $0x50] sm:$0xff] %vm816_vm1, %v8065_v38  ;;  %v6973_v23 = vadd.f32 %v6909_v2, %v6786_v51  ;;  %v4886_v2 = vsel %vm2362_vm3, %v4883_v49, %v4885_v22  ;;  %v6525_v28 = vor.u32 %v6523_v43, %v12814_v53 }
 0x421   : > { %6060 = vst.msk [vmem:[#allocation3 + $0xd0] sm:$0xff] %vm816_vm1, %v5996_v5  ;;  %v8123_v16 = vld [vmem:[#allocation3 + $0x40] ss:$2 sm:$0xff]  ;;  %v8139_v37 = vld [vmem:[#allocation3 + $0x41] ss:$2 sm:$0xff]  ;;  %v5813_v31 = vpop.f32.mrf.mxu2  ;;  %v5222_v5 = vld [vmem:[#allocation3 + $0xf0] sm:$0xff] }
 0x422   : > { %7037 = vst.msk [vmem:[#allocation3 + $0xc8] sm:$0xff] %vm816_vm1, %v6973_v23  ;;  %v8152_v46 = vmax.f32 %v8123_v16, %v8139_v37  ;;  %v12819_v58 = vpop.f32.mrf.mxu0  ;;  %v6529_v27 = vrot.slane %v6527_v17, 1  ;;  %v10230_v37 = vld [vmem:[#allocation2 + $0xd8] sm:$0xff] }
 0x423   : > { %v7691_v34 = vld [vmem:[#allocation3 + $0xc0] sm:$0xff]  ;;  %v5102_v32 = vpop.f32.mrf.mxu1 }
 0x424   : > { %v7882_v48 = vld [vmem:[#allocation3 + $0xb8] sm:$0xff]  ;;  %v7755_v47 = vadd.f32 %v7691_v34, %v12740_v33  ;;  %v5284_v42 = vadd.f32 %v5220_v19, %v5102_v32  ;;  %v8160_v26 = vmax.f32 %v8152_v46, 0.0  ;;  %v6791_v54 = vpop.f32.mrf.mxu3  ;;  %v12876_v34 = vld [vmem:[#allocation2 + $0xe0] sm:$0xff] }
 0x425   : > { %v7950_v63 = vadd.f32 %v12671_v45, %v7882_v48  ;;  %v5933_v35 = vld [vmem:[#allocation3 + $0xd8] sm:$0xff] }
 0x426   : > { %7819 = vst.msk [vmem:[#allocation3 + $0xc0] sm:$0xff] %vm816_vm1, %v7755_v47  ;;  %v5997_v57 = vadd.f32 %v5933_v35, %v5813_v31  ;;  %9445 = vmatmul.msk.bf16.gmra.mxu1 %vm816_vm1, %v4884_v40  ;;  %v8168_v33 = vpack.c.bf16 %v8160_v26, %v8160_v26  ;;  %v6530_v31 = vsel %vm1383_vm2, %v6525_v28, %v6529_v27  ;;  %v7360_v40 = vrot.slane %v12876_v34, 1  ;;  %v12893_v26 = vld [vmem:[#allocation2 + $0xe8] sm:$0xff] }
 0x427   : > { %v8066_v0 = vmax.f32 %v7946_v56, %v7950_v63  ;;  %5348 = vst.msk [vmem:[#allocation3 + $0xe0] sm:$0xff] %vm816_vm1, %v5284_v42  ;;  %9621 = vmatmul.msk.bf16.gmra.mxu2 %vm816_vm1, %v10229_v62  ;;  %v5223_v42 = vld [vmem:[#allocation3 + $0xf8] sm:$0xff] }
 0x428   : > { %v6910_v4 = vld [vmem:[#allocation3 + $0xd0] sm:$0xff]  ;;  %6061 = vst.msk [vmem:[#allocation3 + $0xd8] sm:$0xff] %vm816_vm1, %v5997_v57  ;;  %v12891_v62 = vld [vmem:[#allocation2 + $0xd8] sm:$0xff] }
 0x429   : > { %8098 = vst.msk [vmem:[#allocation3 + $0x58] sm:$0xff] %vm816_vm1, %v8066_v0  ;;  %v6974_v61 = vadd.f32 %v6910_v4, %v6789_v30  ;;  %v7692_v8 = vld [vmem:[#allocation3 + $0xc8] sm:$0xff]  ;;  %9797 = vmatmul.msk.bf16.gmra.mxu3 %vm816_vm1, %v6522_v24  ;;  %v5816_v1 = vpop.f32.mrf.mxu2  ;;  %v6531_v0 = vshrl.u32 %v12839_v36, 16  ;;  %v6535_v24 = vshll.u32 %v12893_v26, 16 }
 0x42a   : > { %v7756_v51 = vadd.f32 %v7692_v8, %v12768_v11  ;;  %8176 = vst.msk [vmem:[%s12439_s29 + $0x8] sm:$0xf] %vm431_vm0, %v8168_v33  ;;  %v12842_v11 = vpop.f32.mrf.mxu0  ;;  %v4887_v33 = vrot.slane %v12891_v62, 1 }
 0x42b   : > { %7038 = vst.msk [vmem:[#allocation3 + $0xd0] sm:$0xff] %vm816_vm1, %v6974_v61  ;;  %v5104_v13 = vpop.f32.mrf.mxu1  ;;  %v6537_v36 = vrot.slane %v6535_v24, 1 }
 0x42c   : > { %7820 = vst.msk [vmem:[#allocation3 + $0xc8] sm:$0xff] %vm816_vm1, %v7756_v51  ;;  %v5285_v50 = vadd.f32 %v5221_v60, %v5104_v13  ;;  %v6794_v52 = vpop.f32.mrf.mxu3  ;;  %9973 = vmatmul.msk.bf16.gmra.mxu0 %vm816_vm1, %v7359_v59  ;;  %v4888_v13 = vsel %vm2362_vm3, %v4885_v22, %v4887_v33  ;;  %v6533_v60 = vor.u32 %v6531_v0, %v6529_v27  ;;  %v12966_v0 = vld [vmem:[#allocation2 + $0xf0] sm:$0xff] }
 0x42d   : > { %v7883_v15 = vld [vmem:[#allocation3 + $0xc0] sm:$0xff] }
 0x42e   : > { %v12850_v55 = vadd.f32 %v12671_v45, %v7883_v15  ;;  %v5934_v14 = vld [vmem:[#allocation3 + $0xe0] sm:$0xff]  ;;  %5349 = vst.msk [vmem:[#allocation3 + $0xe8] sm:$0xff] %vm816_vm1, %v5285_v50 }
 0x42f   : > { %v6911_v6 = vld [vmem:[#allocation3 + $0xd8] sm:$0xff]  ;;  %v5998_v20 = vadd.f32 %v5934_v14, %v5816_v1  ;;  %v5224_v1 = vld [vmem:[#allocation3 + $0x100] sm:$0xff] }
 0x430   : > { %v8003_v18 = vpack.c.bf16 %v12850_v55, %v12850_v55  ;;  %v6975_v10 = vadd.f32 %v6911_v6, %v6791_v54  ;;  %v10231_v15 = vld [vmem:[#allocation2 + $0xe0] sm:$0xff] }
 0x431   : > { %6062 = vst.msk [vmem:[#allocation3 + $0xe0] sm:$0xff] %vm816_vm1, %v5998_v20  ;;  %v5818_v38 = vpop.f32.mrf.mxu2  ;;  %v6538_v20 = vsel %vm1383_vm2, %v6533_v60, %v6537_v36 }
 0x432   : > { %8035 = vst.msk [vmem:[%s12265_s17 + $0x30] sm:$0xf] %vm431_vm0, %v8003_v18  ;;  %v7693_v9 = vld [vmem:[#allocation3 + $0xd0] sm:$0xff]  ;;  %v12874_v46 = vpop.f32.mrf.mxu0  ;;  %v12929_v18 = vld [vmem:[#allocation2 + $0xe0] sm:$0xff] }
 0x433   : > { %v7884_v30 = vld [vmem:[#allocation3 + $0xc8] sm:$0xff]  ;;  %7039 = vst.msk [vmem:[#allocation3 + $0xd8] sm:$0xff] %vm816_vm1, %v6975_v10  ;;  %v7757_v3 = vadd.f32 %v7693_v9, %v12793_v29  ;;  %v5107_v21 = vpop.f32.mrf.mxu1 }
 0x434   : > { %v12871_v23 = vadd.f32 %v12671_v45, %v7884_v30  ;;  %v5286_v16 = vadd.f32 %v5222_v5, %v5107_v21  ;;  %v6796_v39 = vpop.f32.mrf.mxu3 }
 0x435   : > { %7821 = vst.msk [vmem:[#allocation3 + $0xd0] sm:$0xff] %vm816_vm1, %v7757_v3  ;;  %v5935_v29 = vld [vmem:[#allocation3 + $0xe8] sm:$0xff] }
 0x436   : > { %v8004_v12 = vpack.c.bf16 %v12871_v23, %v12871_v23  ;;  %v5999_v49 = vadd.f32 %v5935_v29, %v5818_v38  ;;  %5350 = vst.msk [vmem:[#allocation3 + $0xf0] sm:$0xff] %vm816_vm1, %v5286_v16  ;;  %9446 = vmatmul.msk.bf16.gmra.mxu1 %vm816_vm1, %v4886_v2  ;;  %v5225_v3 = vld [vmem:[#allocation3 + $0x108] sm:$0xff]  ;;  %v12932_v38 = vld [vmem:[#allocation2 + $0xf0] sm:$0xff] }
 0x437   : > { %9622 = vmatmul.msk.bf16.gmra.mxu2 %vm816_vm1, %v10230_v37 }
 0x438   : > { %8036 = vst.msk [vmem:[%s12265_s17 + $0x34] sm:$0xf] %vm431_vm0, %v8004_v12  ;;  %v6912_v32 = vld [vmem:[#allocation3 + $0xe0] sm:$0xff] }
 0x439   : > { %v6976_v19 = vadd.f32 %v6912_v32, %v6794_v52  ;;  %6063 = vst.msk [vmem:[#allocation3 + $0xe8] sm:$0xff] %vm816_vm1, %v5999_v49  ;;  %9798 = vmatmul.msk.bf16.gmra.mxu3 %vm816_vm1, %v6530_v31  ;;  %v5821_v48 = vpop.f32.mrf.mxu2  ;;  %v6539_v31 = vshrl.u32 %v12893_v26, 16  ;;  %v6543_v32 = vshll.u32 %v12932_v38, 16 }
 0x43a   : > { %v7694_v25 = vld [vmem:[#allocation3 + $0xd8] sm:$0xff]  ;;  %v12896_v54 = vpop.f32.mrf.mxu0 }
 0x43b   : > { %7040 = vst.msk [vmem:[#allocation3 + $0xe0] sm:$0xff] %vm816_vm1, %v6976_v19  ;;  %v7758_v53 = vadd.f32 %v7694_v25, %v12819_v58  ;;  %v5109_v47 = vpop.f32.mrf.mxu1  ;;  %v7361_v58 = vsel %vm2362_vm3, %v7358_v7, %v7360_v40 }
 0x43c   : > { %v5287_v56 = vadd.f32 %v5223_v42, %v5109_v47  ;;  %v6799_v35 = vpop.f32.mrf.mxu3  ;;  %9974 = vmatmul.msk.bf16.gmra.mxu0 %vm816_vm1, %v7361_v58  ;;  %v6541_v47 = vor.u32 %v6539_v31, %v6537_v36  ;;  %v12960_v42 = vrot.slane %v6543_v32, 1 }
 0x43d   : > { %7822 = vst.msk [vmem:[#allocation3 + $0xd8] sm:$0xff] %vm816_vm1, %v7758_v53  ;;  %v5936_v63 = vld [vmem:[#allocation3 + $0xf0] sm:$0xff] }
 0x43e   : > { %v6000_v57 = vadd.f32 %v5936_v63, %v5821_v48  ;;  %5351 = vst.msk [vmem:[#allocation3 + $0xf8] sm:$0xff] %vm816_vm1, %v5287_v56  ;;  %v5226_v53 = vld [vmem:[#allocation3 + $0x110] sm:$0xff]  ;;  %v10232_v63 = vld [vmem:[#allocation2 + $0xe8] sm:$0xff] }
 0x440   : > { %v6913_v4 = vld [vmem:[#allocation3 + $0xe8] sm:$0xff]  ;;  %6064 = vst.msk [vmem:[#allocation3 + $0xf0] sm:$0xff] %vm816_vm1, %v6000_v57 }
 0x441   : > { %v6977_v61 = vadd.f32 %v6913_v4, %v6796_v39  ;;  %v5823_v7 = vpop.f32.mrf.mxu2  ;;  %v4889_v39 = vrot.slane %v12929_v18, 1  ;;  %v13018_v18 = vld [vmem:[#allocation2 + $0xf8] sm:$0xff] }
 0x442   : > { %v7695_v8 = vld [vmem:[#allocation3 + $0xe0] sm:$0xff]  ;;  %v12917_v14 = vpop.f32.mrf.mxu0 }
 0x443   : > { %7041 = vst.msk [vmem:[#allocation3 + $0xe8] sm:$0xff] %vm816_vm1, %v6977_v61  ;;  %v7759_v41 = vadd.f32 %v7695_v8, %v12842_v11  ;;  %v5112_v51 = vpop.f32.mrf.mxu1  ;;  %v12919_v11 = vld [vmem:[#allocation2 + $0xe8] sm:$0xff]  ;;  %v4890_v48 = vsel %vm2362_vm3, %v4887_v33, %v4889_v39  ;;  %v6546_v61 = vsel %vm1383_vm2, %v6541_v47, %v12960_v42 }
 0x444   : > { %v5288_v50 = vadd.f32 %v5224_v1, %v5112_v51  ;;  %v6801_v59 = vpop.f32.mrf.mxu3  ;;  %v7362_v43 = vrot.slane %v12919_v11, 1  ;;  %v5227_v1 = vld [vmem:[#allocation3 + $0x118] sm:$0xff] }
 0x445   : > { %7823 = vst.msk [vmem:[#allocation3 + $0xe0] sm:$0xff] %vm816_vm1, %v7759_v41  ;;  %v5937_v52 = vld [vmem:[#allocation3 + $0xf8] sm:$0xff]  ;;  %v7885_v41 = vld [vmem:[#allocation3 + $0xd0] sm:$0xff] }
 0x446   : > { %v6001_v6 = vadd.f32 %v5937_v52, %v5823_v7  ;;  %5352 = vst.msk [vmem:[#allocation3 + $0x100] sm:$0xff] %vm816_vm1, %v5288_v50  ;;  %9447 = vmatmul.msk.bf16.gmra.mxu1 %vm816_vm1, %v4888_v13  ;;  %v7363_v37 = vsel %vm2362_vm3, %v7360_v40, %v7362_v43  ;;  %v7364_v7 = vrot.slane %v12966_v0, 1  ;;  %v12982_v50 = vld [vmem:[#allocation2 + $0xe8] sm:$0xff]  ;;  %v7953_v52 = vadd.f32 %v12671_v45, %v7885_v41  ;;  %v501_v0 = vld [vmem:[%s10794_s15 + $0x14] sm:$0xf] }
 0x447   : > { %v6914_v44 = vld [vmem:[#allocation3 + $0xf0] sm:$0xff]  ;;  %9623 = vmatmul.msk.bf16.gmra.mxu2 %vm816_vm1, %v10231_v15  ;;  %v12984_v15 = vld [vmem:[#allocation2 + $0xf8] sm:$0xff]  ;;  %533 = vst.msk [vmem:[#allocation2 + $0x114] sm:$0xf] %vm431_vm0, %v501_v0  ;;  %v5233_v0 = vld [vmem:[#allocation3 + $0x148] sm:$0xff] }
 0x448   : > { %v6978_v22 = vadd.f32 %v6914_v44, %v6799_v35  ;;  %6065 = vst.msk [vmem:[#allocation3 + $0xf8] sm:$0xff] %vm816_vm1, %v6001_v6 }
 0x449   : > { %9799 = vmatmul.msk.bf16.gmra.mxu3 %vm816_vm1, %v6538_v20  ;;  %v5826_v9 = vpop.f32.mrf.mxu2 }
 0x44a   : > { %7042 = vst.msk [vmem:[#allocation3 + $0xf0] sm:$0xff] %vm816_vm1, %v6978_v22  ;;  %v7696_v17 = vld [vmem:[#allocation3 + $0xe8] sm:$0xff]  ;;  %v12936_v16 = vpop.f32.mrf.mxu0 }
 0x44b   : > { %v7760_v10 = vadd.f32 %v7696_v17, %v12874_v46  ;;  %v5114_v30 = vpop.f32.mrf.mxu1 }
 0x44c   : > { %v7887_v21 = vld [vmem:[#allocation3 + $0xe0] sm:$0xff]  ;;  %v5289_v5 = vadd.f32 %v5225_v3, %v5114_v30  ;;  %v6804_v27 = vpop.f32.mrf.mxu3  ;;  %9975 = vmatmul.msk.bf16.gmra.mxu0 %vm816_vm1, %v7363_v37  ;;  %v4891_v30 = vrot.slane %v12982_v50, 1  ;;  %v6547_v3 = vshrl.u32 %v12932_v38, 16 }
 0x44d   : > { %v7955_v2 = vadd.f32 %v12671_v45, %v7887_v21  ;;  %7824 = vst.msk [vmem:[#allocation3 + $0xe8] sm:$0xff] %vm816_vm1, %v7760_v10  ;;  %v5938_v28 = vld [vmem:[#allocation3 + $0x100] sm:$0xff]  ;;  %v6551_v21 = vshll.u32 %v12984_v15, 16 }
 0x44e   : > { %v6002_v29 = vadd.f32 %v5938_v28, %v5826_v9  ;;  %5353 = vst.msk [vmem:[#allocation3 + $0x108] sm:$0xff] %vm816_vm1, %v5289_v5  ;;  %v13074_v50 = vld [vmem:[#allocation2 + $0x100] sm:$0xff] }
 0x44f   : > { %v8005_v46 = vpack.c.bf16 %v7955_v2, %v7955_v2  ;;  %v8067_v12 = vmax.f32 %v12850_v55, %v7955_v2  ;;  %v6915_v49 = vld [vmem:[#allocation3 + $0xf8] sm:$0xff]  ;;  %v13011_v31 = vrot.slane %v6551_v21, 1 }
 0x450   : > { %v6979_v19 = vadd.f32 %v6915_v49, %v6801_v59  ;;  %6066 = vst.msk [vmem:[#allocation3 + $0x100] sm:$0xff] %vm816_vm1, %v6002_v29  ;;  %v7886_v2 = vld [vmem:[#allocation3 + $0xd8] sm:$0xff]  ;;  %v6549_v49 = vor.u32 %v6547_v3, %v12960_v42  ;;  %v5230_v3 = vld [vmem:[#allocation3 + $0x130] sm:$0xff] }
 0x451   : > { %8037 = vst.msk [vmem:[%s12265_s17 + $0x38] sm:$0xf] %vm431_vm0, %v8005_v46  ;;  %v7697_v34 = vld [vmem:[#allocation3 + $0xf0] sm:$0xff]  ;;  %v5828_v55 = vpop.f32.mrf.mxu2  ;;  %v5228_v46 = vld [vmem:[#allocation3 + $0x120] sm:$0xff] }
 0x452   : > { %8099 = vst.msk [vmem:[#allocation3 + $0x60] sm:$0xff] %vm816_vm1, %v8067_v12  ;;  %v7761_v40 = vadd.f32 %v7697_v34, %v12896_v54  ;;  %v12964_v57 = vpop.f32.mrf.mxu0  ;;  %v4892_v12 = vsel %vm2362_vm3, %v4889_v39, %v4891_v30  ;;  %v10233_v34 = vld [vmem:[#allocation2 + $0xf0] sm:$0xff] }
 0x453   : > { %7043 = vst.msk [vmem:[#allocation3 + $0xf8] sm:$0xff] %vm816_vm1, %v6979_v19  ;;  %v5117_v25 = vpop.f32.mrf.mxu1 }
 0x454   : > { %v7888_v26 = vld [vmem:[#allocation3 + $0xe8] sm:$0xff]  ;;  %7825 = vst.msk [vmem:[#allocation3 + $0xf0] sm:$0xff] %vm816_vm1, %v7761_v40  ;;  %v5290_v56 = vadd.f32 %v5226_v53, %v5117_v25  ;;  %v6806_v58 = vpop.f32.mrf.mxu3 }
 0x455   : > { %v7956_v35 = vadd.f32 %v12671_v45, %v7888_v26  ;;  %v5939_v54 = vld [vmem:[#allocation3 + $0x108] sm:$0xff]  ;;  %v6554_v26 = vsel %vm1383_vm2, %v6549_v49, %v13011_v31 }
 0x456   : > { %v6003_v62 = vadd.f32 %v5939_v54, %v5828_v55  ;;  %5354 = vst.msk [vmem:[#allocation3 + $0x110] sm:$0xff] %vm816_vm1, %v5290_v56  ;;  %9448 = vmatmul.msk.bf16.gmra.mxu1 %vm816_vm1, %v4890_v48  ;;  %v7954_v55 = vadd.f32 %v12671_v45, %v7886_v2  ;;  %v7366_v54 = vrot.slane %v13018_v18, 1 }
 0x457   : > { %v8006_v33 = vpack.c.bf16 %v7956_v35, %v7956_v35  ;;  %v8068_v24 = vmax.f32 %v12871_v23, %v7956_v35  ;;  %v6916_v4 = vld [vmem:[#allocation3 + $0x100] sm:$0xff]  ;;  %9624 = vmatmul.msk.bf16.gmra.mxu2 %vm816_vm1, %v10232_v63 }
 0x458   : > { %v6980_v8 = vadd.f32 %v6916_v4, %v6804_v27  ;;  %6067 = vst.msk [vmem:[#allocation3 + $0x108] sm:$0xff] %vm816_vm1, %v6003_v62  ;;  %v13033_v4 = vld [vmem:[#allocation2 + $0xf0] sm:$0xff] }
 0x459   : > { %8038 = vst.msk [vmem:[%s12265_s17 + $0x3c] sm:$0xf] %vm431_vm0, %v8006_v33  ;;  %9800 = vmatmul.msk.bf16.gmra.mxu3 %vm816_vm1, %v6546_v61  ;;  %v5831_v60 = vpop.f32.mrf.mxu2  ;;  %v13035_v61 = vld [vmem:[#allocation2 + $0x100] sm:$0xff] }
 0x45a   : > { %8100 = vst.msk [vmem:[#allocation3 + $0x68] sm:$0xff] %vm816_vm1, %v8068_v24  ;;  %v7698_v51 = vld [vmem:[#allocation3 + $0xf8] sm:$0xff]  ;;  %v12989_v22 = vpop.f32.mrf.mxu0  ;;  %v5229_v24 = vld [vmem:[#allocation3 + $0x128] sm:$0xff] }
 0x45b   : > { %v7889_v23 = vld [vmem:[#allocation3 + $0xf0] sm:$0xff]  ;;  %7044 = vst.msk [vmem:[#allocation3 + $0x100] sm:$0xff] %vm816_vm1, %v6980_v8  ;;  %v7762_v13 = vadd.f32 %v7698_v51, %v12917_v14  ;;  %v5119_v36 = vpop.f32.mrf.mxu1  ;;  %v7365_v14 = vsel %vm2362_vm3, %v7362_v43, %v7364_v7 }
 0x45c   : > { %v7957_v59 = vadd.f32 %v12671_v45, %v7889_v23  ;;  %v5291_v6 = vadd.f32 %v5227_v1, %v5119_v36  ;;  %v6809_v20 = vpop.f32.mrf.mxu3  ;;  %9976 = vmatmul.msk.bf16.gmra.mxu0 %vm816_vm1, %v7365_v14 }
 0x45d   : > { %7826 = vst.msk [vmem:[#allocation3 + $0xf8] sm:$0xff] %vm816_vm1, %v7762_v13  ;;  %v5940_v44 = vld [vmem:[#allocation3 + $0x110] sm:$0xff]  ;;  %v7367_v13 = vsel %vm2362_vm3, %v7364_v7, %v7366_v54 }
 0x45e   : > { %v8069_v17 = vmax.f32 %v7953_v52, %v7957_v59  ;;  %v6004_v10 = vadd.f32 %v5940_v44, %v5831_v60  ;;  %5355 = vst.msk [vmem:[#allocation3 + $0x118] sm:$0xff] %vm816_vm1, %v5291_v6  ;;  %v4893_v59 = vrot.slane %v13033_v4, 1  ;;  %v6555_v6 = vshrl.u32 %v12984_v15, 16 }
 0x45f   : > { %v6917_v9 = vld [vmem:[#allocation3 + $0x108] sm:$0xff]  ;;  %v6559_v44 = vshll.u32 %v13035_v61, 16 }
 0x460   : > { %8101 = vst.msk [vmem:[#allocation3 + $0x70] sm:$0xff] %vm816_vm1, %v8069_v17  ;;  %v6981_v5 = vadd.f32 %v6917_v9, %v6806_v58  ;;  %v4894_v15 = vsel %vm2362_vm3, %v4891_v30, %v4893_v59  ;;  %v6557_v21 = vor.u32 %v6555_v6, %v13011_v31 }
 0x461   : > { %6068 = vst.msk [vmem:[#allocation3 + $0x110] sm:$0xff] %vm816_vm1, %v6004_v10  ;;  %v8125_v11 = vld [vmem:[#allocation3 + $0x60] ss:$2 sm:$0xff]  ;;  %v8141_v43 = vld [vmem:[#allocation3 + $0x61] ss:$2 sm:$0xff]  ;;  %v5833_v29 = vpop.f32.mrf.mxu2 }
 0x462   : > { %7045 = vst.msk [vmem:[#allocation3 + $0x108] sm:$0xff] %vm816_vm1, %v6981_v5  ;;  %v7699_v28 = vld [vmem:[#allocation3 + $0x100] sm:$0xff]  ;;  %v8153_v27 = vmax.f32 %v8125_v11, %v8141_v43  ;;  %v13016_v48 = vpop.f32.mrf.mxu0  ;;  %v6561_v5 = vrot.slane %v6559_v44, 1 }
 0x463   : > { %v7763_v37 = vadd.f32 %v7699_v28, %v12936_v16  ;;  %v5122_v38 = vpop.f32.mrf.mxu1 }
 0x464   : > { %v7890_v32 = vld [vmem:[#allocation3 + $0xf8] sm:$0xff]  ;;  %v5292_v19 = vadd.f32 %v5228_v46, %v5122_v38  ;;  %v8161_v40 = vmax.f32 %v8153_v27, 0.0  ;;  %v6811_v53 = vpop.f32.mrf.mxu3 }
 0x465   : > { %v7958_v16 = vadd.f32 %v12671_v45, %v7890_v32  ;;  %7827 = vst.msk [vmem:[#allocation3 + $0x100] sm:$0xff] %vm816_vm1, %v7763_v37  ;;  %v5941_v25 = vld [vmem:[#allocation3 + $0x118] sm:$0xff] }
 0x466   : > { %v6005_v39 = vadd.f32 %v5941_v25, %v5833_v29  ;;  %5356 = vst.msk [vmem:[#allocation3 + $0x120] sm:$0xff] %vm816_vm1, %v5292_v19  ;;  %9449 = vmatmul.msk.bf16.gmra.mxu1 %vm816_vm1, %v4892_v12  ;;  %v8169_v47 = vpack.c.bf16 %v8161_v40, %v8161_v40  ;;  %v6562_v29 = vsel %vm1383_vm2, %v6557_v21, %v6561_v5  ;;  %v7368_v12 = vrot.slane %v13074_v50, 1  ;;  %v5231_v19 = vld [vmem:[#allocation3 + $0x138] sm:$0xff]  ;;  %v13091_v40 = vld [vmem:[#allocation2 + $0x108] sm:$0xff] }
 0x467   : > { %v8070_v42 = vmax.f32 %v7954_v55, %v7958_v16  ;;  %9625 = vmatmul.msk.bf16.gmra.mxu2 %vm816_vm1, %v10233_v34  ;;  %v13089_v34 = vld [vmem:[#allocation2 + $0xf8] sm:$0xff] }
 0x468   : > { %v6918_v56 = vld [vmem:[#allocation3 + $0x110] sm:$0xff]  ;;  %6069 = vst.msk [vmem:[#allocation3 + $0x118] sm:$0xff] %vm816_vm1, %v6005_v39 }
 0x469   : > { %8102 = vst.msk [vmem:[#allocation3 + $0x78] sm:$0xff] %vm816_vm1, %v8070_v42  ;;  %v6982_v63 = vadd.f32 %v6918_v56, %v6809_v20  ;;  %v7700_v35 = vld [vmem:[#allocation3 + $0x108] sm:$0xff]  ;;  %9801 = vmatmul.msk.bf16.gmra.mxu3 %vm816_vm1, %v6554_v26  ;;  %v6563_v42 = vshrl.u32 %v13035_v61, 16  ;;  %v6567_v26 = vshll.u32 %v13091_v40, 16 }
 0x46a   : > { %v7764_v58 = vadd.f32 %v7700_v35, %v12964_v57  ;;  %8177 = vst.msk [vmem:[%s12439_s29 + $0xc] sm:$0xf] %vm431_vm0, %v8169_v47  ;;  %v5836_v62 = vpop.f32.mrf.mxu2  ;;  %v13041_v23 = vpop.f32.mrf.mxu0  ;;  %v4895_v47 = vrot.slane %v13089_v34, 1  ;;  %v503_v35 = vld [vmem:[%s10794_s15 + $0x1c] sm:$0xf] }
 0x46b   : > { %7046 = vst.msk [vmem:[#allocation3 + $0x110] sm:$0xff] %vm816_vm1, %v6982_v63  ;;  %v5124_v33 = vpop.f32.mrf.mxu1  ;;  %v502_v63 = vld [vmem:[%s10794_s15 + $0x18] sm:$0xf] }
 0x46c   : > { %v7891_v8 = vld [vmem:[#allocation3 + $0x100] sm:$0xff]  ;;  %7828 = vst.msk [vmem:[#allocation3 + $0x108] sm:$0xff] %vm816_vm1, %v7764_v58  ;;  %v5293_v41 = vadd.f32 %v5229_v24, %v5124_v33  ;;  %v6814_v1 = vpop.f32.mrf.mxu3  ;;  %9977 = vmatmul.msk.bf16.gmra.mxu0 %vm816_vm1, %v7367_v13  ;;  %v4896_v61 = vsel %vm2362_vm3, %v4893_v59, %v4895_v47 }
 0x46d   : > { %v13039_v57 = vadd.f32 %v12671_v45, %v7891_v8  ;;  %v5942_v51 = vld [vmem:[#allocation3 + $0x120] sm:$0xff]  ;;  %534 = vst.msk [vmem:[#allocation2 + $0x118] sm:$0xf] %vm431_vm0, %v502_v63  ;;  %v6565_v8 = vor.u32 %v6563_v42, %v6561_v5  ;;  %v13175_v63 = vld [vmem:[#allocation2 + $0x110] sm:$0xff] }
 0x46e   : > { %v6006_v60 = vadd.f32 %v5942_v51, %v5836_v62  ;;  %5357 = vst.msk [vmem:[#allocation3 + $0x128] sm:$0xff] %vm816_vm1, %v5293_v41  ;;  %v5232_v24 = vld [vmem:[#allocation3 + $0x140] sm:$0xff]  ;;  %v6569_v41 = vrot.slane %v6567_v26, 1 }
 0x46f   : > { %v8007_v36 = vpack.c.bf16 %v13039_v57, %v13039_v57  ;;  %v6919_v52 = vld [vmem:[#allocation3 + $0x118] sm:$0xff]  ;;  %535 = vst.msk [vmem:[#allocation2 + $0x11c] sm:$0xf] %vm431_vm0, %v503_v35 }
 0x470   : > { %v6983_v20 = vadd.f32 %v6919_v52, %v6811_v53  ;;  %6070 = vst.msk [vmem:[#allocation3 + $0x120] sm:$0xff] %vm816_vm1, %v6006_v60  ;;  %v6570_v59 = vsel %vm1383_vm2, %v6565_v8, %v6569_v41 }
 0x471   : > { %8039 = vst.msk [vmem:[%s12265_s17 + $0x40] sm:$0xf] %vm431_vm0, %v8007_v36  ;;  %v13121_v36 = vld [vmem:[#allocation2 + $0x108] sm:$0xff] }
 0x472   : > { %7047 = vst.msk [vmem:[#allocation3 + $0x118] sm:$0xff] %vm816_vm1, %v6983_v20  ;;  %v7701_v7 = vld [vmem:[#allocation3 + $0x110] sm:$0xff]  ;;  %v5838_v10 = vpop.f32.mrf.mxu2  ;;  %v13072_v27 = vpop.f32.mrf.mxu0  ;;  %v7370_v44 = vrot.slane %v13121_v36, 1 }
 0x473   : > { %v7892_v14 = vld [vmem:[#allocation3 + $0x108] sm:$0xff]  ;;  %v7765_v17 = vadd.f32 %v7701_v7, %v12989_v22  ;;  %v5127_v9 = vpop.f32.mrf.mxu1  ;;  %v10234_v22 = vld [vmem:[#allocation2 + $0xf8] sm:$0xff] }
 0x474   : > { %v13069_v11 = vadd.f32 %v12671_v45, %v7892_v14  ;;  %v5294_v43 = vadd.f32 %v5230_v3, %v5127_v9  ;;  %v6816_v28 = vpop.f32.mrf.mxu3  ;;  %v13132_v9 = vld [vmem:[#allocation2 + $0x100] sm:$0xff]  ;;  %v13134_v3 = vld [vmem:[#allocation2 + $0x110] sm:$0xff] }
 0x475   : > { %7829 = vst.msk [vmem:[#allocation3 + $0x110] sm:$0xff] %vm816_vm1, %v7765_v17  ;;  %v5943_v2 = vld [vmem:[#allocation3 + $0x128] sm:$0xff] }
 0x476   : > { %v8008_v30 = vpack.c.bf16 %v13069_v11, %v13069_v11  ;;  %v6007_v37 = vadd.f32 %v5943_v2, %v5838_v10  ;;  %5358 = vst.msk [vmem:[#allocation3 + $0x130] sm:$0xff] %vm816_vm1, %v5294_v43  ;;  %9450 = vmatmul.msk.bf16.gmra.mxu1 %vm816_vm1, %v4894_v15  ;;  %v13139_v15 = vld [vmem:[%s13512_s3] ss:$0 sm:$0xff] }
 0x477   : > { %v6920_v45 = vld [vmem:[#allocation3 + $0x120] sm:$0xff]  ;;  %9626 = vmatmul.msk.bf16.gmra.mxu2 %vm816_vm1, %v10234_v22 }
 0x478   : > { %8040 = vst.msk [vmem:[%s12265_s17 + $0x44] sm:$0xf] %vm431_vm0, %v8008_v30  ;;  %v6984_v38 = vadd.f32 %v6920_v45, %v6814_v1  ;;  %v10235_v1 = vld [vmem:[#allocation2 + $0x100] sm:$0xff] }
 0x479   : > { %6071 = vst.msk [vmem:[#allocation3 + $0x128] sm:$0xff] %vm816_vm1, %v6007_v37  ;;  %v7702_v46 = vld [vmem:[#allocation3 + $0x118] sm:$0xff]  ;;  %9802 = vmatmul.msk.bf16.gmra.mxu3 %vm816_vm1, %v6562_v29 }
 0x47a   : > { %7048 = vst.msk [vmem:[#allocation3 + $0x120] sm:$0xff] %vm816_vm1, %v6984_v38  ;;  %v7766_v49 = vadd.f32 %v7702_v46, %v13016_v48  ;;  %v5841_v31 = vpop.f32.mrf.mxu2  ;;  %v13094_v53 = vpop.f32.mrf.mxu0  ;;  %v7369_v48 = vsel %vm2362_vm3, %v7366_v54, %v7368_v12  ;;  %v4897_v38 = vrot.slane %v13132_v9, 1  ;;  %v6571_v46 = vshrl.u32 %v13091_v40, 16 }
 0x47b   : > { %v5129_v32 = vpop.f32.mrf.mxu1 }
 0x47c   : > { %7830 = vst.msk [vmem:[#allocation3 + $0x118] sm:$0xff] %vm816_vm1, %v7766_v49  ;;  %v5295_v55 = vadd.f32 %v5231_v19, %v5129_v32  ;;  %v6819_v25 = vpop.f32.mrf.mxu3  ;;  %9978 = vmatmul.msk.bf16.gmra.mxu0 %vm816_vm1, %v7369_v48  ;;  %v6575_v49 = vshll.u32 %v13134_v3, 16  ;;  %v5234_v19 = vld [vmem:[#allocation3 + $0x150] sm:$0xff]  ;;  %v4898_v40 = vsel %vm2362_vm3, %v4895_v47, %v4897_v38 }
 0x47d   : > { %v5944_v16 = vld [vmem:[#allocation3 + $0x130] sm:$0xff] }
 0x47e   : > { %v6008_v39 = vadd.f32 %v5944_v16, %v5841_v31  ;;  %5359 = vst.msk [vmem:[#allocation3 + $0x138] sm:$0xff] %vm816_vm1, %v5295_v55  ;;  %v6573_v55 = vor.u32 %v6571_v46, %v6569_v41  ;;  %v13169_v16 = vrot.slane %v6575_v49, 1 }
 0x480   : > { %v6921_v56 = vld [vmem:[#allocation3 + $0x128] sm:$0xff]  ;;  %6072 = vst.msk [vmem:[#allocation3 + $0x130] sm:$0xff] %vm816_vm1, %v6008_v39 }
 0x481   : > { %v6985_v58 = vadd.f32 %v6921_v56, %v6816_v28  ;;  %v7703_v18 = vld [vmem:[#allocation3 + $0x120] sm:$0xff]  ;;  %v7371_v28 = vsel %vm2362_vm3, %v7368_v12, %v7370_v44 }
 0x482   : > { %v7767_v54 = vadd.f32 %v7703_v18, %v13041_v23  ;;  %v5843_v62 = vpop.f32.mrf.mxu2  ;;  %v13119_v60 = vpop.f32.mrf.mxu0  ;;  %v7893_v18 = vld [vmem:[#allocation3 + $0x110] sm:$0xff] }
 0x483   : > { %7049 = vst.msk [vmem:[#allocation3 + $0x128] sm:$0xff] %vm816_vm1, %v6985_v58  ;;  %v5132_v33 = vpop.f32.mrf.mxu1  ;;  %v6578_v58 = vsel %vm1383_vm2, %v6573_v55, %v13169_v16 }
 0x484   : > { %7831 = vst.msk [vmem:[#allocation3 + $0x120] sm:$0xff] %vm816_vm1, %v7767_v54  ;;  %v5296_v51 = vadd.f32 %v5232_v24, %v5132_v33  ;;  %v6821_v13 = vpop.f32.mrf.mxu3 }
 0x485   : > { %v5945_v23 = vld [vmem:[#allocation3 + $0x138] sm:$0xff] }
 0x486   : > { %v6009_v52 = vadd.f32 %v5945_v23, %v5843_v62  ;;  %5360 = vst.msk [vmem:[#allocation3 + $0x140] sm:$0xff] %vm816_vm1, %v5296_v51  ;;  %9451 = vmatmul.msk.bf16.gmra.mxu1 %vm816_vm1, %v4896_v61  ;;  %v7372_v62 = vrot.slane %v13175_v63, 1  ;;  %v5235_v61 = vld [vmem:[#allocation3 + $0x158] sm:$0xff] }
 0x487   : > { %v6922_v4 = vld [vmem:[#allocation3 + $0x130] sm:$0xff]  ;;  %9627 = vmatmul.msk.bf16.gmra.mxu2 %vm816_vm1, %v10235_v1  ;;  %v13190_v1 = vld [vmem:[#allocation2 + $0x108] sm:$0xff]  ;;  %v13192_v23 = vld [vmem:[#allocation2 + $0x118] sm:$0xff] }
 0x488   : > { %v6986_v6 = vadd.f32 %v6922_v4, %v6819_v25  ;;  %6073 = vst.msk [vmem:[#allocation3 + $0x138] sm:$0xff] %vm816_vm1, %v6009_v52 }
 0x489   : > { %9803 = vmatmul.msk.bf16.gmra.mxu3 %vm816_vm1, %v6570_v59 }
 0x48a   : > { %7050 = vst.msk [vmem:[#allocation3 + $0x130] sm:$0xff] %vm816_vm1, %v6986_v6  ;;  %v7704_v20 = vld [vmem:[#allocation3 + $0x128] sm:$0xff]  ;;  %v5846_v17 = vpop.f32.mrf.mxu2  ;;  %v13143_v2 = vpop.f32.mrf.mxu0 }
 0x48b   : > { %v7895_v7 = vld [vmem:[#allocation3 + $0x120] sm:$0xff]  ;;  %v7768_v14 = vadd.f32 %v7704_v20, %v13072_v27  ;;  %v5134_v10 = vpop.f32.mrf.mxu1  ;;  %v7373_v20 = vsel %vm2362_vm3, %v7370_v44, %v7372_v62 }
 0x48c   : > { %v7963_v21 = vadd.f32 %v13139_v15, %v7895_v7  ;;  %v5297_v5 = vadd.f32 %v5233_v0, %v5134_v10  ;;  %v6824_v22 = vpop.f32.mrf.mxu3  ;;  %v504_v27 = vld [vmem:[%s10794_s15 + $0x20] sm:$0xf]  ;;  %9979 = vmatmul.msk.bf16.gmra.mxu0 %vm816_vm1, %v7371_v28  ;;  %v6579_v10 = vshrl.u32 %v13134_v3, 16  ;;  %s10527_s15 = scalar_lea.hbm %s10526_s11, 128 }
 0x48d   : > { %7832 = vst.msk [vmem:[#allocation3 + $0x128] sm:$0xff] %vm816_vm1, %v7768_v14  ;;  %v5946_v43 = vld [vmem:[#allocation3 + $0x140] sm:$0xff]  ;;  %p10528_p1 = scmp.ne.s32.totalorder %s10526_s11, %s10527_s15  ;;  %p10533_p12 = scmp.lt.s32.totalorder %s10531_s25, %s10527_s15 }
 0x48e   : > { %v8009_v30 = vpack.c.bf16 %v7963_v21, %v7963_v21  ;;  %v8071_v37 = vmax.f32 %v13039_v57, %v7963_v21  ;;  %5361 = vst.msk [vmem:[#allocation3 + $0x148] sm:$0xff] %vm816_vm1, %v5297_v5  ;;  %v6010_v29 = vadd.f32 %v5946_v43, %v5846_v17  ;;  %v4899_v17 = vrot.slane %v13190_v1, 1  ;;  %v7894_v43 = vld [vmem:[#allocation3 + $0x118] sm:$0xff] }
 0x48f   : > { %v6923_v45 = vld [vmem:[#allocation3 + $0x138] sm:$0xff]  ;;  %536 = vst.msk [vmem:[#allocation2 + $0x120] sm:$0xf] %vm431_vm0, %v504_v27  ;;  %v6583_v21 = vshll.u32 %v13192_v23, 16  ;;  %v7962_v49 = vadd.f32 %v13139_v15, %v7894_v43  ;;  %p10529_p2 = pnand %p10528_p1, %p10744_p5  ;;  %p10534_p13 = por %p10533_p12, %p10532_p8 }
 0x490   : > { %8041 = vst.msk [vmem:[%s12265_s17 + $0x48] sm:$0xf] %vm431_vm0, %v8009_v30  ;;  %v6987_v50 = vadd.f32 %v6923_v45, %v6821_v13  ;;  %v7961_v13 = vadd.f32 %v13139_v15, %v7893_v18  ;;  %v4900_v3 = vsel %vm2362_vm3, %v4897_v38, %v4899_v17  ;;  %v10237_v45 = vld [vmem:[#allocation2 + $0x110] sm:$0xff]  ;;  %v13226_v38 = vld [vmem:[#allocation2 + $0x118] sm:$0xff] }
 0x491   : > { %8103 = vst.msk [vmem:[#allocation3 + $0x80] sm:$0xff] %vm816_vm1, %v8071_v37  ;;  %v7705_v57 = vld [vmem:[#allocation3 + $0x130] sm:$0xff]  ;;  %v5236_v37 = vld [vmem:[#allocation3 + $0x160] sm:$0xff]  ;;  %v13219_v46 = vrot.slane %v6583_v21, 1  ;;  %p10530_p4 = pneg %p10529_p2 }
 0x492   : > { %7051 = vst.msk [vmem:[#allocation3 + $0x138] sm:$0xff] %vm816_vm1, %v6987_v50  ;;  %v7769_v12 = vadd.f32 %v7705_v57, %v13094_v53  ;;  %v5848_v31 = vpop.f32.mrf.mxu2  ;;  %v10236_v53 = vld [vmem:[#allocation2 + $0x108] sm:$0xff]  ;;  %v13173_v56 = vpop.f32.mrf.mxu0 }
 0x493   : > { %6074 = vst.msk [vmem:[#allocation3 + $0x140] sm:$0xff] %vm816_vm1, %v6010_v29  ;;  %v5137_v32 = vpop.f32.mrf.mxu1  ;;  %v6581_v29 = vor.u32 %v6579_v10, %v13169_v16  ;;  %p10535_p0 = pnand %p10534_p13, %p10530_p4 }
 0x494   : > { %v7896_v25 = vld [vmem:[#allocation3 + $0x128] sm:$0xff]  ;;  %7833 = vst.msk [vmem:[#allocation3 + $0x130] sm:$0xff] %vm816_vm1, %v7769_v12  ;;  %v5298_v48 = vadd.f32 %v5234_v19, %v5137_v32  ;;  %v6826_v26 = vpop.f32.mrf.mxu3 }
 0x495   : > { %v7964_v39 = vadd.f32 %v13139_v15, %v7896_v25  ;;  %v5947_v42 = vld [vmem:[#allocation3 + $0x148] sm:$0xff] }
 0x496   : > { %v6011_v34 = vadd.f32 %v5947_v42, %v5848_v31  ;;  %5362 = vst.msk [vmem:[#allocation3 + $0x150] sm:$0xff] %vm816_vm1, %v5298_v48  ;;  %9452 = vmatmul.msk.bf16.gmra.mxu1 %vm816_vm1, %v4898_v40  ;;  %v4665_v31 = vld [vmem:[#allocation2 + $0x110] sm:$0x1]  ;;  %v6162_v32 = vld [vmem:[#allocation2 + $0x120] sm:$0x1] }
 0x497   : > { %v8010_v47 = vpack.c.bf16 %v7964_v39, %v7964_v39  ;;  %v8072_v35 = vmax.f32 %v13069_v11, %v7964_v39  ;;  %9628 = vmatmul.msk.bf16.gmra.mxu2 %vm816_vm1, %v10236_v53  ;;  %v6586_v39 = vsel %vm1383_vm2, %v6581_v29, %v13219_v46  ;;  %v6301_v42 = vunpack.c.l.b16 %v6162_v32 }
 0x498   : > { %6075 = vst.msk [vmem:[#allocation3 + $0x148] sm:$0xff] %vm816_vm1, %v6011_v34 }
 0x499   : > { %8042 = vst.msk [vmem:[%s12265_s17 + $0x4c] sm:$0xf] %vm431_vm0, %v8010_v47  ;;  %v7706_v54 = vld [vmem:[#allocation3 + $0x138] sm:$0xff]  ;;  %9804 = vmatmul.msk.bf16.gmra.mxu3 %vm816_vm1, %v6578_v58 }
 0x49a   : > { %8104 = vst.msk [vmem:[#allocation3 + $0x88] sm:$0xff] %vm816_vm1, %v8072_v35  ;;  %v6924_v33 = vld [vmem:[#allocation3 + $0x140] sm:$0xff]  ;;  %v7770_v24 = vadd.f32 %v7706_v54, %v13119_v60  ;;  %v5851_v41 = vpop.f32.mrf.mxu2  ;;  %v13198_v6 = vpop.f32.mrf.mxu0  ;;  %v7374_v35 = vrot.slane %v13226_v38, 1 }
 0x49b   : > { %v7897_v11 = vld [vmem:[#allocation3 + $0x130] sm:$0xff]  ;;  %v6988_v8 = vadd.f32 %v6924_v33, %v6824_v22  ;;  %v5139_v51 = vpop.f32.mrf.mxu1  ;;  %v5237_v33 = vld [vmem:[#allocation3 + $0x168] sm:$0xff] }
 0x49c   : > { %v7965_v52 = vadd.f32 %v13139_v15, %v7897_v11  ;;  %7834 = vst.msk [vmem:[#allocation3 + $0x138] sm:$0xff] %vm816_vm1, %v7770_v24  ;;  %v5299_v4 = vadd.f32 %v5235_v61, %v5139_v51  ;;  %v6829_v59 = vpop.f32.mrf.mxu3  ;;  %9980 = vmatmul.msk.bf16.gmra.mxu0 %vm816_vm1, %v7373_v20  ;;  %v6334_v61 = vpack.c.b16 %v6301_v42, %v6301_v42  ;;  %v6587_v20 = vshrl.u32 %v13192_v23, 16  ;;  %v5238_v23 = vld [vmem:[#allocation3 + $0x170] sm:$0xff] }
 0x49d   : > { %7052 = vst.msk [vmem:[#allocation3 + $0x140] sm:$0xff] %vm816_vm1, %v6988_v8  ;;  %v5948_v60 = vld [vmem:[#allocation3 + $0x150] sm:$0xff] }
 0x49e   : > { %v8073_v0 = vmax.f32 %v7961_v13, %v7965_v52  ;;  %v6012_v7 = vadd.f32 %v5948_v60, %v5851_v41  ;;  %5363 = vst.msk [vmem:[#allocation3 + $0x158] sm:$0xff] %vm816_vm1, %v5299_v4  ;;  %v7140_v4 = vld [vmem:[#allocation2 + $0x120] sm:$0x1] }
 0x49f   : > { %v6925_v14 = vld [vmem:[#allocation3 + $0x148] sm:$0xff] }
 0x4a0   : > { %8105 = vst.msk [vmem:[#allocation3 + $0x90] sm:$0xff] %vm816_vm1, %v8073_v0  ;;  %v6989_v5 = vadd.f32 %v6925_v14, %v6826_v26  ;;  %v6591_v0 = vshll.u32 %v6334_v61, 16  ;;  %v7279_v14 = vunpack.c.l.b16 %v7140_v4 }
 0x4a1   : > { %6076 = vst.msk [vmem:[#allocation3 + $0x150] sm:$0xff] %vm816_vm1, %v6012_v7  ;;  %v8127_v36 = vld [vmem:[#allocation3 + $0x80] ss:$2 sm:$0xff]  ;;  %v8143_v44 = vld [vmem:[#allocation3 + $0x81] ss:$2 sm:$0xff] }
 0x4a2   : > { %7053 = vst.msk [vmem:[#allocation3 + $0x148] sm:$0xff] %vm816_vm1, %v6989_v5  ;;  %v8154_v22 = vmax.f32 %v8127_v36, %v8143_v44  ;;  %v5853_v27 = vpop.f32.mrf.mxu2  ;;  %v13224_v25 = vpop.f32.mrf.mxu0  ;;  %v7312_v29 = vpack.c.b16 %v7279_v14, %v7279_v14 }
 0x4a3   : > { %v7898_v28 = vld [vmem:[#allocation3 + $0x138] sm:$0xff]  ;;  %v5142_v30 = vpop.f32.mrf.mxu1 }
 0x4a4   : > { %v7966_v50 = vadd.f32 %v13139_v15, %v7898_v28  ;;  %v7707_v57 = vld [vmem:[#allocation3 + $0x140] sm:$0xff]  ;;  %v5300_v12 = vadd.f32 %v5236_v37, %v5142_v30  ;;  %v8162_v19 = vmax.f32 %v8154_v22, 0.0  ;;  %v6831_v9 = vpop.f32.mrf.mxu3  ;;  %v6589_v22 = vor.u32 %v6587_v20, %v13219_v46  ;;  %v10238_v37 = vld [vmem:[#allocation2 + $0x118] sm:$0xff] }
 0x4a5   : > { %v7771_v40 = vadd.f32 %v7707_v57, %v13143_v2  ;;  %v5949_v55 = vld [vmem:[#allocation3 + $0x158] sm:$0xff]  ;;  %v4804_v2 = vunpack.c.l.b16 %v4665_v31  ;;  %v6593_v28 = vrot.slane %v6591_v0, 1  ;;  %v7376_v57 = vrot.slane %v7312_v29, 1 }
 0x4a6   : > { %v8074_v16 = vmax.f32 %v7962_v49, %v7966_v50  ;;  %v6013_v48 = vadd.f32 %v5949_v55, %v5853_v27  ;;  %5364 = vst.msk [vmem:[#allocation3 + $0x160] sm:$0xff] %vm816_vm1, %v5300_v12  ;;  %9453 = vmatmul.msk.bf16.gmra.mxu1 %vm816_vm1, %v4900_v3  ;;  %v8170_v53 = vpack.c.bf16 %v8162_v19, %v8162_v19  ;;  %v5239_v19 = vld [vmem:[#allocation3 + $0x178] sm:$0xff] }
 0x4a7   : > { %7835 = vst.msk [vmem:[#allocation3 + $0x140] sm:$0xff] %vm816_vm1, %v7771_v40  ;;  %9629 = vmatmul.msk.bf16.gmra.mxu2 %vm816_vm1, %v10237_v45  ;;  %v4837_v24 = vpack.c.b16 %v4804_v2, %v4804_v2  ;;  %v6594_v49 = vsel %vm1383_vm2, %v6589_v22, %v6593_v28 }
 0x4a8   : > { %8106 = vst.msk [vmem:[#allocation3 + $0x98] sm:$0xff] %vm816_vm1, %v8074_v16  ;;  %v6926_v26 = vld [vmem:[#allocation3 + $0x150] sm:$0xff] }
 0x4a9   : > { %v6990_v34 = vadd.f32 %v6926_v26, %v6829_v59  ;;  %6077 = vst.msk [vmem:[#allocation3 + $0x158] sm:$0xff] %vm816_vm1, %v6013_v48  ;;  %v7708_v47 = vld [vmem:[#allocation3 + $0x148] sm:$0xff]  ;;  %9805 = vmatmul.msk.bf16.gmra.mxu3 %vm816_vm1, %v6586_v39  ;;  %v4901_v59 = vrot.slane %v4837_v24, 1 }
 0x4aa   : > { %v7772_v58 = vadd.f32 %v7708_v47, %v13173_v56  ;;  %8178 = vst.msk [vmem:[%s12439_s29 + $0x10] sm:$0xf] %vm431_vm0, %v8170_v53  ;;  %v5856_v18 = vpop.f32.mrf.mxu2  ;;  %v13243_v51 = vpop.f32.mrf.mxu0  ;;  %v7375_v56 = vsel %vm2362_vm3, %v7372_v62, %v7374_v35  ;;  %v7377_v53 = vsel %vm2362_vm3, %v7374_v35, %v7376_v57  ;;  %v5240_v47 = vld [vmem:[#allocation3 + $0x180] sm:$0xff] }
 0x4ab   : > { %7054 = vst.msk [vmem:[#allocation3 + $0x150] sm:$0xff] %vm816_vm1, %v6990_v34  ;;  %v5144_v54 = vpop.f32.mrf.mxu1  ;;  %v4902_v44 = vsel %vm2362_vm3, %v4899_v17, %v4901_v59 }
 0x4ac   : > { %7836 = vst.msk [vmem:[#allocation3 + $0x148] sm:$0xff] %vm816_vm1, %v7772_v58  ;;  %v5301_v11 = vadd.f32 %v5237_v33, %v5144_v54  ;;  %v6834_v41 = vpop.f32.mrf.mxu3  ;;  %9981 = vmatmul.msk.bf16.gmra.mxu0 %vm816_vm1, %v7375_v56 }
 0x4ad   : > { %v5950_v8 = vld [vmem:[#allocation3 + $0x160] sm:$0xff] }
 0x4ae   : > { %v7899_v13 = vld [vmem:[#allocation3 + $0x140] sm:$0xff]  ;;  %v6014_v52 = vadd.f32 %v5950_v8, %v5856_v18  ;;  %5365 = vst.msk [vmem:[#allocation3 + $0x168] sm:$0xff] %vm816_vm1, %v5301_v11 }
 0x4af   : > { %v13252_v60 = vadd.f32 %v13139_v15, %v7899_v13  ;;  %v5241_v13 = vld [vmem:[#allocation3 + $0x188] sm:$0xff] }
 0x4b0   : > { %v6927_v7 = vld [vmem:[#allocation3 + $0x158] sm:$0xff]  ;;  %6078 = vst.msk [vmem:[#allocation3 + $0x160] sm:$0xff] %vm816_vm1, %v6014_v52 }
 0x4b1   : > { %v8011_v63 = vpack.c.bf16 %v13252_v60, %v13252_v60  ;;  %v6991_v62 = vadd.f32 %v6927_v7, %v6831_v9 }
 0x4b2   : > { %v7709_v10 = vld [vmem:[#allocation3 + $0x150] sm:$0xff]  ;;  %v5858_v43 = vpop.f32.mrf.mxu2  ;;  %v7619_v45 = vpop.f32.mrf.mxu0 }
 0x4b3   : > { %8043 = vst.msk [vmem:[%s12265_s17 + $0x50] sm:$0xf] %vm431_vm0, %v8011_v63  ;;  %v7900_v21 = vld [vmem:[#allocation3 + $0x148] sm:$0xff]  ;;  %v7773_v5 = vadd.f32 %v7709_v10, %v13198_v6  ;;  %v5147_v36 = vpop.f32.mrf.mxu1 }
 0x4b4   : > { %v13267_v27 = vadd.f32 %v13139_v15, %v7900_v21  ;;  %7055 = vst.msk [vmem:[#allocation3 + $0x158] sm:$0xff] %vm816_vm1, %v6991_v62  ;;  %v5302_v30 = vadd.f32 %v5238_v23, %v5147_v36  ;;  %v6836_v3 = vpop.f32.mrf.mxu3  ;;  %v5242_v23 = vld [vmem:[#allocation3 + $0x190] sm:$0xff] }
 0x4b5   : > { %7837 = vst.msk [vmem:[#allocation3 + $0x150] sm:$0xff] %vm816_vm1, %v7773_v5  ;;  %v5951_v6 = vld [vmem:[#allocation3 + $0x168] sm:$0xff] }
 0x4b6   : > { %v8012_v1 = vpack.c.bf16 %v13267_v27, %v13267_v27  ;;  %v6015_v17 = vadd.f32 %v5951_v6, %v5858_v43  ;;  %5366 = vst.msk [vmem:[#allocation3 + $0x170] sm:$0xff] %vm816_vm1, %v5302_v30  ;;  %9454 = vmatmul.msk.bf16.gmra.mxu1 %vm816_vm1, %v4902_v44 }
 0x4b7   : > { %v6928_v46 = vld [vmem:[#allocation3 + $0x160] sm:$0xff]  ;;  %9630 = vmatmul.msk.bf16.gmra.mxu2 %vm816_vm1, %v10238_v37 }
 0x4b8   : > { %8044 = vst.msk [vmem:[%s12265_s17 + $0x54] sm:$0xf] %vm431_vm0, %v8012_v1  ;;  %v6992_v50 = vadd.f32 %v6928_v46, %v6834_v41 }
 0x4b9   : > { %6079 = vst.msk [vmem:[#allocation3 + $0x168] sm:$0xff] %vm816_vm1, %v6015_v17  ;;  %9806 = vmatmul.msk.bf16.gmra.mxu3 %vm816_vm1, %v6594_v49 }
 0x4ba   : > { %7056 = vst.msk [vmem:[#allocation3 + $0x160] sm:$0xff] %vm816_vm1, %v6992_v50  ;;  %v5861_v31 = vpop.f32.mrf.mxu2  ;;  %v7622_v48 = vpop.f32.mrf.mxu0 }
 0x4bb   : > { %v7710_v12 = vld [vmem:[#allocation3 + $0x158] sm:$0xff]  ;;  %v5149_v32 = vpop.f32.mrf.mxu1 }
 0x4bc   : > { %v7774_v40 = vadd.f32 %v7710_v12, %v13224_v25  ;;  %v5303_v55 = vadd.f32 %v5239_v19, %v5149_v32  ;;  %v6839_v16 = vpop.f32.mrf.mxu3  ;;  %9982 = vmatmul.msk.bf16.gmra.mxu0 %vm816_vm1, %v7377_v53  ;;  %v7901_v29 = vld [vmem:[#allocation3 + $0x150] sm:$0xff] }
 0x4bd   : > { %v5952_v9 = vld [vmem:[#allocation3 + $0x170] sm:$0xff]  ;;  %v7969_v32 = vadd.f32 %v13139_v15, %v7901_v29 }
 0x4be   : > { %7838 = vst.msk [vmem:[#allocation3 + $0x158] sm:$0xff] %vm816_vm1, %v7774_v40  ;;  %v6016_v39 = vadd.f32 %v5952_v9, %v5861_v31  ;;  %v5243_v31 = vld [vmem:[#allocation3 + $0x198] sm:$0xff] }
 0x4bf   : > { %5367 = vst.msk [vmem:[#allocation3 + $0x178] sm:$0xff] %vm816_vm1, %v5303_v55 }
 0x4c0   : > { %v6929_v2 = vld [vmem:[#allocation3 + $0x168] sm:$0xff]  ;;  %6080 = vst.msk [vmem:[#allocation3 + $0x170] sm:$0xff] %vm816_vm1, %v6016_v39 }
 0x4c1   : > { %v6993_v42 = vadd.f32 %v6929_v2, %v6836_v3  ;;  %v7711_v25 = vld [vmem:[#allocation3 + $0x160] sm:$0xff] }
 0x4c2   : > { %v7775_v26 = vadd.f32 %v7711_v25, %v13243_v51  ;;  %v5863_v34 = vpop.f32.mrf.mxu2  ;;  %v7624_v18 = vpop.f32.mrf.mxu0 }
 0x4c3   : > { %7057 = vst.msk [vmem:[#allocation3 + $0x168] sm:$0xff] %vm816_vm1, %v6993_v42  ;;  %v5152_v38 = vpop.f32.mrf.mxu1 }
 0x4c4   : > { %7839 = vst.msk [vmem:[#allocation3 + $0x160] sm:$0xff] %vm816_vm1, %v7775_v26  ;;  %v5304_v35 = vadd.f32 %v5240_v47, %v5152_v38  ;;  %v6841_v58 = vpop.f32.mrf.mxu3 }
 0x4c5   : > { %v7902_v25 = vld [vmem:[#allocation3 + $0x158] sm:$0xff] }
 0x4c6   : > { %v5953_v54 = vld [vmem:[#allocation3 + $0x178] sm:$0xff]  ;;  %5368 = vst.msk [vmem:[#allocation3 + $0x180] sm:$0xff] %vm816_vm1, %v5304_v35  ;;  %v5244_v35 = vld [vmem:[#allocation3 + $0x1a0] sm:$0xff] }
 0x4c7   : > { %v6930_v33 = vld [vmem:[#allocation3 + $0x170] sm:$0xff]  ;;  %v6017_v24 = vadd.f32 %v5953_v54, %v5863_v34 }
 0x4c8   : > { %v6994_v61 = vadd.f32 %v6930_v33, %v6839_v16 }
 0x4c9   : > { %6081 = vst.msk [vmem:[#allocation3 + $0x178] sm:$0xff] %vm816_vm1, %v6017_v24  ;;  %v7970_v24 = vadd.f32 %v13139_v15, %v7902_v25 }
 0x4ca   : > { %7058 = vst.msk [vmem:[#allocation3 + $0x170] sm:$0xff] %vm816_vm1, %v6994_v61  ;;  %v7712_v11 = vld [vmem:[#allocation3 + $0x168] sm:$0xff]  ;;  %v5866_v51 = vpop.f32.mrf.mxu2  ;;  %v13298_v0 = vpop.f32.mrf.mxu0 }
 0x4cb   : > { %v7903_v8 = vld [vmem:[#allocation3 + $0x160] sm:$0xff]  ;;  %v7776_v41 = vadd.f32 %v7712_v11, %v7619_v45  ;;  %v5154_v56 = vpop.f32.mrf.mxu1 }
 0x4cc   : > { %v7971_v52 = vadd.f32 %v13139_v15, %v7903_v8  ;;  %v5305_v4 = vadd.f32 %v5241_v13, %v5154_v56  ;;  %v6844_v20 = vpop.f32.mrf.mxu3 }
 0x4cd   : > { %7840 = vst.msk [vmem:[#allocation3 + $0x168] sm:$0xff] %vm816_vm1, %v7776_v41  ;;  %v5954_v59 = vld [vmem:[#allocation3 + $0x180] sm:$0xff] }
 0x4ce   : > { %v8013_v7 = vpack.c.bf16 %v7971_v52, %v7971_v52  ;;  %v8075_v63 = vmax.f32 %v13252_v60, %v7971_v52  ;;  %v6018_v62 = vadd.f32 %v5954_v59, %v5866_v51  ;;  %5369 = vst.msk [vmem:[#allocation3 + $0x188] sm:$0xff] %vm816_vm1, %v5305_v4 }
 0x4d0   : > { %8045 = vst.msk [vmem:[%s12265_s17 + $0x58] sm:$0xf] %vm431_vm0, %v8013_v7  ;;  %v6931_v14 = vld [vmem:[#allocation3 + $0x178] sm:$0xff] }
 0x4d1   : > { %8107 = vst.msk [vmem:[#allocation3 + $0xa0] sm:$0xff] %vm816_vm1, %v8075_v63  ;;  %v6995_v10 = vadd.f32 %v6931_v14, %v6841_v58  ;;  %v7713_v21 = vld [vmem:[#allocation3 + $0x170] sm:$0xff]  ;;  %v5245_v63 = vld [vmem:[#allocation3 + $0x1a8] sm:$0xff] }
 0x4d2   : > { %6082 = vst.msk [vmem:[#allocation3 + $0x180] sm:$0xff] %vm816_vm1, %v6018_v62  ;;  %v7777_v5 = vadd.f32 %v7713_v21, %v7622_v48  ;;  %v5868_v43 = vpop.f32.mrf.mxu2  ;;  %v7629_v37 = vpop.f32.mrf.mxu0 }
 0x4d3   : > { %7059 = vst.msk [vmem:[#allocation3 + $0x178] sm:$0xff] %vm816_vm1, %v6995_v10  ;;  %v5157_v36 = vpop.f32.mrf.mxu1 }
 0x4d4   : > { %v7904_v60 = vld [vmem:[#allocation3 + $0x168] sm:$0xff]  ;;  %7841 = vst.msk [vmem:[#allocation3 + $0x170] sm:$0xff] %vm816_vm1, %v7777_v5  ;;  %v5306_v44 = vadd.f32 %v5242_v23, %v5157_v36  ;;  %v6846_v30 = vpop.f32.mrf.mxu3 }
 0x4d5   : > { %v7972_v22 = vadd.f32 %v13139_v15, %v7904_v60  ;;  %v5955_v28 = vld [vmem:[#allocation3 + $0x188] sm:$0xff] }
 0x4d6   : > { %v6019_v6 = vadd.f32 %v5955_v28, %v5868_v43  ;;  %5370 = vst.msk [vmem:[#allocation3 + $0x190] sm:$0xff] %vm816_vm1, %v5306_v44 }
 0x4d7   : > { %v8014_v3 = vpack.c.bf16 %v7972_v22, %v7972_v22  ;;  %v8076_v45 = vmax.f32 %v13267_v27, %v7972_v22 }
 0x4d8   : > { %6083 = vst.msk [vmem:[#allocation3 + $0x188] sm:$0xff] %vm816_vm1, %v6019_v6 }
 0x4d9   : > { %8046 = vst.msk [vmem:[%s12265_s17 + $0x5c] sm:$0xf] %vm431_vm0, %v8014_v3  ;;  %v6932_v1 = vld [vmem:[#allocation3 + $0x180] sm:$0xff]  ;;  %v5246_v3 = vld [vmem:[#allocation3 + $0x1b0] sm:$0xff] }
 0x4da   : > { %8108 = vst.msk [vmem:[#allocation3 + $0xa8] sm:$0xff] %vm816_vm1, %v8076_v45  ;;  %v6996_v17 = vadd.f32 %v6932_v1, %v6844_v20  ;;  %v7714_v46 = vld [vmem:[#allocation3 + $0x178] sm:$0xff]  ;;  %v5871_v57 = vpop.f32.mrf.mxu2  ;;  %v7632_v9 = vpop.f32.mrf.mxu0 }
 0x4db   : > { %v7905_v49 = vld [vmem:[#allocation3 + $0x170] sm:$0xff]  ;;  %v7778_v50 = vadd.f32 %v7714_v46, %v7624_v18  ;;  %v5159_v12 = vpop.f32.mrf.mxu1 }
 0x4dc   : > { %v7973_v19 = vadd.f32 %v13139_v15, %v7905_v49  ;;  %7060 = vst.msk [vmem:[#allocation3 + $0x180] sm:$0xff] %vm816_vm1, %v6996_v17  ;;  %v5307_v27 = vadd.f32 %v5243_v31, %v5159_v12  ;;  %v6849_v55 = vpop.f32.mrf.mxu3 }
 0x4dd   : > { %7842 = vst.msk [vmem:[#allocation3 + $0x178] sm:$0xff] %vm816_vm1, %v7778_v50  ;;  %v5956_v40 = vld [vmem:[#allocation3 + $0x190] sm:$0xff] }
 0x4de   : > { %v8077_v16 = vmax.f32 %v7969_v32, %v7973_v19  ;;  %v6020_v48 = vadd.f32 %v5956_v40, %v5871_v57  ;;  %5371 = vst.msk [vmem:[#allocation3 + $0x198] sm:$0xff] %vm816_vm1, %v5307_v27  ;;  %v5247_v40 = vld [vmem:[#allocation3 + $0x1b8] sm:$0xff] }
 0x4df   : > { %v6933_v53 = vld [vmem:[#allocation3 + $0x188] sm:$0xff] }
 0x4e0   : > { %8109 = vst.msk [vmem:[#allocation3 + $0xb0] sm:$0xff] %vm816_vm1, %v8077_v16  ;;  %v6997_v39 = vadd.f32 %v6933_v53, %v6846_v30 }
 0x4e1   : > { %6084 = vst.msk [vmem:[#allocation3 + $0x190] sm:$0xff] %vm816_vm1, %v6020_v48  ;;  %v8129_v2 = vld [vmem:[#allocation3 + $0xa0] ss:$2 sm:$0xff]  ;;  %v8145_v42 = vld [vmem:[#allocation3 + $0xa1] ss:$2 sm:$0xff] }
 0x4e2   : > { %7061 = vst.msk [vmem:[#allocation3 + $0x188] sm:$0xff] %vm816_vm1, %v6997_v39  ;;  %v8155_v26 = vmax.f32 %v8129_v2, %v8145_v42  ;;  %v5873_v38 = vpop.f32.mrf.mxu2  ;;  %v7634_v41 = vpop.f32.mrf.mxu0 }
 0x4e3   : > { %v7715_v34 = vld [vmem:[#allocation3 + $0x180] sm:$0xff]  ;;  %v5162_v47 = vpop.f32.mrf.mxu1 }
 0x4e4   : > { %v7906_v58 = vld [vmem:[#allocation3 + $0x178] sm:$0xff]  ;;  %v7779_v18 = vadd.f32 %v7715_v34, %v13298_v0  ;;  %v5308_v54 = vadd.f32 %v5244_v35, %v5162_v47  ;;  %v8163_v33 = vmax.f32 %v8155_v26, 0.0  ;;  %v6851_v8 = vpop.f32.mrf.mxu3 }
 0x4e5   : > { %v7974_v61 = vadd.f32 %v13139_v15, %v7906_v58  ;;  %v5957_v11 = vld [vmem:[#allocation3 + $0x198] sm:$0xff] }
 0x4e6   : > { %7843 = vst.msk [vmem:[#allocation3 + $0x180] sm:$0xff] %vm816_vm1, %v7779_v18  ;;  %v6021_v51 = vadd.f32 %v5957_v11, %v5873_v38  ;;  %v8171_v56 = vpack.c.bf16 %v8163_v33, %v8163_v33  ;;  %v5248_v38 = vld [vmem:[#allocation3 + $0x1c0] sm:$0xff] }
 0x4e7   : > { %v8078_v13 = vmax.f32 %v7970_v24, %v7974_v61  ;;  %5372 = vst.msk [vmem:[#allocation3 + $0x1a0] sm:$0xff] %vm816_vm1, %v5308_v54 }
 0x4e8   : > { %v6934_v52 = vld [vmem:[#allocation3 + $0x190] sm:$0xff]  ;;  %6085 = vst.msk [vmem:[#allocation3 + $0x198] sm:$0xff] %vm816_vm1, %v6021_v51  ;;  %v5249_v51 = vld [vmem:[#allocation3 + $0x1c8] sm:$0xff] }
 0x4e9   : > { %8110 = vst.msk [vmem:[#allocation3 + $0xb8] sm:$0xff] %vm816_vm1, %v8078_v13  ;;  %v6998_v4 = vadd.f32 %v6934_v52, %v6849_v55  ;;  %v7716_v59 = vld [vmem:[#allocation3 + $0x188] sm:$0xff] }
 0x4ea   : > { %v7780_v20 = vadd.f32 %v7716_v59, %v7629_v37  ;;  %8179 = vst.msk [vmem:[%s12439_s29 + $0x14] sm:$0xf] %vm431_vm0, %v8171_v56  ;;  %v5876_v0 = vpop.f32.mrf.mxu2  ;;  %v7637_v21 = vpop.f32.mrf.mxu0 }
 0x4eb   : > { %7062 = vst.msk [vmem:[#allocation3 + $0x190] sm:$0xff] %vm816_vm1, %v6998_v4  ;;  %v5164_v7 = vpop.f32.mrf.mxu1 }
 0x4ec   : > { %7844 = vst.msk [vmem:[#allocation3 + $0x188] sm:$0xff] %vm816_vm1, %v7780_v20  ;;  %v5309_v62 = vadd.f32 %v5245_v63, %v5164_v7  ;;  %v6854_v10 = vpop.f32.mrf.mxu3 }
 0x4ed   : > { %v7907_v14 = vld [vmem:[#allocation3 + $0x180] sm:$0xff] }
 0x4ee   : > { %v13335_v5 = vadd.f32 %v13139_v15, %v7907_v14  ;;  %v5958_v43 = vld [vmem:[#allocation3 + $0x1a0] sm:$0xff]  ;;  %5373 = vst.msk [vmem:[#allocation3 + $0x1a8] sm:$0xff] %vm816_vm1, %v5309_v62 }
 0x4ef   : > { %v6935_v36 = vld [vmem:[#allocation3 + $0x198] sm:$0xff]  ;;  %v6022_v23 = vadd.f32 %v5958_v43, %v5876_v0 }
 0x4f0   : > { %v8015_v60 = vpack.c.bf16 %v13335_v5, %v13335_v5  ;;  %v6999_v44 = vadd.f32 %v6935_v36, %v6851_v8 }
 0x4f1   : > { %6086 = vst.msk [vmem:[#allocation3 + $0x1a0] sm:$0xff] %vm816_vm1, %v6022_v23  ;;  %v5250_v23 = vld [vmem:[#allocation3 + $0x1d0] sm:$0xff] }
 0x4f2   : > { %8047 = vst.msk [vmem:[%s12265_s17 + $0x60] sm:$0xf] %vm431_vm0, %v8015_v60  ;;  %v7717_v22 = vld [vmem:[#allocation3 + $0x190] sm:$0xff]  ;;  %v5878_v37 = vpop.f32.mrf.mxu2  ;;  %v7639_v46 = vpop.f32.mrf.mxu0 }
 0x4f3   : > { %v7908_v28 = vld [vmem:[#allocation3 + $0x188] sm:$0xff]  ;;  %7063 = vst.msk [vmem:[#allocation3 + $0x198] sm:$0xff] %vm816_vm1, %v6999_v44  ;;  %v7781_v30 = vadd.f32 %v7717_v22, %v7632_v9  ;;  %v5167_v6 = vpop.f32.mrf.mxu1 }
 0x4f4   : > { %v13345_v45 = vadd.f32 %v13139_v15, %v7908_v28  ;;  %v5310_v29 = vadd.f32 %v5246_v3, %v5167_v6  ;;  %v6856_v17 = vpop.f32.mrf.mxu3 }
 0x4f5   : > { %7845 = vst.msk [vmem:[#allocation3 + $0x190] sm:$0xff] %vm816_vm1, %v7781_v30  ;;  %v5959_v1 = vld [vmem:[#allocation3 + $0x1a8] sm:$0xff] }
 0x4f6   : > { %v8016_v49 = vpack.c.bf16 %v13345_v45, %v13345_v45  ;;  %v6023_v50 = vadd.f32 %v5959_v1, %v5878_v37  ;;  %5374 = vst.msk [vmem:[#allocation3 + $0x1b0] sm:$0xff] %vm816_vm1, %v5310_v29 }
 0x4f8   : > { %8048 = vst.msk [vmem:[%s12265_s17 + $0x64] sm:$0xf] %vm431_vm0, %v8016_v49  ;;  %v6936_v57 = vld [vmem:[#allocation3 + $0x1a0] sm:$0xff] }
 0x4f9   : > { %v7000_v12 = vadd.f32 %v6936_v57, %v6854_v10  ;;  %6087 = vst.msk [vmem:[#allocation3 + $0x1a8] sm:$0xff] %vm816_vm1, %v6023_v50 }
 0x4fa   : > { %v7718_v31 = vld [vmem:[#allocation3 + $0x198] sm:$0xff]  ;;  %v5881_v19 = vpop.f32.mrf.mxu2  ;;  %v7642_v53 = vpop.f32.mrf.mxu0 }
 0x4fb   : > { %7064 = vst.msk [vmem:[#allocation3 + $0x1a0] sm:$0xff] %vm816_vm1, %v7000_v12  ;;  %v7782_v32 = vadd.f32 %v7718_v31, %v7634_v41  ;;  %v5169_v27 = vpop.f32.mrf.mxu1  ;;  %v5251_v12 = vld [vmem:[#allocation3 + $0x1d8] sm:$0xff] }
 0x4fc   : > { %v5311_v55 = vadd.f32 %v5247_v40, %v5169_v27  ;;  %v6859_v16 = vpop.f32.mrf.mxu3  ;;  %v7909_v1 = vld [vmem:[#allocation3 + $0x190] sm:$0xff] }
 0x4fd   : > { %7846 = vst.msk [vmem:[#allocation3 + $0x198] sm:$0xff] %vm816_vm1, %v7782_v32  ;;  %v5960_v9 = vld [vmem:[#allocation3 + $0x1b0] sm:$0xff]  ;;  %v7977_v31 = vadd.f32 %v13139_v15, %v7909_v1 }
 0x4fe   : > { %v6024_v48 = vadd.f32 %v5960_v9, %v5881_v19  ;;  %5375 = vst.msk [vmem:[#allocation3 + $0x1b8] sm:$0xff] %vm816_vm1, %v5311_v55 }
 0x500   : > { %v6937_v39 = vld [vmem:[#allocation3 + $0x1a8] sm:$0xff]  ;;  %6088 = vst.msk [vmem:[#allocation3 + $0x1b0] sm:$0xff] %vm816_vm1, %v6024_v48 }
 0x501   : > { %v7001_v2 = vadd.f32 %v6937_v39, %v6856_v17 }
 0x502   : > { %v7719_v42 = vld [vmem:[#allocation3 + $0x1a0] sm:$0xff]  ;;  %v5883_v26 = vpop.f32.mrf.mxu2  ;;  %v7644_v24 = vpop.f32.mrf.mxu0 }
 0x503   : > { %7065 = vst.msk [vmem:[#allocation3 + $0x1a8] sm:$0xff] %vm816_vm1, %v7001_v2  ;;  %v7783_v25 = vadd.f32 %v7719_v42, %v7637_v21  ;;  %v5172_v34 = vpop.f32.mrf.mxu1 }
 0x504   : > { %v5312_v47 = vadd.f32 %v5248_v38, %v5172_v34  ;;  %v6861_v58 = vpop.f32.mrf.mxu3  ;;  %v7910_v2 = vld [vmem:[#allocation3 + $0x198] sm:$0xff] }
 0x505   : > { %7847 = vst.msk [vmem:[#allocation3 + $0x1a0] sm:$0xff] %vm816_vm1, %v7783_v25  ;;  %v5961_v35 = vld [vmem:[#allocation3 + $0x1b8] sm:$0xff] }
 0x506   : > { %v6025_v18 = vadd.f32 %v5961_v35, %v5883_v26  ;;  %5376 = vst.msk [vmem:[#allocation3 + $0x1c0] sm:$0xff] %vm816_vm1, %v5312_v47  ;;  %v5252_v47 = vld [vmem:[#allocation3 + $0x1e0] sm:$0xff] }
 0x507   : > { %v6938_v54 = vld [vmem:[#allocation3 + $0x1b0] sm:$0xff] }
 0x508   : > { %v7002_v33 = vadd.f32 %v6938_v54, %v6859_v16  ;;  %6089 = vst.msk [vmem:[#allocation3 + $0x1b8] sm:$0xff] %vm816_vm1, %v6025_v18  ;;  %v7978_v54 = vadd.f32 %v13139_v15, %v7910_v2 }
 0x50a   : > { %7066 = vst.msk [vmem:[#allocation3 + $0x1b0] sm:$0xff] %vm816_vm1, %v7002_v33  ;;  %v7720_v61 = vld [vmem:[#allocation3 + $0x1a8] sm:$0xff]  ;;  %v5886_v8 = vpop.f32.mrf.mxu2  ;;  %v7647_v21 = vpop.f32.mrf.mxu0 }
 0x50b   : > { %v7784_v11 = vadd.f32 %v7720_v61, %v7639_v46  ;;  %v5174_v41 = vpop.f32.mrf.mxu1 }
 0x50c   : > { %v7911_v56 = vld [vmem:[#allocation3 + $0x1a0] sm:$0xff]  ;;  %v5313_v13 = vadd.f32 %v5249_v51, %v5174_v41  ;;  %v6864_v59 = vpop.f32.mrf.mxu3 }
 0x50d   : > { %v7979_v52 = vadd.f32 %v13139_v15, %v7911_v56  ;;  %7848 = vst.msk [vmem:[#allocation3 + $0x1a8] sm:$0xff] %vm816_vm1, %v7784_v11  ;;  %v5962_v4 = vld [vmem:[#allocation3 + $0x1c0] sm:$0xff] }
 0x50e   : > { %v6026_v20 = vadd.f32 %v5962_v4, %v5886_v8  ;;  %5377 = vst.msk [vmem:[#allocation3 + $0x1c8] sm:$0xff] %vm816_vm1, %v5313_v13 }
 0x50f   : > { %v8017_v0 = vpack.c.bf16 %v7979_v52, %v7979_v52  ;;  %v8079_v7 = vmax.f32 %v13335_v5, %v7979_v52  ;;  %v6939_v63 = vld [vmem:[#allocation3 + $0x1b8] sm:$0xff] }
 0x510   : > { %v7003_v62 = vadd.f32 %v6939_v63, %v6861_v58  ;;  %6090 = vst.msk [vmem:[#allocation3 + $0x1c0] sm:$0xff] %vm816_vm1, %v6026_v20 }
 0x511   : > { %8049 = vst.msk [vmem:[%s12265_s17 + $0x68] sm:$0xf] %vm431_vm0, %v8017_v0  ;;  %v7721_v14 = vld [vmem:[#allocation3 + $0x1b0] sm:$0xff]  ;;  %v5253_v0 = vld [vmem:[#allocation3 + $0x1e8] sm:$0xff] }
 0x512   : > { %8111 = vst.msk [vmem:[#allocation3 + $0xc0] sm:$0xff] %vm816_vm1, %v8079_v7  ;;  %v7785_v10 = vadd.f32 %v7721_v14, %v7642_v53  ;;  %v5888_v43 = vpop.f32.mrf.mxu2  ;;  %v7649_v19 = vpop.f32.mrf.mxu0 }
 0x513   : > { %7067 = vst.msk [vmem:[#allocation3 + $0x1b8] sm:$0xff] %vm816_vm1, %v7003_v62  ;;  %v5177_v36 = vpop.f32.mrf.mxu1 }
 0x514   : > { %v7912_v60 = vld [vmem:[#allocation3 + $0x1a8] sm:$0xff]  ;;  %7849 = vst.msk [vmem:[#allocation3 + $0x1b0] sm:$0xff] %vm816_vm1, %v7785_v10  ;;  %v5314_v5 = vadd.f32 %v5250_v23, %v5177_v36  ;;  %v6866_v28 = vpop.f32.mrf.mxu3 }
 0x515   : > { %v7980_v44 = vadd.f32 %v13139_v15, %v7912_v60  ;;  %v5963_v22 = vld [vmem:[#allocation3 + $0x1c8] sm:$0xff] }
 0x516   : > { %v6027_v30 = vadd.f32 %v5963_v22, %v5888_v43  ;;  %5378 = vst.msk [vmem:[#allocation3 + $0x1d0] sm:$0xff] %vm816_vm1, %v5314_v5 }
 0x517   : > { %v8018_v37 = vpack.c.bf16 %v7980_v44, %v7980_v44  ;;  %v8080_v6 = vmax.f32 %v13345_v45, %v7980_v44  ;;  %v6940_v3 = vld [vmem:[#allocation3 + $0x1c0] sm:$0xff] }
 0x518   : > { %v7004_v29 = vadd.f32 %v6940_v3, %v6864_v59  ;;  %6091 = vst.msk [vmem:[#allocation3 + $0x1c8] sm:$0xff] %vm816_vm1, %v6027_v30 }
 0x519   : > { %8050 = vst.msk [vmem:[%s12265_s17 + $0x6c] sm:$0xf] %vm431_vm0, %v8018_v37  ;;  %v5254_v37 = vld [vmem:[#allocation3 + $0x1f0] sm:$0xff] }
 0x51a   : > { %8112 = vst.msk [vmem:[#allocation3 + $0xc8] sm:$0xff] %vm816_vm1, %v8080_v6  ;;  %v7722_v17 = vld [vmem:[#allocation3 + $0x1b8] sm:$0xff]  ;;  %v5891_v50 = vpop.f32.mrf.mxu2  ;;  %v7652_v8 = vpop.f32.mrf.mxu0 }
 0x51b   : > { %v7913_v46 = vld [vmem:[#allocation3 + $0x1b0] sm:$0xff]  ;;  %7068 = vst.msk [vmem:[#allocation3 + $0x1c0] sm:$0xff] %vm816_vm1, %v7004_v29  ;;  %v7786_v49 = vadd.f32 %v7722_v17, %v7644_v24  ;;  %v5179_v57 = vpop.f32.mrf.mxu1 }
 0x51c   : > { %v7981_v45 = vadd.f32 %v13139_v15, %v7913_v46  ;;  %v5315_v32 = vadd.f32 %v5251_v12, %v5179_v57  ;;  %v6869_v40 = vpop.f32.mrf.mxu3 }
 0x51d   : > { %7850 = vst.msk [vmem:[#allocation3 + $0x1b8] sm:$0xff] %vm816_vm1, %v7786_v49  ;;  %v5964_v27 = vld [vmem:[#allocation3 + $0x1d0] sm:$0xff] }
 0x51e   : > { %v8081_v55 = vmax.f32 %v7977_v31, %v7981_v45  ;;  %v6028_v9 = vadd.f32 %v5964_v27, %v5891_v50  ;;  %5379 = vst.msk [vmem:[#allocation3 + $0x1d8] sm:$0xff] %vm816_vm1, %v5315_v32  ;;  %v5255_v32 = vld [vmem:[#allocation3 + $0x1f8] sm:$0xff] }
 0x51f   : > { %v6941_v16 = vld [vmem:[#allocation3 + $0x1c8] sm:$0xff] }
 0x520   : > { %8113 = vst.msk [vmem:[#allocation3 + $0xd0] sm:$0xff] %vm816_vm1, %v8081_v55  ;;  %v7005_v48 = vadd.f32 %v6941_v16, %v6866_v28 }
 0x521   : > { %6092 = vst.msk [vmem:[#allocation3 + $0x1d0] sm:$0xff] %vm816_vm1, %v6028_v9  ;;  %v8131_v53 = vld [vmem:[#allocation3 + $0xc0] ss:$2 sm:$0xff]  ;;  %v8147_v39 = vld [vmem:[#allocation3 + $0xc1] ss:$2 sm:$0xff] }
 0x522   : > { %7069 = vst.msk [vmem:[#allocation3 + $0x1c8] sm:$0xff] %vm816_vm1, %v7005_v48  ;;  %v7723_v42 = vld [vmem:[#allocation3 + $0x1c0] sm:$0xff]  ;;  %v8156_v25 = vmax.f32 %v8131_v53, %v8147_v39  ;;  %v5893_v34 = vpop.f32.mrf.mxu2  ;;  %v7654_v60 = vpop.f32.mrf.mxu0 }
 0x523   : > { %v7787_v26 = vadd.f32 %v7723_v42, %v7647_v21  ;;  %v5182_v38 = vpop.f32.mrf.mxu1 }
 0x524   : > { %v7914_v35 = vld [vmem:[#allocation3 + $0x1b8] sm:$0xff]  ;;  %v5316_v58 = vadd.f32 %v5252_v47, %v5182_v38  ;;  %v8164_v18 = vmax.f32 %v8156_v25, 0.0  ;;  %v6871_v11 = vpop.f32.mrf.mxu3 }
 0x525   : > { %v7982_v33 = vadd.f32 %v13139_v15, %v7914_v35  ;;  %7851 = vst.msk [vmem:[#allocation3 + $0x1c0] sm:$0xff] %vm816_vm1, %v7787_v26  ;;  %v5965_v24 = vld [vmem:[#allocation3 + $0x1d8] sm:$0xff] }
 0x526   : > { %v6029_v61 = vadd.f32 %v5965_v24, %v5893_v34  ;;  %5380 = vst.msk [vmem:[#allocation3 + $0x1e0] sm:$0xff] %vm816_vm1, %v5316_v58  ;;  %v8172_v41 = vpack.c.bf16 %v8164_v18, %v8164_v18  ;;  %v10420_v58 = vld [vmem:[%s13512_s3] ss:$0 sm:$0xff] }
 0x527   : > { %v8082_v51 = vmax.f32 %v7978_v54, %v7982_v33 }
 0x528   : > { %v6942_v56 = vld [vmem:[#allocation3 + $0x1d0] sm:$0xff]  ;;  %6093 = vst.msk [vmem:[#allocation3 + $0x1d8] sm:$0xff] %vm816_vm1, %v6029_v61 }
 0x529   : > { %8114 = vst.msk [vmem:[#allocation3 + $0xd8] sm:$0xff] %vm816_vm1, %v8082_v51  ;;  %v7006_v13 = vadd.f32 %v6942_v56, %v6869_v40  ;;  %v7724_v52 = vld [vmem:[#allocation3 + $0x1c8] sm:$0xff] }
 0x52a   : > { %v7788_v4 = vadd.f32 %v7724_v52, %v7649_v19  ;;  %8180 = vst.msk [vmem:[%s12439_s29 + $0x18] sm:$0xf] %vm431_vm0, %v8172_v41  ;;  %v5896_v59 = vpop.f32.mrf.mxu2  ;;  %v7657_v12 = vpop.f32.mrf.mxu0 }
 0x52b   : > { %7070 = vst.msk [vmem:[#allocation3 + $0x1d0] sm:$0xff] %vm816_vm1, %v7006_v13  ;;  %v5184_v20 = vpop.f32.mrf.mxu1 }
 0x52c   : > { %v7915_v7 = vld [vmem:[#allocation3 + $0x1c0] sm:$0xff]  ;;  %7852 = vst.msk [vmem:[#allocation3 + $0x1c8] sm:$0xff] %vm816_vm1, %v7788_v4  ;;  %v5317_v63 = vadd.f32 %v5253_v0, %v5184_v20  ;;  %v6874_v23 = vpop.f32.mrf.mxu3 }
 0x52d   : > { %v13399_v62 = vadd.f32 %v13139_v15, %v7915_v7  ;;  %v5966_v14 = vld [vmem:[#allocation3 + $0x1e0] sm:$0xff] }
 0x52e   : > { %v6030_v10 = vadd.f32 %v5966_v14, %v5896_v59  ;;  %5381 = vst.msk [vmem:[#allocation3 + $0x1e8] sm:$0xff] %vm816_vm1, %v5317_v63 }
 0x52f   : > { %v8019_v21 = vpack.c.bf16 %v13399_v62, %v13399_v62  ;;  %v6943_v43 = vld [vmem:[#allocation3 + $0x1d8] sm:$0xff] }
 0x530   : > { %v7007_v36 = vadd.f32 %v6943_v43, %v6871_v11  ;;  %6094 = vst.msk [vmem:[#allocation3 + $0x1e0] sm:$0xff] %vm816_vm1, %v6030_v10 }
 0x531   : > { %8051 = vst.msk [vmem:[%s12265_s17 + $0x70] sm:$0xf] %vm431_vm0, %v8019_v21 }
 0x532   : > { %7071 = vst.msk [vmem:[#allocation3 + $0x1d8] sm:$0xff] %vm816_vm1, %v7007_v36  ;;  %v7725_v5 = vld [vmem:[#allocation3 + $0x1d0] sm:$0xff]  ;;  %v5898_v28 = vpop.f32.mrf.mxu2  ;;  %v7659_v53 = vpop.f32.mrf.mxu0 }
 0x533   : > { %v7916_v44 = vld [vmem:[#allocation3 + $0x1c8] sm:$0xff]  ;;  %v7789_v22 = vadd.f32 %v7725_v5, %v7652_v8  ;;  %v5187_v30 = vpop.f32.mrf.mxu1 }
 0x534   : > { %v13409_v6 = vadd.f32 %v13139_v15, %v7916_v44  ;;  %v5318_v3 = vadd.f32 %v5254_v37, %v5187_v30  ;;  %v6876_v57 = vpop.f32.mrf.mxu3 }
 0x535   : > { %7853 = vst.msk [vmem:[#allocation3 + $0x1d0] sm:$0xff] %vm816_vm1, %v7789_v22  ;;  %v5967_v29 = vld [vmem:[#allocation3 + $0x1e8] sm:$0xff] }
 0x536   : > { %v8020_v1 = vpack.c.bf16 %v13409_v6, %v13409_v6  ;;  %v6031_v17 = vadd.f32 %v5967_v29, %v5898_v28  ;;  %5382 = vst.msk [vmem:[#allocation3 + $0x1f0] sm:$0xff] %vm816_vm1, %v5318_v3 }
 0x537   : > { %v6944_v46 = vld [vmem:[#allocation3 + $0x1e0] sm:$0xff] }
 0x538   : > { %8052 = vst.msk [vmem:[%s12265_s17 + $0x74] sm:$0xf] %vm431_vm0, %v8020_v1  ;;  %v7008_v49 = vadd.f32 %v6944_v46, %v6874_v23 }
 0x539   : > { %6095 = vst.msk [vmem:[#allocation3 + $0x1e8] sm:$0xff] %vm816_vm1, %v6031_v17  ;;  %v7726_v50 = vld [vmem:[#allocation3 + $0x1d8] sm:$0xff] }
 0x53a   : > { %7072 = vst.msk [vmem:[#allocation3 + $0x1e0] sm:$0xff] %vm816_vm1, %v7008_v49  ;;  %v7790_v15 = vadd.f32 %v7726_v50, %v7654_v60  ;;  %v5901_v31 = vpop.f32.mrf.mxu2  ;;  %v7662_v11 = vpop.f32.mrf.mxu0 }
 0x53b   : > { %v5189_v45 = vpop.f32.mrf.mxu1 }
 0x53c   : > { %7854 = vst.msk [vmem:[#allocation3 + $0x1d8] sm:$0xff] %vm816_vm1, %v7790_v15  ;;  %v5319_v19 = vadd.f32 %v5255_v32, %v5189_v45  ;;  %v6879_v39 = vpop.f32.mrf.mxu3  ;;  %v7917_v59 = vld [vmem:[#allocation3 + $0x1d0] sm:$0xff] }
 0x53d   : > { %v5968_v27 = vld [vmem:[#allocation3 + $0x1f0] sm:$0xff] }
 0x53e   : > { %v6032_v40 = vadd.f32 %v5968_v27, %v5901_v31  ;;  %5383 = vst.msk [vmem:[#allocation3 + $0x1f8] sm:$0xff] %vm816_vm1, %v5319_v19 }
 0x540   : > { %v6945_v55 = vld [vmem:[#allocation3 + $0x1e8] sm:$0xff]  ;;  %6096 = vst.msk [vmem:[#allocation3 + $0x1f0] sm:$0xff] %vm816_vm1, %v6032_v40 }
 0x541   : > { %v7009_v9 = vadd.f32 %v6945_v55, %v6876_v57  ;;  %v7727_v16 = vld [vmem:[#allocation3 + $0x1e0] sm:$0xff] }
 0x542   : > { %v7791_v48 = vadd.f32 %v7727_v16, %v7657_v12  ;;  %v5903_v2 = vpop.f32.mrf.mxu2  ;;  %v7664_v20 = vpop.f32.mrf.mxu0 }
 0x543   : > { %7073 = vst.msk [vmem:[#allocation3 + $0x1e8] sm:$0xff] %vm816_vm1, %v7009_v9 }
 0x544   : > { %7855 = vst.msk [vmem:[#allocation3 + $0x1e0] sm:$0xff] %vm816_vm1, %v7791_v48  ;;  %v6881_v24 = vpop.f32.mrf.mxu3 }
 0x545   : > { %v5969_v42 = vld [vmem:[#allocation3 + $0x1f8] sm:$0xff] }
 0x546   : > { %v6033_v25 = vadd.f32 %v5969_v42, %v5903_v2 }
 0x547   : > { %v6946_v26 = vld [vmem:[#allocation3 + $0x1f0] sm:$0xff] }
 0x548   : > { %v7010_v34 = vadd.f32 %v6946_v26, %v6879_v39  ;;  %6097 = vst.msk [vmem:[#allocation3 + $0x1f8] sm:$0xff] %vm816_vm1, %v6033_v25 }
 0x54a   : > { %7074 = vst.msk [vmem:[#allocation3 + $0x1f0] sm:$0xff] %vm816_vm1, %v7010_v34  ;;  %v7728_v38 = vld [vmem:[#allocation3 + $0x1e8] sm:$0xff] }
 0x54b   : > { %v7919_v47 = vld [vmem:[#allocation3 + $0x1e0] sm:$0xff]  ;;  %v7792_v35 = vadd.f32 %v7728_v38, %v7659_v53 }
 0x54c   : > { %v7987_v18 = vadd.f32 %v10420_v58, %v7919_v47 }
 0x54d   : > { %7856 = vst.msk [vmem:[#allocation3 + $0x1e8] sm:$0xff] %vm816_vm1, %v7792_v35 }
 0x54e   : > { %v8021_v54 = vpack.c.bf16 %v7987_v18, %v7987_v18  ;;  %v8083_v33 = vmax.f32 %v13399_v62, %v7987_v18 }
 0x54f   : > { %v6947_v61 = vld [vmem:[#allocation3 + $0x1f8] sm:$0xff] }
 0x550   : > { %8053 = vst.msk [vmem:[%s12265_s17 + $0x78] sm:$0xf] %vm431_vm0, %v8021_v54  ;;  %v7011_v8 = vadd.f32 %v6947_v61, %v6881_v24 }
 0x551   : > { %8115 = vst.msk [vmem:[#allocation3 + $0xe0] sm:$0xff] %vm816_vm1, %v8083_v33  ;;  %v7729_v41 = vld [vmem:[#allocation3 + $0x1f0] sm:$0xff] }
 0x552   : > { %7075 = vst.msk [vmem:[#allocation3 + $0x1f8] sm:$0xff] %vm816_vm1, %v7011_v8  ;;  %v7793_v51 = vadd.f32 %v7729_v41, %v7662_v11 }
 0x554   : > { %v7920_v56 = vld [vmem:[#allocation3 + $0x1e8] sm:$0xff]  ;;  %7857 = vst.msk [vmem:[#allocation3 + $0x1f0] sm:$0xff] %vm816_vm1, %v7793_v51 }
 0x555   : > { %v7988_v13 = vadd.f32 %v10420_v58, %v7920_v56 }
 0x557   : > { %v8022_v52 = vpack.c.bf16 %v7988_v13, %v7988_v13  ;;  %v8084_v4 = vmax.f32 %v13409_v6, %v7988_v13 }
 0x559   : > { %8054 = vst.msk [vmem:[%s12265_s17 + $0x7c] sm:$0xf] %vm431_vm0, %v8022_v52  ;;  %v7730_v0 = vld [vmem:[#allocation3 + $0x1f8] sm:$0xff] }
 0x55a   : > { %8116 = vst.msk [vmem:[#allocation3 + $0xe8] sm:$0xff] %vm816_vm1, %v8084_v4  ;;  %v7794_v7 = vadd.f32 %v7730_v0, %v7664_v20 }
 0x55b   : > { %10538 = shalt.err (!%p10535_p0)
}
 0x55c   : > { %s10638_s17 = smov 64   ;;  %s10639_s12 = smov 4   ;;  %v7921_v63 = vld [vmem:[#allocation3 + $0x1f0] sm:$0xff]  ;;  %v7985_v62 = vadd.f32 %v10420_v58, %v7917_v59  ;;  %7858 = vst.msk [vmem:[#allocation3 + $0x1f8] sm:$0xff] %vm816_vm1, %v7794_v7  ;;  %v7918_v21 = vld [vmem:[#allocation3 + $0x1d8] sm:$0xff] }
 0x55d   : > { %10338 = dma.vmem_to_hbm [thread:$0]  (%p10744_p5), %s13441_s20, 2048, %s8206_s0, %s8183_s6, %s10638_s17, %s10638_s17, %s10639_s12   ;;  %v7989_v14 = vadd.f32 %v10420_v58, %v7921_v63  ;;  %v7986_v5 = vadd.f32 %v10420_v58, %v7918_v21 }
 0x55e   : > { %s10316_s16 = sshll.u32 %s10625_s21, 5  ;;  %s8222_s9 = sshll.u32 %s12439_s29, 4  ;;  %s8223_s9 = int_to_ptr.vmem [resolvable:$true] %s8222_s9 }
 0x55f   : > { %v8085_v10 = vmax.f32 %v7985_v62, %v7989_v14  ;;  %s8221_s8 = scalar_lea.hbm %s13514_s5, %s10316_s16  ;;  %s8188_s21 = scalar_lea.sflag [#allocation12], %s10780_s2 }
 0x560   : > { %s8224_s22 = sshll.u32 %s8221_s8, 4  ;;  %s10559_s11 = scalar_lea.hbm %s13514_s5, 64  ;;  %s8225_s22 = int_to_ptr.hbm [resolvable:$true] %s8224_s22 }
 0x561   : > { %8117 = vst.msk [vmem:[#allocation3 + $0xf0] sm:$0xff] %vm816_vm1, %v8085_v10  ;;  %v8133_v43 = vld [vmem:[#allocation3 + $0xe0] ss:$2 sm:$0xff]  ;;  %v8149_v36 = vld [vmem:[#allocation3 + $0xe1] ss:$2 sm:$0xff]  ;;  %s10553_s10 = sshra.s32 %s8225_s22, 4  ;;  %s10554_s10 = int_to_ptr.hbm [resolvable:$true] %s10553_s10 }
 0x562   : > { %v8157_v23 = vmax.f32 %v8133_v43, %v8149_v36  ;;  %s10555_s20 = scalar_lea.hbm %s10554_s10, 32  ;;  %p10560_p10 = scmp.lt.s32.totalorder %s10554_s10, %s13514_s5 }
 0x563   : > { %v7922_v60 = vld [vmem:[#allocation3 + $0x1f8] sm:$0xff]  ;;  %p10556_p3 = scmp.ne.s32.totalorder %s10554_s10, %s10555_s20  ;;  %p10561_p1 = scmp.lt.s32.totalorder %s10559_s11, %s10555_s20 }
 0x564   : > { %v7990_v44 = vadd.f32 %v10420_v58, %v7922_v60  ;;  %v8165_v22 = vmax.f32 %v8157_v23, 0.0 }
 0x565   : > { %p10557_p7 = pnand %p10556_p3, %p10744_p5  ;;  %p10562_p2 = por %p10561_p1, %p10560_p10 }
 0x566   : > { %v8086_v28 = vmax.f32 %v7986_v5, %v7990_v44  ;;  %v8173_v30 = vpack.c.bf16 %v8165_v22, %v8165_v22 }
 0x567   : > { %p10558_p9 = pneg %p10557_p7 }
 0x568   : > { %8118 = vst.msk [vmem:[#allocation3 + $0xf8] sm:$0xff] %vm816_vm1, %v8086_v28 }
 0x569   : > { %8181 = vst.msk [vmem:[%s12439_s29 + $0x1c] sm:$0xf] %vm431_vm0, %v8173_v30  ;;  %p10563_p4 = pnand %p10562_p2, %p10558_p9 }
 0x56b   : > { %10566 = shalt.err (!%p10563_p4)
}
 0x56c   : > { %10339 = dma.vmem_to_hbm [thread:$0]  (%p10744_p5), %s8223_s9, 512, %s8225_s22, %s8188_s21, %s10638_s17, %s10638_s17, %s10639_s12  }
 0x56d PF: > { %s8239_s2 = sand.u32 1, %s10613_s18   ;;  %p10354_p8 = pnand %p8388_p11, %p10715_p6 }
 0x56e   : > { %s8240_s29 = scalar_lea.sflag [#allocation6], %s8239_s2 }
 0x56f   : > { %p10355_p12 = pneg %p10354_p8 }
 0x571   : > { %10604 = dma.done.wait (%p10355_p12), %s8240_s29, 2048  }
 0x572   : > { %10606 = vsyncadd (%p10355_p12), %s8240_s29, 4294965248  ;;  %s8250_s26 = scalar_lea.sflag [#allocation12], %s8239_s2 }
 0x573   : > { %10608 = dma.done.wait (%p10355_p12), %s8250_s26, 512  }
 0x574   : > { %10610 = vsyncadd (%p10355_p12), %s8250_s26, 4294966784  ;;  %s28_s23 = sadd.s32 1, %s10633_s23   ;;  %s13537_s13 = sld [smem:[#allocation18_spill]] }
 0x575   : > { %p25_p13 = scmp.ge.s32.totalorder %s28_s23, 4   ;;  %s13538_s20 = sld [smem:[#allocation21_spill]] }
 0x576   : > { %s13539_s21 = sld [smem:[#allocation19_spill]]  ;;  %s13541_s18 = smov %s10617_s19 }
 0x577   : > { %s13540_s22 = sld [smem:[#allocation20_spill]]  ;;  %27 = sbr.rel (!%p25_p13) target bundleno = 13 (0xd), region = 138 }
 0x57a   : > { %s13542_s19 = smov %s13537_s13 }
 0x57c   :  { %8256 = vsyncpa [#allocation5], 1 }
 0x57d   :  { %8258 = vsyncpa [#allocation5 + $0x1], 1 }
 0x57e   :  { %8259 = vsyncpa [#allocation8], 1 }
 0x57f   :  { %8261 = vsyncpa [#allocation8 + $0x1], 1 }
 0x580   :  { %8262 = vsyncpa [#allocation6], 1 }
 0x581   :  { %8264 = vsyncpa [#allocation6 + $0x1], 1 }
 0x582   :  { %8265 = vsyncpa [#allocation12], 1 }
 0x583   :  { %8267 = vsyncpa [#allocation12 + $0x1], 1 }

</bundles_post_ra>
